<compile_context>
chip_gen: v7x
topology: tpu7x:2x2x1
jax: 0.10.0
libtpu: 0.0.40
codegen_flags: <defaults>
</compile_context>

<pallas_src>
import jax
import jax.numpy as jnp
from jax import lax
from jax.experimental import pallas as pl
from jax.experimental.pallas import tpu as pltpu

EPS = 0.8  # BatchNorm2d(in_features, 0.8) -> eps = 0.8 (positional arg)
_VMEM_LIMIT = 48 * 1024 * 1024  # safe on v7x (64 MiB); v6e could raise to ~96 MiB


# ----------------------------- kernel helpers ------------------------------


def _zero_border(pad_ref):
    """Zero only the 1-pixel border of the (H+2, W+2, C) padded tile."""
    Hp, Wp, C = pad_ref.shape
    z_row = jnp.zeros((1, Wp, C), pad_ref.dtype)
    pad_ref[0:1, :, :] = z_row
    pad_ref[Hp - 1:Hp, :, :] = z_row
    z_col = jnp.zeros((Hp, 1, C), pad_ref.dtype)
    pad_ref[:, 0:1, :] = z_col
    pad_ref[:, Wp - 1:Wp, :] = z_col


def _conv3x3(pad_ref, col_ref, w_ref, b_ref):
    """3x3 'same' conv from a zero-bordered (H+2, W+2, C) bf16 VMEM tile.

    Assembles the (H, W, 9C) im2col scratch with nine pure 3-D window copies
    (no reshape of the windowed slice), collapses the contiguous buffer to
    (H*W, 9C) only at matmul time (minor dim untouched), then runs one bf16
    MXU matmul against the (9C, C) weight slab with f32 accumulation.
    Returns the (H*W, C) float32 conv output with bias added.
    """
    Hp, Wp, C = pad_ref.shape
    H, W = Hp - 2, Wp - 2
    for ky in range(3):
        for kx in range(3):
            t = ky * 3 + kx
            col_ref[:, :, t * C:(t + 1) * C] = pad_ref[ky:ky + H, kx:kx + W, :]
    col = col_ref[...].reshape(H * W, 9 * C)          # contiguous collapse
    y = jnp.dot(col, w_ref[...], preferred_element_type=jnp.float32)
    return y + b_ref[...]                             # (H*W, C) f32


# -------------------------------- kernels -----------------------------------


def conv1_stats_kernel(x_ref, w_ref, b_ref, y_ref, s_ref, ss_ref,
                       pad_ref, col_ref):
    """Conv1 (+bias) for one image; emits bf16 pre-BN output + BN1 partials.

    Input / output stay channel-major (C, H*W): the channel-minor compute
    layout is reached with a 2-D transpose on the otherwise-idle XLU, and the
    output store is lane-dense (H*W lanes).
    """
    Hp, Wp, C = pad_ref.shape
    H, W = Hp - 2, Wp - 2
    _zero_border(pad_ref)
    x_hwc = x_ref[0].T.reshape(H, W, C)                # (C,HW) -> (HW,C) -> (H,W,C)
    pad_ref[1:H + 1, 1:W + 1, :] = x_hwc.astype(pad_ref.dtype)
    y = _conv3x3(pad_ref, col_ref, w_ref, b_ref)       # (H*W, C) f32
    # Streaming BatchNorm statistics: per-image channel sum / sum of squares.
    s_ref[0] = jnp.sum(y, axis=0, keepdims=True)
    ss_ref[0] = jnp.sum(y * y, axis=0, keepdims=True)
    y_ref[0] = y.T.astype(y_ref.dtype)                 # (C, H*W) bf16, lane-dense


def bn1_prelu_conv2_stats_kernel(y1_ref, sc_ref, sh_ref, alpha_ref,
                                 w_ref, b_ref, y_ref, s_ref, ss_ref,
                                 pad_ref, col_ref):
    """BN1 (affine form) + PReLU + Conv2 (+bias); emits BN2 partial stats."""
    Hp, Wp, C = pad_ref.shape
    H, W = Hp - 2, Wp - 2
    _zero_border(pad_ref)
    # BN1 with global statistics, channel-major: (C, HW) * (C, 1) + (C, 1).
    h = y1_ref[0].astype(jnp.float32) * sc_ref[...] + sh_ref[...]
    alpha = alpha_ref[0, 0]                            # scalar from SMEM
    h = jnp.where(h >= 0.0, h, alpha * h)              # PReLU (shared alpha)
    # Zero-pad AFTER the pointwise ops (matches Conv2d(padding=1) semantics).
    h_hwc = h.T.reshape(H, W, C)
    pad_ref[1:H + 1, 1:W + 1, :] = h_hwc.astype(pad_ref.dtype)
    y = _conv3x3(pad_ref, col_ref, w_ref, b_ref)       # (H*W, C) f32
    s_ref[0] = jnp.sum(y, axis=0, keepdims=True)
    ss_ref[0] = jnp.sum(y * y, axis=0, keepdims=True)
    y_ref[0] = y.T.astype(y_ref.dtype)                 # (C, H*W) bf16


def bn2_residual_kernel(x_ref, y2_ref, sc_ref, sh_ref, o_ref):
    """out = x + BN2(y2) on channel-major (C, H*W) lane-dense blocks."""
    o_ref[0] = (x_ref[0]
                + y2_ref[0].astype(jnp.float32) * sc_ref[...] + sh_ref[...])


# -------------------------------- wrapper ------------------------------------


def _finalize_bn(s, ss, gamma, beta, count):
    """Per-image partials (N,1,C) -> BN scale/shift of shape (C, 1)."""
    mean = jnp.sum(s, axis=(0, 1)) / count                   # (C,)
    var = jnp.sum(ss, axis=(0, 1)) / count - mean * mean     # biased variance
    var = jnp.maximum(var, 0.0)
    scale = gamma * lax.rsqrt(var + EPS)                     # (C,)
    shift = beta - mean * scale                              # (C,)
    return scale.reshape(-1, 1), shift.reshape(-1, 1)        # (C, 1) each


def residual_block_forward(x_nchw, params):
    """x_nchw: (N, C, H, W) float32 -> (N, C, H, W) float32."""
    N, C, H, W = x_nchw.shape
    HW = H * W
    count = float(N * HW)
    x = x_nchw.reshape(N, C, HW).astype(jnp.float32)   # free channel-major flat view

    # HWIO weights -> (9*C, C) bf16 im2col slabs; row index = (ky*3+kx)*C + cin.
    w1 = params["w1"].reshape(9 * C, C).astype(jnp.bfloat16)
    w2 = params["w2"].reshape(9 * C, C).astype(jnp.bfloat16)

    cparams = pltpu.CompilerParams(
        dimension_semantics=("parallel",), vmem_limit_bytes=_VMEM_LIMIT)

    def conv_scratch():
        return [pltpu.VMEM((H + 2, W + 2, C), jnp.bfloat16),   # padded tile
                pltpu.VMEM((H, W, 9 * C), jnp.bfloat16)]       # im2col tile

    img_spec = pl.BlockSpec((1, C, HW), lambda i: (i, 0, 0))
    stat_spec = pl.BlockSpec((1, 1, C), lambda i: (i, 0, 0))
    wslab_spec = pl.BlockSpec((9 * C, C), lambda i: (0, 0))
    bias_spec = pl.BlockSpec((1, C), lambda i: (0, 0))
    chan_spec = pl.BlockSpec((C, 1), lambda i: (0, 0))
    smem_spec = pl.BlockSpec(memory_space=pltpu.MemorySpace.SMEM)

    # ---- Stage 1: Conv1 (+bias) and BN1 partial statistics -----------------
    y1, s1, ss1 = pl.pallas_call(
        conv1_stats_kernel,
        grid=(N,),
        in_specs=[img_spec, wslab_spec, bias_spec],
        out_specs=(img_spec, stat_spec, stat_spec),
        out_shape=(jax.ShapeDtypeStruct((N, C, HW), jnp.bfloat16),
                   jax.ShapeDtypeStruct((N, 1, C), jnp.float32),
                   jax.ShapeDtypeStruct((N, 1, C), jnp.float32)),
        scratch_shapes=conv_scratch(),
        compiler_params=cparams,
    )(x, w1, params["b1"])

    scale1, shift1 = _finalize_bn(s1, ss1, params["g1"], params["be1"], count)

    # ---- Stage 2: BN1 + PReLU + Conv2 (+bias) and BN2 partial statistics ---
    y2, s2, ss2 = pl.pallas_call(
        bn1_prelu_conv2_stats_kernel,
        grid=(N,),
        in_specs=[img_spec, chan_spec, chan_spec, smem_spec,
                  wslab_spec, bias_spec],
        out_specs=(img_spec, stat_spec, stat_spec),
        out_shape=(jax.ShapeDtypeStruct((N, C, HW), jnp.bfloat16),
                   jax.ShapeDtypeStruct((N, 1, C), jnp.float32),
                   jax.ShapeDtypeStruct((N, 1, C), jnp.float32)),
        scratch_shapes=conv_scratch(),
        compiler_params=cparams,
    )(y1, scale1, shift1, params["alpha"], w2, params["b2"])

    scale2, shift2 = _finalize_bn(s2, ss2, params["g2"], params["be2"], count)

    # ---- Stage 3: BN2 + residual add, output aliased onto x ----------------
    out_flat = pl.pallas_call(
        bn2_residual_kernel,
        grid=(N,),
        in_specs=[img_spec, img_spec, chan_spec, chan_spec],
        out_specs=pl.BlockSpec((1, C, HW), lambda i: (i, 0, 0)),
        out_shape=jax.ShapeDtypeStruct((N, C, HW), jnp.float32),
        input_output_aliases={0: 0},   # in-place over x when the caller donates it
        compiler_params=cparams,
    )(x, y2, scale2, shift2)

    return out_flat.reshape(N, C, H, W)                 # free reshape, already NCHW


# ------------------------- pure-JAX reference --------------------------------


def _ref_forward(x_nchw, params):
    x = jnp.transpose(x_nchw, (0, 2, 3, 1))

    def conv(h, w, b):
        o = lax.conv_general_dilated(
            h, w, window_strides=(1, 1), padding="SAME",
            dimension_numbers=("NHWC", "HWIO", "NHWC"))
        return o + b.reshape(1, 1, 1, -1)

    def bn(h, g, be):
        m = jnp.mean(h, axis=(0, 1, 2), keepdims=True)
        v = jnp.mean((h - m) ** 2, axis=(0, 1, 2), keepdims=True)
        return (h - m) * lax.rsqrt(v + EPS) * g.reshape(1, 1, 1, -1) \
            + be.reshape(1, 1, 1, -1)

    h = conv(x, params["w1"], params["b1"])
    h = bn(h, params["g1"], params["be1"])
    a = params["alpha"][0, 0]
    h = jnp.where(h >= 0, h, a * h)
    h = conv(h, params["w2"], params["b2"])
    h = bn(h, params["g2"], params["be2"])
    return jnp.transpose(x + h, (0, 3, 1, 2))


# --------------------------------- main ---------------------------------------


def _init_params(key, C):
    k = jax.random.split(key, 4)
    bound = 1.0 / jnp.sqrt(9 * C)  # PyTorch-style uniform bound
    return {
        "w1": jax.random.uniform(k[0], (3, 3, C, C), jnp.float32, -bound, bound),
        "b1": jax.random.uniform(k[1], (1, C), jnp.float32, -bound, bound),
        "g1": jnp.ones((C,), jnp.float32),
        "be1": jnp.zeros((C,), jnp.float32),
        "alpha": jnp.full((1, 1), 0.25, jnp.float32),
        "w2": jax.random.uniform(k[2], (3, 3, C, C), jnp.float32, -bound, bound),
        "b2": jax.random.uniform(k[3], (1, C), jnp.float32, -bound, bound),
        "g2": jnp.ones((C,), jnp.float32),
        "be2": jnp.zeros((C,), jnp.float32),
    }


if __name__ == "__main__":
    N, C, H, W = 2, 8, 16, 16
    key = jax.random.PRNGKey(0)
    kx_, kp = jax.random.split(key)
    x = jax.random.normal(kx_, (N, C, H, W), jnp.float32)
    params = _init_params(kp, C)

    fwd = jax.jit(residual_block_forward)
    out = jax.block_until_ready(fwd(x, params))

    ref = jax.block_until_ready(_ref_forward(x, params))
    assert out.shape == (N, C, H, W)
    err = float(jnp.max(jnp.abs(out - ref)))
    # bf16 matmul operands + bf16 y1/y2 intermediates -> bf16-level tolerance
    # against the pure-f32 reference.
    assert jnp.allclose(out, ref, rtol=5e-2, atol=5e-2), f"max abs err {err}"

    print("KERNEL_OK")
</pallas_src>

<mosaic_0001>
module attributes {stable_mosaic.version = 11 : i64} {
  func.func @conv1_stats_kernel(%arg0: i32, %arg1: memref<1x8x256xf32, #tpu.memory_space<vmem>>, %arg2: memref<72x8xbf16, #tpu.memory_space<vmem>>, %arg3: memref<1x8xf32, #tpu.memory_space<vmem>>, %arg4: memref<1x8x256xbf16, #tpu.memory_space<vmem>>, %arg5: memref<1x1x8xf32, #tpu.memory_space<vmem>>, %arg6: memref<1x1x8xf32, #tpu.memory_space<vmem>>, %arg7: memref<18x18x8xbf16, #tpu.memory_space<vmem>>, %arg8: memref<16x16x72xbf16, #tpu.memory_space<vmem>>) attributes {dimension_semantics = [#tpu.dimension_semantics<parallel>], iteration_bounds = array<i64: 2>, scalar_prefetch = 0 : i64, scratch_operands = 2 : i64, tpu.core_type = #tpu.core_type<tc>, window_params = [{transform_indices = @transform_0, window_bounds = array<i64: 1, 8, 256>}, {pipeline_mode = #tpu.pipeline_mode<synchronous>, transform_indices = @transform_1, window_bounds = array<i64: 72, 8>}, {pipeline_mode = #tpu.pipeline_mode<synchronous>, transform_indices = @transform_2, window_bounds = array<i64: 1, 8>}, {transform_indices = @transform_3, window_bounds = array<i64: 1, 8, 256>}, {transform_indices = @transform_4, window_bounds = array<i64: 1, 1, 8>}, {transform_indices = @transform_5, window_bounds = array<i64: 1, 1, 8>}]} {
    %cst = arith.constant 0.000000e+00 : bf16
    %0 = vector.broadcast %cst : bf16 to vector<1x18x8xbf16>
    %c0 = arith.constant 0 : index
    %c0_0 = arith.constant 0 : index
    %c0_1 = arith.constant 0 : index
    %1 = vector.load %arg7[%c0, %c0_0, %c0_1] : memref<18x18x8xbf16, #tpu.memory_space<vmem>>, vector<1x18x8xbf16>
    tpu.vector_store %arg7[%c0, %c0_0, %c0_1], %0 {strides = array<i32>} : memref<18x18x8xbf16, #tpu.memory_space<vmem>>, vector<1x18x8xbf16>,
    %c17 = arith.constant 17 : index
    %c0_2 = arith.constant 0 : index
    %c0_3 = arith.constant 0 : index
    %2 = vector.load %arg7[%c17, %c0_2, %c0_3] : memref<18x18x8xbf16, #tpu.memory_space<vmem>>, vector<1x18x8xbf16>
    tpu.vector_store %arg7[%c17, %c0_2, %c0_3], %0 {strides = array<i32>} : memref<18x18x8xbf16, #tpu.memory_space<vmem>>, vector<1x18x8xbf16>,
    %cst_4 = arith.constant 0.000000e+00 : bf16
    %3 = vector.broadcast %cst_4 : bf16 to vector<18x1x8xbf16>
    %c0_5 = arith.constant 0 : index
    %c0_6 = arith.constant 0 : index
    %c0_7 = arith.constant 0 : index
    %4 = vector.load %arg7[%c0_5, %c0_6, %c0_7] : memref<18x18x8xbf16, #tpu.memory_space<vmem>>, vector<18x1x8xbf16>
    tpu.vector_store %arg7[%c0_5, %c0_6, %c0_7], %3 {strides = array<i32>} : memref<18x18x8xbf16, #tpu.memory_space<vmem>>, vector<18x1x8xbf16>,
    %c0_8 = arith.constant 0 : index
    %c17_9 = arith.constant 17 : index
    %c0_10 = arith.constant 0 : index
    %5 = vector.load %arg7[%c0_8, %c17_9, %c0_10] : memref<18x18x8xbf16, #tpu.memory_space<vmem>>, vector<18x1x8xbf16>
    tpu.vector_store %arg7[%c0_8, %c17_9, %c0_10], %3 {strides = array<i32>} : memref<18x18x8xbf16, #tpu.memory_space<vmem>>, vector<18x1x8xbf16>,
    %c0_11 = arith.constant 0 : index
    %c0_12 = arith.constant 0 : index
    %c0_13 = arith.constant 0 : index
    %6 = vector.load %arg1[%c0_11, %c0_12, %c0_13] : memref<1x8x256xf32, #tpu.memory_space<vmem>>, vector<1x8x256xf32>
    %7 = vector.shape_cast %6 : vector<1x8x256xf32> to vector<8x256xf32>
    %8 = tpu.transpose %7, [1, 0] : vector<8x256xf32> -> vector<256x8xf32>
    %9 = vector.shape_cast %8 : vector<256x8xf32> to vector<16x16x8xf32>
    %10 = arith.truncf %9 : vector<16x16x8xf32> to vector<16x16x8xbf16>
    %c1 = arith.constant 1 : index
    %c1_14 = arith.constant 1 : index
    %c0_15 = arith.constant 0 : index
    %11 = vector.load %arg7[%c1, %c1_14, %c0_15] : memref<18x18x8xbf16, #tpu.memory_space<vmem>>, vector<16x16x8xbf16>
    tpu.vector_store %arg7[%c1, %c1_14, %c0_15], %10 {strides = array<i32>} : memref<18x18x8xbf16, #tpu.memory_space<vmem>>, vector<16x16x8xbf16>,
    %c0_16 = arith.constant 0 : index
    %c0_17 = arith.constant 0 : index
    %c0_18 = arith.constant 0 : index
    %12 = vector.load %arg7[%c0_16, %c0_17, %c0_18] : memref<18x18x8xbf16, #tpu.memory_space<vmem>>, vector<16x16x8xbf16>
    %c0_19 = arith.constant 0 : index
    %c0_20 = arith.constant 0 : index
    %c0_21 = arith.constant 0 : index
    %13 = vector.load %arg8[%c0_19, %c0_20, %c0_21] : memref<16x16x72xbf16, #tpu.memory_space<vmem>>, vector<16x16x8xbf16>
    tpu.vector_store %arg8[%c0_19, %c0_20, %c0_21], %12 {strides = array<i32>} : memref<16x16x72xbf16, #tpu.memory_space<vmem>>, vector<16x16x8xbf16>,
    %c0_22 = arith.constant 0 : index
    %c1_23 = arith.constant 1 : index
    %c0_24 = arith.constant 0 : index
    %14 = vector.load %arg7[%c0_22, %c1_23, %c0_24] : memref<18x18x8xbf16, #tpu.memory_space<vmem>>, vector<16x16x8xbf16>
    %c0_25 = arith.constant 0 : index
    %c0_26 = arith.constant 0 : index
    %c8 = arith.constant 8 : index
    %15 = vector.load %arg8[%c0_25, %c0_26, %c8] : memref<16x16x72xbf16, #tpu.memory_space<vmem>>, vector<16x16x8xbf16>
    tpu.vector_store %arg8[%c0_25, %c0_26, %c8], %14 {strides = array<i32>} : memref<16x16x72xbf16, #tpu.memory_space<vmem>>, vector<16x16x8xbf16>,
    %c0_27 = arith.constant 0 : index
    %c2 = arith.constant 2 : index
    %c0_28 = arith.constant 0 : index
    %16 = vector.load %arg7[%c0_27, %c2, %c0_28] : memref<18x18x8xbf16, #tpu.memory_space<vmem>>, vector<16x16x8xbf16>
    %c0_29 = arith.constant 0 : index
    %c0_30 = arith.constant 0 : index
    %c16 = arith.constant 16 : index
    %17 = vector.load %arg8[%c0_29, %c0_30, %c16] : memref<16x16x72xbf16, #tpu.memory_space<vmem>>, vector<16x16x8xbf16>
    tpu.vector_store %arg8[%c0_29, %c0_30, %c16], %16 {strides = array<i32>} : memref<16x16x72xbf16, #tpu.memory_space<vmem>>, vector<16x16x8xbf16>,
    %c1_31 = arith.constant 1 : index
    %c0_32 = arith.constant 0 : index
    %c0_33 = arith.constant 0 : index
    %18 = vector.load %arg7[%c1_31, %c0_32, %c0_33] : memref<18x18x8xbf16, #tpu.memory_space<vmem>>, vector<16x16x8xbf16>
    %c0_34 = arith.constant 0 : index
    %c0_35 = arith.constant 0 : index
    %c24 = arith.constant 24 : index
    %19 = vector.load %arg8[%c0_34, %c0_35, %c24] : memref<16x16x72xbf16, #tpu.memory_space<vmem>>, vector<16x16x8xbf16>
    tpu.vector_store %arg8[%c0_34, %c0_35, %c24], %18 {strides = array<i32>} : memref<16x16x72xbf16, #tpu.memory_space<vmem>>, vector<16x16x8xbf16>,
    %c1_36 = arith.constant 1 : index
    %c1_37 = arith.constant 1 : index
    %c0_38 = arith.constant 0 : index
    %20 = vector.load %arg7[%c1_36, %c1_37, %c0_38] : memref<18x18x8xbf16, #tpu.memory_space<vmem>>, vector<16x16x8xbf16>
    %c0_39 = arith.constant 0 : index
    %c0_40 = arith.constant 0 : index
    %c32 = arith.constant 32 : index
    %21 = vector.load %arg8[%c0_39, %c0_40, %c32] : memref<16x16x72xbf16, #tpu.memory_space<vmem>>, vector<16x16x8xbf16>
    tpu.vector_store %arg8[%c0_39, %c0_40, %c32], %20 {strides = array<i32>} : memref<16x16x72xbf16, #tpu.memory_space<vmem>>, vector<16x16x8xbf16>,
    %c1_41 = arith.constant 1 : index
    %c2_42 = arith.constant 2 : index
    %c0_43 = arith.constant 0 : index
    %22 = vector.load %arg7[%c1_41, %c2_42, %c0_43] : memref<18x18x8xbf16, #tpu.memory_space<vmem>>, vector<16x16x8xbf16>
    %c0_44 = arith.constant 0 : index
    %c0_45 = arith.constant 0 : index
    %c40 = arith.constant 40 : index
    %23 = vector.load %arg8[%c0_44, %c0_45, %c40] : memref<16x16x72xbf16, #tpu.memory_space<vmem>>, vector<16x16x8xbf16>
    tpu.vector_store %arg8[%c0_44, %c0_45, %c40], %22 {strides = array<i32>} : memref<16x16x72xbf16, #tpu.memory_space<vmem>>, vector<16x16x8xbf16>,
    %c2_46 = arith.constant 2 : index
    %c0_47 = arith.constant 0 : index
    %c0_48 = arith.constant 0 : index
    %24 = vector.load %arg7[%c2_46, %c0_47, %c0_48] : memref<18x18x8xbf16, #tpu.memory_space<vmem>>, vector<16x16x8xbf16>
    %c0_49 = arith.constant 0 : index
    %c0_50 = arith.constant 0 : index
    %c48 = arith.constant 48 : index
    %25 = vector.load %arg8[%c0_49, %c0_50, %c48] : memref<16x16x72xbf16, #tpu.memory_space<vmem>>, vector<16x16x8xbf16>
    tpu.vector_store %arg8[%c0_49, %c0_50, %c48], %24 {strides = array<i32>} : memref<16x16x72xbf16, #tpu.memory_space<vmem>>, vector<16x16x8xbf16>,
    %c2_51 = arith.constant 2 : index
    %c1_52 = arith.constant 1 : index
    %c0_53 = arith.constant 0 : index
    %26 = vector.load %arg7[%c2_51, %c1_52, %c0_53] : memref<18x18x8xbf16, #tpu.memory_space<vmem>>, vector<16x16x8xbf16>
    %c0_54 = arith.constant 0 : index
    %c0_55 = arith.constant 0 : index
    %c56 = arith.constant 56 : index
    %27 = vector.load %arg8[%c0_54, %c0_55, %c56] : memref<16x16x72xbf16, #tpu.memory_space<vmem>>, vector<16x16x8xbf16>
    tpu.vector_store %arg8[%c0_54, %c0_55, %c56], %26 {strides = array<i32>} : memref<16x16x72xbf16, #tpu.memory_space<vmem>>, vector<16x16x8xbf16>,
    %c2_56 = arith.constant 2 : index
    %c2_57 = arith.constant 2 : index
    %c0_58 = arith.constant 0 : index
    %28 = vector.load %arg7[%c2_56, %c2_57, %c0_58] : memref<18x18x8xbf16, #tpu.memory_space<vmem>>, vector<16x16x8xbf16>
    %c0_59 = arith.constant 0 : index
    %c0_60 = arith.constant 0 : index
    %c64 = arith.constant 64 : index
    %29 = vector.load %arg8[%c0_59, %c0_60, %c64] : memref<16x16x72xbf16, #tpu.memory_space<vmem>>, vector<16x16x8xbf16>
    tpu.vector_store %arg8[%c0_59, %c0_60, %c64], %28 {strides = array<i32>} : memref<16x16x72xbf16, #tpu.memory_space<vmem>>, vector<16x16x8xbf16>,
    %c0_61 = arith.constant 0 : index
    %c0_62 = arith.constant 0 : index
    %c0_63 = arith.constant 0 : index
    %30 = vector.load %arg8[%c0_61, %c0_62, %c0_63] : memref<16x16x72xbf16, #tpu.memory_space<vmem>>, vector<16x16x72xbf16>
    %31 = vector.shape_cast %30 : vector<16x16x72xbf16> to vector<256x72xbf16>
    %c0_64 = arith.constant 0 : index
    %c0_65 = arith.constant 0 : index
    %32 = vector.load %arg2[%c0_64, %c0_65] : memref<72x8xbf16, #tpu.memory_space<vmem>>, vector<72x8xbf16>
    %cst_66 = arith.constant dense<0.000000e+00> : vector<256x8xf32>
    %33 = tpu.matmul %31, %32, %cst_66 {dimension_numbers = #tpu.dot_dimension_numbers<[1], [0], [0], [1], [0, 0, 1, 1], [], []>} : vector<256x72xbf16>, vector<72x8xbf16>, vector<256x8xf32> -> vector<256x8xf32>
    %c0_67 = arith.constant 0 : index
    %c0_68 = arith.constant 0 : index
    %34 = vector.load %arg3[%c0_67, %c0_68] : memref<1x8xf32, #tpu.memory_space<vmem>>, vector<1x8xf32>
    %35 = vector.broadcast %34 : vector<1x8xf32> to vector<256x8xf32>
    %36 = arith.addf %33, %35 : vector<256x8xf32>
    %cst_69 = arith.constant dense<0.000000e+00> : vector<8xf32>
    %37 = vector.multi_reduction <add>, %36, %cst_69 [0] : vector<256x8xf32> to vector<8xf32>
    %38 = vector.shape_cast %37 : vector<8xf32> to vector<1x8xf32>
    %c0_70 = arith.constant 0 : index
    %c0_71 = arith.constant 0 : index
    %c0_72 = arith.constant 0 : index
    %39 = vector.load %arg5[%c0_70, %c0_71, %c0_72] : memref<1x1x8xf32, #tpu.memory_space<vmem>>, vector<1x1x8xf32>
    %40 = vector.shape_cast %39 : vector<1x1x8xf32> to vector<1x8xf32>
    %41 = vector.shape_cast %38 : vector<1x8xf32> to vector<1x1x8xf32>
    tpu.vector_store %arg5[%c0_70, %c0_71, %c0_72], %41 {strides = array<i32>} : memref<1x1x8xf32, #tpu.memory_space<vmem>>, vector<1x1x8xf32>,
    %42 = arith.mulf %36, %36 : vector<256x8xf32>
    %cst_73 = arith.constant dense<0.000000e+00> : vector<8xf32>
    %43 = vector.multi_reduction <add>, %42, %cst_73 [0] : vector<256x8xf32> to vector<8xf32>
    %44 = vector.shape_cast %43 : vector<8xf32> to vector<1x8xf32>
    %c0_74 = arith.constant 0 : index
    %c0_75 = arith.constant 0 : index
    %c0_76 = arith.constant 0 : index
    %45 = vector.load %arg6[%c0_74, %c0_75, %c0_76] : memref<1x1x8xf32, #tpu.memory_space<vmem>>, vector<1x1x8xf32>
    %46 = vector.shape_cast %45 : vector<1x1x8xf32> to vector<1x8xf32>
    %47 = vector.shape_cast %44 : vector<1x8xf32> to vector<1x1x8xf32>
    tpu.vector_store %arg6[%c0_74, %c0_75, %c0_76], %47 {strides = array<i32>} : memref<1x1x8xf32, #tpu.memory_space<vmem>>, vector<1x1x8xf32>,
    %48 = tpu.transpose %36, [1, 0] : vector<256x8xf32> -> vector<8x256xf32>
    %49 = arith.truncf %48 : vector<8x256xf32> to vector<8x256xbf16>
    %c0_77 = arith.constant 0 : index
    %c0_78 = arith.constant 0 : index
    %c0_79 = arith.constant 0 : index
    %50 = vector.load %arg4[%c0_77, %c0_78, %c0_79] : memref<1x8x256xbf16, #tpu.memory_space<vmem>>, vector<1x8x256xbf16>
    %51 = vector.shape_cast %50 : vector<1x8x256xbf16> to vector<8x256xbf16>
    %52 = vector.shape_cast %49 : vector<8x256xbf16> to vector<1x8x256xbf16>
    tpu.vector_store %arg4[%c0_77, %c0_78, %c0_79], %52 {strides = array<i32>} : memref<1x8x256xbf16, #tpu.memory_space<vmem>>, vector<1x8x256xbf16>,
    return
  }
  func.func @transform_0(%arg0: i32) -> (i32, i32, i32) {
    %c0_i32 = arith.constant 0 : i32
    %c0_i32_0 = arith.constant 0 : i32
    %c0_i32_1 = arith.constant 0 : i32
    return %arg0, %c0_i32, %c0_i32_0 : i32, i32, i32
  }
  func.func @transform_1(%arg0: i32) -> (i32, i32) {
    %c0_i32 = arith.constant 0 : i32
    %c0_i32_0 = arith.constant 0 : i32
    %c0_i32_1 = arith.constant 0 : i32
    return %c0_i32, %c0_i32_0 : i32, i32
  }
  func.func @transform_2(%arg0: i32) -> (i32, i32) {
    %c0_i32 = arith.constant 0 : i32
    %c0_i32_0 = arith.constant 0 : i32
    %c0_i32_1 = arith.constant 0 : i32
    return %c0_i32, %c0_i32_0 : i32, i32
  }
  func.func @transform_3(%arg0: i32) -> (i32, i32, i32) {
    %c0_i32 = arith.constant 0 : i32
    %c0_i32_0 = arith.constant 0 : i32
    %c0_i32_1 = arith.constant 0 : i32
    return %arg0, %c0_i32, %c0_i32_0 : i32, i32, i32
  }
  func.func @transform_4(%arg0: i32) -> (i32, i32, i32) {
    %c0_i32 = arith.constant 0 : i32
    %c0_i32_0 = arith.constant 0 : i32
    %c0_i32_1 = arith.constant 0 : i32
    return %arg0, %c0_i32, %c0_i32_0 : i32, i32, i32
  }
  func.func @transform_5(%arg0: i32) -> (i32, i32, i32) {
    %c0_i32 = arith.constant 0 : i32
    %c0_i32_0 = arith.constant 0 : i32
    %c0_i32_1 = arith.constant 0 : i32
    return %arg0, %c0_i32, %c0_i32_0 : i32, i32, i32
  }
}

module attributes {stable_mosaic.version = 11 : i64} {
  func.func @bn2_residual_kernel(%arg0: i32, %arg1: memref<1x8x256xf32, #tpu.memory_space<vmem>>, %arg2: memref<1x8x256xbf16, #tpu.memory_space<vmem>>, %arg3: memref<8x1xf32, #tpu.memory_space<vmem>>, %arg4: memref<8x1xf32, #tpu.memory_space<vmem>>, %arg5: memref<1x8x256xf32, #tpu.memory_space<vmem>>) attributes {dimension_semantics = [#tpu.dimension_semantics<parallel>], iteration_bounds = array<i64: 2>, scalar_prefetch = 0 : i64, scratch_operands = 0 : i64, tpu.core_type = #tpu.core_type<tc>, window_params = [{transform_indices = @transform_0, window_bounds = array<i64: 1, 8, 256>}, {transform_indices = @transform_1, window_bounds = array<i64: 1, 8, 256>}, {pipeline_mode = #tpu.pipeline_mode<synchronous>, transform_indices = @transform_2, window_bounds = array<i64: 8, 1>}, {pipeline_mode = #tpu.pipeline_mode<synchronous>, transform_indices = @transform_3, window_bounds = array<i64: 8, 1>}, {transform_indices = @transform_4, window_bounds = array<i64: 1, 8, 256>}]} {
    %c0 = arith.constant 0 : index
    %c0_0 = arith.constant 0 : index
    %c0_1 = arith.constant 0 : index
    %0 = vector.load %arg1[%c0, %c0_0, %c0_1] : memref<1x8x256xf32, #tpu.memory_space<vmem>>, vector<1x8x256xf32>
    %1 = vector.shape_cast %0 : vector<1x8x256xf32> to vector<8x256xf32>
    %c0_2 = arith.constant 0 : index
    %c0_3 = arith.constant 0 : index
    %c0_4 = arith.constant 0 : index
    %2 = vector.load %arg2[%c0_2, %c0_3, %c0_4] : memref<1x8x256xbf16, #tpu.memory_space<vmem>>, vector<1x8x256xbf16>
    %3 = vector.shape_cast %2 : vector<1x8x256xbf16> to vector<8x256xbf16>
    %4 = arith.extf %3 : vector<8x256xbf16> to vector<8x256xf32>
    %c0_5 = arith.constant 0 : index
    %c0_6 = arith.constant 0 : index
    %5 = vector.load %arg3[%c0_5, %c0_6] : memref<8x1xf32, #tpu.memory_space<vmem>>, vector<8x1xf32>
    %6 = vector.broadcast %5 : vector<8x1xf32> to vector<8x256xf32>
    %7 = arith.mulf %4, %6 : vector<8x256xf32>
    %8 = arith.addf %1, %7 : vector<8x256xf32>
    %c0_7 = arith.constant 0 : index
    %c0_8 = arith.constant 0 : index
    %9 = vector.load %arg4[%c0_7, %c0_8] : memref<8x1xf32, #tpu.memory_space<vmem>>, vector<8x1xf32>
    %10 = vector.broadcast %9 : vector<8x1xf32> to vector<8x256xf32>
    %11 = arith.addf %8, %10 : vector<8x256xf32>
    %c0_9 = arith.constant 0 : index
    %c0_10 = arith.constant 0 : index
    %c0_11 = arith.constant 0 : index
    %12 = vector.load %arg5[%c0_9, %c0_10, %c0_11] : memref<1x8x256xf32, #tpu.memory_space<vmem>>, vector<1x8x256xf32>
    %13 = vector.shape_cast %12 : vector<1x8x256xf32> to vector<8x256xf32>
    %14 = vector.shape_cast %11 : vector<8x256xf32> to vector<1x8x256xf32>
    tpu.vector_store %arg5[%c0_9, %c0_10, %c0_11], %14 {strides = array<i32>} : memref<1x8x256xf32, #tpu.memory_space<vmem>>, vector<1x8x256xf32>,
    return
  }
  func.func @transform_0(%arg0: i32) -> (i32, i32, i32) {
    %c0_i32 = arith.constant 0 : i32
    %c0_i32_0 = arith.constant 0 : i32
    %c0_i32_1 = arith.constant 0 : i32
    return %arg0, %c0_i32, %c0_i32_0 : i32, i32, i32
  }
  func.func @transform_1(%arg0: i32) -> (i32, i32, i32) {
    %c0_i32 = arith.constant 0 : i32
    %c0_i32_0 = arith.constant 0 : i32
    %c0_i32_1 = arith.constant 0 : i32
    return %arg0, %c0_i32, %c0_i32_0 : i32, i32, i32
  }
  func.func @transform_2(%arg0: i32) -> (i32, i32) {
    %c0_i32 = arith.constant 0 : i32
    %c0_i32_0 = arith.constant 0 : i32
    %c0_i32_1 = arith.constant 0 : i32
    return %c0_i32, %c0_i32_0 : i32, i32
  }
  func.func @transform_3(%arg0: i32) -> (i32, i32) {
    %c0_i32 = arith.constant 0 : i32
    %c0_i32_0 = arith.constant 0 : i32
    %c0_i32_1 = arith.constant 0 : i32
    return %c0_i32, %c0_i32_0 : i32, i32
  }
  func.func @transform_4(%arg0: i32) -> (i32, i32, i32) {
    %c0_i32 = arith.constant 0 : i32
    %c0_i32_0 = arith.constant 0 : i32
    %c0_i32_1 = arith.constant 0 : i32
    return %arg0, %c0_i32, %c0_i32_0 : i32, i32, i32
  }
}

module attributes {stable_mosaic.version = 11 : i64} {
  func.func @bn1_prelu_conv2_stats_kernel(%arg0: i32, %arg1: memref<1x8x256xbf16, #tpu.memory_space<vmem>>, %arg2: memref<8x1xf32, #tpu.memory_space<vmem>>, %arg3: memref<8x1xf32, #tpu.memory_space<vmem>>, %arg4: memref<1x1xf32, #tpu.memory_space<smem>>, %arg5: memref<72x8xbf16, #tpu.memory_space<vmem>>, %arg6: memref<1x8xf32, #tpu.memory_space<vmem>>, %arg7: memref<1x8x256xbf16, #tpu.memory_space<vmem>>, %arg8: memref<1x1x8xf32, #tpu.memory_space<vmem>>, %arg9: memref<1x1x8xf32, #tpu.memory_space<vmem>>, %arg10: memref<18x18x8xbf16, #tpu.memory_space<vmem>>, %arg11: memref<16x16x72xbf16, #tpu.memory_space<vmem>>) attributes {dimension_semantics = [#tpu.dimension_semantics<parallel>], iteration_bounds = array<i64: 2>, scalar_prefetch = 0 : i64, scratch_operands = 2 : i64, tpu.core_type = #tpu.core_type<tc>, window_params = [{transform_indices = @transform_0, window_bounds = array<i64: 1, 8, 256>}, {pipeline_mode = #tpu.pipeline_mode<synchronous>, transform_indices = @transform_1, window_bounds = array<i64: 8, 1>}, {pipeline_mode = #tpu.pipeline_mode<synchronous>, transform_indices = @transform_2, window_bounds = array<i64: 8, 1>}, {transform_indices = @transform_3, window_bounds = array<i64: 1, 1>}, {pipeline_mode = #tpu.pipeline_mode<synchronous>, transform_indices = @transform_4, window_bounds = array<i64: 72, 8>}, {pipeline_mode = #tpu.pipeline_mode<synchronous>, transform_indices = @transform_5, window_bounds = array<i64: 1, 8>}, {transform_indices = @transform_6, window_bounds = array<i64: 1, 8, 256>}, {transform_indices = @transform_7, window_bounds = array<i64: 1, 1, 8>}, {transform_indices = @transform_8, window_bounds = array<i64: 1, 1, 8>}]} {
    %cst = arith.constant 0.000000e+00 : bf16
    %0 = vector.broadcast %cst : bf16 to vector<1x18x8xbf16>
    %c0 = arith.constant 0 : index
    %c0_0 = arith.constant 0 : index
    %c0_1 = arith.constant 0 : index
    %1 = vector.load %arg10[%c0, %c0_0, %c0_1] : memref<18x18x8xbf16, #tpu.memory_space<vmem>>, vector<1x18x8xbf16>
    tpu.vector_store %arg10[%c0, %c0_0, %c0_1], %0 {strides = array<i32>} : memref<18x18x8xbf16, #tpu.memory_space<vmem>>, vector<1x18x8xbf16>,
    %c17 = arith.constant 17 : index
    %c0_2 = arith.constant 0 : index
    %c0_3 = arith.constant 0 : index
    %2 = vector.load %arg10[%c17, %c0_2, %c0_3] : memref<18x18x8xbf16, #tpu.memory_space<vmem>>, vector<1x18x8xbf16>
    tpu.vector_store %arg10[%c17, %c0_2, %c0_3], %0 {strides = array<i32>} : memref<18x18x8xbf16, #tpu.memory_space<vmem>>, vector<1x18x8xbf16>,
    %cst_4 = arith.constant 0.000000e+00 : bf16
    %3 = vector.broadcast %cst_4 : bf16 to vector<18x1x8xbf16>
    %c0_5 = arith.constant 0 : index
    %c0_6 = arith.constant 0 : index
    %c0_7 = arith.constant 0 : index
    %4 = vector.load %arg10[%c0_5, %c0_6, %c0_7] : memref<18x18x8xbf16, #tpu.memory_space<vmem>>, vector<18x1x8xbf16>
    tpu.vector_store %arg10[%c0_5, %c0_6, %c0_7], %3 {strides = array<i32>} : memref<18x18x8xbf16, #tpu.memory_space<vmem>>, vector<18x1x8xbf16>,
    %c0_8 = arith.constant 0 : index
    %c17_9 = arith.constant 17 : index
    %c0_10 = arith.constant 0 : index
    %5 = vector.load %arg10[%c0_8, %c17_9, %c0_10] : memref<18x18x8xbf16, #tpu.memory_space<vmem>>, vector<18x1x8xbf16>
    tpu.vector_store %arg10[%c0_8, %c17_9, %c0_10], %3 {strides = array<i32>} : memref<18x18x8xbf16, #tpu.memory_space<vmem>>, vector<18x1x8xbf16>,
    %c0_11 = arith.constant 0 : index
    %c0_12 = arith.constant 0 : index
    %c0_13 = arith.constant 0 : index
    %6 = vector.load %arg1[%c0_11, %c0_12, %c0_13] : memref<1x8x256xbf16, #tpu.memory_space<vmem>>, vector<1x8x256xbf16>
    %7 = vector.shape_cast %6 : vector<1x8x256xbf16> to vector<8x256xbf16>
    %8 = arith.extf %7 : vector<8x256xbf16> to vector<8x256xf32>
    %c0_14 = arith.constant 0 : index
    %c0_15 = arith.constant 0 : index
    %9 = vector.load %arg2[%c0_14, %c0_15] : memref<8x1xf32, #tpu.memory_space<vmem>>, vector<8x1xf32>
    %10 = vector.broadcast %9 : vector<8x1xf32> to vector<8x256xf32>
    %11 = arith.mulf %8, %10 : vector<8x256xf32>
    %c0_16 = arith.constant 0 : index
    %c0_17 = arith.constant 0 : index
    %12 = vector.load %arg3[%c0_16, %c0_17] : memref<8x1xf32, #tpu.memory_space<vmem>>, vector<8x1xf32>
    %13 = vector.broadcast %12 : vector<8x1xf32> to vector<8x256xf32>
    %14 = arith.addf %11, %13 : vector<8x256xf32>
    %c0_18 = arith.constant 0 : index
    %c0_19 = arith.constant 0 : index
    %15 = memref.load %arg4[%c0_18, %c0_19] : memref<1x1xf32, #tpu.memory_space<smem>>
    %cst_20 = arith.constant 0.000000e+00 : f32
    %16 = vector.broadcast %cst_20 : f32 to vector<8x256xf32>
    %17 = arith.cmpf oge, %14, %16 : vector<8x256xf32>
    %18 = vector.broadcast %15 : f32 to vector<8x256xf32>
    %19 = arith.mulf %18, %14 : vector<8x256xf32>
    %20 = arith.select %17, %14, %19 : vector<8x256xi1>, vector<8x256xf32>
    %21 = tpu.transpose %20, [1, 0] : vector<8x256xf32> -> vector<256x8xf32>
    %22 = vector.shape_cast %21 : vector<256x8xf32> to vector<16x16x8xf32>
    %23 = arith.truncf %22 : vector<16x16x8xf32> to vector<16x16x8xbf16>
    %c1 = arith.constant 1 : index
    %c1_21 = arith.constant 1 : index
    %c0_22 = arith.constant 0 : index
    %24 = vector.load %arg10[%c1, %c1_21, %c0_22] : memref<18x18x8xbf16, #tpu.memory_space<vmem>>, vector<16x16x8xbf16>
    tpu.vector_store %arg10[%c1, %c1_21, %c0_22], %23 {strides = array<i32>} : memref<18x18x8xbf16, #tpu.memory_space<vmem>>, vector<16x16x8xbf16>,
    %c0_23 = arith.constant 0 : index
    %c0_24 = arith.constant 0 : index
    %c0_25 = arith.constant 0 : index
    %25 = vector.load %arg10[%c0_23, %c0_24, %c0_25] : memref<18x18x8xbf16, #tpu.memory_space<vmem>>, vector<16x16x8xbf16>
    %c0_26 = arith.constant 0 : index
    %c0_27 = arith.constant 0 : index
    %c0_28 = arith.constant 0 : index
    %26 = vector.load %arg11[%c0_26, %c0_27, %c0_28] : memref<16x16x72xbf16, #tpu.memory_space<vmem>>, vector<16x16x8xbf16>
    tpu.vector_store %arg11[%c0_26, %c0_27, %c0_28], %25 {strides = array<i32>} : memref<16x16x72xbf16, #tpu.memory_space<vmem>>, vector<16x16x8xbf16>,
    %c0_29 = arith.constant 0 : index
    %c1_30 = arith.constant 1 : index
    %c0_31 = arith.constant 0 : index
    %27 = vector.load %arg10[%c0_29, %c1_30, %c0_31] : memref<18x18x8xbf16, #tpu.memory_space<vmem>>, vector<16x16x8xbf16>
    %c0_32 = arith.constant 0 : index
    %c0_33 = arith.constant 0 : index
    %c8 = arith.constant 8 : index
    %28 = vector.load %arg11[%c0_32, %c0_33, %c8] : memref<16x16x72xbf16, #tpu.memory_space<vmem>>, vector<16x16x8xbf16>
    tpu.vector_store %arg11[%c0_32, %c0_33, %c8], %27 {strides = array<i32>} : memref<16x16x72xbf16, #tpu.memory_space<vmem>>, vector<16x16x8xbf16>,
    %c0_34 = arith.constant 0 : index
    %c2 = arith.constant 2 : index
    %c0_35 = arith.constant 0 : index
    %29 = vector.load %arg10[%c0_34, %c2, %c0_35] : memref<18x18x8xbf16, #tpu.memory_space<vmem>>, vector<16x16x8xbf16>
    %c0_36 = arith.constant 0 : index
    %c0_37 = arith.constant 0 : index
    %c16 = arith.constant 16 : index
    %30 = vector.load %arg11[%c0_36, %c0_37, %c16] : memref<16x16x72xbf16, #tpu.memory_space<vmem>>, vector<16x16x8xbf16>
    tpu.vector_store %arg11[%c0_36, %c0_37, %c16], %29 {strides = array<i32>} : memref<16x16x72xbf16, #tpu.memory_space<vmem>>, vector<16x16x8xbf16>,
    %c1_38 = arith.constant 1 : index
    %c0_39 = arith.constant 0 : index
    %c0_40 = arith.constant 0 : index
    %31 = vector.load %arg10[%c1_38, %c0_39, %c0_40] : memref<18x18x8xbf16, #tpu.memory_space<vmem>>, vector<16x16x8xbf16>
    %c0_41 = arith.constant 0 : index
    %c0_42 = arith.constant 0 : index
    %c24 = arith.constant 24 : index
    %32 = vector.load %arg11[%c0_41, %c0_42, %c24] : memref<16x16x72xbf16, #tpu.memory_space<vmem>>, vector<16x16x8xbf16>
    tpu.vector_store %arg11[%c0_41, %c0_42, %c24], %31 {strides = array<i32>} : memref<16x16x72xbf16, #tpu.memory_space<vmem>>, vector<16x16x8xbf16>,
    %c1_43 = arith.constant 1 : index
    %c1_44 = arith.constant 1 : index
    %c0_45 = arith.constant 0 : index
    %33 = vector.load %arg10[%c1_43, %c1_44, %c0_45] : memref<18x18x8xbf16, #tpu.memory_space<vmem>>, vector<16x16x8xbf16>
    %c0_46 = arith.constant 0 : index
    %c0_47 = arith.constant 0 : index
    %c32 = arith.constant 32 : index
    %34 = vector.load %arg11[%c0_46, %c0_47, %c32] : memref<16x16x72xbf16, #tpu.memory_space<vmem>>, vector<16x16x8xbf16>
    tpu.vector_store %arg11[%c0_46, %c0_47, %c32], %33 {strides = array<i32>} : memref<16x16x72xbf16, #tpu.memory_space<vmem>>, vector<16x16x8xbf16>,
    %c1_48 = arith.constant 1 : index
    %c2_49 = arith.constant 2 : index
    %c0_50 = arith.constant 0 : index
    %35 = vector.load %arg10[%c1_48, %c2_49, %c0_50] : memref<18x18x8xbf16, #tpu.memory_space<vmem>>, vector<16x16x8xbf16>
    %c0_51 = arith.constant 0 : index
    %c0_52 = arith.constant 0 : index
    %c40 = arith.constant 40 : index
    %36 = vector.load %arg11[%c0_51, %c0_52, %c40] : memref<16x16x72xbf16, #tpu.memory_space<vmem>>, vector<16x16x8xbf16>
    tpu.vector_store %arg11[%c0_51, %c0_52, %c40], %35 {strides = array<i32>} : memref<16x16x72xbf16, #tpu.memory_space<vmem>>, vector<16x16x8xbf16>,
    %c2_53 = arith.constant 2 : index
    %c0_54 = arith.constant 0 : index
    %c0_55 = arith.constant 0 : index
    %37 = vector.load %arg10[%c2_53, %c0_54, %c0_55] : memref<18x18x8xbf16, #tpu.memory_space<vmem>>, vector<16x16x8xbf16>
    %c0_56 = arith.constant 0 : index
    %c0_57 = arith.constant 0 : index
    %c48 = arith.constant 48 : index
    %38 = vector.load %arg11[%c0_56, %c0_57, %c48] : memref<16x16x72xbf16, #tpu.memory_space<vmem>>, vector<16x16x8xbf16>
    tpu.vector_store %arg11[%c0_56, %c0_57, %c48], %37 {strides = array<i32>} : memref<16x16x72xbf16, #tpu.memory_space<vmem>>, vector<16x16x8xbf16>,
    %c2_58 = arith.constant 2 : index
    %c1_59 = arith.constant 1 : index
    %c0_60 = arith.constant 0 : index
    %39 = vector.load %arg10[%c2_58, %c1_59, %c0_60] : memref<18x18x8xbf16, #tpu.memory_space<vmem>>, vector<16x16x8xbf16>
    %c0_61 = arith.constant 0 : index
    %c0_62 = arith.constant 0 : index
    %c56 = arith.constant 56 : index
    %40 = vector.load %arg11[%c0_61, %c0_62, %c56] : memref<16x16x72xbf16, #tpu.memory_space<vmem>>, vector<16x16x8xbf16>
    tpu.vector_store %arg11[%c0_61, %c0_62, %c56], %39 {strides = array<i32>} : memref<16x16x72xbf16, #tpu.memory_space<vmem>>, vector<16x16x8xbf16>,
    %c2_63 = arith.constant 2 : index
    %c2_64 = arith.constant 2 : index
    %c0_65 = arith.constant 0 : index
    %41 = vector.load %arg10[%c2_63, %c2_64, %c0_65] : memref<18x18x8xbf16, #tpu.memory_space<vmem>>, vector<16x16x8xbf16>
    %c0_66 = arith.constant 0 : index
    %c0_67 = arith.constant 0 : index
    %c64 = arith.constant 64 : index
    %42 = vector.load %arg11[%c0_66, %c0_67, %c64] : memref<16x16x72xbf16, #tpu.memory_space<vmem>>, vector<16x16x8xbf16>
    tpu.vector_store %arg11[%c0_66, %c0_67, %c64], %41 {strides = array<i32>} : memref<16x16x72xbf16, #tpu.memory_space<vmem>>, vector<16x16x8xbf16>,
    %c0_68 = arith.constant 0 : index
    %c0_69 = arith.constant 0 : index
    %c0_70 = arith.constant 0 : index
    %43 = vector.load %arg11[%c0_68, %c0_69, %c0_70] : memref<16x16x72xbf16, #tpu.memory_space<vmem>>, vector<16x16x72xbf16>
    %44 = vector.shape_cast %43 : vector<16x16x72xbf16> to vector<256x72xbf16>
    %c0_71 = arith.constant 0 : index
    %c0_72 = arith.constant 0 : index
    %45 = vector.load %arg5[%c0_71, %c0_72] : memref<72x8xbf16, #tpu.memory_space<vmem>>, vector<72x8xbf16>
    %cst_73 = arith.constant dense<0.000000e+00> : vector<256x8xf32>
    %46 = tpu.matmul %44, %45, %cst_73 {dimension_numbers = #tpu.dot_dimension_numbers<[1], [0], [0], [1], [0, 0, 1, 1], [], []>} : vector<256x72xbf16>, vector<72x8xbf16>, vector<256x8xf32> -> vector<256x8xf32>
    %c0_74 = arith.constant 0 : index
    %c0_75 = arith.constant 0 : index
    %47 = vector.load %arg6[%c0_74, %c0_75] : memref<1x8xf32, #tpu.memory_space<vmem>>, vector<1x8xf32>
    %48 = vector.broadcast %47 : vector<1x8xf32> to vector<256x8xf32>
    %49 = arith.addf %46, %48 : vector<256x8xf32>
    %cst_76 = arith.constant dense<0.000000e+00> : vector<8xf32>
    %50 = vector.multi_reduction <add>, %49, %cst_76 [0] : vector<256x8xf32> to vector<8xf32>
    %51 = vector.shape_cast %50 : vector<8xf32> to vector<1x8xf32>
    %c0_77 = arith.constant 0 : index
    %c0_78 = arith.constant 0 : index
    %c0_79 = arith.constant 0 : index
    %52 = vector.load %arg8[%c0_77, %c0_78, %c0_79] : memref<1x1x8xf32, #tpu.memory_space<vmem>>, vector<1x1x8xf32>
    %53 = vector.shape_cast %52 : vector<1x1x8xf32> to vector<1x8xf32>
    %54 = vector.shape_cast %51 : vector<1x8xf32> to vector<1x1x8xf32>
    tpu.vector_store %arg8[%c0_77, %c0_78, %c0_79], %54 {strides = array<i32>} : memref<1x1x8xf32, #tpu.memory_space<vmem>>, vector<1x1x8xf32>,
    %55 = arith.mulf %49, %49 : vector<256x8xf32>
    %cst_80 = arith.constant dense<0.000000e+00> : vector<8xf32>
    %56 = vector.multi_reduction <add>, %55, %cst_80 [0] : vector<256x8xf32> to vector<8xf32>
    %57 = vector.shape_cast %56 : vector<8xf32> to vector<1x8xf32>
    %c0_81 = arith.constant 0 : index
    %c0_82 = arith.constant 0 : index
    %c0_83 = arith.constant 0 : index
    %58 = vector.load %arg9[%c0_81, %c0_82, %c0_83] : memref<1x1x8xf32, #tpu.memory_space<vmem>>, vector<1x1x8xf32>
    %59 = vector.shape_cast %58 : vector<1x1x8xf32> to vector<1x8xf32>
    %60 = vector.shape_cast %57 : vector<1x8xf32> to vector<1x1x8xf32>
    tpu.vector_store %arg9[%c0_81, %c0_82, %c0_83], %60 {strides = array<i32>} : memref<1x1x8xf32, #tpu.memory_space<vmem>>, vector<1x1x8xf32>,
    %61 = tpu.transpose %49, [1, 0] : vector<256x8xf32> -> vector<8x256xf32>
    %62 = arith.truncf %61 : vector<8x256xf32> to vector<8x256xbf16>
    %c0_84 = arith.constant 0 : index
    %c0_85 = arith.constant 0 : index
    %c0_86 = arith.constant 0 : index
    %63 = vector.load %arg7[%c0_84, %c0_85, %c0_86] : memref<1x8x256xbf16, #tpu.memory_space<vmem>>, vector<1x8x256xbf16>
    %64 = vector.shape_cast %63 : vector<1x8x256xbf16> to vector<8x256xbf16>
    %65 = vector.shape_cast %62 : vector<8x256xbf16> to vector<1x8x256xbf16>
    tpu.vector_store %arg7[%c0_84, %c0_85, %c0_86], %65 {strides = array<i32>} : memref<1x8x256xbf16, #tpu.memory_space<vmem>>, vector<1x8x256xbf16>,
    return
  }
  func.func @transform_0(%arg0: i32) -> (i32, i32, i32) {
    %c0_i32 = arith.constant 0 : i32
    %c0_i32_0 = arith.constant 0 : i32
    %c0_i32_1 = arith.constant 0 : i32
    return %arg0, %c0_i32, %c0_i32_0 : i32, i32, i32
  }
  func.func @transform_1(%arg0: i32) -> (i32, i32) {
    %c0_i32 = arith.constant 0 : i32
    %c0_i32_0 = arith.constant 0 : i32
    %c0_i32_1 = arith.constant 0 : i32
    return %c0_i32, %c0_i32_0 : i32, i32
  }
  func.func @transform_2(%arg0: i32) -> (i32, i32) {
    %c0_i32 = arith.constant 0 : i32
    %c0_i32_0 = arith.constant 0 : i32
    %c0_i32_1 = arith.constant 0 : i32
    return %c0_i32, %c0_i32_0 : i32, i32
  }
  func.func @transform_3(%arg0: i32) -> (i32, i32) {
    %c0_i32 = arith.constant 0 : i32
    %c0_i32_0 = arith.constant 0 : i32
    %c0_i32_1 = arith.constant 0 : i32
    return %c0_i32, %c0_i32_0 : i32, i32
  }
  func.func @transform_4(%arg0: i32) -> (i32, i32) {
    %c0_i32 = arith.constant 0 : i32
    %c0_i32_0 = arith.constant 0 : i32
    %c0_i32_1 = arith.constant 0 : i32
    return %c0_i32, %c0_i32_0 : i32, i32
  }
  func.func @transform_5(%arg0: i32) -> (i32, i32) {
    %c0_i32 = arith.constant 0 : i32
    %c0_i32_0 = arith.constant 0 : i32
    %c0_i32_1 = arith.constant 0 : i32
    return %c0_i32, %c0_i32_0 : i32, i32
  }
  func.func @transform_6(%arg0: i32) -> (i32, i32, i32) {
    %c0_i32 = arith.constant 0 : i32
    %c0_i32_0 = arith.constant 0 : i32
    %c0_i32_1 = arith.constant 0 : i32
    return %arg0, %c0_i32, %c0_i32_0 : i32, i32, i32
  }
  func.func @transform_7(%arg0: i32) -> (i32, i32, i32) {
    %c0_i32 = arith.constant 0 : i32
    %c0_i32_0 = arith.constant 0 : i32
    %c0_i32_1 = arith.constant 0 : i32
    return %arg0, %c0_i32, %c0_i32_0 : i32, i32, i32
  }
  func.func @transform_8(%arg0: i32) -> (i32, i32, i32) {
    %c0_i32 = arith.constant 0 : i32
    %c0_i32_0 = arith.constant 0 : i32
    %c0_i32_1 = arith.constant 0 : i32
    return %arg0, %c0_i32, %c0_i32_0 : i32, i32, i32
  }
}

</mosaic_0001>

<bundles_post_ra>
// kernel: residual_block_forward.5
= control target key start
LH: loop header
LB: loop body
LE: loop exit
PB: predicated region body
PF: predicated region fallthrough
CT: control target
= control target key end

     0   :  { %s370_s15 = smov 0   ;;  %s396_s0 = inlined_call_operand.vmem [shape: f32[2,8,256], index: 0, kind: input, shape index: {}, may-alias: {0,4}]   ;;  %s397_s1 = inlined_call_operand.vmem [shape: bf16[2,8,256], index: 1, kind: input, shape index: {}]   ;;  %s398_s2 = inlined_call_operand.vmem [shape: f32[8,1], index: 2, kind: input, shape index: {}]   ;;  %s399_s3 = inlined_call_operand.vmem [shape: f32[8,1], index: 3, kind: input, shape index: {}]   ;;  %s400_s4 = inlined_call_operand.vmem [shape: f32[2,8,256], index: 4, kind: output, shape index: {}, may-alias: {0,4}]  }
   0x1 LB: > { %s310_s16 = sadd.s32 4294967295, %s342_s15   ;;  %p314_p0 = scmp.ge.s32.totalorder %s342_s15, 1  ;;  %s342_s15 = sphi %s370_s15, %s14_s15  }
   0x2   : > { %p172_p1 = scmp.lt.s32.totalorder %s342_s15, 3 }
   0x4   : > { %p173_p2 = pnand %p314_p0, %p172_p1 }
   0x5   : > { %v223_v0 = vld [vmem:[%s398_s2] sm:$0xff] (!%p173_p2)  ;;  %v344_v1 = vmov (!%p173_p2), 0   ;;  %p203_p3 = scmp.lt.s32.totalorder (!%p173_p2), %s310_s16, 1 }
   0x6   : > { %176 = sbr.rel (%p173_p2) target bundleno = 142 (0x8e), region = 36  ;;  %335 = vset.pattern.permute.xlu0 (!%p173_p2), %v344_v1  ;;  %v233_v2 = vld [vmem:[%s399_s3] sm:$0xff] (!%p173_p2) }
   0x7   : > { %226 = vperm.xlu0 (!%p173_p2), %335, %v223_v0  }
   0xb   : > { %236 = vperm.xlu0 (!%p173_p2), %335, %v233_v2  }
   0xd   : > { %s402_s16 = smov (!%p203_p3, %s310_s16), 1 }
   0xe   : > { %s324_s21 = sshll.u32 %s402_s16, 3  ;;  %s323_s25 = sshll.u32 %s402_s16, 4 }
   0xf   : > { %s212_s24 = scalar_lea.vmem %s397_s1, %s324_s21  ;;  %s207_s28 = scalar_lea.vmem %s396_s0, %s323_s25 }
  0x10   : > { %v220_v3 = vld [vmem:[%s212_s24] sm:$0xff]  ;;  %v219_v8 = vld [vmem:[%s207_s28 + $0x8] sm:$0xff]  ;;  %s217_s5 = scalar_lea.vmem %s400_s4, %s323_s25 }
  0x11   : > { %v221_v4 = vunpack.c.l.bf16 %v220_v3  ;;  %v222_v5 = vunpack.c.h.bf16 %v220_v3  ;;  %v218_v7 = vld [vmem:[%s207_s28] sm:$0xff] }
  0x86   : > { %v227_v6 = vpop.permute.xlu0 %226 }
  0x87   : > { %v229_v9 = vmul.f32 %v227_v6, %v221_v4  ;;  %v230_v10 = vmul.f32 %v227_v6, %v222_v5 }
  0x89   : > { %v231_v11 = vadd.f32 %v229_v9, %v218_v7  ;;  %v232_v12 = vadd.f32 %v230_v10, %v219_v8 }
  0x8a   : > { %v237_v13 = vpop.permute.xlu0 %236 }
  0x8b   : > { %v239_v14 = vadd.f32 %v237_v13, %v231_v11  ;;  %v240_v15 = vadd.f32 %v237_v13, %v232_v12 }
  0x8d   : > { %241 = vst [vmem:[%s217_s5] sm:$0xff] %v239_v14  ;;  %242 = vst [vmem:[%s217_s5 + $0x8] sm:$0xff] %v240_v15 }
  0x8e PF: > { %s14_s15 = sadd.s32 1, %s342_s15  }
  0x8f   : > { %p11_p4 = scmp.ge.s32.totalorder %s14_s15, 4  }
  0x91   :  { %13 = sbr.rel (!%p11_p4) target bundleno = 1 (0x1), region = 69 }

// kernel: residual_block_forward.3
= control target key start
LH: loop header
LB: loop body
LE: loop exit
PB: predicated region body
PF: predicated region fallthrough
CT: control target
= control target key end

     0   :  { %s5100_s18 = smov 0   ;;  %s6171_s0 = inlined_call_operand.vmem [shape: f32[2,8,256], index: 0, kind: input, shape index: {}]   ;;  %s6172_s1 = inlined_call_operand.vmem [shape: bf16[72,8], index: 1, kind: input, shape index: {}]   ;;  %s6173_s2 = inlined_call_operand.vmem [shape: f32[1,8], index: 2, kind: input, shape index: {}]   ;;  %s6174_s3 = inlined_call_operand.vmem [shape: bf16[2,8,256], index: 3, kind: output, shape index: {0}]   ;;  %s6175_s4 = inlined_call_operand.vmem [shape: f32[2,1,8], index: 4, kind: output, shape index: {1}]   ;;  %s6176_s5 = inlined_call_operand.vmem [shape: f32[2,1,8], index: 5, kind: output, shape index: {2}]  }
   0x1 LB: > { %s4255_s19 = sadd.s32 4294967295, %s5059_s18   ;;  %p4259_p0 = scmp.ge.s32.totalorder %s5059_s18, 1  ;;  %s5059_s18 = sphi %s5100_s18, %s16_s18  }
   0x2   : > { %p192_p1 = scmp.lt.s32.totalorder %s5059_s18, 3 }
   0x4   : > { %p193_p2 = pnand %p4259_p0, %p192_p1 }
   0x5   : > { %p226_p3 = scmp.lt.s32.totalorder (!%p193_p2), %s4255_s19, 1  ;;  %vm246_vm0 = vcmask (!%p193_p2), 57344   ;;  %vm253_vm1 = vsmask.f32 (!%p193_p2), 256  ;;  %v258_v1 = vld [vmem:[#allocation2 + $0xc] sm:$0x1] (!%p193_p2) }
   0x6   : > { %196 = sbr.rel (%p193_p2) target bundleno = 913 (0x391), region = 32  ;;  %vm5110_vm2 = vmand (!%p193_p2), %vm246_vm0, %vm253_vm1  ;;  %v282_v2 = vld [vmem:[#allocation2 + $0x6c] sm:$0x1] (!%p193_p2)  ;;  %vm243_vm3 = vcmask (!%p193_p2), 60416   ;;  %v5061_v5 = vmov (!%p193_p2), 0   ;;  %vm1719_vm6 = vcmask (!%p193_p2), 1046528  }
   0x7   : > { %v259_v3 = vsel (!%p193_p2), %vm5110_vm2, 0, %v258_v1  ;;  %v283_v4 = vsel (!%p193_p2), %vm5110_vm2, 0, %v282_v2  ;;  %244 = vst.msk [vmem:[#allocation2] sm:$0xf] (!%p193_p2), %vm243_vm3, %v5061_v5  ;;  %245 = vst.msk [vmem:[#allocation2 + $0x4] sm:$0xf] (!%p193_p2), %vm243_vm3, %v5061_v5 }
   0x8   : > { %260 = vst [vmem:[#allocation2 + $0xc] sm:$0x1] (!%p193_p2), %v259_v3  ;;  %284 = vst [vmem:[#allocation2 + $0x6c] sm:$0x1] (!%p193_p2), %v283_v4  ;;  %vm309_vm4 = vsmask.f32 (!%p193_p2), 7938 }
   0x9   : > { %247 = vst.msk [vmem:[#allocation2 + $0x8] sm:$0x1] (!%p193_p2), %vm246_vm0, %v5061_v5  ;;  %251 = vst.msk [vmem:[#allocation2 + $0xd4] sm:$0x1] (!%p193_p2), %vm246_vm0, %v5061_v5  ;;  %v314_v12 = vld [vmem:[#allocation2 + $0x14] sm:$0x1] (!%p193_p2) }
   0xa   : > { %249 = vst.msk [vmem:[#allocation2 + $0xcc] sm:$0xf] (!%p193_p2), %vm243_vm3, %v5061_v5  ;;  %250 = vst.msk [vmem:[#allocation2 + $0xd0] sm:$0xf] (!%p193_p2), %vm243_vm3, %v5061_v5  ;;  %v338_v13 = vld [vmem:[#allocation2 + $0x74] sm:$0x1] (!%p193_p2) }
   0xb   : > { %vm5132_vm5 = vmand (!%p193_p2), %vm246_vm0, %vm309_vm4  ;;  %v285_v18 = vld [vmem:[#allocation2 + $0x78] sm:$0x1] (!%p193_p2)  ;;  %s5062_s24 = smov (!%p193_p2), 16   ;;  %v317_v27 = vld [vmem:[#allocation2 + $0x20] sm:$0x1] (!%p193_p2)  ;;  %s5063_s25 = smov (!%p193_p2), 8  }
   0xc   : > { %v315_v15 = vsel (!%p193_p2), %vm5132_vm5, 0, %v314_v12  ;;  %v339_v16 = vsel (!%p193_p2), %vm5132_vm5, 0, %v338_v13  ;;  %v286_v19 = vsel (!%p193_p2), %vm5110_vm2, 0, %v285_v18  ;;  %v261_v20 = vld [vmem:[#allocation2 + $0x18] sm:$0x1] (!%p193_p2)  ;;  %v318_v29 = vsel (!%p193_p2), %vm5132_vm5, 0, %v317_v27  ;;  %vm5198_vm9 = vmand (!%p193_p2), %vm243_vm3, %vm309_vm4 }
   0xd   : > { %s6186_s19 = smov (!%p226_p3, %s4255_s19), 1  ;;  %316 = vst [vmem:[#allocation2 + $0x14] sm:$0x1] %v315_v15  ;;  %340 = vst [vmem:[#allocation2 + $0x74] sm:$0x1] %v339_v16  ;;  %v262_v22 = vsel %vm5110_vm2, 0, %v261_v20 }
   0xe   : > { %s4561_s20 = sshll.u32 %s6186_s19, 4  ;;  %v255_v9 = vld [vmem:[#allocation2] sm:$0x1]  ;;  %287 = vst [vmem:[#allocation2 + $0x78] sm:$0x1] %v286_v19  ;;  %vm1092_vm11 = vcmask 64512  }
   0xf   : > { %s230_s23 = scalar_lea.vmem %s6171_s0, %s4561_s20  ;;  %v256_v11 = vsel %vm5110_vm2, 0, %v255_v9  ;;  %v4810_v21 = vld [vmem:[#allocation2] sm:$0xfe]   ;;  %263 = vst [vmem:[#allocation2 + $0x18] sm:$0x1] %v262_v22  ;;  %s5064_s26 = smov 24  }
  0x10   : > { %v365_v6 = vld [vmem:[%s230_s23] sm:$0xff]  ;;  %v366_v7 = vld [vmem:[%s230_s23 + $0x8] sm:$0xff]  ;;  %257 = vst [vmem:[#allocation2] sm:$0x1] %v256_v11  ;;  %v1720_v24 = vrot.slane %v4810_v21, 1  ;;  %s5065_s27 = smov 40   ;;  %s238_s23 = scalar_lea.vmem %s6175_s4, %s6186_s19 }
  0x11   : > { %v4689_v8 = vpack.i.bf16 %v366_v7, %v365_v6  ;;  %v311_v14 = vld [vmem:[#allocation2 + $0x8] sm:$0x1]  ;;  %v341_v28 = vld [vmem:[#allocation2 + $0x80] sm:$0x1]  ;;  %319 = vst [vmem:[#allocation2 + $0x20] sm:$0x1] %v318_v29 }
  0x12   : > { %v312_v17 = vsel %vm5132_vm5, 0, %v311_v14  ;;  %v342_v30 = vsel %vm5132_vm5, 0, %v341_v28  ;;  %v264_v31 = vld [vmem:[#allocation2 + $0x24] sm:$0x1]  ;;  %v267_v35 = vld [vmem:[#allocation2 + $0x30] sm:$0x1] }
  0x13   : > { %4690 = vxpose.xlu0.b32.start.end [1/1] (short) %v4689_v8, 128  ;;  %313 = vst [vmem:[#allocation2 + $0x8] sm:$0x1] %v312_v17  ;;  %343 = vst [vmem:[#allocation2 + $0x80] sm:$0x1] %v342_v30  ;;  %v288_v32 = vld [vmem:[#allocation2 + $0x84] sm:$0x1] }
  0x14   : > { %v265_v33 = vsel %vm5110_vm2, 0, %v264_v31  ;;  %v289_v34 = vsel %vm5110_vm2, 0, %v288_v32  ;;  %v268_v36 = vsel %vm5110_vm2, 0, %v267_v35  ;;  %v323_v37 = vld [vmem:[#allocation2 + $0x38] sm:$0x1]  ;;  %s5066_s28 = smov 32  }
  0x15   : > { %266 = vst [vmem:[#allocation2 + $0x24] sm:$0x1] %v265_v33  ;;  %290 = vst [vmem:[#allocation2 + $0x84] sm:$0x1] %v289_v34  ;;  %v320_v38 = vld [vmem:[#allocation2 + $0x2c] sm:$0x1] }
  0x16   : > { %v344_v39 = vld [vmem:[#allocation2 + $0x8c] sm:$0x1]  ;;  %269 = vst [vmem:[#allocation2 + $0x30] sm:$0x1] %v268_v36  ;;  %v324_v40 = vsel %vm5132_vm5, 0, %v323_v37  ;;  %v321_v41 = vsel %vm5132_vm5, 0, %v320_v38 }
  0x17   : > { %v345_v42 = vsel %vm5132_vm5, 0, %v344_v39  ;;  %325 = vst [vmem:[#allocation2 + $0x38] sm:$0x1] %v324_v40  ;;  %322 = vst [vmem:[#allocation2 + $0x2c] sm:$0x1] %v321_v41  ;;  %v4808_v63 = vld [vmem:[#allocation2] sm:$0xff]  }
  0x18   : > { %346 = vst [vmem:[#allocation2 + $0x8c] sm:$0x1] %v345_v42  ;;  %v291_v43 = vld [vmem:[#allocation2 + $0x90] sm:$0x1]  ;;  %v347_v45 = vld [vmem:[#allocation2 + $0x98] sm:$0x1] }
  0x19   : > { %v292_v44 = vsel %vm5110_vm2, 0, %v291_v43  ;;  %v348_v46 = vsel %vm5132_vm5, 0, %v347_v45  ;;  %v270_v47 = vld [vmem:[#allocation2 + $0x3c] sm:$0x1]  ;;  %v326_v51 = vld [vmem:[#allocation2 + $0x44] sm:$0x1] }
  0x1a   : > { %v4811_v23 = vld [vmem:[#allocation2 + $0x8] ss:$0 sps:$4 sm:$0x11]   ;;  %293 = vst [vmem:[#allocation2 + $0x90] sm:$0x1] %v292_v44  ;;  %v271_v49 = vsel %vm5110_vm2, 0, %v270_v47 }
  0x1b   : > { %v1721_v25 = vrot.slane %v4811_v23, 1  ;;  %349 = vst [vmem:[#allocation2 + $0x98] sm:$0x1] %v348_v46  ;;  %v294_v48 = vld [vmem:[#allocation2 + $0x9c] sm:$0x1]  ;;  %v327_v52 = vsel %vm5132_vm5, 0, %v326_v51 }
  0x1c   : > { %v295_v50 = vsel %vm5110_vm2, 0, %v294_v48  ;;  %272 = vst [vmem:[#allocation2 + $0x3c] sm:$0x1] %v271_v49  ;;  %v350_v53 = vld [vmem:[#allocation2 + $0xa4] sm:$0x1]  ;;  %v1289_v2 = vshll.u32 %v4808_v63, 16 }
  0x1d   : > { %v1722_v26 = vsel %vm1719_vm6, %v1720_v24, %v1721_v25  ;;  %296 = vst [vmem:[#allocation2 + $0x9c] sm:$0x1] %v295_v50  ;;  %328 = vst [vmem:[#allocation2 + $0x44] sm:$0x1] %v327_v52  ;;  %v351_v54 = vsel %vm5132_vm5, 0, %v350_v53  ;;  %v1287_v3 = vshrl.u32 %v4808_v63, 16 }
  0x1e   : > { %1768 = vrot.lane.b32.xlu1 %v1722_v26, %s5062_s24  ;;  %352 = vst [vmem:[#allocation2 + $0xa4] sm:$0x1] %v351_v54  ;;  %v273_v55 = vld [vmem:[#allocation2 + $0x48] sm:$0x1]  ;;  %v329_v59 = vld [vmem:[#allocation2 + $0x50] sm:$0x1] }
  0x1f   : > { %v297_v56 = vld [vmem:[#allocation2 + $0xa8] sm:$0x1]  ;;  %v274_v57 = vsel %vm5110_vm2, 0, %v273_v55  ;;  %v353_v60 = vld [vmem:[#allocation2 + $0xb0] sm:$0x1]  ;;  %v330_v61 = vsel %vm5132_vm5, 0, %v329_v59 }
  0x20   : > { %v298_v58 = vsel %vm5110_vm2, 0, %v297_v56  ;;  %275 = vst [vmem:[#allocation2 + $0x48] sm:$0x1] %v274_v57  ;;  %v354_v62 = vsel %vm5132_vm5, 0, %v353_v60  ;;  %331 = vst [vmem:[#allocation2 + $0x50] sm:$0x1] %v330_v61 }
  0x21   : > { %299 = vst [vmem:[#allocation2 + $0xa8] sm:$0x1] %v298_v58  ;;  %355 = vst [vmem:[#allocation2 + $0xb0] sm:$0x1] %v354_v62  ;;  %v1291_v4 = vrot.slane %v1289_v2, 1  ;;  %s5067_s29 = smov 48  }
  0x22   : > { %v4809_v1 = vld [vmem:[#allocation2 + $0x8] ss:$0 sps:$4 sm:$0x11]   ;;  %vm1285_vm7 = vsmask.f32 7424  ;;  %s5068_s30 = smov 56  }
  0x23   : > { %v1294_v5 = vshll.u32 %v4809_v1, 16  ;;  %v1292_v6 = vor.u32 %v1291_v4, %v1287_v3  ;;  %v276_v9 = vld [vmem:[#allocation2 + $0x54] sm:$0x1]  ;;  %v332_v14 = vld [vmem:[#allocation2 + $0x5c] sm:$0x1]  ;;  %s5069_s6 = smov 64  }
  0x24   : > { %v300_v11 = vld [vmem:[#allocation2 + $0xb4] sm:$0x1]  ;;  %v277_v12 = vsel %vm5110_vm2, 0, %v276_v9  ;;  %v356_v15 = vld [vmem:[#allocation2 + $0xbc] sm:$0x1]  ;;  %v333_v16 = vsel %vm5132_vm5, 0, %v332_v14 }
  0x25   : > { %v1296_v7 = vrot.slane %v1294_v5, 1  ;;  %v301_v13 = vsel %vm5110_vm2, 0, %v300_v11  ;;  %278 = vst [vmem:[#allocation2 + $0x54] sm:$0x1] %v277_v12  ;;  %v357_v17 = vsel %vm5132_vm5, 0, %v356_v15  ;;  %vm1526_vm12 = vcmask 130112  }
  0x26   : > { %302 = vst [vmem:[#allocation2 + $0xb4] sm:$0x1] %v301_v13  ;;  %334 = vst [vmem:[#allocation2 + $0x5c] sm:$0x1] %v333_v16  ;;  %vm527_vm8 = vsmask.f32 4368 }
  0x27   : > { %v1297_v8 = vsel %vm1285_vm7, %v1292_v6, %v1296_v7  ;;  %358 = vst [vmem:[#allocation2 + $0xbc] sm:$0x1] %v357_v17  ;;  %v279_v32 = vld [vmem:[#allocation2 + $0x60] sm:$0x1]  ;;  %v852_v35 = vld [vmem:[#allocation2 + $0xc] sm:$0xf]  ;;  %vm5212_vm10 = vmor %vm253_vm1, %vm527_vm8 }
  0x28   : > { %v303_v33 = vld [vmem:[#allocation2 + $0xc0] sm:$0x1]  ;;  %v908_v36 = vld [vmem:[#allocation2 + $0x6c] sm:$0xf]  ;;  %v280_v40 = vsel %vm5110_vm2, 0, %v279_v32  ;;  %vm1816_vm13 = vcmask 195712  }
  0x29   : > { %v304_v41 = vsel %vm5110_vm2, 0, %v303_v33  ;;  %281 = vst [vmem:[#allocation2 + $0x60] sm:$0x1] %v280_v40  ;;  %v856_v58 = vld [vmem:[#allocation2 + $0x14] sm:$0x1]  ;;  %vm1993_vm14 = vcmask 261312  }
  0x2a   : > { %305 = vst [vmem:[#allocation2 + $0xc0] sm:$0x1] %v304_v41  ;;  %v912_v59 = vld [vmem:[#allocation2 + $0x74] sm:$0x1]  ;;  %v859_v17 = vld [vmem:[#allocation2 + $0x18] sm:$0xf] }
  0x2b   : > { %v863_v41 = vld [vmem:[#allocation2 + $0x20] sm:$0x1]  ;;  %vm2426_vm15 = vcmask 326912   ;;  %vm2715_vm1 = vcmask 392512   ;;  %vm3326_vm4 = vcmask 523712   ;;  %vm3615_vm8 = vcmask 589312  }
  0x78   : > { %1478 = vrot.lane.b32.xlu0 %v1297_v8, %s5063_s25 }
  0x93   : > { %v4691_v18 = vpop.trf.xlu0 }
  0x94   : > { %v4695_v19 = vunpack.i.h.bf16 %v4691_v18  ;;  %v4692_v20 = vunpack.i.l.bf16 %v4691_v18  ;;  %v915_v18 = vld [vmem:[#allocation2 + $0x78] sm:$0xf] }
  0x96   : > { %v4579_v21 = vpack.c.bf16 %v4695_v19, %v4695_v19  ;;  %v4563_v22 = vpack.c.bf16 %v4692_v20, %v4692_v20 }
  0x97   : > { %v4696_v23 = vpop.trf.xlu0 }
  0x98   : > { %v666_v24 = vshrl.u32 %v4579_v21, 16  ;;  %v669_v25 = vshll.u32 %v4579_v21, 16  ;;  %v530_v26 = vshrl.u32 %v4563_v22, 16  ;;  %v533_v27 = vshll.u32 %v4563_v22, 16 }
  0x99   : > { %v4700_v28 = vunpack.i.h.bf16 %v4696_v23  ;;  %v4697_v29 = vunpack.i.l.bf16 %v4696_v23 }
  0x9a   : > { %v668_v30 = vrot.slane %v666_v24, 7  ;;  %v532_v31 = vrot.slane %v530_v26, 7 }
  0x9b   : > { %v4580_v37 = vpack.c.bf16 %v4700_v28, %v4700_v28  ;;  %v4564_v38 = vpack.c.bf16 %v4697_v29, %v4697_v29  ;;  %v4701_v39 = vpop.trf.xlu0 }
  0x9c   : > { %v671_v42 = vor.u32 %v669_v25, %v668_v30  ;;  %v672_v43 = vrot.slane %v668_v30, 4  ;;  %v535_v44 = vor.u32 %v533_v27, %v532_v31  ;;  %v536_v45 = vrot.slane %v532_v31, 4  ;;  %v919_v25 = vld [vmem:[#allocation2 + $0x80] sm:$0x1] }
  0x9d   : > { %v674_v46 = vshrl.u32 %v4580_v37, 16  ;;  %v677_v47 = vshll.u32 %v4580_v37, 16  ;;  %v538_v48 = vshrl.u32 %v4564_v38, 16  ;;  %v541_v49 = vshll.u32 %v4564_v38, 16 }
  0x9e   : > { %v909_v50 = vsel %vm5198_vm9, %v671_v42, %v908_v36  ;;  %v853_v51 = vsel %vm5198_vm9, %v535_v44, %v852_v35  ;;  %v4705_v52 = vunpack.i.h.bf16 %v4701_v39  ;;  %v4702_v55 = vunpack.i.l.bf16 %v4701_v39 }
  0x9f   : > { %910 = vst [vmem:[#allocation2 + $0x6c] sm:$0xf] %v909_v50  ;;  %854 = vst [vmem:[#allocation2 + $0xc] sm:$0xf] %v853_v51  ;;  %v676_v53 = vrot.slane %v674_v46, 7  ;;  %v540_v54 = vrot.slane %v538_v48, 7  ;;  %v4706_v56 = vpop.trf.xlu0 }
  0xa0   : > { %v4581_v60 = vpack.c.bf16 %v4705_v52, %v4705_v52  ;;  %v4710_v61 = vunpack.i.h.bf16 %v4706_v56  ;;  %v4565_v5 = vpack.c.bf16 %v4702_v55, %v4702_v55  ;;  %v4707_v20 = vunpack.i.l.bf16 %v4706_v56  ;;  %v4903_v46 = vld [vmem:[#allocation2] sm:$0xff]  }
  0xa1   : > { %v679_v62 = vor.u32 %v677_v47, %v676_v53  ;;  %v681_v63 = vrot.slane %v676_v53, 4  ;;  %v543_v1 = vor.u32 %v541_v49, %v540_v54  ;;  %v545_v2 = vrot.slane %v540_v54, 4  ;;  %1093 = vst.msk [vmem:[#allocation3] sm:$0xff] %vm1092_vm11, %v4903_v46 }
  0xa2   : > { %v683_v3 = vshrl.u32 %v4581_v60, 16  ;;  %v686_v4 = vshll.u32 %v4581_v60, 16  ;;  %v4582_v6 = vpack.c.bf16 %v4710_v61, %v4710_v61  ;;  %v547_v14 = vshrl.u32 %v4565_v5, 16 }
  0xa3   : > { %v913_v7 = vsel %vm5110_vm2, %v681_v63, %v912_v59  ;;  %v544_v8 = vsel %vm5212_vm10, %v536_v45, %v543_v1  ;;  %v680_v9 = vsel %vm5212_vm10, %v672_v43, %v679_v62  ;;  %v857_v11 = vsel %vm5110_vm2, %v545_v2, %v856_v58  ;;  %v4711_v12 = vpop.trf.xlu0  ;;  %v922_v43 = vld [vmem:[#allocation2 + $0x84] sm:$0xf] }
  0xa4   : > { %914 = vst [vmem:[#allocation2 + $0x74] sm:$0x1] %v913_v7  ;;  %855 = vst.msk [vmem:[#allocation2 + $0x10] sm:$0xf] %vm243_vm3, %v544_v8  ;;  %v685_v13 = vrot.slane %v683_v3, 7  ;;  %v550_v15 = vshll.u32 %v4565_v5, 16  ;;  %v4715_v21 = vunpack.i.h.bf16 %v4711_v12  ;;  %v4566_v27 = vpack.c.bf16 %v4707_v20, %v4707_v20 }
  0xa5   : > { %858 = vst [vmem:[#allocation2 + $0x14] sm:$0x1] %v857_v11  ;;  %911 = vst.msk [vmem:[#allocation2 + $0x70] sm:$0xf] %vm243_vm3, %v680_v9  ;;  %v691_v16 = vshrl.u32 %v4582_v6, 16  ;;  %v694_v19 = vshll.u32 %v4582_v6, 16  ;;  %v4712_v29 = vunpack.i.l.bf16 %v4711_v12 }
  0xa6   : > { %v688_v22 = vor.u32 %v686_v4, %v685_v13  ;;  %v689_v23 = vrot.slane %v685_v13, 4  ;;  %v549_v24 = vrot.slane %v547_v14, 7  ;;  %v4583_v28 = vpack.c.bf16 %v4715_v21, %v4715_v21  ;;  %v866_v3 = vld [vmem:[#allocation2 + $0x24] sm:$0xf]  ;;  %v926_v9 = vld [vmem:[#allocation2 + $0x8c] sm:$0x1] }
  0xa7   : > { %v693_v26 = vrot.slane %v691_v16, 7  ;;  %v4716_v30 = vpop.trf.xlu0  ;;  %v555_v37 = vshrl.u32 %v4566_v27, 16  ;;  %v558_v38 = vshll.u32 %v4566_v27, 16  ;;  %v4567_v45 = vpack.c.bf16 %v4712_v29, %v4712_v29 }
  0xa8   : > { %v916_v31 = vsel %vm5198_vm9, %v688_v22, %v915_v18  ;;  %v552_v32 = vor.u32 %v550_v15, %v549_v24  ;;  %v553_v33 = vrot.slane %v549_v24, 4  ;;  %v700_v39 = vshrl.u32 %v4583_v28, 16  ;;  %v870_v22 = vld [vmem:[#allocation2 + $0x2c] sm:$0x1] }
  0xa9   : > { %v696_v35 = vor.u32 %v694_v19, %v693_v26  ;;  %917 = vst [vmem:[#allocation2 + $0x78] sm:$0xf] %v916_v31  ;;  %v698_v36 = vrot.slane %v693_v26, 4  ;;  %v703_v44 = vshll.u32 %v4583_v28, 16  ;;  %v557_v48 = vrot.slane %v555_v37, 7 }
  0xaa   : > { %v860_v40 = vsel %vm5198_vm9, %v552_v32, %v859_v17  ;;  %v702_v49 = vrot.slane %v700_v39, 7  ;;  %v4720_v50 = vunpack.i.h.bf16 %v4716_v30  ;;  %v564_v53 = vshrl.u32 %v4567_v45, 16 }
  0xab   : > { %v697_v42 = vsel %vm5212_vm10, %v689_v23, %v696_v35  ;;  %861 = vst [vmem:[#allocation2 + $0x18] sm:$0xf] %v860_v40  ;;  %v920_v47 = vsel %vm5110_vm2, %v698_v36, %v919_v25  ;;  %v4721_v51 = vpop.trf.xlu0  ;;  %v4812_v52 = vld [vmem:[#allocation2 + $0xc] sm:$0xff]   ;;  %v567_v54 = vshll.u32 %v4567_v45, 16  ;;  %v560_v55 = vor.u32 %v558_v38, %v557_v48 }
  0xac   : > { %918 = vst.msk [vmem:[#allocation2 + $0x7c] sm:$0xf] %vm243_vm3, %v697_v42  ;;  %921 = vst [vmem:[#allocation2 + $0x80] sm:$0x1] %v920_v47  ;;  %v562_v56 = vrot.slane %v557_v48, 4  ;;  %v705_v58 = vor.u32 %v703_v44, %v702_v49  ;;  %v706_v59 = vrot.slane %v702_v49, 4  ;;  %1945 = vrot.lane.b32.xlu1 %v4812_v52, %s5064_s26  ;;  %v4584_v61 = vpack.c.bf16 %v4720_v50, %v4720_v50 }
  0xad   : > { %v566_v60 = vrot.slane %v564_v53, 7  ;;  %v4717_v62 = vunpack.i.l.bf16 %v4716_v30  ;;  %v4725_v63 = vunpack.i.h.bf16 %v4721_v51  ;;  %v561_v1 = vsel %vm5212_vm10, %v553_v33, %v560_v55  ;;  %v929_v25 = vld [vmem:[#allocation2 + $0x90] sm:$0xf]  ;;  %v4814_v32 = vld [vmem:[#allocation2 + $0x74] ss:$0 sps:$4 sm:$0x11]  }
  0xae   : > { %v864_v2 = vsel %vm5110_vm2, %v562_v56, %v863_v41  ;;  %v923_v4 = vsel %vm5198_vm9, %v705_v58, %v922_v43  ;;  %862 = vst.msk [vmem:[#allocation2 + $0x1c] sm:$0xf] %vm243_vm3, %v561_v1  ;;  %v708_v7 = vshrl.u32 %v4584_v61, 16  ;;  %v711_v8 = vshll.u32 %v4584_v61, 16  ;;  %v4813_v28 = vld [vmem:[#allocation2 + $0x6c] sm:$0xfe]  }
  0xaf   : > { %865 = vst [vmem:[#allocation2 + $0x20] sm:$0x1] %v864_v2  ;;  %924 = vst [vmem:[#allocation2 + $0x84] sm:$0xf] %v923_v4  ;;  %v569_v5 = vor.u32 %v567_v54, %v566_v60  ;;  %v570_v6 = vrot.slane %v566_v60, 4  ;;  %v4568_v11 = vpack.c.bf16 %v4717_v62, %v4717_v62  ;;  %v4585_v12 = vpack.c.bf16 %v4725_v63, %v4725_v63  ;;  %v4726_v14 = vpop.trf.xlu0 }
  0xb0   : > { %v4722_v13 = vunpack.i.l.bf16 %v4721_v51  ;;  %v710_v16 = vrot.slane %v708_v7, 7  ;;  %v4730_v17 = vunpack.i.h.bf16 %v4726_v14  ;;  %v4727_v31 = vunpack.i.l.bf16 %v4726_v14  ;;  %v4815_v33 = vld [vmem:[#allocation2 + $0xc] sm:$0xfe]   ;;  %v4816_v35 = vld [vmem:[#allocation2 + $0x14] ss:$0 sps:$4 sm:$0x11]  }
  0xb1   : > { %v867_v15 = vsel %vm5198_vm9, %v569_v5, %v866_v3  ;;  %v572_v18 = vshrl.u32 %v4568_v11, 16  ;;  %v575_v19 = vshll.u32 %v4568_v11, 16  ;;  %v717_v20 = vshrl.u32 %v4585_v12, 16  ;;  %v873_v44 = vld [vmem:[#allocation2 + $0x30] sm:$0xf] }
  0xb2   : > { %868 = vst [vmem:[#allocation2 + $0x24] sm:$0xf] %v867_v15  ;;  %v720_v21 = vshll.u32 %v4585_v12, 16  ;;  %v713_v23 = vor.u32 %v711_v8, %v710_v16  ;;  %v715_v24 = vrot.slane %v710_v16, 4  ;;  %v4569_v26 = vpack.c.bf16 %v4722_v13, %v4722_v13  ;;  %v933_v52 = vld [vmem:[#allocation2 + $0x98] sm:$0x1] }
  0xb3   : > { %v4586_v27 = vpack.c.bf16 %v4730_v17, %v4730_v17  ;;  %v574_v29 = vrot.slane %v572_v18, 7  ;;  %v719_v30 = vrot.slane %v717_v20, 7  ;;  %v4570_v48 = vpack.c.bf16 %v4727_v31, %v4727_v31  ;;  %v4731_v54 = vpop.trf.xlu0  ;;  %v4818_v55 = vld [vmem:[#allocation2 + $0xc] sm:$0xfe]   ;;  %v877_v4 = vld [vmem:[#allocation2 + $0x38] sm:$0x1] }
  0xb4   : > { %v927_v36 = vsel %vm5110_vm2, %v715_v24, %v926_v9  ;;  %v714_v37 = vsel %vm5212_vm10, %v706_v59, %v713_v23  ;;  %v581_v38 = vshrl.u32 %v4569_v26, 16  ;;  %v584_v39 = vshll.u32 %v4569_v26, 16  ;;  %v4819_v61 = vld [vmem:[#allocation2 + $0x14] ss:$0 sps:$4 sm:$0x11]   ;;  %v4817_v12 = vld [vmem:[#allocation2 + $0x78] sm:$0xff]  }
  0xb5   : > { %928 = vst [vmem:[#allocation2 + $0x8c] sm:$0x1] %v927_v36  ;;  %v577_v40 = vor.u32 %v575_v19, %v574_v29  ;;  %v579_v41 = vrot.slane %v574_v29, 4  ;;  %925 = vst.msk [vmem:[#allocation2 + $0x88] sm:$0xf] %vm243_vm3, %v714_v37  ;;  %v722_v42 = vor.u32 %v720_v21, %v719_v30  ;;  %v723_v43 = vrot.slane %v719_v30, 4 }
  0xb6   : > { %v583_v45 = vrot.slane %v581_v38, 7  ;;  %v725_v46 = vshrl.u32 %v4586_v27, 16  ;;  %v728_v47 = vshll.u32 %v4586_v27, 16  ;;  %v1747_v53 = vrot.slane %v4813_v28, 1  ;;  %v4820_v13 = vld [vmem:[#allocation2 + $0x6c] sm:$0xfe]  }
  0xb7   : > { %v578_v49 = vsel %vm5212_vm10, %v570_v6, %v577_v40  ;;  %v871_v50 = vsel %vm5110_vm2, %v579_v41, %v870_v22  ;;  %v930_v51 = vsel %vm5198_vm9, %v722_v42, %v929_v25  ;;  %v589_v60 = vshrl.u32 %v4570_v48, 16  ;;  %v4821_v18 = vld [vmem:[#allocation2 + $0x74] ss:$0 sps:$4 sm:$0x11]   ;;  %v4736_v22 = vpop.trf.xlu0  ;;  %v5273_v27 = vld [vmem:[#allocation2 + $0xc] sm:$0xff]  }
  0xb8   : > { %869 = vst.msk [vmem:[#allocation2 + $0x28] sm:$0xf] %vm243_vm3, %v578_v49  ;;  %872 = vst [vmem:[#allocation2 + $0x2c] sm:$0x1] %v871_v50  ;;  %v586_v56 = vor.u32 %v584_v39, %v583_v45  ;;  %v587_v58 = vrot.slane %v583_v45, 4  ;;  %v727_v59 = vrot.slane %v725_v46, 7  ;;  %v4735_v11 = vunpack.i.h.bf16 %v4731_v54 }
  0xb9   : > { %931 = vst [vmem:[#allocation2 + $0x90] sm:$0xf] %v930_v51  ;;  %v592_v62 = vshll.u32 %v4570_v48, 16  ;;  %v1748_v63 = vrot.slane %v4814_v32, 1  ;;  %v1723_v1 = vrot.slane %v4815_v33, 1  ;;  %v1724_v2 = vrot.slane %v4816_v35, 1 }
  0xba   : > { %v874_v3 = vsel %vm5198_vm9, %v586_v56, %v873_v44  ;;  %v730_v5 = vor.u32 %v728_v47, %v727_v59  ;;  %v732_v6 = vrot.slane %v727_v59, 4  ;;  %v591_v7 = vrot.slane %v589_v60, 7  ;;  %v936_v31 = vld [vmem:[#allocation2 + $0x9c] sm:$0xf]  ;;  %v4822_v46 = vld [vmem:[#allocation2 + $0x6c] sm:$0xff]  }
  0xbb   : > { %875 = vst [vmem:[#allocation2 + $0x30] sm:$0xf] %v874_v3  ;;  %v1749_v8 = vsel %vm1719_vm6, %v1747_v53, %v1748_v63  ;;  %v1725_v9 = vsel %vm1719_vm6, %v1723_v1, %v1724_v2  ;;  %v4587_v19 = vpack.c.bf16 %v4735_v11, %v4735_v11  ;;  %v4732_v20 = vunpack.i.l.bf16 %v4731_v54  ;;  %v4824_v36 = vld [vmem:[#allocation2 + $0x14] ss:$0 sps:$4 sm:$0x11]  }
  0xbc   : > { %v934_v14 = vsel %vm5110_vm2, %v732_v6, %v933_v52  ;;  %v594_v15 = vor.u32 %v592_v62, %v591_v7  ;;  %v596_v16 = vrot.slane %v591_v7, 4  ;;  %v731_v17 = vsel %vm5212_vm10, %v723_v43, %v730_v5  ;;  %1786 = vrot.lane.b32.xlu0 %v1749_v8, %s5062_s24  ;;  %1770 = vrot.lane.b32.xlu1 %v1725_v9, %s5062_s24  ;;  %v880_v41 = vld [vmem:[#allocation2 + $0x3c] sm:$0xf]  ;;  %v940_v50 = vld [vmem:[#allocation2 + $0xa4] sm:$0x1]  ;;  %v4825_v52 = vld [vmem:[#allocation2 + $0xc] sm:$0xff]  }
  0xbd   : > { %935 = vst [vmem:[#allocation2 + $0x98] sm:$0x1] %v934_v14  ;;  %932 = vst.msk [vmem:[#allocation2 + $0x94] sm:$0xf] %vm243_vm3, %v731_v17  ;;  %v2619_v21 = vrot.slane %v4818_v55, 1  ;;  %v2620_v25 = vrot.slane %v4819_v61, 1  ;;  %v4740_v26 = vunpack.i.h.bf16 %v4736_v22  ;;  %v4571_v30 = vpack.c.bf16 %v4732_v20, %v4732_v20 }
  0xbe   : > { %v595_v23 = vsel %vm5212_vm10, %v587_v58, %v594_v15  ;;  %v878_v24 = vsel %vm5110_vm2, %v596_v16, %v877_v4  ;;  %v734_v28 = vshrl.u32 %v4587_v19, 16  ;;  %v737_v29 = vshll.u32 %v4587_v19, 16  ;;  %v4826_v53 = vld [vmem:[#allocation2 + $0x14] ss:$0 sps:$4 sm:$0x11]  }
  0xbf   : > { %876 = vst.msk [vmem:[#allocation2 + $0x34] sm:$0xf] %vm243_vm3, %v595_v23  ;;  %879 = vst [vmem:[#allocation2 + $0x38] sm:$0x1] %v878_v24  ;;  %v2621_v32 = vsel %vm1719_vm6, %v2619_v21, %v2620_v25  ;;  %v4588_v33 = vpack.c.bf16 %v4740_v26, %v4740_v26  ;;  %v4737_v35 = vunpack.i.l.bf16 %v4736_v22  ;;  %v598_v38 = vshrl.u32 %v4571_v30, 16  ;;  %v4741_v24 = vpop.trf.xlu0 }
  0xc0   : > { %1963 = vrot.lane.b32.xlu0 %v4817_v12, %s5064_s26  ;;  %v736_v37 = vrot.slane %v734_v28, 7  ;;  %v601_v39 = vshll.u32 %v4571_v30, 16  ;;  %2667 = vrot.lane.b32.xlu1 %v2621_v32, %s5065_s27  ;;  %v2643_v40 = vrot.slane %v4820_v13, 1  ;;  %v2644_v45 = vrot.slane %v4821_v18, 1  ;;  %v884_v63 = vld [vmem:[#allocation2 + $0x44] sm:$0x1] }
  0xc1   : > { %v742_v42 = vshrl.u32 %v4588_v33, 16  ;;  %v745_v43 = vshll.u32 %v4588_v33, 16  ;;  %v4572_v44 = vpack.c.bf16 %v4737_v35, %v4737_v35  ;;  %v600_v49 = vrot.slane %v598_v38, 7  ;;  %v4828_v59 = vld [vmem:[#allocation2 + $0x80] ss:$0 sps:$4 sm:$0x11]  }
  0xc2   : > { %v739_v47 = vor.u32 %v737_v29, %v736_v37  ;;  %v740_v48 = vrot.slane %v736_v37, 4  ;;  %v1299_v51 = vshrl.u32 %v5273_v27, 16  ;;  %v2645_v58 = vsel %vm1719_vm6, %v2643_v40, %v2644_v45  ;;  %v4827_v2 = vld [vmem:[#allocation2 + $0x78] sm:$0xfe]   ;;  %v4829_v13 = vld [vmem:[#allocation2 + $0x6c] sm:$0xff]  }
  0xc3   : > { %v744_v54 = vrot.slane %v742_v42, 7  ;;  %v606_v55 = vshrl.u32 %v4572_v44, 16  ;;  %v609_v56 = vshll.u32 %v4572_v44, 16  ;;  %v603_v61 = vor.u32 %v601_v39, %v600_v49  ;;  %v4830_v7 = vld [vmem:[#allocation2 + $0x74] ss:$0 sps:$4 sm:$0x11]  }
  0xc4   : > { %v937_v60 = vsel %vm5198_vm9, %v739_v47, %v936_v31  ;;  %v604_v62 = vrot.slane %v600_v49, 4  ;;  %2683 = vrot.lane.b32.xlu0 %v2645_v58, %s5065_s27  ;;  %1961 = vrot.lane.b32.xlu1 %v4822_v46, %s5064_s26  ;;  %v1301_v1 = vshll.u32 %v5273_v27, 16  ;;  %v1306_v6 = vshll.u32 %v4824_v36, 16 }
  0xc5   : > { %938 = vst [vmem:[#allocation2 + $0x9c] sm:$0xf] %v937_v60  ;;  %v747_v3 = vor.u32 %v745_v43, %v744_v54  ;;  %v749_v4 = vrot.slane %v744_v54, 4  ;;  %v608_v5 = vrot.slane %v606_v55, 7  ;;  %v881_v8 = vsel %vm5198_vm9, %v603_v61, %v880_v41  ;;  %v5305_v55 = vld [vmem:[#allocation2 + $0x6c] sm:$0xff]  }
  0xc6   : > { %v1303_v9 = vrot.slane %v1301_v1, 1  ;;  %v2187_v11 = vshrl.u32 %v4825_v52, 16  ;;  %v2189_v12 = vshll.u32 %v4825_v52, 16  ;;  %882 = vst [vmem:[#allocation2 + $0x3c] sm:$0xf] %v881_v8  ;;  %v1308_v21 = vrot.slane %v1306_v6, 1 }
  0xc7   : > { %v941_v14 = vsel %vm5110_vm2, %v749_v4, %v940_v50  ;;  %v611_v15 = vor.u32 %v609_v56, %v608_v5  ;;  %v613_v16 = vrot.slane %v608_v5, 4  ;;  %v748_v17 = vsel %vm5212_vm10, %v740_v48, %v747_v3  ;;  %v4831_v18 = vld [vmem:[#allocation2 + $0x30] sm:$0xfe]   ;;  %v4832_v19 = vld [vmem:[#allocation2 + $0x38] ss:$0 sps:$4 sm:$0x11]   ;;  %v4746_v50 = vpop.trf.xlu0 }
  0xc8   : > { %942 = vst [vmem:[#allocation2 + $0xa4] sm:$0x1] %v941_v14  ;;  %939 = vst.msk [vmem:[#allocation2 + $0xa0] sm:$0xf] %vm243_vm3, %v748_v17  ;;  %v1304_v20 = vor.u32 %v1303_v9, %v1299_v51  ;;  %v2191_v22 = vrot.slane %v2189_v12, 1  ;;  %v2194_v23 = vshll.u32 %v4826_v53, 16  ;;  %v4745_v42 = vunpack.i.h.bf16 %v4741_v24 }
  0xc9   : > { %v612_v25 = vsel %vm5212_vm10, %v604_v62, %v611_v15  ;;  %v885_v26 = vsel %vm5110_vm2, %v613_v16, %v884_v63  ;;  %v2646_v27 = vrot.slane %v4827_v2, 1  ;;  %v2647_v28 = vrot.slane %v4828_v59, 1  ;;  %v4834_v33 = vld [vmem:[#allocation2 + $0x30] sm:$0xff]   ;;  %v4835_v39 = vld [vmem:[#allocation2 + $0x38] ss:$0 sps:$4 sm:$0x11]  }
  0xca   : > { %883 = vst.msk [vmem:[#allocation2 + $0x40] sm:$0xf] %vm243_vm3, %v612_v25  ;;  %886 = vst [vmem:[#allocation2 + $0x44] sm:$0x1] %v885_v26  ;;  %v1309_v29 = vsel %vm1285_vm7, %v1304_v20, %v1308_v21  ;;  %v2192_v30 = vor.u32 %v2191_v22, %v2187_v11  ;;  %v2196_v31 = vrot.slane %v2194_v23, 1  ;;  %v1395_v32 = vshrl.u32 %v4829_v13, 16 }
  0xcb   : > { %1480 = vrot.lane.b32.xlu1 %v1309_v29, %s5063_s25  ;;  %v2648_v35 = vsel %vm1719_vm6, %v2646_v27, %v2647_v28  ;;  %v1397_v36 = vshll.u32 %v4829_v13, 16  ;;  %v1402_v37 = vshll.u32 %v4830_v7, 16  ;;  %v2628_v38 = vrot.slane %v4831_v18, 1  ;;  %v4839_v60 = vld [vmem:[#allocation2 + $0x74] ss:$0 sps:$4 sm:$0x11]  }
  0xcc   : > { %v2197_v40 = vsel %vm1285_vm7, %v2192_v30, %v2196_v31  ;;  %2685 = vrot.lane.b32.xlu0 %v2648_v35, %s5065_s27  ;;  %v2629_v41 = vrot.slane %v4832_v19, 1  ;;  %v4742_v45 = vunpack.i.l.bf16 %v4741_v24  ;;  %v4589_v47 = vpack.c.bf16 %v4745_v42, %v4745_v42  ;;  %v887_v2 = vld [vmem:[#allocation2 + $0x48] sm:$0xf]  ;;  %v4833_v6 = vld [vmem:[#allocation2 + $0x18] sm:$0xff]   ;;  %v947_v19 = vld [vmem:[#allocation2 + $0xb0] sm:$0x1] }
  0xcd   : > { %v1399_v43 = vrot.slane %v1397_v36, 1  ;;  %v1404_v44 = vrot.slane %v1402_v37, 1  ;;  %v1335_v48 = vshrl.u32 %v4834_v33, 16  ;;  %v1337_v49 = vshll.u32 %v4834_v33, 16  ;;  %v943_v7 = vld [vmem:[#allocation2 + $0xa8] sm:$0xf] }
  0xce   : > { %v2630_v46 = vsel %vm1719_vm6, %v2628_v38, %v2629_v41  ;;  %v4573_v52 = vpack.c.bf16 %v4742_v45, %v4742_v45  ;;  %v1342_v53 = vshll.u32 %v4835_v39, 16  ;;  %v4750_v54 = vunpack.i.h.bf16 %v4746_v50  ;;  %v5314_v16 = vld [vmem:[#allocation2 + $0x18] sm:$0xfe]   ;;  %v5320_v28 = vld [vmem:[#allocation2 + $0x20] ss:$0 sps:$4 sm:$0x11]  }
  0xcf   : > { %2378 = vrot.lane.b32.xlu1 %v2197_v40, %s5066_s28  ;;  %v1400_v51 = vor.u32 %v1399_v43, %v1395_v32  ;;  %v751_v56 = vshrl.u32 %v4589_v47, 16  ;;  %v754_v58 = vshll.u32 %v4589_v47, 16  ;;  %v1339_v59 = vrot.slane %v1337_v49, 1  ;;  %v4836_v31 = vld [vmem:[#allocation2 + $0x18] sm:$0xff]   ;;  %v891_v38 = vld [vmem:[#allocation2 + $0x50] sm:$0x1] }
  0xd0   : > { %2673 = vrot.lane.b32.xlu0 %v2630_v46, %s5065_s27  ;;  %v615_v62 = vshrl.u32 %v4573_v52, 16  ;;  %v618_v63 = vshll.u32 %v4573_v52, 16  ;;  %v1344_v1 = vrot.slane %v1342_v53, 1  ;;  %v4590_v5 = vpack.c.bf16 %v4750_v54, %v4750_v54  ;;  %v4846_v36 = vld [vmem:[#allocation2 + $0x18] sm:$0xfe]  }
  0xd1   : > { %v1405_v61 = vsel %vm1285_vm7, %v1400_v51, %v1404_v44  ;;  %v753_v3 = vrot.slane %v751_v56, 7  ;;  %v1340_v4 = vor.u32 %v1339_v59, %v1335_v48  ;;  %v4747_v9 = vunpack.i.l.bf16 %v4746_v50  ;;  %v4837_v15 = vld [vmem:[#allocation2 + $0x3c] sm:$0xff]   ;;  %v4841_v23 = vld [vmem:[#allocation2 + $0x44] ss:$0 sps:$4 sm:$0x11]  }
  0xd2   : > { %v5310_v8 = vrot.slane %v615_v62, 7  ;;  %v2285_v11 = vshll.u32 %v5305_v55, 16  ;;  %v759_v14 = vshrl.u32 %v4590_v5, 16  ;;  %v762_v20 = vshll.u32 %v4590_v5, 16  ;;  %v4840_v22 = vld [vmem:[#allocation2 + $0x3c] sm:$0xff]  }
  0xd3   : > { %1496 = vrot.lane.b32.xlu1 %v1405_v61, %s5063_s25  ;;  %v756_v12 = vor.u32 %v754_v58, %v753_v3  ;;  %v1345_v13 = vsel %vm1285_vm7, %v1340_v4, %v1344_v1  ;;  %v757_v17 = vrot.slane %v753_v3, 4  ;;  %v4574_v21 = vpack.c.bf16 %v4747_v9, %v4747_v9  ;;  %v4845_v29 = vld [vmem:[#allocation2 + $0x44] ss:$0 sps:$4 sm:$0x11]   ;;  %v4844_v42 = vld [vmem:[#allocation2 + $0x3c] sm:$0xff]  }
  0xd4   : > { %v620_v18 = vor.u32 %v618_v63, %v5310_v8  ;;  %1486 = vrot.lane.b32.xlu0 %v1345_v13, %s5063_s25  ;;  %v761_v25 = vrot.slane %v759_v14, 7  ;;  %v2287_v26 = vrot.slane %v2285_v11, 1  ;;  %v2290_v27 = vshll.u32 %v4839_v60, 16  ;;  %v4847_v43 = vld [vmem:[#allocation2 + $0x20] ss:$0 sps:$4 sm:$0x11]  }
  0xd5   : > { %v944_v24 = vsel %vm5198_vm9, %v756_v12, %v943_v7  ;;  %v623_v32 = vshrl.u32 %v4574_v21, 16  ;;  %v626_v33 = vshll.u32 %v4574_v21, 16  ;;  %v2283_v35 = vshrl.u32 %v5305_v55, 16  ;;  %v4848_v52 = vld [vmem:[#allocation2 + $0x3c] sm:$0xfe]  }
  0xd6   : > { %945 = vst [vmem:[#allocation2 + $0xa8] sm:$0xf] %v944_v24  ;;  %v888_v30 = vsel %vm5198_vm9, %v620_v18, %v887_v2  ;;  %v621_v37 = vrot.slane %v5310_v8, 4  ;;  %v764_v39 = vor.u32 %v762_v20, %v761_v25  ;;  %v766_v40 = vrot.slane %v761_v25, 4  ;;  %v5335_v59 = vld [vmem:[#allocation2 + $0x18] sm:$0xfe]   ;;  %v4751_v2 = vpop.trf.xlu0 }
  0xd7   : > { %1947 = vrot.lane.b32.xlu1 %v4833_v6, %s5064_s26  ;;  %889 = vst [vmem:[#allocation2 + $0x48] sm:$0xf] %v888_v30  ;;  %v3123_v41 = vshrl.u32 %v4840_v22, 16  ;;  %v625_v44 = vrot.slane %v623_v32, 7  ;;  %v2292_v45 = vrot.slane %v2290_v27, 1  ;;  %v3125_v46 = vshll.u32 %v4840_v22, 16 }
  0xd8   : > { %2851 = vrot.lane.b32.xlu0 %v4837_v15, %s5067_s29  ;;  %v3130_v47 = vshll.u32 %v4841_v23, 16  ;;  %v948_v48 = vsel %vm5110_vm2, %v766_v40, %v947_v19  ;;  %v765_v49 = vsel %vm5212_vm10, %v757_v17, %v764_v39  ;;  %v2288_v50 = vor.u32 %v2287_v26, %v2283_v35  ;;  %v4849_v53 = vld [vmem:[#allocation2 + $0x44] ss:$0 sps:$4 sm:$0x11]   ;;  %v5344_v7 = vld [vmem:[#allocation2 + $0x18] sm:$0xff]  }
  0xd9   : > { %v2622_v51 = vrot.slane %v5314_v16, 1  ;;  %949 = vst [vmem:[#allocation2 + $0xb0] sm:$0x1] %v948_v48  ;;  %v628_v54 = vor.u32 %v626_v33, %v625_v44  ;;  %v630_v55 = vrot.slane %v625_v44, 4  ;;  %946 = vst.msk [vmem:[#allocation2 + $0xac] sm:$0xf] %vm243_vm3, %v765_v49  ;;  %v4755_v19 = vunpack.i.h.bf16 %v4751_v2 }
  0xda   : > { %v3127_v56 = vrot.slane %v3125_v46, 1  ;;  %v3132_v58 = vrot.slane %v3130_v47, 1  ;;  %v5337_v60 = vld [vmem:[#allocation2 + $0x20] ss:$0 sps:$4 sm:$0x11]   ;;  %v2623_v61 = vrot.slane %v5320_v28, 1  ;;  %v2293_v8 = vsel %vm1285_vm7, %v2288_v50, %v2292_v45  ;;  %v5359_v28 = vpop.trf.xlu0 }
  0xdb   : > { %2845 = vrot.lane.b32.xlu1 %v4836_v31, %s5067_s29  ;;  %v1347_v62 = vshrl.u32 %v4844_v42, 16  ;;  %v1349_v63 = vshll.u32 %v4844_v42, 16  ;;  %v1354_v1 = vshll.u32 %v4845_v29, 16  ;;  %v629_v3 = vsel %vm5212_vm10, %v621_v37, %v628_v54  ;;  %v5350_v16 = vld [vmem:[#allocation2 + $0x84] sm:$0xff]   ;;  %v5367_v39 = vld [vmem:[#allocation2 + $0x18] sm:$0xff]  }
  0xdc   : > { %v892_v4 = vsel %vm5110_vm2, %v630_v55, %v891_v38  ;;  %v3128_v5 = vor.u32 %v3127_v56, %v3123_v41  ;;  %v3519_v6 = vrot.slane %v4846_v36, 1  ;;  %890 = vst.msk [vmem:[#allocation2 + $0x4c] sm:$0xf] %vm243_vm3, %v629_v3  ;;  %v3520_v12 = vrot.slane %v4847_v43, 1  ;;  %v950_v42 = vld [vmem:[#allocation2 + $0xb4] sm:$0xf] }
  0xdd   : > { %893 = vst [vmem:[#allocation2 + $0x50] sm:$0x1] %v892_v4  ;;  %v1351_v9 = vrot.slane %v1349_v63, 1  ;;  %v1356_v11 = vrot.slane %v1354_v1, 1  ;;  %v1735_v14 = vrot.slane %v4848_v52, 1  ;;  %v1736_v15 = vrot.slane %v4849_v53, 1 }
  0xde   : > { %v3133_v13 = vsel %vm1285_vm7, %v3128_v5, %v3132_v58  ;;  %v2624_v17 = vsel %vm1719_vm6, %v2622_v51, %v2623_v61  ;;  %v3521_v20 = vsel %vm1719_vm6, %v3519_v6, %v3520_v12  ;;  %v1726_v21 = vrot.slane %v5335_v59, 1  ;;  %v4856_v23 = vld [vmem:[#allocation2 + $0x20] ss:$0 sps:$4 sm:$0x11]   ;;  %v4852_v45 = vld [vmem:[#allocation2 + $0x84] sm:$0xff]   ;;  %v5373_v50 = vld [vmem:[#allocation2 + $0x78] sm:$0xff]  }
  0xdf   : > { %2394 = vrot.lane.b32.xlu1 %v2293_v8, %s5066_s28  ;;  %3284 = vrot.lane.b32.xlu0 %v3133_v13, %s5068_s30  ;;  %v1352_v18 = vor.u32 %v1351_v9, %v1347_v62  ;;  %v1727_v22 = vrot.slane %v5337_v60, 1  ;;  %v2201_v24 = vshll.u32 %v5344_v7, 16  ;;  %v4591_v26 = vpack.c.bf16 %v4755_v19, %v4755_v19  ;;  %v4858_v32 = vld [vmem:[#allocation2 + $0x8c] ss:$0 sps:$4 sm:$0x11]   ;;  %v5380_v60 = vld [vmem:[#allocation2 + $0x18] sm:$0xff]  }
  0xe0   : > { %v4752_v27 = vunpack.i.l.bf16 %v4751_v2  ;;  %v1737_v29 = vsel %vm1719_vm6, %v1735_v14, %v1736_v15  ;;  %v2199_v30 = vshrl.u32 %v5344_v7, 16  ;;  %v2206_v31 = vshll.u32 %v4856_v23, 16  ;;  %v894_v51 = vld [vmem:[#allocation2 + $0x54] sm:$0xf]  ;;  %v954_v6 = vld [vmem:[#allocation2 + $0xbc] sm:$0x1] }
  0xe1   : > { %v1357_v25 = vsel %vm1285_vm7, %v1352_v18, %v1356_v11  ;;  %v4760_v33 = vunpack.i.h.bf16 %v5359_v28  ;;  %v768_v35 = vshrl.u32 %v4591_v26, 16  ;;  %v771_v36 = vshll.u32 %v4591_v26, 16  ;;  %v4860_v53 = vld [vmem:[#allocation2 + $0x20] ss:$0 sps:$4 sm:$0x11]   ;;  %v4853_v8 = vld [vmem:[#allocation2 + $0x78] sm:$0xff]  }
  0xe2   : > { %v4575_v37 = vpack.c.bf16 %v4752_v27, %v4752_v27  ;;  %v3197_v38 = vshll.u32 %v5350_v16, 16  ;;  %v2203_v40 = vrot.slane %v2201_v24, 1  ;;  %v5369_v41 = vrot.slane %v2206_v31, 1  ;;  %v4862_v7 = vld [vmem:[#allocation2 + $0x80] ss:$0 sps:$4 sm:$0x11]  }
  0xe3   : > { %2669 = vrot.lane.b32.xlu1 %v2624_v17, %s5065_s27  ;;  %1488 = vrot.lane.b32.xlu0 %v1357_v25, %s5063_s25  ;;  %v3195_v43 = vshrl.u32 %v5350_v16, 16  ;;  %v3202_v44 = vshll.u32 %v4858_v32, 16  ;;  %v770_v46 = vrot.slane %v768_v35, 7  ;;  %v3087_v49 = vshrl.u32 %v5367_v39, 16  ;;  %v4854_v9 = vld [vmem:[#allocation2 + $0x48] sm:$0xff]   ;;  %v4867_v27 = vld [vmem:[#allocation2 + $0x78] sm:$0xff]  }
  0xe4   : > { %v632_v47 = vshrl.u32 %v4575_v37, 16  ;;  %v635_v48 = vshll.u32 %v4575_v37, 16  ;;  %v3199_v52 = vrot.slane %v3197_v38, 1  ;;  %v4592_v54 = vpack.c.bf16 %v4760_v33, %v4760_v33  ;;  %v4865_v32 = vld [vmem:[#allocation2 + $0x3c] sm:$0xfe]   ;;  %v4869_v33 = vld [vmem:[#allocation2 + $0x84] sm:$0xff]  }
  0xe5   : > { %v1728_v55 = vsel %vm1719_vm6, %v1726_v21, %v1727_v22  ;;  %v773_v56 = vor.u32 %v771_v36, %v770_v46  ;;  %v3204_v59 = vrot.slane %v3202_v44, 1  ;;  %v3089_v61 = vshll.u32 %v5367_v39, 16  ;;  %v4864_v22 = vld [vmem:[#allocation2 + $0x20] ss:$0 sps:$4 sm:$0x11]  }
  0xe6   : > { %v5378_v58 = vrot.slane %v632_v47, 7  ;;  %v3094_v62 = vshll.u32 %v4860_v53, 16  ;;  %v776_v63 = vshrl.u32 %v4592_v54, 16  ;;  %v779_v1 = vshll.u32 %v4592_v54, 16  ;;  %v898_v44 = vld [vmem:[#allocation2 + $0x5c] sm:$0x1] }
  0xe7   : > { %3567 = vrot.lane.b32.xlu1 %v3521_v20, %s5069_s6  ;;  %1778 = vrot.lane.b32.xlu0 %v1737_v29, %s5062_s24  ;;  %v2204_v2 = vor.u32 %v2203_v40, %v2199_v30  ;;  %v774_v3 = vrot.slane %v770_v46, 4  ;;  %v951_v4 = vsel %vm5198_vm9, %v773_v56, %v950_v42  ;;  %v3200_v12 = vor.u32 %v3199_v52, %v3195_v43  ;;  %v4866_v40 = vld [vmem:[#allocation2 + $0x44] ss:$0 sps:$4 sm:$0x11]   ;;  %v5404_v42 = vpop.trf.xlu0 }
  0xe8   : > { %v637_v5 = vor.u32 %v635_v48, %v5378_v58  ;;  %952 = vst [vmem:[#allocation2 + $0xb4] sm:$0xf] %v951_v4  ;;  %v638_v11 = vrot.slane %v5378_v58, 4  ;;  %v778_v13 = vrot.slane %v776_v63, 7  ;;  %v3091_v15 = vrot.slane %v3089_v61, 1 }
  0xe9   : > { %v4757_v16 = vunpack.i.l.bf16 %v5359_v28  ;;  %v1409_v17 = vshll.u32 %v5373_v50, 16  ;;  %v3096_v18 = vrot.slane %v3094_v62, 1  ;;  %v1414_v21 = vshll.u32 %v4862_v7, 16  ;;  %v4868_v53 = vld [vmem:[#allocation2 + $0x80] ss:$0 sps:$4 sm:$0x11]  }
  0xea   : > { %v895_v14 = vsel %vm5198_vm9, %v637_v5, %v894_v51  ;;  %v781_v19 = vor.u32 %v779_v1, %v778_v13  ;;  %v783_v20 = vrot.slane %v778_v13, 4  ;;  %v1407_v24 = vshrl.u32 %v5373_v50, 16  ;;  %v4870_v61 = vld [vmem:[#allocation2 + $0x8c] ss:$0 sps:$4 sm:$0x11]  }
  0xeb   : > { %1772 = vrot.lane.b32.xlu1 %v1728_v55, %s5062_s24  ;;  %2863 = vrot.lane.b32.xlu0 %v4852_v45, %s5067_s29  ;;  %896 = vst [vmem:[#allocation2 + $0x54] sm:$0xf] %v895_v14  ;;  %v4576_v23 = vpack.c.bf16 %v4757_v16, %v4757_v16  ;;  %v1411_v25 = vrot.slane %v1409_v17, 1  ;;  %v1313_v26 = vshll.u32 %v5380_v60, 16  ;;  %v1416_v30 = vrot.slane %v1414_v21, 1  ;;  %v5423_v7 = vpop.trf.xlu0 }
  0xec   : > { %v955_v28 = vsel %vm5110_vm2, %v783_v20, %v954_v6  ;;  %v782_v29 = vsel %vm5212_vm10, %v774_v3, %v781_v19  ;;  %v1311_v31 = vshrl.u32 %v5380_v60, 16  ;;  %v3205_v35 = vsel %vm1285_vm7, %v3200_v12, %v3204_v59  ;;  %v5421_v6 = vld [vmem:[#allocation2 + $0x24] sm:$0xff]   ;;  %v4873_v14 = vld [vmem:[#allocation2 + $0x50] ss:$0 sps:$4 sm:$0x11]  }
  0xed   : > { %956 = vst [vmem:[#allocation2 + $0xbc] sm:$0x1] %v955_v28  ;;  %v640_v36 = vshrl.u32 %v4576_v23, 16  ;;  %v643_v37 = vshll.u32 %v4576_v23, 16  ;;  %953 = vst.msk [vmem:[#allocation2 + $0xb8] sm:$0xf] %vm243_vm3, %v782_v29  ;;  %v3092_v43 = vor.u32 %v3091_v15, %v3087_v49  ;;  %v2209_v47 = vsel %vm1285_vm7, %v2204_v2, %v5369_v41 }
  0xee   : > { %v1315_v38 = vrot.slane %v1313_v26, 1  ;;  %v1318_v45 = vshll.u32 %v4864_v22, 16  ;;  %v2631_v46 = vrot.slane %v4865_v32, 1  ;;  %v2632_v50 = vrot.slane %v4866_v40, 1  ;;  %v4875_v19 = vld [vmem:[#allocation2 + $0x84] sm:$0xfe]  }
  0xef   : > { %2861 = vrot.lane.b32.xlu1 %v4853_v8, %s5067_s29  ;;  %1955 = vrot.lane.b32.xlu0 %v4854_v9, %s5064_s26  ;;  %v642_v48 = vrot.slane %v640_v36, 7  ;;  %v1412_v51 = vor.u32 %v1411_v25, %v1407_v24  ;;  %v2295_v54 = vshrl.u32 %v4867_v27, 16  ;;  %v2297_v55 = vshll.u32 %v4867_v27, 16  ;;  %v4872_v8 = vld [vmem:[#allocation2 + $0x48] sm:$0xfe]  }
  0xf0   : > { %v1320_v52 = vrot.slane %v1318_v45, 1  ;;  %v1419_v49 = vshrl.u32 %v4869_v33, 16  ;;  %v4765_v58 = vunpack.i.h.bf16 %v5404_v42  ;;  %v3097_v59 = vsel %vm1285_vm7, %v3092_v43, %v3096_v18  ;;  %v4876_v21 = vld [vmem:[#allocation2 + $0x8c] ss:$0 sps:$4 sm:$0x11]   ;;  %v4874_v45 = vld [vmem:[#allocation2 + $0x24] sm:$0xff]  }
  0xf1   : > { %v645_v56 = vor.u32 %v643_v37, %v642_v48  ;;  %v647_v39 = vrot.slane %v642_v48, 4  ;;  %v2299_v60 = vrot.slane %v2297_v55, 1  ;;  %v2302_v41 = vshll.u32 %v4868_v53, 16  ;;  %v4877_v28 = vld [vmem:[#allocation2 + $0x24] sm:$0xfe]  }
  0xf2   : > { %v1421_v62 = vshll.u32 %v4869_v33, 16  ;;  %v1316_v2 = vor.u32 %v1315_v38, %v1311_v31  ;;  %v1417_v3 = vsel %vm1285_vm7, %v1412_v51, %v1416_v30  ;;  %v1426_v5 = vshll.u32 %v4870_v61, 16  ;;  %v4878_v29 = vld [vmem:[#allocation2 + $0x2c] ss:$0 sps:$4 sm:$0x11]   ;;  %v4871_v30 = vld [vmem:[#allocation2 + $0x24] sm:$0xff]  }
  0xf3   : > { %2380 = vrot.lane.b32.xlu1 %v2209_v47, %s5066_s28  ;;  %3296 = vrot.lane.b32.xlu0 %v3205_v35, %s5068_s30  ;;  %v646_v63 = vsel %vm5212_vm10, %v638_v11, %v645_v56  ;;  %v899_v1 = vsel %vm5110_vm2, %v647_v39, %v898_v44  ;;  %v4593_v9 = vpack.c.bf16 %v4765_v58, %v4765_v58  ;;  %v2304_v17 = vrot.slane %v2302_v41, 1  ;;  %v4880_v38 = vld [vmem:[#allocation2 + $0x24] sm:$0xfe]   ;;  %v4881_v40 = vld [vmem:[#allocation2 + $0x2c] ss:$0 sps:$4 sm:$0x11]  }
  0xf4   : > { %897 = vst.msk [vmem:[#allocation2 + $0x58] sm:$0xf] %vm243_vm3, %v646_v63  ;;  %900 = vst [vmem:[#allocation2 + $0x5c] sm:$0x1] %v899_v1  ;;  %v1423_v4 = vrot.slane %v1421_v62, 1  ;;  %v2633_v11 = vsel %vm1719_vm6, %v2631_v46, %v2632_v50  ;;  %v1428_v13 = vrot.slane %v1426_v5, 1  ;;  %v1321_v15 = vsel %vm1285_vm7, %v1316_v2, %v1320_v52 }
  0xf5   : > { %v2300_v16 = vor.u32 %v2299_v60, %v2295_v54  ;;  %v2634_v18 = vrot.slane %v4872_v8, 1  ;;  %v3101_v20 = vshll.u32 %v5421_v6, 16  ;;  %v785_v22 = vshrl.u32 %v4593_v9, 16  ;;  %v957_v44 = vld [vmem:[#allocation2 + $0xc0] sm:$0xf]  ;;  %v4889_v55 = vld [vmem:[#allocation2 + $0x48] sm:$0xff]  }
  0xf6   : > { %v1424_v12 = vor.u32 %v1423_v4, %v1419_v49  ;;  %v2635_v24 = vrot.slane %v4873_v14, 1  ;;  %v3099_v25 = vshrl.u32 %v5421_v6, 16  ;;  %v1753_v27 = vrot.slane %v4875_v19, 1  ;;  %v5444_v51 = vld [vmem:[#allocation2 + $0x24] sm:$0xfe]   ;;  %v4882_v14 = vld [vmem:[#allocation2 + $0x90] sm:$0xff]  }
  0xf7   : > { %3278 = vrot.lane.b32.xlu1 %v3097_v59, %s5068_s30  ;;  %1498 = vrot.lane.b32.xlu0 %v1417_v3, %s5063_s25  ;;  %v2305_v26 = vsel %vm1285_vm7, %v2300_v16, %v2304_v17  ;;  %v1754_v31 = vrot.slane %v4876_v21, 1  ;;  %v5435_v32 = vrot.slane %v3101_v20, 1  ;;  %v4762_v33 = vunpack.i.l.bf16 %v5404_v42  ;;  %v5446_v52 = vld [vmem:[#allocation2 + $0x2c] ss:$0 sps:$4 sm:$0x11]   ;;  %v5457_v1 = vld [vmem:[#allocation2 + $0x24] sm:$0xff]  }
  0xf8   : > { %v1429_v23 = vsel %vm1285_vm7, %v1424_v12, %v1428_v13  ;;  %v3522_v35 = vrot.slane %v4877_v28, 1  ;;  %v5439_v36 = vrot.slane %v785_v22, 7  ;;  %v2636_v37 = vsel %vm1719_vm6, %v2634_v18, %v2635_v24  ;;  %v4888_v5 = vld [vmem:[#allocation2 + $0x2c] ss:$0 sps:$4 sm:$0x11]  }
  0xf9   : > { %v3523_v46 = vrot.slane %v4878_v29, 1  ;;  %v788_v47 = vshll.u32 %v4593_v9, 16  ;;  %v4577_v48 = vpack.c.bf16 %v4762_v33, %v4762_v33  ;;  %v1729_v42 = vrot.slane %v4880_v38, 1  ;;  %v901_v8 = vld [vmem:[#allocation2 + $0x60] sm:$0xf] }
  0xfa   : > { %v1730_v50 = vrot.slane %v4881_v40, 1  ;;  %v4770_v56 = vunpack.i.h.bf16 %v5423_v7  ;;  %v1755_v39 = vsel %vm1719_vm6, %v1753_v27, %v1754_v31  ;;  %v2625_v58 = vrot.slane %v5444_v51, 1  ;;  %v359_v18 = vld [vmem:[#allocation2 + $0xc8] sm:$0x1] }
  0xfb   : > { %1482 = vrot.lane.b32.xlu1 %v1321_v15, %s5063_s25  ;;  %2675 = vrot.lane.b32.xlu0 %v2633_v11, %s5065_s27  ;;  %v4885_v43 = vld [vmem:[#allocation2 + $0x54] sm:$0xff]   ;;  %v790_v54 = vor.u32 %v788_v47, %v5439_v36  ;;  %v4886_v60 = vld [vmem:[#allocation2 + $0x5c] ss:$0 sps:$4 sm:$0x11]   ;;  %v791_v61 = vrot.slane %v5439_v36, 4  ;;  %v649_v63 = vshrl.u32 %v4577_v48, 16  ;;  %v4767_v2 = vunpack.i.l.bf16 %v5423_v7 }
  0xfc   : > { %v3149_v53 = vshll.u32 %v4885_v43, 16  ;;  %v4879_v49 = vld [vmem:[#allocation2 + $0x54] sm:$0xff]   ;;  %v3147_v59 = vshrl.u32 %v4885_v43, 16  ;;  %v2626_v3 = vrot.slane %v5446_v52, 1  ;;  %v3154_v4 = vshll.u32 %v4886_v60, 16 }
  0xfd   : > { %v958_v62 = vsel %vm5198_vm9, %v790_v54, %v957_v44  ;;  %v5461_v9 = vrot.slane %v649_v63, 7  ;;  %v335_v11 = vld [vmem:[#allocation2 + $0x68] sm:$0x1]  ;;  %v4594_v12 = vpack.c.bf16 %v4770_v56, %v4770_v56  ;;  %v3524_v13 = vsel %vm1719_vm6, %v3522_v35, %v3523_v46  ;;  %v4892_v35 = vld [vmem:[#allocation2 + $0x2c] ss:$0 sps:$4 sm:$0x11]  }
  0xfe   : > { %v3151_v41 = vrot.slane %v3149_v53, 1  ;;  %959 = vst [vmem:[#allocation2 + $0xc0] sm:$0xf] %v958_v62  ;;  %v652_v16 = vshll.u32 %v4577_v48, 16  ;;  %v1359_v17 = vshrl.u32 %v4889_v55, 16  ;;  %v3156_v19 = vrot.slane %v3154_v4, 1 }
  0xff   : > { %2396 = vrot.lane.b32.xlu1 %v2305_v26, %s5066_s28  ;;  %1500 = vrot.lane.b32.xlu0 %v1429_v23, %s5063_s25  ;;  %v3106_v7 = vshll.u32 %v4888_v5, 16  ;;  %v655_v20 = vrot.slane %v5461_v9, 4  ;;  %v1361_v21 = vshll.u32 %v4889_v55, 16  ;;  %v4890_v23 = vld [vmem:[#allocation2 + $0x50] ss:$0 sps:$4 sm:$0x11]   ;;  %v1731_v26 = vsel %vm1719_vm6, %v1729_v42, %v1730_v50 }
 0x100   : > { %v3152_v15 = vor.u32 %v3151_v41, %v3147_v59  ;;  %v654_v22 = vor.u32 %v652_v16, %v5461_v9  ;;  %v1323_v24 = vshrl.u32 %v5457_v1, 16  ;;  %v4578_v29 = vpack.c.bf16 %v4767_v2, %v4767_v2  ;;  %v4893_v53 = vld [vmem:[#allocation2 + $0x84] sm:$0xfe]   ;;  %v4897_v63 = vld [vmem:[#allocation2 + $0x54] sm:$0xff]  }
 0x101   : > { %v3108_v27 = vrot.slane %v3106_v7, 1  ;;  %v1363_v28 = vrot.slane %v1361_v21, 1  ;;  %v1366_v33 = vshll.u32 %v4890_v23, 16  ;;  %v336_v38 = vsel %vm5132_vm5, 0, %v335_v11  ;;  %v1769_v11 = vpop.permute.xlu1 %1768 }
 0x102   : > { %v902_v31 = vsel %vm5198_vm9, %v654_v22, %v901_v8  ;;  %v3157_v40 = vsel %vm1285_vm7, %v3152_v15, %v3156_v19  ;;  %337 = vst [vmem:[#allocation2 + $0x68] sm:$0x1] %v336_v38  ;;  %v360_v44 = vsel %vm5132_vm5, 0, %v359_v18  ;;  %v1330_v47 = vshll.u32 %v4892_v35, 16  ;;  %v1479_v15 = vpop.permute.xlu0 %1478  ;;  %v5508_v19 = vld [vmem:[#allocation2 + $0x30] sm:$0xff]  }
 0x103   : > { %2847 = vrot.lane.b32.xlu1 %v4871_v30, %s5067_s29  ;;  %2677 = vrot.lane.b32.xlu0 %v2636_v37, %s5065_s27  ;;  %v5470_v30 = vld [vmem:[#allocation2 + $0x24] sm:$0xff]   ;;  %v1325_v37 = vshll.u32 %v5457_v1, 16  ;;  %903 = vst [vmem:[#allocation2 + $0x60] sm:$0xf] %v902_v31  ;;  %v1364_v43 = vor.u32 %v1363_v28, %v1359_v17  ;;  %v1368_v34 = vrot.slane %v1366_v33, 1  ;;  %v796_v48 = vshll.u32 %v4594_v12, 16 }
 0x104   : > { %361 = vst [vmem:[#allocation2 + $0xc8] sm:$0x1] %v360_v44  ;;  %v657_v50 = vshrl.u32 %v4578_v29, 16  ;;  %v660_v52 = vshll.u32 %v4578_v29, 16  ;;  %v2211_v54 = vshrl.u32 %v5470_v30, 16  ;;  %v2627_v55 = vsel %vm1719_vm6, %v2625_v58, %v2626_v3  ;;  %1527 = vst.msk [vmem:[#allocation3] sm:$0xff] %vm1526_vm12, %v1479_v15 }
 0x105   : > { %v1327_v46 = vrot.slane %v1325_v37, 1  ;;  %v3104_v56 = vor.u32 %v5435_v32, %v3099_v25  ;;  %v2649_v62 = vrot.slane %v4893_v53, 1  ;;  %v1369_v1 = vsel %vm1285_vm7, %v1364_v43, %v1368_v34  ;;  %v4896_v2 = vld [vmem:[#allocation2 + $0x2c] ss:$0 sps:$4 sm:$0x11]   ;;  %1817 = vst.msk [vmem:[#allocation3] sm:$0xff] %vm1816_vm13, %v1769_v11 }
 0x106   : > { %v659_v41 = vrot.slane %v657_v50, 7  ;;  %v2213_v25 = vshll.u32 %v5470_v30, 16  ;;  %v2218_v8 = vshll.u32 %v4896_v2, 16  ;;  %v1371_v9 = vshrl.u32 %v4897_v63, 16  ;;  %v4900_v22 = vld [vmem:[#allocation2 + $0x90] sm:$0xfe]  }
 0x107   : > { %1949 = vrot.lane.b32.xlu1 %v4874_v45, %s5064_s26  ;;  %1790 = vrot.lane.b32.xlu0 %v1755_v39, %s5062_s24  ;;  %v793_v45 = vshrl.u32 %v4594_v12, 16  ;;  %v1332_v39 = vrot.slane %v1330_v47, 1  ;;  %v3109_v32 = vsel %vm1285_vm7, %v3104_v56, %v3108_v27  ;;  %v1328_v4 = vor.u32 %v1327_v46, %v1323_v24  ;;  %v4904_v35 = vld [vmem:[#allocation2 + $0x54] sm:$0xfe]   ;;  %v4922_v15 = vld [vmem:[#allocation2 + $0xc] sm:$0xff]  }
 0x108   : > { %v662_v58 = vor.u32 %v660_v52, %v659_v41  ;;  %v664_v3 = vrot.slane %v659_v41, 4  ;;  %v2220_v17 = vrot.slane %v2218_v8, 1  ;;  %v1373_v18 = vshll.u32 %v4897_v63, 16  ;;  %v4905_v37 = vld [vmem:[#allocation2 + $0x5c] ss:$0 sps:$4 sm:$0x11]  }
 0x109   : > { %v795_v42 = vrot.slane %v793_v45, 7  ;;  %v905_v5 = vld [vmem:[#allocation2 + $0x68] sm:$0x1]  ;;  %v1333_v7 = vsel %vm1285_vm7, %v1328_v4, %v1332_v39  ;;  %v2652_v29 = vrot.slane %v4900_v22, 1  ;;  %v2225_v38 = vshll.u32 %v5508_v19, 16  ;;  %v4914_v45 = vld [vmem:[#allocation2 + $0x9c] sm:$0xff]  }
 0x10a   : > { %v663_v36 = vsel %vm5212_vm10, %v655_v20, %v662_v58  ;;  %v1375_v21 = vrot.slane %v1373_v18, 1  ;;  %v1741_v43 = vrot.slane %v4904_v35, 1  ;;  %v4906_v44 = vld [vmem:[#allocation2 + $0x30] sm:$0xfe]   ;;  %v1742_v34 = vrot.slane %v4905_v37, 1  ;;  %v4908_v41 = vld [vmem:[#allocation2 + $0x9c] sm:$0xff]  }
 0x10b   : > { %3569 = vrot.lane.b32.xlu1 %v3524_v13, %s5069_s6  ;;  %2855 = vrot.lane.b32.xlu0 %v4879_v49, %s5067_s29  ;;  %v4894_v49 = vld [vmem:[#allocation2 + $0x8c] ss:$0 sps:$4 sm:$0x11]   ;;  %v798_v59 = vor.u32 %v796_v48, %v795_v42  ;;  %v800_v60 = vrot.slane %v795_v42, 4  ;;  %v961_v12 = vld [vmem:[#allocation2 + $0xc8] sm:$0x1] }
 0x10c   : > { %v2650_v51 = vrot.slane %v4894_v49, 1  ;;  %v2215_v13 = vrot.slane %v2213_v25, 1  ;;  %904 = vst.msk [vmem:[#allocation2 + $0x64] sm:$0xf] %vm243_vm3, %v663_v36  ;;  %v1376_v27 = vor.u32 %v1375_v21, %v1371_v9  ;;  %v4916_v47 = vld [vmem:[#allocation2 + $0x30] sm:$0xff]   ;;  %v3525_v48 = vrot.slane %v4906_v44, 1 }
 0x10d   : > { %v799_v6 = vsel %vm5212_vm10, %v791_v61, %v798_v59  ;;  %v906_v61 = vsel %vm5110_vm2, %v664_v3, %v905_v5  ;;  %v962_v16 = vsel %vm5110_vm2, %v800_v60, %v961_v12  ;;  %v4907_v46 = vld [vmem:[#allocation2 + $0x38] ss:$0 sps:$4 sm:$0x11]   ;;  %v2223_v42 = vshrl.u32 %v5508_v19, 16  ;;  %v4902_v52 = vld [vmem:[#allocation2 + $0x30] sm:$0xff]   ;;  %1094 = vst.msk [vmem:[#allocation3 + $0x8] sm:$0xff] %vm1092_vm11, %v4922_v15 }
 0x10e   : > { %960 = vst.msk [vmem:[#allocation2 + $0xc4] sm:$0xf] %vm243_vm3, %v799_v6  ;;  %907 = vst [vmem:[#allocation2 + $0x68] sm:$0x1] %v906_v61  ;;  %v2216_v20 = vor.u32 %v2215_v13, %v2211_v54  ;;  %v2651_v23 = vsel %vm1719_vm6, %v2649_v62, %v2650_v51  ;;  %v3526_v53 = vrot.slane %v4907_v46, 1  ;;  %v3221_v39 = vshll.u32 %v4914_v45, 16 }
 0x10f   : > { %1774 = vrot.lane.b32.xlu1 %v1731_v26, %s5062_s24  ;;  %1967 = vrot.lane.b32.xlu0 %v4882_v14, %s5064_s26  ;;  %v4898_v14 = vld [vmem:[#allocation2 + $0x5c] ss:$0 sps:$4 sm:$0x11]   ;;  %963 = vst [vmem:[#allocation2 + $0xc8] sm:$0x1] %v962_v16  ;;  %v1743_v49 = vsel %vm1719_vm6, %v1741_v43, %v1742_v34  ;;  %v3219_v60 = vshrl.u32 %v4914_v45, 16 }
 0x110   : > { %v1378_v57 = vshll.u32 %v4898_v14, 16  ;;  %v4901_v26 = vld [vmem:[#allocation2 + $0x98] ss:$0 sps:$4 sm:$0x11]   ;;  %v2221_v31 = vsel %vm1285_vm7, %v2216_v20, %v2220_v17  ;;  %v4909_v54 = vld [vmem:[#allocation2 + $0x30] sm:$0xfe]   ;;  %v3527_v6 = vsel %vm1719_vm6, %v3525_v48, %v3526_v53 }
 0x111   : > { %v2653_v30 = vrot.slane %v4901_v26, 1  ;;  %v4910_v56 = vld [vmem:[#allocation2 + $0x38] ss:$0 sps:$4 sm:$0x11]   ;;  %v1732_v59 = vrot.slane %v4909_v54, 1  ;;  %v3223_v62 = vrot.slane %v3221_v39, 1 }
 0x112   : > { %v1380_v24 = vrot.slane %v1378_v57, 1  ;;  %v3111_v63 = vshrl.u32 %v4916_v47, 16  ;;  %v3113_v51 = vshll.u32 %v4916_v47, 16  ;;  %v4918_v2 = vld [vmem:[#allocation2 + $0x90] sm:$0xff]   ;;  %v1733_v25 = vrot.slane %v4910_v56, 1 }
 0x113   : > { %2671 = vrot.lane.b32.xlu1 %v2627_v55, %s5065_s27  ;;  %3288 = vrot.lane.b32.xlu0 %v3157_v40, %s5068_s30  ;;  %v4899_v40 = vld [vmem:[#allocation2 + $0x30] sm:$0xff]   ;;  %v2654_v50 = vsel %vm1719_vm6, %v2652_v29, %v2653_v30  ;;  %v2227_v55 = vrot.slane %v2225_v38, 1  ;;  %v4915_v3 = vld [vmem:[#allocation2 + $0xa4] ss:$0 sps:$4 sm:$0x11]   ;;  %v3224_v61 = vor.u32 %v3223_v62, %v3219_v60  ;;  %v1433_v14 = vshll.u32 %v4918_v2, 16 }
 0x114   : > { %v1381_v33 = vsel %vm1285_vm7, %v1376_v27, %v1380_v24  ;;  %v4917_v4 = vld [vmem:[#allocation2 + $0x38] ss:$0 sps:$4 sm:$0x11]   ;;  %v3226_v5 = vshll.u32 %v4915_v3, 16  ;;  %v3115_v8 = vrot.slane %v3113_v51, 1  ;;  %v1734_v16 = vsel %vm1719_vm6, %v1732_v59, %v1733_v25  ;;  %v4933_v62 = vld [vmem:[#allocation2 + $0x3c] sm:$0xff]  }
 0x115   : > { %v3118_v9 = vshll.u32 %v4917_v4, 16  ;;  %v4919_v11 = vld [vmem:[#allocation2 + $0x98] ss:$0 sps:$4 sm:$0x11]   ;;  %v2228_v18 = vor.u32 %v2227_v55, %v2223_v42  ;;  %v1431_v19 = vshrl.u32 %v4918_v2, 16  ;;  %vm2893_vm3 = vcmask 458112  }
 0x116   : > { %v3228_v13 = vrot.slane %v3226_v5, 1  ;;  %v1438_v57 = vshll.u32 %v4919_v11, 16  ;;  %v4920_v20 = vld [vmem:[#allocation2 + $0x3c] sm:$0xfe]   ;;  %v3116_v29 = vor.u32 %v3115_v8, %v3111_v63  ;;  %v4923_v30 = vld [vmem:[#allocation2 + $0x54] sm:$0xfe]  }
 0x117   : > { %3280 = vrot.lane.b32.xlu1 %v3109_v32, %s5068_s30  ;;  %1490 = vrot.lane.b32.xlu0 %v1369_v1, %s5063_s25  ;;  %v4913_v1 = vld [vmem:[#allocation2 + $0x38] ss:$0 sps:$4 sm:$0x11]   ;;  %v4911_v32 = vld [vmem:[#allocation2 + $0x60] sm:$0xff]   ;;  %v3120_v22 = vrot.slane %v3118_v9, 1  ;;  %v3528_v26 = vrot.slane %v4920_v20, 1 }
 0x118   : > { %v2230_v58 = vshll.u32 %v4913_v1, 16  ;;  %v4921_v21 = vld [vmem:[#allocation2 + $0x44] ss:$0 sps:$4 sm:$0x11]   ;;  %v1440_v24 = vrot.slane %v1438_v57, 1  ;;  %v2637_v38 = vrot.slane %v4923_v30, 1 }
 0x119   : > { %v4924_v35 = vld [vmem:[#allocation2 + $0x5c] ss:$0 sps:$4 sm:$0x11]   ;;  %v4927_v44 = vld [vmem:[#allocation2 + $0xa4] ss:$0 sps:$4 sm:$0x11]   ;;  %v3121_v45 = vsel %vm1285_vm7, %v3116_v29, %v3120_v22 }
 0x11a   : > { %v2232_v36 = vrot.slane %v2230_v58, 1  ;;  %v2638_v43 = vrot.slane %v4924_v35, 1  ;;  %v1450_v42 = vshll.u32 %v4927_v44, 16  ;;  %v4929_v53 = vld [vmem:[#allocation2 + $0x80] ss:$0 sps:$4 sm:$0x11]  }
 0x11b   : > { %1484 = vrot.lane.b32.xlu1 %v1333_v7, %s5063_s25  ;;  %2687 = vrot.lane.b32.xlu0 %v2651_v23, %s5065_s27  ;;  %v1435_v7 = vrot.slane %v1433_v14, 1  ;;  %v3229_v23 = vsel %vm1285_vm7, %v3224_v61, %v3228_v13  ;;  %v4925_v63 = vld [vmem:[#allocation2 + $0x3c] sm:$0xff]   ;;  %v4932_v58 = vld [vmem:[#allocation2 + $0x68] ss:$0 sps:$4 sm:$0x11]   ;;  %v2237_v5 = vshll.u32 %v4933_v62, 16 }
 0x11c   : > { %v2233_v27 = vsel %vm1285_vm7, %v2228_v18, %v2232_v36  ;;  %v2639_v54 = vsel %vm1719_vm6, %v2637_v38, %v2638_v43  ;;  %v1452_v55 = vrot.slane %v1450_v42, 1  ;;  %v4931_v2 = vld [vmem:[#allocation2 + $0x60] sm:$0xfe]   ;;  %v2641_v4 = vrot.slane %v4932_v58, 1  ;;  %v4939_v8 = vld [vmem:[#allocation2 + $0x30] sm:$0xff]  }
 0x11d   : > { %v4934_v11 = vld [vmem:[#allocation2 + $0x44] ss:$0 sps:$4 sm:$0x11]   ;;  %v2235_v36 = vshrl.u32 %v4933_v62, 16  ;;  %v2239_v13 = vrot.slane %v2237_v5, 1  ;;  %1097 = vst.msk [vmem:[#allocation3 + $0x20] sm:$0xff] %vm1092_vm11, %v4939_v8 }
 0x11e   : > { %v1946_v28 = vpop.permute.xlu1 %1945  ;;  %v2242_v14 = vshll.u32 %v4934_v11, 16  ;;  %v4935_v15 = vld [vmem:[#allocation2 + $0x9c] sm:$0xfe]   ;;  %v4946_v38 = vld [vmem:[#allocation2 + $0x6c] sm:$0xff]   ;;  %vm3691_vm9 = vcmask 588800   ;;  %vm3740_vm10 = vcmask 1043456  }
 0x11f   : > { %1994 = vst.msk [vmem:[#allocation3] sm:$0xff] %vm1993_vm14, %v1946_v28  ;;  %2382 = vrot.lane.b32.xlu1 %v2221_v31, %s5066_s28  ;;  %1492 = vrot.lane.b32.xlu0 %v1381_v33, %s5063_s25  ;;  %v1436_v31 = vor.u32 %v1435_v7, %v1431_v19  ;;  %v3529_v33 = vrot.slane %v4921_v21, 1  ;;  %v1759_v21 = vrot.slane %v4935_v15, 1  ;;  %v4942_v43 = vld [vmem:[#allocation2 + $0x50] ss:$0 sps:$4 sm:$0x11]  }
 0x120   : > { %v2244_v7 = vrot.slane %v2242_v14, 1  ;;  %v4948_v44 = vld [vmem:[#allocation2 + $0x60] sm:$0xff]   ;;  %v2254_v42 = vshll.u32 %v4942_v43, 16 }
 0x121   : > { %v1441_v48 = vsel %vm1285_vm7, %v1436_v31, %v1440_v24  ;;  %v3530_v60 = vsel %vm1719_vm6, %v3528_v26, %v3529_v33  ;;  %v4938_v24 = vld [vmem:[#allocation2 + $0x80] ss:$0 sps:$4 sm:$0x11]   ;;  %v4941_v26 = vld [vmem:[#allocation2 + $0x48] sm:$0xff]  }
 0x122   : > { %v3544_v30 = vrot.slane %v4938_v24, 1  ;;  %v2247_v31 = vshrl.u32 %v4941_v26, 16  ;;  %v2249_v35 = vshll.u32 %v4941_v26, 16  ;;  %v4950_v58 = vld [vmem:[#allocation2 + $0x3c] sm:$0xff]  }
 0x123   : > { %1951 = vrot.lane.b32.xlu1 %v4899_v40, %s5064_s26  ;;  %2689 = vrot.lane.b32.xlu0 %v2654_v50, %s5065_s27  ;;  %v4926_v40 = vld [vmem:[#allocation2 + $0x9c] sm:$0xff]   ;;  %1098 = vst.msk [vmem:[#allocation3 + $0x28] sm:$0xff] %vm1092_vm11, %v4950_v58 }
 0x124   : > { %v1443_v34 = vshrl.u32 %v4926_v40, 16  ;;  %v1445_v46 = vshll.u32 %v4926_v40, 16  ;;  %v4928_v50 = vld [vmem:[#allocation2 + $0x78] sm:$0xff]  }
 0x125   : > { %v3183_v56 = vshrl.u32 %v4928_v50, 16  ;;  %v3185_v39 = vshll.u32 %v4928_v50, 16 }
 0x127   : > { %2849 = vrot.lane.b32.xlu1 %v4902_v52, %s5067_s29  ;;  %1782 = vrot.lane.b32.xlu0 %v1743_v49, %s5062_s24  ;;  %v1447_v52 = vrot.slane %v1445_v46, 1  ;;  %v4930_v49 = vld [vmem:[#allocation2 + $0x6c] sm:$0xff]   ;;  %v3187_v51 = vrot.slane %v3185_v39, 1  ;;  %v3171_v46 = vshrl.u32 %v4946_v38, 16 }
 0x128   : > { %1102 = vst.msk [vmem:[#allocation3 + $0x48] sm:$0xff] %vm1092_vm11, %v4930_v49  ;;  %v4943_v49 = vld [vmem:[#allocation2 + $0xa8] sm:$0xff]  }
 0x129   : > { %v1448_v1 = vor.u32 %v1447_v52, %v1443_v34  ;;  %v3188_v25 = vor.u32 %v3187_v51, %v3183_v56  ;;  %v2251_v34 = vrot.slane %v2249_v35, 1 }
 0x12b   : > { %3571 = vrot.lane.b32.xlu1 %v3527_v6, %s5069_s6  ;;  %2867 = vrot.lane.b32.xlu0 %v4908_v41, %s5067_s29  ;;  %v3190_v41 = vshll.u32 %v4929_v53, 16  ;;  %v1453_v61 = vsel %vm1285_vm7, %v1448_v1, %v1452_v55  ;;  %v2252_v52 = vor.u32 %v2251_v34, %v2247_v31  ;;  %v4944_v53 = vld [vmem:[#allocation2 + $0x60] sm:$0xfe]   ;;  %v1383_v55 = vshrl.u32 %v4948_v44, 16  ;;  %v4955_v31 = vld [vmem:[#allocation2 + $0x6c] sm:$0xfe]  }
 0x12c   : > { %v1385_v1 = vshll.u32 %v4948_v44, 16  ;;  %v4957_v44 = vld [vmem:[#allocation2 + $0x78] sm:$0xfe]  }
 0x12d   : > { %v3192_v3 = vrot.slane %v3190_v41, 1 }
 0x12e   : > { %v5532_v12 = vpop.permute.xlu1 %1770  ;;  %v5535_v17 = vpop.permute.xlu0 %1786 }
 0x12f   : > { %1776 = vrot.lane.b32.xlu1 %v1734_v16, %s5062_s24  ;;  %1959 = vrot.lane.b32.xlu0 %v4911_v32, %s5064_s26  ;;  %v2640_v32 = vrot.slane %v4931_v2, 1  ;;  %v4936_v16 = vld [vmem:[#allocation2 + $0xa4] ss:$0 sps:$4 sm:$0x11]   ;;  %v3193_v19 = vsel %vm1285_vm7, %v3188_v25, %v3192_v3  ;;  %v1387_v25 = vrot.slane %v1385_v1, 1 }
 0x130   : > { %v1760_v22 = vrot.slane %v4936_v16, 1  ;;  %v4949_v2 = vld [vmem:[#allocation2 + $0x68] ss:$0 sps:$4 sm:$0x11]   ;;  %v4964_v1 = vld [vmem:[#allocation2 + $0xa8] sm:$0xfe]  }
 0x131   : > { %v2642_v57 = vsel %vm1719_vm6, %v2640_v32, %v2641_v4  ;;  %v1390_v32 = vshll.u32 %v4949_v2, 16  ;;  %v4951_v4 = vld [vmem:[#allocation2 + $0xa8] sm:$0xff]  }
 0x132   : > { %v5542_v28 = vpop.permute.xlu1 %2667  ;;  %v5545_v37 = vpop.permute.xlu0 %1963  ;;  %v2343_v15 = vshrl.u32 %v4951_v4, 16  ;;  %v2345_v16 = vshll.u32 %v4951_v4, 16  ;;  %v4963_v4 = vld [vmem:[#allocation2 + $0x84] sm:$0xff]  }
 0x133   : > { %2384 = vrot.lane.b32.xlu1 %v2233_v27, %s5066_s28  ;;  %3300 = vrot.lane.b32.xlu0 %v3229_v23, %s5068_s30  ;;  %v4937_v23 = vld [vmem:[#allocation2 + $0x78] sm:$0xfe]   ;;  %v1392_v14 = vrot.slane %v1390_v32, 1 }
 0x134   : > { %v3543_v27 = vrot.slane %v4937_v23, 1  ;;  %v4961_v23 = vld [vmem:[#allocation2 + $0xa8] sm:$0xff]  }
 0x136   : > { %v5550_v47 = vpop.permute.xlu1 %1961  ;;  %v5555_v59 = vpop.permute.xlu0 %2683  ;;  %v3545_v50 = vsel %vm1719_vm6, %v3543_v27, %v3544_v30 }
 0x137   : > { %3282 = vrot.lane.b32.xlu1 %v3121_v45, %s5068_s30  ;;  %1502 = vrot.lane.b32.xlu0 %v1441_v48, %s5063_s25  ;;  %v4940_v45 = vld [vmem:[#allocation2 + $0x6c] sm:$0xff]  }
 0x13b   : > { %3573 = vrot.lane.b32.xlu1 %v3530_v60, %s5069_s6  ;;  %2679 = vrot.lane.b32.xlu0 %v2639_v54, %s5065_s27  ;;  %v4945_v54 = vld [vmem:[#allocation2 + $0x68] ss:$0 sps:$4 sm:$0x11]   ;;  %v1744_v60 = vrot.slane %v4944_v53, 1 }
 0x13c   : > { %v1745_v41 = vrot.slane %v4945_v54, 1  ;;  %v4959_v54 = vld [vmem:[#allocation2 + $0xa8] sm:$0xff]  }
 0x13d   : > { %v1481_v6 = vpop.permute.xlu1 %1480 }
 0x13e   : > { %1528 = vst.msk [vmem:[#allocation3 + $0x8] sm:$0xff] %vm1526_vm12, %v1481_v6  ;;  %v5562_v9 = vpop.permute.xlu0 %2685  ;;  %v1746_v8 = vsel %vm1719_vm6, %v1744_v60, %v1745_v41  ;;  %v4960_v60 = vld [vmem:[#allocation2 + $0x48] sm:$0xff]  }
 0x13f   : > { %1818 = vst.msk [vmem:[#allocation3 + $0x8] sm:$0xff] %vm1816_vm13, %v5532_v12  ;;  %1953 = vrot.lane.b32.xlu1 %v4925_v63, %s5064_s26  ;;  %1504 = vrot.lane.b32.xlu0 %v1453_v61, %s5063_s25  ;;  %v2240_v12 = vor.u32 %v2239_v13, %v2235_v36  ;;  %v4947_v63 = vld [vmem:[#allocation2 + $0x74] ss:$0 sps:$4 sm:$0x11]   ;;  %v1388_v13 = vor.u32 %v1387_v25, %v1383_v55  ;;  %v3555_v25 = vrot.slane %v4964_v1, 1 }
 0x140   : > { %v3178_v6 = vshll.u32 %v4947_v63, 16  ;;  %v4952_v36 = vld [vmem:[#allocation2 + $0xb0] ss:$0 sps:$4 sm:$0x11]  }
 0x141   : > { %v2379_v18 = vpop.permute.xlu1 %2378  ;;  %v2245_v33 = vsel %vm1285_vm7, %v2240_v12, %v2244_v7  ;;  %v4953_v12 = vld [vmem:[#allocation2 + $0x84] sm:$0xfe]   ;;  %v4954_v7 = vld [vmem:[#allocation2 + $0x8c] ss:$0 sps:$4 sm:$0x11]   ;;  %v1393_v24 = vsel %vm1285_vm7, %v1388_v13, %v1392_v14  ;;  %v4969_v14 = vld [vmem:[#allocation2 + $0x18] sm:$0xff]  }
 0x142   : > { %2427 = vst.msk [vmem:[#allocation3] sm:$0xff] %vm2426_vm15, %v2379_v18  ;;  %v5573_v20 = vpop.permute.xlu0 %2673  ;;  %v3180_v11 = vrot.slane %v3178_v6, 1  ;;  %v3547_v30 = vrot.slane %v4954_v7, 1  ;;  %v4962_v55 = vld [vmem:[#allocation2 + $0xb0] ss:$0 sps:$4 sm:$0x11]  }
 0x143   : > { %3294 = vrot.lane.b32.xlu1 %v3193_v19, %s5068_s30  ;;  %2716 = vst.msk [vmem:[#allocation3] sm:$0xff] %vm2715_vm1, %v5542_v28  ;;  %2681 = vrot.lane.b32.xlu0 %v2642_v57, %s5065_s27  ;;  %v1761_v28 = vsel %vm1719_vm6, %v1759_v21, %v1760_v22  ;;  %v2350_v19 = vshll.u32 %v4952_v36, 16  ;;  %v2347_v57 = vrot.slane %v2345_v16, 1  ;;  %v3238_v41 = vshll.u32 %v4962_v55, 16 }
 0x144   : > { %1095 = vst.msk [vmem:[#allocation3 + $0x10] sm:$0xff] %vm1092_vm11, %v4969_v14 }
 0x145   : > { %v1497_v29 = vpop.permute.xlu1 %1496  ;;  %v2352_v22 = vrot.slane %v2350_v19, 1  ;;  %v2348_v27 = vor.u32 %v2347_v57, %v2343_v15  ;;  %v3240_v58 = vrot.slane %v3238_v41, 1 }
 0x146   : > { %1536 = vst.msk [vmem:[#allocation3 + $0x48] sm:$0xff] %vm1526_vm12, %v1497_v29  ;;  %v1487_v40 = vpop.permute.xlu0 %1486  ;;  %v3546_v29 = vrot.slane %v4953_v12, 1  ;;  %v4970_v12 = vld [vmem:[#allocation2 + $0xb4] sm:$0xfe]  }
 0x147   : > { %1826 = vst.msk [vmem:[#allocation3 + $0x48] sm:$0xff] %vm1816_vm13, %v5535_v17  ;;  %2386 = vrot.lane.b32.xlu1 %v2245_v33, %s5066_s28  ;;  %1794 = vrot.lane.b32.xlu0 %v1761_v28, %s5062_s24  ;;  %v3173_v17 = vshll.u32 %v4946_v38, 16  ;;  %v4956_v33 = vld [vmem:[#allocation2 + $0x74] ss:$0 sps:$4 sm:$0x11]   ;;  %v2353_v35 = vsel %vm1285_vm7, %v2348_v27, %v2352_v22  ;;  %v3540_v38 = vrot.slane %v4955_v31, 1 }
 0x148   : > { %2003 = vst.msk [vmem:[#allocation3 + $0x48] sm:$0xff] %vm1993_vm14, %v5545_v37  ;;  %v2256_v37 = vrot.slane %v2254_v42, 1  ;;  %v3233_v28 = vshll.u32 %v4961_v23, 16  ;;  %v3541_v43 = vrot.slane %v4956_v33, 1  ;;  %v3548_v34 = vsel %vm1719_vm6, %v3546_v29, %v3547_v30  ;;  %v4978_v33 = vld [vmem:[#allocation2 + $0x84] sm:$0xff]  }
 0x149   : > { %1531 = vst.msk [vmem:[#allocation3 + $0x20] sm:$0xff] %vm1526_vm12, %v1487_v40  ;;  %v1948_v48 = vpop.permute.xlu1 %1947  ;;  %v3175_v56 = vrot.slane %v3173_v17, 1  ;;  %v4971_v22 = vld [vmem:[#allocation2 + $0xbc] ss:$0 sps:$4 sm:$0x11]  }
 0x14a   : > { %1995 = vst.msk [vmem:[#allocation3 + $0x8] sm:$0xff] %vm1993_vm14, %v1948_v48  ;;  %v5593_v39 = vpop.permute.xlu0 %2851  ;;  %v2257_v51 = vsel %vm1285_vm7, %v2252_v52, %v2256_v37  ;;  %v1750_v48 = vrot.slane %v4957_v44, 1  ;;  %v3542_v17 = vsel %vm1719_vm6, %v3540_v38, %v3541_v43  ;;  %v3235_v52 = vrot.slane %v3233_v28, 1  ;;  %v4974_v43 = vld [vmem:[#allocation2 + $0xa8] sm:$0xfe]  }
 0x14b   : > { %3583 = vrot.lane.b32.xlu1 %v3545_v50, %s5069_s6  ;;  %2859 = vrot.lane.b32.xlu0 %v4940_v45, %s5067_s29  ;;  %v3176_v3 = vor.u32 %v3175_v56, %v3171_v46  ;;  %v4958_v45 = vld [vmem:[#allocation2 + $0x80] ss:$0 sps:$4 sm:$0x11]   ;;  %v3231_v50 = vshrl.u32 %v4961_v23, 16  ;;  %v3559_v29 = vrot.slane %v4971_v22, 1  ;;  %1104 = vst.msk [vmem:[#allocation3 + $0x58] sm:$0xff] %vm1092_vm11, %v4978_v33 }
 0x14c   : > { %v1751_v42 = vrot.slane %v4958_v45, 1  ;;  %v4975_v44 = vld [vmem:[#allocation2 + $0xb0] ss:$0 sps:$4 sm:$0x11]  }
 0x14d   : > { %v2846_v62 = vpop.permute.xlu1 %2845  ;;  %v3181_v18 = vsel %vm1285_vm7, %v3176_v3, %v3180_v11  ;;  %v3236_v63 = vor.u32 %v3235_v52, %v3231_v50  ;;  %v1763_v50 = vrot.slane %v4975_v44, 1 }
 0x14e   : > { %2894 = vst.msk [vmem:[#allocation3] sm:$0xff] %vm2893_vm3, %v2846_v62  ;;  %v1752_v37 = vsel %vm1719_vm6, %v1750_v48, %v1751_v42  ;;  %v4968_v62 = vld [vmem:[#allocation2 + $0x78] sm:$0xff]  }
 0x14f   : > { %2388 = vrot.lane.b32.xlu1 %v2257_v51, %s5066_s28  ;;  %1971 = vrot.lane.b32.xlu0 %v4943_v49, %s5064_s26  ;;  %v4966_v49 = vld [vmem:[#allocation2 + $0x48] sm:$0xff]   ;;  %v4965_v51 = vld [vmem:[#allocation2 + $0xb0] ss:$0 sps:$4 sm:$0x11]   ;;  %1103 = vst.msk [vmem:[#allocation3 + $0x50] sm:$0xff] %vm1092_vm11, %v4968_v62  ;;  %v3241_v36 = vsel %vm1285_vm7, %v3236_v63, %v3240_v58  ;;  %v4982_v63 = vld [vmem:[#allocation2 + $0xb4] sm:$0xff]  }
 0x150   : > { %v3137_v3 = vshll.u32 %v4966_v49, 16  ;;  %v3135_v32 = vshrl.u32 %v4966_v49, 16  ;;  %v3556_v13 = vrot.slane %v4965_v51, 1  ;;  %v4979_v51 = vld [vmem:[#allocation2 + $0xb4] sm:$0xff]  }
 0x151   : > { %v5600_v5 = vpop.permute.xlu1 %2394  ;;  %v5603_v61 = vpop.permute.xlu0 %3284 }
 0x152   : > { %v3139_v11 = vrot.slane %v3137_v3, 1  ;;  %v3557_v23 = vsel %vm1719_vm6, %v3555_v25, %v3556_v13  ;;  %v4988_v3 = vld [vmem:[%s6172_s1] sm:$0xff]   ;;  %v4981_v25 = vld [vmem:[#allocation2 + $0x98] ss:$0 sps:$4 sm:$0x11]  }
 0x153   : > { %1784 = vrot.lane.b32.xlu1 %v1746_v8, %s5062_s24  ;;  %3292 = vrot.lane.b32.xlu0 %v3181_v18, %s5068_s30  ;;  %v4967_v8 = vld [vmem:[#allocation2 + $0x50] ss:$0 sps:$4 sm:$0x11]   ;;  %v4972_v18 = vld [vmem:[#allocation2 + $0x84] sm:$0xff]  }
 0x154   : > { %v3142_v16 = vshll.u32 %v4967_v8, 16  ;;  %v3140_v57 = vor.u32 %v3139_v11, %v3135_v32  ;;  %v2307_v30 = vshrl.u32 %v4972_v18, 16  ;;  %v2309_v31 = vshll.u32 %v4972_v18, 16  ;;  %4617 = vmatprep.subr.bf16.mxu0 %v4988_v3  ;;  %v4983_v13 = vld [vmem:[#allocation2 + $0xbc] ss:$0 sps:$4 sm:$0x11]   ;;  %4659 = vmatprep.subr.bf16.mxu1 %v4988_v3 }
 0x155   : > { %v5608_v21 = vpop.permute.xlu1 %2669  ;;  %v1489_v26 = vpop.permute.xlu0 %1488  ;;  %v2357_v8 = vshll.u32 %v4982_v63, 16  ;;  %4618 = vmatpush3.bf16.msra.mxu0 %v4988_v3  ;;  %v4984_v18 = vld [vmem:[#allocation2 + $0x54] sm:$0xfe]   ;;  %4664 = vmatpush3.bf16.msra.mxu1 %v4988_v3 }
 0x156   : > { %1532 = vst.msk [vmem:[#allocation3 + $0x28] sm:$0xff] %vm1526_vm12, %v1489_v26  ;;  %v3144_v7 = vrot.slane %v3142_v16, 1  ;;  %v4973_v26 = vld [vmem:[#allocation2 + $0x8c] ss:$0 sps:$4 sm:$0x11]   ;;  %v2311_v28 = vrot.slane %v2309_v31, 1 }
 0x157   : > { %1494 = vrot.lane.b32.xlu1 %v1393_v24, %s5063_s25  ;;  %2404 = vrot.lane.b32.xlu0 %v2353_v35, %s5066_s28  ;;  %v3558_v24 = vrot.slane %v4970_v12, 1  ;;  %v2314_v38 = vshll.u32 %v4973_v26, 16  ;;  %v2359_v14 = vrot.slane %v2357_v8, 1  ;;  %v4985_v12 = vld [vmem:[#allocation2 + $0x5c] ss:$0 sps:$4 sm:$0x11]  }
 0x158   : > { %v3145_v35 = vsel %vm1285_vm7, %v3140_v57, %v3144_v7  ;;  %v2312_v42 = vor.u32 %v2311_v28, %v2307_v30  ;;  %v4992_v7 = vld [vmem:[%s6172_s1 + $0x8] sm:$0xff]   ;;  %v4997_v8 = vld [vmem:[#allocation2 + $0x54] sm:$0xff]  }
 0x159   : > { %v5614_v40 = vpop.permute.xlu1 %3567  ;;  %v1779_v46 = vpop.permute.xlu0 %1778  ;;  %v3560_v45 = vsel %vm1719_vm6, %v3558_v24, %v3559_v29  ;;  %v4986_v24 = vld [vmem:[#allocation2 + $0xb4] sm:$0xfe]   ;;  %v4987_v29 = vld [vmem:[#allocation2 + $0xbc] ss:$0 sps:$4 sm:$0x11]   ;;  %4619 = vmatprep.subr.bf16.mxu0 %v4992_v7  ;;  %4660 = vmatprep.subr.bf16.mxu1 %v4992_v7 }
 0x15a   : > { %1822 = vst.msk [vmem:[#allocation3 + $0x28] sm:$0xff] %vm1816_vm13, %v1779_v46  ;;  %v4980_v46 = vld [vmem:[#allocation2 + $0x90] sm:$0xff]   ;;  %v2661_v33 = vrot.slane %v4986_v24, 1  ;;  %4620 = vmatpush3.bf16.msra.mxu0 %v4992_v7  ;;  %4665 = vmatpush3.bf16.msra.mxu1 %v4992_v7 }
 0x15b   : > { %3585 = vrot.lane.b32.xlu1 %v3548_v34, %s5069_s6  ;;  %3581 = vrot.lane.b32.xlu0 %v3542_v17, %s5069_s6  ;;  %v2316_v34 = vrot.slane %v2314_v38, 1  ;;  %v1762_v17 = vrot.slane %v4974_v43, 1  ;;  %v2319_v55 = vshrl.u32 %v4980_v46, 16  ;;  %v4990_v38 = vld [vmem:[#allocation2 + $0x50] ss:$0 sps:$4 sm:$0x11]  }
 0x15d   : > { %v5621_v53 = vpop.permute.xlu1 %1772  ;;  %v5625_v56 = vpop.permute.xlu0 %2863  ;;  %v1764_v41 = vsel %vm1719_vm6, %v1762_v17, %v1763_v50  ;;  %v4995_v17 = vld [vmem:[#allocation2 + $0xc8] ss:$0 sps:$4 sm:$0x11]   ;;  %v4996_v50 = vld [vmem:[%s6172_s1 + $0x10] sm:$0xff]  }
 0x15e   : > { %4621 = vmatprep.subr.bf16.mxu0 %v4996_v50  ;;  %4661 = vmatprep.subr.bf16.mxu1 %v4996_v50 }
 0x15f   : > { %1788 = vrot.lane.b32.xlu1 %v1752_v37, %s5062_s24  ;;  %2869 = vrot.lane.b32.xlu0 %v4959_v54, %s5067_s29  ;;  %v4977_v54 = vld [vmem:[#allocation2 + $0x50] ss:$0 sps:$4 sm:$0x11]   ;;  %v2317_v37 = vsel %vm1285_vm7, %v2312_v42, %v2316_v34  ;;  %v4991_v42 = vld [vmem:[#allocation2 + $0xc0] sm:$0xff]  }
 0x160   : > { %v3532_v62 = vrot.slane %v4977_v54, 1  ;;  %4622 = vmatpush3.bf16.msra.mxu0 %v4996_v50  ;;  %4666 = vmatpush3.bf16.msra.mxu1 %v4996_v50  ;;  %v5012_v50 = vld [vmem:[#allocation2 + $0x68] ss:$0 sps:$4 sm:$0x11]  }
 0x161   : > { %v5628_v2 = vpop.permute.xlu1 %2861  ;;  %v1956_v6 = vpop.permute.xlu0 %1955 }
 0x162   : > { %1999 = vst.msk [vmem:[#allocation3 + $0x28] sm:$0xff] %vm1993_vm14, %v1956_v6 }
 0x163   : > { %2853 = vrot.lane.b32.xlu1 %v4960_v60, %s5067_s29  ;;  %3302 = vrot.lane.b32.xlu0 %v3241_v36, %s5068_s30  ;;  %v2321_v60 = vshll.u32 %v4980_v46, 16  ;;  %v2326_v36 = vshll.u32 %v4981_v25, 16 }
 0x165   : > { %v2381_v15 = vpop.permute.xlu1 %2380  ;;  %v5637_v19 = vpop.permute.xlu0 %3296  ;;  %v2323_v58 = vrot.slane %v2321_v60, 1  ;;  %v4993_v60 = vld [vmem:[#allocation2 + $0x90] sm:$0xff]  }
 0x166   : > { %2428 = vst.msk [vmem:[#allocation3 + $0x8] sm:$0xff] %vm2426_vm15, %v2381_v15  ;;  %v2328_v15 = vrot.slane %v2326_v36, 1  ;;  %v5002_v36 = vld [vmem:[#allocation2 + $0x98] ss:$0 sps:$4 sm:$0x11]  }
 0x167   : > { %2717 = vst.msk [vmem:[#allocation3 + $0x8] sm:$0xff] %vm2715_vm1, %v5608_v21  ;;  %1965 = vrot.lane.b32.xlu1 %v4963_v4, %s5064_s26  ;;  %3591 = vrot.lane.b32.xlu0 %v3557_v23, %s5069_s6  ;;  %v2355_v4 = vshrl.u32 %v4982_v63, 16  ;;  %v2324_v11 = vor.u32 %v2323_v58, %v2319_v55  ;;  %v3534_v23 = vrot.slane %v4984_v18, 1  ;;  %v5003_v58 = vld [vmem:[#allocation2 + $0x48] sm:$0xff]   ;;  %v3214_v18 = vshll.u32 %v5002_v36, 16 }
 0x168   : > { %1099 = vst.msk [vmem:[#allocation3 + $0x30] sm:$0xff] %vm1092_vm11, %v5003_v58 }
 0x169   : > { %v3279_v27 = vpop.permute.xlu1 %3278  ;;  %v1499_v21 = vpop.permute.xlu0 %1498  ;;  %v2360_v57 = vor.u32 %v2359_v14, %v2355_v4 }
 0x16a   : > { %3327 = vst.msk [vmem:[#allocation3] sm:$0xff] %vm3326_vm4, %v3279_v27  ;;  %v3535_v27 = vrot.slane %v4985_v12, 1 }
 0x16b   : > { %3616 = vst.msk [vmem:[#allocation3] sm:$0xff] %vm3615_vm8, %v5614_v40  ;;  %3286 = vrot.lane.b32.xlu1 %v3145_v35, %s5068_s30  ;;  %3593 = vrot.lane.b32.xlu0 %v3560_v45, %s5069_s6  ;;  %v4976_v40 = vld [vmem:[#allocation2 + $0x48] sm:$0xfe]   ;;  %v2662_v35 = vrot.slane %v4987_v29, 1  ;;  %v1739_v45 = vrot.slane %v4990_v38, 1 }
 0x16c   : > { %1537 = vst.msk [vmem:[#allocation3 + $0x50] sm:$0xff] %vm1526_vm12, %v1499_v21  ;;  %v3531_v49 = vrot.slane %v4976_v40, 1  ;;  %v4989_v21 = vld [vmem:[#allocation2 + $0x48] sm:$0xfe]   ;;  %v3536_v28 = vsel %vm1719_vm6, %v3534_v23, %v3535_v27 }
 0x16d   : > { %v1483_v48 = vpop.permute.xlu1 %1482  ;;  %v5655_v52 = vpop.permute.xlu0 %2675  ;;  %v1738_v44 = vrot.slane %v4989_v21, 1  ;;  %v2663_v34 = vsel %vm1719_vm6, %v2661_v33, %v2662_v35  ;;  %v5007_v23 = vld [vmem:[#allocation2 + $0x5c] ss:$0 sps:$4 sm:$0x11]   ;;  %v5008_v33 = vld [vmem:[#allocation2 + $0x90] sm:$0xfe]  }
 0x16e   : > { %1529 = vst.msk [vmem:[#allocation3 + $0x10] sm:$0xff] %vm1526_vm12, %v1483_v48  ;;  %v3533_v32 = vsel %vm1719_vm6, %v3531_v49, %v3532_v62  ;;  %v4994_v48 = vld [vmem:[#allocation2 + $0xc0] sm:$0xff]   ;;  %v5001_v62 = vld [vmem:[#allocation2 + $0x90] sm:$0xff]   ;;  %v5009_v38 = vld [vmem:[#allocation2 + $0x98] ss:$0 sps:$4 sm:$0x11]  }
 0x16f   : > { %1819 = vst.msk [vmem:[#allocation3 + $0x10] sm:$0xff] %vm1816_vm13, %v5621_v53  ;;  %2398 = vrot.lane.b32.xlu1 %v2317_v37, %s5066_s28  ;;  %1796 = vrot.lane.b32.xlu0 %v1764_v41, %s5062_s24  ;;  %v1740_v40 = vsel %vm1719_vm6, %v1738_v44, %v1739_v45  ;;  %v3255_v54 = vshrl.u32 %v4994_v48, 16  ;;  %v3257_v55 = vshll.u32 %v4994_v48, 16  ;;  %v5000_v37 = vld [vmem:[%s6172_s1 + $0x18] sm:$0xff]   ;;  %v3262_v41 = vshll.u32 %v4995_v17, 16 }
 0x170   : > { %4623 = vmatprep.subr.bf16.mxu0 %v5000_v37  ;;  %4662 = vmatprep.subr.bf16.mxu1 %v5000_v37  ;;  %v5010_v35 = vld [vmem:[#allocation2 + $0x54] sm:$0xff]   ;;  %v3549_v48 = vrot.slane %v5008_v33, 1  ;;  %v5023_v33 = vld [vmem:[#allocation2 + $0xa4] ss:$0 sps:$4 sm:$0x11]  }
 0x171   : > { %v2397_v1 = vpop.permute.xlu1 %2396  ;;  %v1501_v6 = vpop.permute.xlu0 %1500  ;;  %v3264_v3 = vrot.slane %v3262_v41, 1  ;;  %4624 = vmatpush3.bf16.msra.mxu0 %v5000_v37  ;;  %4667 = vmatpush3.bf16.msra.mxu1 %v5000_v37  ;;  %1100 = vst.msk [vmem:[#allocation3 + $0x38] sm:$0xff] %vm1092_vm11, %v5010_v35  ;;  %v2278_v41 = vshll.u32 %v5012_v50, 16  ;;  %v5036_v50 = vld [vmem:[#allocation2 + $0x60] sm:$0xff]  }
 0x172   : > { %2436 = vst.msk [vmem:[#allocation3 + $0x48] sm:$0xff] %vm2426_vm15, %v2397_v1  ;;  %v3632_v53 = vld [vmem:[#allocation3] sm:$0xff]  ;;  %v3259_v1 = vrot.slane %v3257_v55, 1 }
 0x173   : > { %2725 = vst.msk [vmem:[#allocation3 + $0x48] sm:$0xff] %vm2715_vm1, %v5562_v9  ;;  %4627 = vmatprep.mubr.msk.bf16.mxu0 %vm3691_vm9, %v3632_v53  ;;  %3575 = vrot.lane.b32.xlu1 %v3533_v32, %s5069_s6  ;;  %v4999_v53 = vld [vmem:[#allocation2 + $0xc8] ss:$0 sps:$4 sm:$0x11]   ;;  %v3207_v32 = vshrl.u32 %v5001_v62, 16 }
 0x174   : > { %1538 = vst.msk [vmem:[#allocation3 + $0x58] sm:$0xff] %vm1526_vm12, %v1501_v6  ;;  %1973 = vrot.lane.b32.xlu0 %v4979_v51, %s5064_s26  ;;  %v4998_v51 = vld [vmem:[#allocation2 + $0xc0] sm:$0xfe]   ;;  %v3260_v6 = vor.u32 %v3259_v1, %v3255_v54 }
 0x175   : > { %2903 = vst.msk [vmem:[#allocation3 + $0x48] sm:$0xff] %vm2893_vm3, %v5625_v56  ;;  %v2848_v9 = vpop.permute.xlu1 %2847  ;;  %v5679_v16 = vpop.permute.xlu0 %2677  ;;  %v2362_v56 = vshll.u32 %v4983_v13, 16  ;;  %v3561_v25 = vrot.slane %v4998_v51, 1  ;;  %v3209_v13 = vshll.u32 %v5001_v62, 16 }
 0x176   : > { %3336 = vst.msk [vmem:[#allocation3 + $0x48] sm:$0xff] %vm3326_vm4, %v5637_v19  ;;  %v2329_v19 = vsel %vm1285_vm7, %v2324_v11, %v2328_v15  ;;  %v3562_v11 = vrot.slane %v4999_v53, 1  ;;  %v3265_v14 = vsel %vm1285_vm7, %v3260_v6, %v3264_v3  ;;  %v5014_v1 = vld [vmem:[#allocation2 + $0xa4] ss:$0 sps:$4 sm:$0x11]   ;;  %v2280_v53 = vrot.slane %v2278_v41, 1 }
 0x177   : > { %2895 = vst.msk [vmem:[#allocation3 + $0x8] sm:$0xff] %vm2893_vm3, %v2848_v9  ;;  %v2364_v22 = vrot.slane %v2362_v56, 1  ;;  %2400 = vrot.lane.b32.xlu1 %v2329_v19, %s5066_s28  ;;  %v5004_v9 = vld [vmem:[#allocation2 + $0x24] sm:$0xff]   ;;  %v3211_v56 = vrot.slane %v3209_v13, 1  ;;  %v3216_v19 = vrot.slane %v3214_v18, 1 }
 0x178   : > { %1096 = vst.msk [vmem:[#allocation3 + $0x18] sm:$0xff] %vm1092_vm11, %v5004_v9  ;;  %1101 = vst.msk [vmem:[#allocation3 + $0x40] sm:$0xff] %vm1092_vm11, %v5036_v50 }
 0x179   : > { %v1950_v26 = vpop.permute.xlu1 %1949  ;;  %v2365_v30 = vsel %vm1285_vm7, %v2360_v57, %v2364_v22  ;;  %v1791_v31 = vpop.permute.xlu0 %1790  ;;  %v5005_v57 = vld [vmem:[%s6172_s1 + $0x20] ss:$0 sps:$4 sm:$0xff]   ;;  %v3212_v7 = vor.u32 %v3211_v56, %v3207_v32  ;;  %v5006_v22 = vld [vmem:[#allocation2 + $0x54] sm:$0xff]  }
 0x17a   : > { %1996 = vst.msk [vmem:[#allocation3 + $0x10] sm:$0xff] %vm1993_vm14, %v1950_v26  ;;  %2406 = vrot.lane.b32.xlu0 %v2365_v30, %s5066_s28  ;;  %4669 = vmatprep.subr.msk.bf16.mxu0 %vm3740_vm10, %v5005_v57  ;;  %v3742_v24 = vsel %vm3740_vm10, %v5005_v57, 0  ;;  %v3563_v26 = vsel %vm1719_vm6, %v3561_v25, %v3562_v11  ;;  %v2259_v29 = vshrl.u32 %v5006_v22, 16  ;;  %v2261_v30 = vshll.u32 %v5006_v22, 16  ;;  %v5015_v25 = vld [vmem:[#allocation2 + $0x90] sm:$0xfe]  }
 0x17b   : > { %1828 = vst.msk [vmem:[#allocation3 + $0x58] sm:$0xff] %vm1816_vm13, %v1791_v31  ;;  %3577 = vrot.lane.b32.xlu1 %v3536_v28, %s5069_s6  ;;  %4626 = vmatpush3.bf16.msra.mxu0 %v3742_v24  ;;  %v2266_v31 = vshll.u32 %v5007_v23, 16  ;;  %v3217_v21 = vsel %vm1285_vm7, %v3212_v7, %v3216_v19  ;;  %v5011_v28 = vld [vmem:[#allocation2 + $0x60] sm:$0xff]   ;;  %v5021_v11 = vld [vmem:[#allocation2 + $0x90] sm:$0xff]  }
 0x17c   : > { %4670 = vmatprep.subr.msk.bf16.mxu1 %vm3740_vm10, %v5005_v57  ;;  %v2263_v45 = vrot.slane %v2261_v30, 1  ;;  %v2271_v37 = vshrl.u32 %v5011_v28, 16  ;;  %1105 = vst.msk [vmem:[#allocation3 + $0x60] sm:$0xff] %vm1092_vm11, %v5021_v11  ;;  %v1756_v57 = vrot.slane %v5015_v25, 1  ;;  %v5019_v7 = vld [vmem:[#allocation2 + $0x60] sm:$0xff]   ;;  %v5032_v11 = vld [vmem:[#allocation2 + $0xb4] sm:$0xff]  }
 0x17d   : > { %v5692_v43 = vpop.permute.xlu1 %3569  ;;  %v5695_v46 = vpop.permute.xlu0 %2855  ;;  %4668 = vmatpush3.bf16.msra.mxu1 %v3742_v24  ;;  %v5020_v22 = vld [vmem:[#allocation2 + $0x68] ss:$0 sps:$4 sm:$0x11]   ;;  %v5022_v23 = vld [vmem:[#allocation2 + $0x9c] sm:$0xff]   ;;  %v3243_v10 = vshrl.u32 %v5032_v11, 16 }
 0x17e   : > { %2695 = vrot.lane.b32.xlu0 %v2663_v34, %s5065_s27  ;;  %v2268_v34 = vrot.slane %v2266_v31, 1  ;;  %v2264_v17 = vor.u32 %v2263_v45, %v2259_v29  ;;  %v5017_v30 = vld [vmem:[#allocation2 + $0x60] sm:$0xff]   ;;  %v3166_v31 = vshll.u32 %v5020_v22, 16  ;;  %v2333_v35 = vshll.u32 %v5022_v23, 16 }
 0x17f   : > { %1780 = vrot.lane.b32.xlu1 %v1740_v40, %s5062_s24  ;;  %v2273_v40 = vshll.u32 %v5011_v28, 16  ;;  %v5018_v45 = vld [vmem:[#allocation2 + $0x9c] sm:$0xff]  }
 0x180   : > { %v2269_v54 = vsel %vm1285_vm7, %v2264_v17, %v2268_v34  ;;  %v3168_v34 = vrot.slane %v3166_v31, 1  ;;  %v2338_v17 = vshll.u32 %v5023_v33, 16 }
 0x181   : > { %v5706_v49 = vpop.permute.xlu1 %1774  ;;  %v1968_v63 = vpop.permute.xlu0 %1967 }
 0x182   : > { %2873 = vrot.lane.b32.xlu0 %v4991_v42, %s5067_s29  ;;  %2005 = vst.msk [vmem:[#allocation3 + $0x58] sm:$0xff] %vm1993_vm14, %v1968_v63  ;;  %v3550_v42 = vrot.slane %v5009_v38, 1  ;;  %v3159_v38 = vshrl.u32 %v5019_v7, 16  ;;  %v2340_v41 = vrot.slane %v2338_v17, 1  ;;  %v5031_v17 = vld [vmem:[#allocation2 + $0xb4] sm:$0xff]  }
 0x183   : > { %2865 = vrot.lane.b32.xlu1 %v4993_v60, %s5067_s29  ;;  %v2275_v60 = vrot.slane %v2273_v40, 1 }
 0x184   : > { %v3551_v51 = vsel %vm1719_vm6, %v3549_v48, %v3550_v42  ;;  %v2331_v48 = vshrl.u32 %v5022_v23, 16  ;;  %v2335_v42 = vrot.slane %v2333_v35, 1 }
 0x185   : > { %v5712_v4 = vpop.permute.xlu1 %2671  ;;  %v5715_v15 = vpop.permute.xlu0 %3288  ;;  %v2276_v3 = vor.u32 %v2275_v60, %v2271_v37 }
 0x186   : > { %3306 = vrot.lane.b32.xlu0 %v3265_v14, %s5068_s30  ;;  %v5026_v14 = vld [vmem:[#allocation2 + $0x9c] sm:$0xff]   ;;  %v2336_v60 = vor.u32 %v2335_v42, %v2331_v48  ;;  %v5037_v48 = vld [vmem:[#allocation2 + $0xb4] sm:$0xff]  }
 0x187   : > { %1957 = vrot.lane.b32.xlu1 %v4997_v8, %s5064_s26  ;;  %v5016_v8 = vld [vmem:[#allocation2 + $0x98] ss:$0 sps:$4 sm:$0x11]   ;;  %v2281_v36 = vsel %vm1285_vm7, %v2276_v3, %v2280_v53  ;;  %1106 = vst.msk [vmem:[#allocation3 + $0x68] sm:$0xff] %vm1092_vm11, %v5026_v14 }
 0x189   : > { %v3281_v12 = vpop.permute.xlu1 %3280  ;;  %v1491_v27 = vpop.permute.xlu0 %1490 }
 0x18a   : > { %3328 = vst.msk [vmem:[#allocation3 + $0x8] sm:$0xff] %vm3326_vm4, %v3281_v12  ;;  %3595 = vrot.lane.b32.xlu0 %v3563_v26, %s5069_s6  ;;  %v1757_v12 = vrot.slane %v5016_v8, 1 }
 0x18b   : > { %3617 = vst.msk [vmem:[#allocation3 + $0x8] sm:$0xff] %vm3615_vm8, %v5692_v43  ;;  %3298 = vrot.lane.b32.xlu1 %v3217_v21, %s5068_s30 }
 0x18c   : > { %1533 = vst.msk [vmem:[#allocation3 + $0x30] sm:$0xff] %vm1526_vm12, %v1491_v27  ;;  %v1758_v24 = vsel %vm1719_vm6, %v1756_v57, %v1757_v12  ;;  %v3161_v27 = vshll.u32 %v5019_v7, 16  ;;  %v5029_v57 = vld [vmem:[#allocation2 + $0xa8] sm:$0xfe]   ;;  %v362_v7 = vld [vmem:[#allocation2 + $0xd4] sm:$0x1] }
 0x18d   : > { %v1485_v44 = vpop.permute.xlu1 %1484  ;;  %v5736_v43 = vpop.permute.xlu0 %2687  ;;  %v363_v23 = vsel %vm5132_vm5, 0, %v362_v7 }
 0x18e   : > { %1530 = vst.msk [vmem:[#allocation3 + $0x18] sm:$0xff] %vm1526_vm12, %v1485_v44  ;;  %v3163_v28 = vrot.slane %v3161_v27, 1  ;;  %364 = vst [vmem:[#allocation2 + $0xd4] sm:$0x1] %v363_v23  ;;  %v5034_v27 = vld [vmem:[#allocation2 + $0xa8] sm:$0xff]   ;;  %v5041_v23 = vld [vmem:[#allocation2 + $0xc0] sm:$0xff]  }
 0x18f   : > { %1820 = vst.msk [vmem:[#allocation3 + $0x18] sm:$0xff] %vm1816_vm13, %v5706_v49  ;;  %2390 = vrot.lane.b32.xlu1 %v2269_v54, %s5066_s28  ;;  %v5013_v49 = vld [vmem:[#allocation2 + $0x9c] sm:$0xfe]  }
 0x190   : > { %v3552_v32 = vrot.slane %v5013_v49, 1  ;;  %v3164_v54 = vor.u32 %v3163_v28, %v3159_v38  ;;  %v5028_v49 = vld [vmem:[#allocation2 + $0xa4] ss:$0 sps:$4 sm:$0x11]   ;;  %v1457_v28 = vshll.u32 %v5034_v27, 16 }
 0x191   : > { %v2383_v55 = vpop.permute.xlu1 %2382  ;;  %v1493_v63 = vpop.permute.xlu0 %1492  ;;  %v2656_v8 = vrot.slane %v5028_v49, 1  ;;  %v5035_v38 = vld [vmem:[#allocation2 + $0xb0] ss:$0 sps:$4 sm:$0x11]  }
 0x192   : > { %2429 = vst.msk [vmem:[#allocation3 + $0x10] sm:$0xff] %vm2426_vm15, %v2383_v55  ;;  %v3633_v62 = vld [vmem:[#allocation3 + $0x8] sm:$0xff] }
 0x193   : > { %2718 = vst.msk [vmem:[#allocation3 + $0x10] sm:$0xff] %vm2715_vm1, %v5712_v4  ;;  %4628 = vmatmul.mubr.msk.bf16.vlgmr.msra.gmra.mrb[0].mxu0 %vm3691_vm9, %v3633_v62  ;;  %3587 = vrot.lane.b32.xlu1 %v3551_v51, %s5069_s6  ;;  %v3553_v4 = vrot.slane %v5014_v1, 1  ;;  %v5051_v1 = vld [vmem:[#allocation2 + $0xa8] sm:$0xff]   ;;  %v2341_v51 = vsel %vm1285_vm7, %v2336_v60, %v2340_v41 }
 0x194   : > { %1534 = vst.msk [vmem:[#allocation3 + $0x38] sm:$0xff] %vm1526_vm12, %v1493_v63  ;;  %v5027_v63 = vld [vmem:[#allocation2 + $0x9c] sm:$0xfe]  }
 0x195   : > { %v1952_v58 = vpop.permute.xlu1 %1951  ;;  %v5750_v6 = vpop.permute.xlu0 %2689  ;;  %v3554_v56 = vsel %vm1719_vm6, %v3552_v32, %v3553_v4  ;;  %1107 = vst.msk [vmem:[#allocation3 + $0x70] sm:$0xff] %vm1092_vm11, %v5051_v1  ;;  %v2655_v4 = vrot.slane %v5027_v63, 1  ;;  %v1467_v1 = vshrl.u32 %v5037_v48, 16 }
 0x196   : > { %1997 = vst.msk [vmem:[#allocation3 + $0x18] sm:$0xff] %vm1993_vm14, %v1952_v58 }
 0x197   : > { %2392 = vrot.lane.b32.xlu1 %v2281_v36, %s5066_s28  ;;  %v5030_v36 = vld [vmem:[#allocation2 + $0xb0] ss:$0 sps:$4 sm:$0x11]   ;;  %v2657_v0 = vsel %vm1719_vm6, %v2655_v4, %v2656_v8  ;;  %v5040_v4 = vld [vmem:[#allocation2 + $0xbc] ss:$0 sps:$4 sm:$0x11]  }
 0x198   : > { %v2659_v31 = vrot.slane %v5030_v36, 1  ;;  %v5042_v8 = vld [vmem:[#allocation2 + $0xc0] sm:$0xff]  }
 0x199   : > { %v2850_v13 = vpop.permute.xlu1 %2849  ;;  %v1783_v9 = vpop.permute.xlu0 %1782 }
 0x19a   : > { %2896 = vst.msk [vmem:[#allocation3 + $0x10] sm:$0xff] %vm2893_vm3, %v2850_v13  ;;  %v306_v13 = vld [vmem:[#allocation2 + $0xcc] sm:$0x1] }
 0x19b   : > { %1824 = vst.msk [vmem:[#allocation3 + $0x38] sm:$0xff] %vm1816_vm13, %v1783_v9  ;;  %3589 = vrot.lane.b32.xlu1 %v3554_v56, %s5069_s6  ;;  %v5052_v9 = vld [vmem:[#allocation2 + $0xb4] sm:$0xff]   ;;  %v307_v12 = vsel %vm5110_vm2, 0, %v306_v13 }
 0x19c   : > { %308 = vst [vmem:[#allocation2 + $0xcc] sm:$0x1] %v307_v12  ;;  %1108 = vst.msk [vmem:[#allocation3 + $0x78] sm:$0xff] %vm1092_vm11, %v5052_v9  ;;  %v1766_v9 = vrot.slane %v5040_v4, 1 }
 0x19d   : > { %v3572_v18 = vpop.permute.xlu1 %3571  ;;  %v5760_v19 = vpop.permute.xlu0 %2867 }
 0x19f   : > { %1792 = vrot.lane.b32.xlu1 %v1758_v24, %s5062_s24  ;;  %v5033_v24 = vld [vmem:[#allocation2 + $0xbc] ss:$0 sps:$4 sm:$0x11]  }
 0x1a1   : > { %v1777_v26 = vpop.permute.xlu1 %1776  ;;  %v1960_v29 = vpop.permute.xlu0 %1959 }
 0x1a2   : > { %1821 = vst.msk [vmem:[#allocation3 + $0x20] sm:$0xff] %vm1816_vm13, %v1777_v26  ;;  %v3245_v26 = vshll.u32 %v5032_v11, 16 }
 0x1a3   : > { %2001 = vst.msk [vmem:[#allocation3 + $0x38] sm:$0xff] %vm1993_vm14, %v1960_v29  ;;  %2857 = vrot.lane.b32.xlu1 %v5017_v30, %s5067_s29  ;;  %v2658_v30 = vrot.slane %v5029_v57, 1  ;;  %v2367_v57 = vshrl.u32 %v5042_v8, 16 }
 0x1a4   : > { %v3247_v35 = vrot.slane %v3245_v26, 1 }
 0x1a5   : > { %v2385_v21 = vpop.permute.xlu1 %2384  ;;  %v5768_v44 = vpop.permute.xlu0 %3300 }
 0x1a6   : > { %2430 = vst.msk [vmem:[#allocation3 + $0x18] sm:$0xff] %vm2426_vm15, %v2385_v21  ;;  %v3250_v21 = vshll.u32 %v5033_v24, 16  ;;  %v3248_v50 = vor.u32 %v3247_v35, %v3243_v10 }
 0x1a7   : > { %2719 = vst.msk [vmem:[#allocation3 + $0x18] sm:$0xff] %vm2715_vm1, %v5573_v20  ;;  %1969 = vrot.lane.b32.xlu1 %v5018_v45, %s5064_s26  ;;  %v5024_v20 = vld [vmem:[#allocation2 + $0x60] sm:$0xfe]   ;;  %v2660_v45 = vsel %vm1719_vm6, %v2658_v30, %v2659_v31 }
 0x1a8   : > { %2897 = vst.msk [vmem:[#allocation3 + $0x18] sm:$0xff] %vm2893_vm3, %v5593_v39  ;;  %v3169_v39 = vsel %vm1285_vm7, %v3164_v54, %v3168_v34  ;;  %v3537_v3 = vrot.slane %v5024_v20, 1  ;;  %v1455_v54 = vshrl.u32 %v5034_v27, 16  ;;  %v1462_v20 = vshll.u32 %v5035_v38, 16  ;;  %v5044_v27 = vld [vmem:[#allocation2 + $0xc0] sm:$0xfe]  }
 0x1a9   : > { %3330 = vst.msk [vmem:[#allocation3 + $0x18] sm:$0xff] %vm3326_vm4, %v5603_v61  ;;  %v3283_v40 = vpop.permute.xlu1 %3282  ;;  %v1503_v55 = vpop.permute.xlu0 %1502  ;;  %v5025_v61 = vld [vmem:[#allocation2 + $0x68] ss:$0 sps:$4 sm:$0x11]   ;;  %v2664_v35 = vrot.slane %v5044_v27, 1 }
 0x1aa   : > { %3329 = vst.msk [vmem:[#allocation3 + $0x10] sm:$0xff] %vm3326_vm4, %v3283_v40  ;;  %v3538_v53 = vrot.slane %v5025_v61, 1  ;;  %v3252_v40 = vrot.slane %v3250_v21, 1  ;;  %v1464_v49 = vrot.slane %v1462_v20, 1 }
 0x1ab   : > { %3618 = vst.msk [vmem:[#allocation3 + $0x10] sm:$0xff] %vm3615_vm8, %v3572_v18  ;;  %3290 = vrot.lane.b32.xlu1 %v3169_v39, %s5068_s30  ;;  %v5038_v39 = vld [vmem:[#allocation2 + $0xbc] ss:$0 sps:$4 sm:$0x11]  }
 0x1ac   : > { %1539 = vst.msk [vmem:[#allocation3 + $0x60] sm:$0xff] %vm1526_vm12, %v1503_v55  ;;  %v3539_v14 = vsel %vm1719_vm6, %v3537_v3, %v3538_v53  ;;  %v3253_v41 = vsel %vm1285_vm7, %v3248_v50, %v3252_v40 }
 0x1ad   : > { %v3574_v37 = vpop.permute.xlu1 %3573  ;;  %v5784_v62 = vpop.permute.xlu0 %2679 }
 0x1ae   : > { %3619 = vst.msk [vmem:[#allocation3 + $0x18] sm:$0xff] %vm3615_vm8, %v3574_v37  ;;  %v1469_v37 = vshll.u32 %v5037_v48, 16 }
 0x1af   : > { %2402 = vrot.lane.b32.xlu1 %v2341_v51, %s5066_s28 }
 0x1b0   : > { %v1471_v51 = vrot.slane %v1469_v37, 1 }
 0x1b1   : > { %v1954_v58 = vpop.permute.xlu1 %1953  ;;  %v1505_v32 = vpop.permute.xlu0 %1504 }
 0x1b2   : > { %1998 = vst.msk [vmem:[#allocation3 + $0x20] sm:$0xff] %vm1993_vm14, %v1954_v58  ;;  %v3634_v25 = vld [vmem:[#allocation3 + $0x10] sm:$0xff]  ;;  %v1474_v58 = vshll.u32 %v5038_v39, 16 }
 0x1b3   : > { %4631 = vmatprep.mubr.msk.bf16.mxu0 %vm3691_vm9, %v3634_v25  ;;  %1540 = vst.msk [vmem:[#allocation3 + $0x68] sm:$0xff] %vm1526_vm12, %v1505_v32  ;;  %3579 = vrot.lane.b32.xlu1 %v3539_v14, %s5069_s6  ;;  %v5043_v14 = vld [vmem:[#allocation2 + $0xc8] ss:$0 sps:$4 sm:$0x11]  }
 0x1b4   : > { %v1476_v32 = vrot.slane %v1474_v58, 1  ;;  %v2374_v7 = vshll.u32 %v5043_v14, 16 }
 0x1b5   : > { %v5793_v56 = vpop.permute.xlu1 %3294  ;;  %v3635_v18 = vld [vmem:[#allocation3 + $0x18] sm:$0xff]  ;;  %v5799_v22 = vpop.permute.xlu0 %2681 }
 0x1b6   : > { %4632 = vmatmul.mubr.msk.bf16.gmra.mrb[4].mxu0 %vm3691_vm9, %v3635_v18  ;;  %v2369_v18 = vshll.u32 %v5042_v8, 16 }
 0x1b7   : > { %2691 = vrot.lane.b32.xlu1 %v2657_v0, %s5065_s27  ;;  %v5045_v0 = vld [vmem:[#allocation2 + $0xc8] ss:$0 sps:$4 sm:$0x11]  }
 0x1b8   : > { %v2371_v12 = vrot.slane %v2369_v18, 1  ;;  %v2665_v21 = vrot.slane %v5045_v0, 1 }
 0x1b9   : > { %v2387_v29 = vpop.permute.xlu1 %2386  ;;  %v1795_v33 = vpop.permute.xlu0 %1794 }
 0x1ba   : > { %2431 = vst.msk [vmem:[#allocation3 + $0x20] sm:$0xff] %vm2426_vm15, %v2387_v29  ;;  %v2372_v26 = vor.u32 %v2371_v12, %v2367_v57 }
 0x1bb   : > { %2720 = vst.msk [vmem:[#allocation3 + $0x20] sm:$0xff] %vm2715_vm1, %v5655_v52  ;;  %2693 = vrot.lane.b32.xlu1 %v2660_v45, %s5065_s27  ;;  %v1459_v52 = vrot.slane %v1457_v28, 1 }
 0x1bc   : > { %1830 = vst.msk [vmem:[#allocation3 + $0x68] sm:$0xff] %vm1816_vm13, %v1795_v33 }
 0x1bd   : > { %v3584_v34 = vpop.permute.xlu1 %3583  ;;  %v5812_v42 = vpop.permute.xlu0 %2859  ;;  %v1460_v61 = vor.u32 %v1459_v52, %v1455_v54  ;;  %v5049_v54 = vld [vmem:[#allocation2 + $0xcc] sm:$0xfe]   ;;  %v5050_v52 = vld [vmem:[#allocation2 + $0xd4] ss:$0 sps:$4 sm:$0x11]  }
 0x1be   : > { %v3564_v39 = vrot.slane %v5049_v54, 1  ;;  %v3565_v37 = vrot.slane %v5050_v52, 1 }
 0x1bf   : > { %2871 = vrot.lane.b32.xlu1 %v5031_v17, %s5067_s29  ;;  %v1465_v53 = vsel %vm1285_vm7, %v1460_v61, %v1464_v49  ;;  %v5046_v17 = vld [vmem:[#allocation2 + $0xcc] sm:$0xff]  }
 0x1c1   : > { %v2389_v55 = vpop.permute.xlu1 %2388  ;;  %v1972_v60 = vpop.permute.xlu0 %1971 }
 0x1c2   : > { %2432 = vst.msk [vmem:[#allocation3 + $0x28] sm:$0xff] %vm2426_vm15, %v2389_v55 }
 0x1c3   : > { %2721 = vst.msk [vmem:[#allocation3 + $0x28] sm:$0xff] %vm2715_vm1, %v5679_v16  ;;  %3304 = vrot.lane.b32.xlu1 %v3253_v41, %s5068_s30  ;;  %v5039_v16 = vld [vmem:[#allocation2 + $0xb4] sm:$0xfe]   ;;  %v3566_v41 = vsel %vm1719_vm6, %v3564_v39, %v3565_v37 }
 0x1c4   : > { %2007 = vst.msk [vmem:[#allocation3 + $0x68] sm:$0xff] %vm1993_vm14, %v1972_v60  ;;  %v1765_v13 = vrot.slane %v5039_v16, 1 }
 0x1c5   : > { %2899 = vst.msk [vmem:[#allocation3 + $0x28] sm:$0xff] %vm2893_vm3, %v5695_v46  ;;  %v1785_v63 = vpop.permute.xlu1 %1784  ;;  %v5825_v3 = vpop.permute.xlu0 %3292  ;;  %v1472_v46 = vor.u32 %v1471_v51, %v1467_v1 }
 0x1c6   : > { %3332 = vst.msk [vmem:[#allocation3 + $0x28] sm:$0xff] %vm3326_vm4, %v5715_v15 }
 0x1c7   : > { %1506 = vrot.lane.b32.xlu1 %v1465_v53, %s5063_s25  ;;  %v1477_v11 = vsel %vm1285_vm7, %v1472_v46, %v1476_v32 }
 0x1c9   : > { %v1495_v25 = vpop.permute.xlu1 %1494  ;;  %v2405_v15 = vpop.permute.xlu0 %2404 }
 0x1ca   : > { %1535 = vst.msk [vmem:[#allocation3 + $0x40] sm:$0xff] %vm1526_vm12, %v1495_v25 }
 0x1cb   : > { %1825 = vst.msk [vmem:[#allocation3 + $0x40] sm:$0xff] %vm1816_vm13, %v1785_v63  ;;  %1508 = vrot.lane.b32.xlu1 %v1477_v11, %s5063_s25 }
 0x1cc   : > { %2002 = vst.msk [vmem:[#allocation3 + $0x40] sm:$0xff] %vm1993_vm14, %v5550_v47  ;;  %v1767_v47 = vsel %vm1719_vm6, %v1765_v13, %v1766_v9 }
 0x1cd   : > { %2440 = vst.msk [vmem:[#allocation3 + $0x68] sm:$0xff] %vm2426_vm15, %v2405_v15  ;;  %2435 = vst.msk [vmem:[#allocation3 + $0x40] sm:$0xff] %vm2426_vm15, %v5600_v5  ;;  %v3586_v36 = vpop.permute.xlu1 %3585 }
 0x1ce   : > { %2724 = vst.msk [vmem:[#allocation3 + $0x40] sm:$0xff] %vm2715_vm1, %v5555_v59  ;;  %v5047_v59 = vld [vmem:[#allocation2 + $0xcc] sm:$0xff]  }
 0x1cf   : > { %3625 = vst.msk [vmem:[#allocation3 + $0x48] sm:$0xff] %vm3615_vm8, %v3586_v36  ;;  %1798 = vrot.lane.b32.xlu1 %v1767_v47, %s5062_s24  ;;  %v3269_v29 = vshll.u32 %v5047_v59, 16  ;;  %v3267_v38 = vshrl.u32 %v5047_v59, 16 }
 0x1d0   : > { %2902 = vst.msk [vmem:[#allocation3 + $0x40] sm:$0xff] %vm2893_vm3, %v5628_v2  ;;  %v2376_v2 = vrot.slane %v2374_v7, 1 }
 0x1d1   : > { %3335 = vst.msk [vmem:[#allocation3 + $0x40] sm:$0xff] %vm3326_vm4, %v5793_v56  ;;  %v1789_v5 = vpop.permute.xlu1 %1788  ;;  %v5048_v56 = vld [vmem:[#allocation2 + $0xd4] ss:$0 sps:$4 sm:$0x11]   ;;  %v3271_v28 = vrot.slane %v3269_v29, 1 }
 0x1d2   : > { %3624 = vst.msk [vmem:[#allocation3 + $0x40] sm:$0xff] %vm3615_vm8, %v3584_v34  ;;  %v2377_v31 = vsel %vm1285_vm7, %v2372_v26, %v2376_v2  ;;  %v3274_v45 = vshll.u32 %v5048_v56, 16  ;;  %v2666_v34 = vsel %vm1719_vm6, %v2664_v35, %v2665_v21 }
 0x1d3   : > { %1827 = vst.msk [vmem:[#allocation3 + $0x50] sm:$0xff] %vm1816_vm13, %v1789_v5  ;;  %1975 = vrot.lane.b32.xlu1 %v5041_v23, %s5064_s26  ;;  %v3272_v50 = vor.u32 %v3271_v28, %v3267_v38  ;;  %s241_s26 = scalar_lea.vmem %s6176_s5, %s6186_s19 }
 0x1d4   : > { %v3276_v40 = vrot.slane %v3274_v45, 1 }
 0x1d5   : > { %v2854_v24 = vpop.permute.xlu1 %2853 }
 0x1d6   : > { %2898 = vst.msk [vmem:[#allocation3 + $0x20] sm:$0xff] %vm2893_vm3, %v2854_v24  ;;  %v3641_v10 = vld [vmem:[#allocation3 + $0x48] sm:$0xff]  ;;  %v3277_v20 = vsel %vm1285_vm7, %v3272_v50, %v3276_v40 }
 0x1d7   : > { %2408 = vrot.lane.b32.xlu1 %v2377_v31, %s5066_s28  ;;  %v5936_v40 = vld [vmem:[%s6173_s2] ss:$0 sm:$0xff] }
 0x1d9   : > { %v3640_v30 = vld [vmem:[#allocation3 + $0x40] sm:$0xff]  ;;  %v1966_v33 = vpop.permute.xlu1 %1965 }
 0x1da   : > { %4643 = vmatprep.mubr.msk.bf16.mxu1 %vm3691_vm9, %v3640_v30  ;;  %2004 = vst.msk [vmem:[#allocation3 + $0x50] sm:$0xff] %vm1993_vm14, %v1966_v33 }
 0x1db   : > { %4644 = vmatmul.mubr.msk.bf16.vlgmr.msra.gmra.mrb[0].mxu1 %vm3691_vm9, %v3641_v10  ;;  %2697 = vrot.lane.b32.xlu1 %v2666_v34, %s5065_s27  ;;  %s4562_s27 = sshll.u32 %s6186_s19, 3 }
 0x1dd   : > { %v3287_v48 = vpop.permute.xlu1 %3286 }
 0x1de   : > { %3331 = vst.msk [vmem:[#allocation3 + $0x20] sm:$0xff] %vm3326_vm4, %v3287_v48 }
 0x1df   : > { %2875 = vrot.lane.b32.xlu1 %v5046_v17, %s5067_s29 }
 0x1e1   : > { %v2399_v55 = vpop.permute.xlu1 %2398 }
 0x1e2   : > { %2437 = vst.msk [vmem:[#allocation3 + $0x50] sm:$0xff] %vm2426_vm15, %v2399_v55 }
 0x1e3   : > { %2726 = vst.msk [vmem:[#allocation3 + $0x50] sm:$0xff] %vm2715_vm1, %v5736_v43  ;;  %3308 = vrot.lane.b32.xlu1 %v3277_v20, %s5068_s30  ;;  %s235_s30 = scalar_lea.vmem %s6174_s3, %s4562_s27 }
 0x1e5   : > { %v3576_v60 = vpop.permute.xlu1 %3575 }
 0x1e6   : > { %3620 = vst.msk [vmem:[#allocation3 + $0x20] sm:$0xff] %vm3615_vm8, %v3576_v60 }
 0x1e7   : > { %3597 = vrot.lane.b32.xlu1 %v3566_v41, %s5069_s6 }
 0x1e9   : > { %v2401_v61 = vpop.permute.xlu1 %2400 }
 0x1ea   : > { %2438 = vst.msk [vmem:[#allocation3 + $0x58] sm:$0xff] %vm2426_vm15, %v2401_v61 }
 0x1eb   : > { %2727 = vst.msk [vmem:[#allocation3 + $0x58] sm:$0xff] %vm2715_vm1, %v5750_v6 }
 0x1ec   : > { %2905 = vst.msk [vmem:[#allocation3 + $0x58] sm:$0xff] %vm2893_vm3, %v5760_v19 }
 0x1ed   : > { %v3636_v63 = vld [vmem:[#allocation3 + $0x20] sm:$0xff]  ;;  %3338 = vst.msk [vmem:[#allocation3 + $0x58] sm:$0xff] %vm3326_vm4, %v5768_v44  ;;  %v3578_v43 = vpop.permute.xlu1 %3577  ;;  %v3582_v44 = vpop.permute.xlu0 %3581 }
 0x1ee   : > { %4635 = vmatprep.mubr.msk.bf16.mxu0 %vm3691_vm9, %v3636_v63  ;;  %3621 = vst.msk [vmem:[#allocation3 + $0x28] sm:$0xff] %vm3615_vm8, %v3578_v43 }
 0x1f1   : > { %v1781_v49 = vpop.permute.xlu1 %1780  ;;  %v2870_v16 = vpop.permute.xlu0 %2869 }
 0x1f2   : > { %1823 = vst.msk [vmem:[#allocation3 + $0x30] sm:$0xff] %vm1816_vm13, %v1781_v49 }
 0x1f5   : > { %v2866_v1 = vpop.permute.xlu1 %2865  ;;  %v3637_v51 = vld [vmem:[#allocation3 + $0x28] sm:$0xff]  ;;  %v3303_v46 = vpop.permute.xlu0 %3302 }
 0x1f6   : > { %2904 = vst.msk [vmem:[#allocation3 + $0x50] sm:$0xff] %vm2893_vm3, %v2866_v1  ;;  %4636 = vmatmul.mubr.msk.bf16.gmra.mrb[8].mxu0 %vm3691_vm9, %v3637_v51 }
 0x1f9   : > { %v1958_v6 = vpop.permute.xlu1 %1957 }
 0x1fa   : > { %2000 = vst.msk [vmem:[#allocation3 + $0x30] sm:$0xff] %vm1993_vm14, %v1958_v6 }
 0x1fd   : > { %v3299_v19 = vpop.permute.xlu1 %3298 }
 0x1fe   : > { %3337 = vst.msk [vmem:[#allocation3 + $0x50] sm:$0xff] %vm3326_vm4, %v3299_v19 }
 0x201   : > { %v2391_v58 = vpop.permute.xlu1 %2390 }
 0x202   : > { %2433 = vst.msk [vmem:[#allocation3 + $0x30] sm:$0xff] %vm2426_vm15, %v2391_v58 }
 0x203   : > { %2722 = vst.msk [vmem:[#allocation3 + $0x30] sm:$0xff] %vm2715_vm1, %v5784_v62  ;;  %v3592_v62 = vpop.permute.xlu0 %3591 }
 0x205   : > { %v3588_v53 = vpop.permute.xlu1 %3587 }
 0x206   : > { %3626 = vst.msk [vmem:[#allocation3 + $0x50] sm:$0xff] %vm3615_vm8, %v3588_v53 }
 0x207   : > { %v3594_v11 = vpop.permute.xlu0 %3593 }
 0x209   : > { %v2393_v25 = vpop.permute.xlu1 %2392 }
 0x20a   : > { %2434 = vst.msk [vmem:[#allocation3 + $0x38] sm:$0xff] %vm2426_vm15, %v2393_v25 }
 0x20b   : > { %2723 = vst.msk [vmem:[#allocation3 + $0x38] sm:$0xff] %vm2715_vm1, %v5799_v22 }
 0x20c   : > { %2901 = vst.msk [vmem:[#allocation3 + $0x38] sm:$0xff] %vm2893_vm3, %v5812_v42 }
 0x20d   : > { %3334 = vst.msk [vmem:[#allocation3 + $0x38] sm:$0xff] %vm3326_vm4, %v5825_v3  ;;  %v3590_v32 = vpop.permute.xlu1 %3589  ;;  %v3642_v4 = vld [vmem:[#allocation3 + $0x50] sm:$0xff]  ;;  %v1797_v3 = vpop.permute.xlu0 %1796 }
 0x20e   : > { %3623 = vst.msk [vmem:[#allocation3 + $0x38] sm:$0xff] %vm3615_vm8, %v3582_v44  ;;  %3627 = vst.msk [vmem:[#allocation3 + $0x58] sm:$0xff] %vm3615_vm8, %v3590_v32  ;;  %4647 = vmatprep.mubr.msk.bf16.mxu1 %vm3691_vm9, %v3642_v4 }
 0x211   : > { %v1793_v8 = vpop.permute.xlu1 %1792  ;;  %v1974_v9 = vpop.permute.xlu0 %1973 }
 0x212   : > { %1829 = vst.msk [vmem:[#allocation3 + $0x60] sm:$0xff] %vm1816_vm13, %v1793_v8 }
 0x215   : > { %v2858_v15 = vpop.permute.xlu1 %2857  ;;  %v3643_v22 = vld [vmem:[#allocation3 + $0x58] sm:$0xff]  ;;  %v2407_v18 = vpop.permute.xlu0 %2406 }
 0x216   : > { %2900 = vst.msk [vmem:[#allocation3 + $0x30] sm:$0xff] %vm2893_vm3, %v2858_v15  ;;  %4648 = vmatmul.mubr.msk.bf16.gmra.mrb[4].mxu1 %vm3691_vm9, %v3643_v22  ;;  %v3639_v7 = vld [vmem:[#allocation3 + $0x38] sm:$0xff] }
 0x219   : > { %v1970_v42 = vpop.permute.xlu1 %1969  ;;  %v2696_v12 = vpop.permute.xlu0 %2695 }
 0x21a   : > { %2006 = vst.msk [vmem:[#allocation3 + $0x60] sm:$0xff] %vm1993_vm14, %v1970_v42 }
 0x21d   : > { %v3291_v36 = vpop.permute.xlu1 %3290  ;;  %v2874_v23 = vpop.permute.xlu0 %2873 }
 0x21e   : > { %3333 = vst.msk [vmem:[#allocation3 + $0x30] sm:$0xff] %vm3326_vm4, %v3291_v36 }
 0x221   : > { %v2403_v13 = vpop.permute.xlu1 %2402  ;;  %v3307_v27 = vpop.permute.xlu0 %3306 }
 0x222   : > { %2439 = vst.msk [vmem:[#allocation3 + $0x60] sm:$0xff] %vm2426_vm15, %v2403_v13 }
 0x225   : > { %v3580_v14 = vpop.permute.xlu1 %3579  ;;  %v3596_v29 = vpop.permute.xlu0 %3595 }
 0x226   : > { %3622 = vst.msk [vmem:[#allocation3 + $0x30] sm:$0xff] %vm3615_vm8, %v3580_v14 }
 0x229   : > { %v2692_v47 = vpop.permute.xlu1 %2691 }
 0x22a   : > { %2728 = vst.msk [vmem:[#allocation3 + $0x60] sm:$0xff] %vm2715_vm1, %v2692_v47 }
 0x22b   : > { %2906 = vst.msk [vmem:[#allocation3 + $0x60] sm:$0xff] %vm2893_vm3, %v2870_v16 }
 0x22c   : > { %3339 = vst.msk [vmem:[#allocation3 + $0x60] sm:$0xff] %vm3326_vm4, %v3303_v46 }
 0x22d   : > { %3628 = vst.msk [vmem:[#allocation3 + $0x60] sm:$0xff] %vm3615_vm8, %v3592_v62  ;;  %v2694_v5 = vpop.permute.xlu1 %2693  ;;  %v3638_v57 = vld [vmem:[#allocation3 + $0x30] sm:$0xff] }
 0x22e   : > { %2729 = vst.msk [vmem:[#allocation3 + $0x68] sm:$0xff] %vm2715_vm1, %v2694_v5  ;;  %4639 = vmatprep.mubr.msk.bf16.mxu0 %vm3691_vm9, %v3638_v57 }
 0x22f   : > { %4640 = vmatmul.mubr.msk.bf16.gmra.mrb[12].mxu0 %vm3691_vm9, %v3639_v7 }
 0x231   : > { %v2872_v59 = vpop.permute.xlu1 %2871 }
 0x232   : > { %2907 = vst.msk [vmem:[#allocation3 + $0x68] sm:$0xff] %vm2893_vm3, %v2872_v59 }
 0x234   : > { %v3644_v24 = vld [vmem:[#allocation3 + $0x60] sm:$0xff] }
 0x235   : > { %4651 = vmatprep.mubr.msk.bf16.mxu1 %vm3691_vm9, %v3644_v24  ;;  %v3305_v26 = vpop.permute.xlu1 %3304 }
 0x236   : > { %3340 = vst.msk [vmem:[#allocation3 + $0x68] sm:$0xff] %vm3326_vm4, %v3305_v26 }
 0x237   : > { %3629 = vst.msk [vmem:[#allocation3 + $0x68] sm:$0xff] %vm3615_vm8, %v3594_v11 }
 0x239   : > { %v1507_v2 = vpop.permute.xlu1 %1506 }
 0x23a   : > { %1541 = vst.msk [vmem:[#allocation3 + $0x70] sm:$0xff] %vm1526_vm12, %v1507_v2 }
 0x23b   : > { %1831 = vst.msk [vmem:[#allocation3 + $0x70] sm:$0xff] %vm1816_vm13, %v1797_v3 }
 0x23c   : > { %2008 = vst.msk [vmem:[#allocation3 + $0x70] sm:$0xff] %vm1993_vm14, %v1974_v9 }
 0x23d   : > { %2441 = vst.msk [vmem:[#allocation3 + $0x70] sm:$0xff] %vm2426_vm15, %v2407_v18  ;;  %v1509_v0 = vpop.permute.xlu1 %1508 }
 0x23e   : > { %2730 = vst.msk [vmem:[#allocation3 + $0x70] sm:$0xff] %vm2715_vm1, %v2696_v12  ;;  %v3645_v56 = vld [vmem:[#allocation3 + $0x68] sm:$0xff] }
 0x23f   : > { %1542 = vst.msk [vmem:[#allocation3 + $0x78] sm:$0xff] %vm1526_vm12, %v1509_v0  ;;  %4652 = vmatmul.mubr.msk.bf16.gmra.mrb[8].mxu1 %vm3691_vm9, %v3645_v56 }
 0x240   : > { %2908 = vst.msk [vmem:[#allocation3 + $0x70] sm:$0xff] %vm2893_vm3, %v2874_v23 }
 0x241   : > { %3341 = vst.msk [vmem:[#allocation3 + $0x70] sm:$0xff] %vm3326_vm4, %v3307_v27  ;;  %v1799_v30 = vpop.permute.xlu1 %1798 }
 0x242   : > { %3630 = vst.msk [vmem:[#allocation3 + $0x70] sm:$0xff] %vm3615_vm8, %v3596_v29 }
 0x243   : > { %1832 = vst.msk [vmem:[#allocation3 + $0x78] sm:$0xff] %vm1816_vm13, %v1799_v30 }
 0x245   : > { %v1976_v31 = vpop.permute.xlu1 %1975 }
 0x246   : > { %2009 = vst.msk [vmem:[#allocation3 + $0x78] sm:$0xff] %vm1993_vm14, %v1976_v31 }
 0x249   : > { %v3646_v33 = vld [vmem:[#allocation3 + $0x70] sm:$0xff]  ;;  %v2409_v10 = vpop.permute.xlu1 %2408 }
 0x24a   : > { %4655 = vmatprep.mubr.msk.bf16.mxu1 %vm3691_vm9, %v3646_v33  ;;  %2442 = vst.msk [vmem:[#allocation3 + $0x78] sm:$0xff] %vm2426_vm15, %v2409_v10 }
 0x24d   : > { %v2698_v35 = vpop.permute.xlu1 %2697 }
 0x24e   : > { %2731 = vst.msk [vmem:[#allocation3 + $0x78] sm:$0xff] %vm2715_vm1, %v2698_v35 }
 0x251   : > { %v2876_v21 = vpop.permute.xlu1 %2875 }
 0x252   : > { %2909 = vst.msk [vmem:[#allocation3 + $0x78] sm:$0xff] %vm2893_vm3, %v2876_v21 }
 0x255   : > { %v3309_v38 = vpop.permute.xlu1 %3308 }
 0x256   : > { %3342 = vst.msk [vmem:[#allocation3 + $0x78] sm:$0xff] %vm3326_vm4, %v3309_v38 }
 0x259   : > { %v3598_v28 = vpop.permute.xlu1 %3597 }
 0x25a   : > { %3631 = vst.msk [vmem:[#allocation3 + $0x78] sm:$0xff] %vm3615_vm8, %v3598_v28 }
 0x261   : > { %v3647_v45 = vld [vmem:[#allocation3 + $0x78] sm:$0xff] }
 0x262   : > { %4656 = vmatmul.mubr.msk.bf16.gmra.mrb[12].mxu1 %vm3691_vm9, %v3647_v45 }
 0x266   : > { %v4629_v34 = vpop.f32.mrb[0].mxu0 }
 0x267   : > { %v3778_v48 = vpop.f32.mrb[1].mxu0  ;;  %v3787_v20 = vadd.f32 %v4629_v34, %v5936_v40 }
 0x268   : > { %v4630_v17 = vpop.f32.mrb[2].mxu0  ;;  %v3779_v52 = vadd.f32 %v5936_v40, %v3778_v48 }
 0x269   : > { %v3781_v50 = vpop.f32.mrb[3].mxu0  ;;  %v3790_v61 = vadd.f32 %v4630_v17, %v5936_v40  ;;  %v3977_v43 = vmul.f32 %v3787_v20, %v3787_v20  ;;  %v3908_v51 = vsel %vm1092_vm11, %v3787_v20, 0.0 }
 0x26a   : > { %v3782_v54 = vadd.f32 %v5936_v40, %v3781_v50  ;;  %v3975_v39 = vmul.f32 %v3779_v52, %v3779_v52  ;;  %v3905_v60 = vsel %vm1092_vm11, %v3779_v52, 0.0 }
 0x26b   : > { %v3978_v6 = vmul.f32 %v3790_v61, %v3790_v61  ;;  %v4010_v44 = vsel %vm1092_vm11, %v3977_v43, 0.0  ;;  %v3910_v25 = vsel %vm1092_vm11, %v3790_v61, 0.0 }
 0x26c   : > { %v3976_v55 = vmul.f32 %v3782_v54, %v3782_v54  ;;  %v3906_v37 = vsel %vm1092_vm11, %v3782_v54, 0.0  ;;  %v4007_v49 = vsel %vm1092_vm11, %v3975_v39, 0.0 }
 0x26d   : > { %v3907_v63 = vadd.f32 %v3906_v37, %v3905_v60  ;;  %v4012_v62 = vsel %vm1092_vm11, %v3978_v6, 0.0 }
 0x26e   : > { %v4008_v41 = vsel %vm1092_vm11, %v3976_v55, 0.0 }
 0x26f   : > { %v4009_v1 = vadd.f32 %v4008_v41, %v4007_v49  ;;  %v3909_v19 = vadd.f32 %v3908_v51, %v3907_v63 }
 0x271   : > { %v4011_v16 = vadd.f32 %v4010_v44, %v4009_v1  ;;  %v3911_v8 = vadd.f32 %v3910_v25, %v3909_v19 }
 0x273   : > { %v4013_v13 = vadd.f32 %v4012_v62, %v4011_v16 }
 0x289   : > { %v4633_v58 = vpop.f32.mrb[4].mxu0 }
 0x28a   : > { %v3794_v53 = vpop.f32.mrb[5].mxu0  ;;  %v5950_v46 = vadd.f32 %v4633_v58, %v5936_v40 }
 0x28b   : > { %v5953_v32 = vadd.f32 %v5936_v40, %v3794_v53  ;;  %v4634_v4 = vpop.f32.mrb[6].mxu0 }
 0x28c   : > { %v3797_v15 = vpop.f32.mrb[7].mxu0  ;;  %v5961_v42 = vadd.f32 %v4634_v4, %v5936_v40  ;;  %v3981_v9 = vmul.f32 %v5950_v46, %v5950_v46  ;;  %v3916_v12 = vsel %vm1092_vm11, %v5950_v46, 0.0 }
 0x28d   : > { %v3912_v22 = vsel %vm1092_vm11, %v5953_v32, 0.0  ;;  %v3979_v11 = vmul.f32 %v5953_v32, %v5953_v32  ;;  %v5964_v3 = vadd.f32 %v5936_v40, %v3797_v15 }
 0x28e   : > { %v3913_v36 = vadd.f32 %v3912_v22, %v3911_v8  ;;  %v3982_v7 = vmul.f32 %v5961_v42, %v5961_v42  ;;  %v4018_v26 = vsel %vm1092_vm11, %v3981_v9, 0.0  ;;  %v3918_v2 = vsel %vm1092_vm11, %v5961_v42, 0.0 }
 0x28f   : > { %v4014_v14 = vsel %vm1092_vm11, %v3979_v11, 0.0  ;;  %v3914_v18 = vsel %vm1092_vm11, %v5964_v3, 0.0  ;;  %v3980_v47 = vmul.f32 %v5964_v3, %v5964_v3 }
 0x290   : > { %v4015_v5 = vadd.f32 %v4014_v14, %v4013_v13  ;;  %v3915_v57 = vadd.f32 %v3914_v18, %v3913_v36  ;;  %v4020_v56 = vsel %vm1092_vm11, %v3982_v7, 0.0 }
 0x291   : > { %v4016_v59 = vsel %vm1092_vm11, %v3980_v47, 0.0 }
 0x292   : > { %v3917_v23 = vadd.f32 %v3916_v12, %v3915_v57  ;;  %v4017_v24 = vadd.f32 %v4016_v59, %v4015_v5 }
 0x294   : > { %v4019_v27 = vadd.f32 %v4018_v26, %v4017_v24  ;;  %v3919_v0 = vadd.f32 %v3918_v2, %v3917_v23 }
 0x296   : > { %v4021_v29 = vadd.f32 %v4020_v56, %v4019_v27 }
 0x2ae   : > { %v4645_v30 = vpop.f32.mrb[0].mxu1 }
 0x2af   : > { %v3842_v31 = vpop.f32.mrb[1].mxu1  ;;  %v5990_v28 = vadd.f32 %v4645_v30, %v5936_v40 }
 0x2b0   : > { %v5983_v33 = vadd.f32 %v5936_v40, %v3842_v31  ;;  %v4646_v10 = vpop.f32.mrb[2].mxu1 }
 0x2b1   : > { %v3845_v35 = vpop.f32.mrb[3].mxu1  ;;  %v4775_v34 = vpack.i.bf16 %v5990_v28, %v3787_v20  ;;  %v5995_v48 = vadd.f32 %v4646_v10, %v5936_v40 }
 0x2b2   : > { %v4771_v21 = vpack.i.bf16 %v5983_v33, %v3779_v52  ;;  %v5987_v38 = vadd.f32 %v5936_v40, %v3845_v35 }
 0x2b3   : > { %v4777_v17 = vpack.i.bf16 %v5995_v48, %v3790_v61 }
 0x2b4   : > { %4772 = vxpose.xlu0.b32.start [1/16] (narrow) %v4771_v21, 8  ;;  %v4773_v45 = vpack.i.bf16 %v5987_v38, %v3782_v54 }
 0x2b8   : > { %4774 = vxpose.xlu0.b32.cont [2/16] (narrow) %v4773_v45, 8 }
 0x2bc   : > { %4776 = vxpose.xlu0.b32.cont [3/16] (narrow) %v4775_v34, 8 }
 0x2c0   : > { %4778 = vxpose.xlu0.b32.cont [4/16] (narrow) %v4777_v17, 8 }
 0x2c9   : > { %v4637_v50 = vpop.f32.mrb[8].mxu0 }
 0x2ca   : > { %v3810_v52 = vpop.f32.mrb[9].mxu0  ;;  %v5999_v55 = vadd.f32 %v4637_v50, %v5936_v40 }
 0x2cb   : > { %v6002_v39 = vadd.f32 %v5936_v40, %v3810_v52  ;;  %v4638_v37 = vpop.f32.mrb[10].mxu0 }
 0x2cc   : > { %v3813_v54 = vpop.f32.mrb[11].mxu0  ;;  %v6009_v41 = vadd.f32 %v4638_v37, %v5936_v40  ;;  %v3985_v43 = vmul.f32 %v5999_v55, %v5999_v55  ;;  %v3924_v44 = vsel %vm1092_vm11, %v5999_v55, 0.0 }
 0x2cd   : > { %v3920_v20 = vsel %vm1092_vm11, %v6002_v39, 0.0  ;;  %v3983_v60 = vmul.f32 %v6002_v39, %v6002_v39  ;;  %v6012_v61 = vadd.f32 %v5936_v40, %v3813_v54  ;;  %v3991_v54 = vmul.f32 %v5983_v33, %v5983_v33 }
 0x2ce   : > { %v3921_v63 = vadd.f32 %v3920_v20, %v3919_v0  ;;  %v3986_v58 = vmul.f32 %v6009_v41, %v6009_v41  ;;  %v4026_v4 = vsel %vm1092_vm11, %v3985_v43, 0.0  ;;  %v3926_v62 = vsel %vm1092_vm11, %v6009_v41, 0.0 }
 0x2cf   : > { %v4022_v49 = vsel %vm1092_vm11, %v3983_v60, 0.0  ;;  %v3922_v1 = vsel %vm1092_vm11, %v6012_v61, 0.0  ;;  %v3984_v51 = vmul.f32 %v6012_v61, %v6012_v61 }
 0x2d0   : > { %v4023_v6 = vadd.f32 %v4022_v49, %v4021_v29  ;;  %v3923_v19 = vadd.f32 %v3922_v1, %v3921_v63  ;;  %v4028_v22 = vsel %vm1092_vm11, %v3986_v58, 0.0  ;;  %v3936_v49 = vsel %vm1092_vm11, %v5983_v33, 0.0 }
 0x2d1   : > { %v4024_v16 = vsel %vm1092_vm11, %v3984_v51, 0.0  ;;  %v3992_v1 = vmul.f32 %v5987_v38, %v5987_v38  ;;  %v4038_v58 = vsel %vm1092_vm11, %v3991_v54, 0.0  ;;  %v3940_v33 = vsel %vm1092_vm11, %v5990_v28, 0.0 }
 0x2d2   : > { %v3925_v53 = vadd.f32 %v3924_v44, %v3923_v19  ;;  %v4025_v25 = vadd.f32 %v4024_v16, %v4023_v6  ;;  %v3993_v44 = vmul.f32 %v5990_v28, %v5990_v28  ;;  %v3938_v16 = vsel %vm1092_vm11, %v5987_v38, 0.0 }
 0x2d3   : > { %v3942_v28 = vsel %vm1092_vm11, %v5995_v48, 0.0 }
 0x2d4   : > { %v4027_v8 = vadd.f32 %v4026_v4, %v4025_v25  ;;  %v3927_v15 = vadd.f32 %v3926_v62, %v3925_v53  ;;  %v3994_v4 = vmul.f32 %v5995_v48, %v5995_v48  ;;  %v4040_v62 = vsel %vm1092_vm11, %v3992_v1, 0.0 }
 0x2d6   : > { %v4029_v11 = vadd.f32 %v4028_v22, %v4027_v8 }
 0x2e9   : > { %v4649_v36 = vpop.f32.mrb[4].mxu1 }
 0x2ea   : > { %v6031_v13 = vadd.f32 %v4649_v36, %v5936_v40  ;;  %v3858_v9 = vpop.f32.mrb[5].mxu1 }
 0x2eb   : > { %v6034_v14 = vadd.f32 %v5936_v40, %v3858_v9  ;;  %v4650_v18 = vpop.f32.mrb[6].mxu1  ;;  %v4042_v9 = vsel %vm1092_vm11, %v3993_v44, 0.0 }
 0x2ec   : > { %v4783_v47 = vpack.i.bf16 %v6031_v13, %v5950_v46  ;;  %v6039_v5 = vadd.f32 %v4650_v18, %v5936_v40  ;;  %v3861_v57 = vpop.f32.mrb[7].mxu1 }
 0x2ed   : > { %v4779_v12 = vpack.i.bf16 %v6034_v14, %v5953_v32  ;;  %v6044_v7 = vadd.f32 %v5936_v40, %v3861_v57  ;;  %v3995_v38 = vmul.f32 %v6034_v14, %v6034_v14 }
 0x2ee   : > { %v4785_v59 = vpack.i.bf16 %v6039_v5, %v5961_v42 }
 0x2ef   : > { %v4781_v23 = vpack.i.bf16 %v6044_v7, %v5964_v3  ;;  %4780 = vxpose.xlu0.b32.cont [5/16] (narrow) %v4779_v12, 8 }
 0x2f3   : > { %4782 = vxpose.xlu0.b32.cont [6/16] (narrow) %v4781_v23, 8  ;;  %v4044_v23 = vsel %vm1092_vm11, %v3994_v4, 0.0 }
 0x2f7   : > { %4784 = vxpose.xlu0.b32.cont [7/16] (narrow) %v4783_v47, 8 }
 0x2fb   : > { %4786 = vxpose.xlu0.b32.cont [8/16] (narrow) %v4785_v59, 8 }
 0x302   : > { %v4641_v46 = vpop.f32.mrb[12].mxu0 }
 0x303   : > { %v3826_v24 = vpop.f32.mrb[13].mxu0  ;;  %v6051_v26 = vadd.f32 %v4641_v46, %v5936_v40  ;;  %v3996_v46 = vmul.f32 %v6044_v7, %v6044_v7 }
 0x304   : > { %v6054_v32 = vadd.f32 %v5936_v40, %v3826_v24  ;;  %v4642_v2 = vpop.f32.mrb[14].mxu0 }
 0x305   : > { %v3829_v27 = vpop.f32.mrb[15].mxu0  ;;  %v6061_v0 = vadd.f32 %v4642_v2, %v5936_v40  ;;  %v3989_v30 = vmul.f32 %v6051_v26, %v6051_v26  ;;  %v3932_v34 = vsel %vm1092_vm11, %v6051_v26, 0.0 }
 0x306   : > { %v3928_v42 = vsel %vm1092_vm11, %v6054_v32, 0.0  ;;  %v3987_v3 = vmul.f32 %v6054_v32, %v6054_v32  ;;  %v6064_v56 = vadd.f32 %v5936_v40, %v3829_v27  ;;  %v3944_v27 = vsel %vm1092_vm11, %v6034_v14, 0.0 }
 0x307   : > { %v3929_v29 = vadd.f32 %v3928_v42, %v3927_v15  ;;  %v3990_v17 = vmul.f32 %v6061_v0, %v6061_v0  ;;  %v4034_v20 = vsel %vm1092_vm11, %v3989_v30, 0.0  ;;  %v3934_v60 = vsel %vm1092_vm11, %v6061_v0, 0.0 }
 0x308   : > { %v4030_v31 = vsel %vm1092_vm11, %v3987_v3, 0.0  ;;  %v3930_v10 = vsel %vm1092_vm11, %v6064_v56, 0.0  ;;  %v3988_v35 = vmul.f32 %v6064_v56, %v6064_v56  ;;  %v3998_v14 = vmul.f32 %v6039_v5, %v6039_v5 }
 0x309   : > { %v4031_v21 = vadd.f32 %v4030_v31, %v4029_v11  ;;  %v3931_v45 = vadd.f32 %v3930_v10, %v3929_v29  ;;  %v4036_v51 = vsel %vm1092_vm11, %v3990_v17, 0.0  ;;  %v4046_v29 = vsel %vm1092_vm11, %v3995_v38, 0.0 }
 0x30a   : > { %v4032_v50 = vsel %vm1092_vm11, %v3988_v35, 0.0  ;;  %v3946_v31 = vsel %vm1092_vm11, %v6044_v7, 0.0  ;;  %v4048_v35 = vsel %vm1092_vm11, %v3996_v46, 0.0  ;;  %v4052_v54 = vsel %vm1092_vm11, %v3998_v14, 0.0 }
 0x30b   : > { %v3933_v52 = vadd.f32 %v3932_v34, %v3931_v45  ;;  %v4033_v37 = vadd.f32 %v4032_v50, %v4031_v21  ;;  %v3948_v34 = vsel %vm1092_vm11, %v6031_v13, 0.0 }
 0x30d   : > { %v3935_v63 = vadd.f32 %v3934_v60, %v3933_v52  ;;  %v4035_v43 = vadd.f32 %v4034_v20, %v4033_v37 }
 0x30f   : > { %v3937_v6 = vadd.f32 %v3936_v49, %v3935_v63  ;;  %v4037_v19 = vadd.f32 %v4036_v51, %v4035_v43 }
 0x311   : > { %v3939_v53 = vadd.f32 %v3938_v16, %v3937_v6  ;;  %v4039_v25 = vadd.f32 %v4038_v58, %v4037_v19 }
 0x312   : > { %v4653_v8 = vpop.f32.mrb[8].mxu1 }
 0x313   : > { %v3941_v15 = vadd.f32 %v3940_v33, %v3939_v53  ;;  %v4041_v22 = vadd.f32 %v4040_v62, %v4039_v25  ;;  %v3883_v11 = vadd.f32 %v4653_v8, %v5936_v40  ;;  %v3874_v36 = vpop.f32.mrb[9].mxu1 }
 0x314   : > { %v3875_v18 = vadd.f32 %v5936_v40, %v3874_v36  ;;  %v4654_v47 = vpop.f32.mrb[10].mxu1 }
 0x315   : > { %v4043_v57 = vadd.f32 %v4042_v9, %v4041_v22  ;;  %v4791_v12 = vpack.i.bf16 %v3883_v11, %v5999_v55  ;;  %v3877_v59 = vpop.f32.mrb[11].mxu1  ;;  %v3943_v2 = vadd.f32 %v3942_v28, %v3941_v15  ;;  %v3886_v3 = vadd.f32 %v4654_v47, %v5936_v40 }
 0x316   : > { %v4787_v24 = vpack.i.bf16 %v3875_v18, %v6002_v39  ;;  %v3878_v48 = vadd.f32 %v5936_v40, %v3877_v59  ;;  %v3997_v55 = vmul.f32 %v6031_v13, %v6031_v13  ;;  %v3999_v52 = vmul.f32 %v3875_v18, %v3875_v18 }
 0x317   : > { %v4045_v42 = vadd.f32 %v4044_v23, %v4043_v57  ;;  %v3945_v30 = vadd.f32 %v3944_v27, %v3943_v2  ;;  %v4793_v10 = vpack.i.bf16 %v3886_v3, %v6009_v41  ;;  %v3950_v41 = vsel %vm1092_vm11, %v6039_v5, 0.0 }
 0x318   : > { %4788 = vxpose.xlu0.b32.cont [9/16] (narrow) %v4787_v24, 8  ;;  %v4789_v45 = vpack.i.bf16 %v3878_v48, %v6012_v61  ;;  %v4050_v50 = vsel %vm1092_vm11, %v3997_v55, 0.0  ;;  %v4000_v60 = vmul.f32 %v3878_v48, %v3878_v48  ;;  %v3952_v63 = vsel %vm1092_vm11, %v3875_v18, 0.0 }
 0x319   : > { %v4047_v39 = vadd.f32 %v4046_v29, %v4045_v42  ;;  %v3947_v21 = vadd.f32 %v3946_v31, %v3945_v30  ;;  %v4001_v43 = vmul.f32 %v3883_v11, %v3883_v11  ;;  %v4054_v13 = vsel %vm1092_vm11, %v3999_v52, 0.0 }
 0x31a   : > { %v3954_v51 = vsel %vm1092_vm11, %v3878_v48, 0.0  ;;  %v4002_v6 = vmul.f32 %v3886_v3, %v3886_v3  ;;  %v4056_v19 = vsel %vm1092_vm11, %v4000_v60, 0.0  ;;  %v3956_v44 = vsel %vm1092_vm11, %v3883_v11, 0.0 }
 0x31b   : > { %v4049_v17 = vadd.f32 %v4048_v35, %v4047_v39  ;;  %v3949_v37 = vadd.f32 %v3948_v34, %v3947_v21  ;;  %v4058_v16 = vsel %vm1092_vm11, %v4001_v43, 0.0  ;;  %v3958_v25 = vsel %vm1092_vm11, %v3886_v3, 0.0 }
 0x31c   : > { %4790 = vxpose.xlu0.b32.cont [10/16] (narrow) %v4789_v45, 8  ;;  %v4060_v4 = vsel %vm1092_vm11, %v4002_v6, 0.0 }
 0x31d   : > { %v4051_v7 = vadd.f32 %v4050_v50, %v4049_v17  ;;  %v3951_v20 = vadd.f32 %v3950_v41, %v3949_v37 }
 0x31f   : > { %v4053_v61 = vadd.f32 %v4052_v54, %v4051_v7  ;;  %v3953_v49 = vadd.f32 %v3952_v63, %v3951_v20 }
 0x320   : > { %4792 = vxpose.xlu0.b32.cont [11/16] (narrow) %v4791_v12, 8 }
 0x321   : > { %v4055_v1 = vadd.f32 %v4054_v13, %v4053_v61  ;;  %v3955_v5 = vadd.f32 %v3954_v51, %v3953_v49 }
 0x323   : > { %v4057_v58 = vadd.f32 %v4056_v19, %v4055_v1  ;;  %v3957_v53 = vadd.f32 %v3956_v44, %v3955_v5 }
 0x324   : > { %4794 = vxpose.xlu0.b32.cont [12/16] (narrow) %v4793_v10, 8 }
 0x325   : > { %v4059_v33 = vadd.f32 %v4058_v16, %v4057_v58  ;;  %v3959_v62 = vadd.f32 %v3958_v25, %v3957_v53 }
 0x327   : > { %v4061_v8 = vadd.f32 %v4060_v4, %v4059_v33 }
 0x335   : > { %v4657_v15 = vpop.f32.mrb[12].mxu1 }
 0x336   : > { %v3899_v22 = vadd.f32 %v4657_v15, %v5936_v40  ;;  %v3890_v36 = vpop.f32.mrb[13].mxu1 }
 0x337   : > { %v3891_v9 = vadd.f32 %v5936_v40, %v3890_v36  ;;  %v4658_v38 = vpop.f32.mrb[14].mxu1 }
 0x338   : > { %v4799_v11 = vpack.i.bf16 %v3899_v22, %v6051_v26  ;;  %v3902_v18 = vadd.f32 %v4658_v38, %v5936_v40  ;;  %v3893_v47 = vpop.f32.mrb[15].mxu1  ;;  %v4005_v23 = vmul.f32 %v3899_v22, %v3899_v22  ;;  %v3964_v55 = vsel %vm1092_vm11, %v3899_v22, 0.0 }
 0x339   : > { %v3960_v28 = vsel %vm1092_vm11, %v3891_v9, 0.0  ;;  %v4003_v57 = vmul.f32 %v3891_v9, %v3891_v9  ;;  %v4795_v12 = vpack.i.bf16 %v3891_v9, %v6054_v32  ;;  %v3894_v59 = vadd.f32 %v5936_v40, %v3893_v47 }
 0x33a   : > { %v3961_v46 = vadd.f32 %v3960_v28, %v3959_v62  ;;  %v4801_v2 = vpack.i.bf16 %v3902_v18, %v6061_v0  ;;  %v4006_v29 = vmul.f32 %v3902_v18, %v3902_v18  ;;  %v4066_v31 = vsel %vm1092_vm11, %v4005_v23, 0.0 }
 0x33b   : > { %v4062_v24 = vsel %vm1092_vm11, %v4003_v57, 0.0  ;;  %v3962_v27 = vsel %vm1092_vm11, %v3894_v59, 0.0  ;;  %v4004_v42 = vmul.f32 %v3894_v59, %v3894_v59  ;;  %4796 = vxpose.xlu0.b32.cont [13/16] (narrow) %v4795_v12, 8  ;;  %v4797_v3 = vpack.i.bf16 %v3894_v59, %v6064_v56 }
 0x33c   : > { %v4063_v26 = vadd.f32 %v4062_v24, %v4061_v8  ;;  %v3963_v48 = vadd.f32 %v3962_v27, %v3961_v46  ;;  %v3966_v39 = vsel %vm1092_vm11, %v3902_v18, 0.0  ;;  %v4068_v14 = vsel %vm1092_vm11, %v4006_v29, 0.0 }
 0x33d   : > { %v4064_v32 = vsel %vm1092_vm11, %v4004_v42, 0.0 }
 0x33e   : > { %v3965_v40 = vadd.f32 %v3964_v55, %v3963_v48  ;;  %v4065_v30 = vadd.f32 %v4064_v32, %v4063_v26 }
 0x33f   : > { %4798 = vxpose.xlu0.b32.cont [14/16] (narrow) %v4797_v3, 8 }
 0x340   : > { %v3967_v0 = vadd.f32 %v3966_v39, %v3965_v40  ;;  %v4067_v10 = vadd.f32 %v4066_v31, %v4065_v30 }
 0x342   : > { %v3968_v56 = vrot.slane %v3967_v0, 4  ;;  %v4069_v35 = vadd.f32 %v4068_v14, %v4067_v10 }
 0x343   : > { %4800 = vxpose.xlu0.b32.cont [15/16] (narrow) %v4799_v11, 8 }
 0x344   : > { %v3969_v21 = vadd.f32 %v3968_v56, %v3967_v0  ;;  %v4070_v45 = vrot.slane %v4069_v35, 4 }
 0x346   : > { %v3970_v34 = vrot.slane %v3969_v21, 2  ;;  %v4071_v17 = vadd.f32 %v4070_v45, %v4069_v35 }
 0x347   : > { %4802 = vxpose.xlu0.b32.end [16/16] (narrow) %v4801_v2, 8 }
 0x348   : > { %v3971_v50 = vadd.f32 %v3970_v34, %v3969_v21  ;;  %v4072_v52 = vrot.slane %v4071_v17, 2 }
 0x34a   : > { %v3972_v37 = vrot.slane %v3971_v50, 1  ;;  %v4073_v41 = vadd.f32 %v4072_v52, %v4071_v17 }
 0x34c   : > { %v3973_v7 = vadd.f32 %v3972_v37, %v3971_v50  ;;  %v4074_v54 = vrot.slane %v4073_v41, 1 }
 0x34e   : > { %3974 = vst.msk [vmem:[%s238_s23] sm:$0x1] %vm246_vm0, %v3973_v7  ;;  %v4075_v20 = vadd.f32 %v4074_v54, %v4073_v41 }
 0x350   : > { %4076 = vst.msk [vmem:[%s241_s26] sm:$0x1] %vm246_vm0, %v4075_v20 }
 0x38b   : > { %v4803_v60 = vpop.trf.xlu0 }
 0x38c   : > { %v4807_v63 = vunpack.i.h.bf16 %v4803_v60  ;;  %v4804_v61 = vunpack.i.l.bf16 %v4803_v60 }
 0x38e   : > { %v4595_v43 = vpack.c.bf16 %v4807_v63, %v4804_v61 }
 0x390   : > { %4149 = vst [vmem:[%s235_s30] sm:$0xff] %v4595_v43 }
 0x391 PF: > { %s16_s18 = sadd.s32 1, %s5059_s18  }
 0x392   : > { %p13_p4 = scmp.ge.s32.totalorder %s16_s18, 4  }
 0x394   :  { %15 = sbr.rel (!%p13_p4) target bundleno = 1 (0x1), region = 89 }

// kernel: residual_block_forward.4
= control target key start
LH: loop header
LB: loop body
LE: loop exit
PB: predicated region body
PF: predicated region fallthrough
CT: control target
= control target key end

     0   :  { %s5226_s29 = smov 0   ;;  %s6351_s0 = inlined_call_operand.vmem [shape: bf16[2,8,256], index: 0, kind: input, shape index: {}]   ;;  %s6352_s1 = inlined_call_operand.vmem [shape: f32[8,1], index: 1, kind: input, shape index: {}]   ;;  %s6353_s2 = inlined_call_operand.vmem [shape: f32[8,1], index: 2, kind: input, shape index: {}]   ;;  %s6354_s3 = inlined_call_operand.<no memory space> [shape: f32[1,1], index: 3, kind: input, shape index: {}]   ;;  %s6355_s4 = inlined_call_operand.vmem [shape: bf16[72,8], index: 4, kind: input, shape index: {}]   ;;  %s6356_s5 = inlined_call_operand.vmem [shape: f32[1,8], index: 5, kind: input, shape index: {}]   ;;  %s6357_s6 = inlined_call_operand.vmem [shape: bf16[2,8,256], index: 6, kind: output, shape index: {0}]   ;;  %s6358_s7 = inlined_call_operand.vmem [shape: f32[2,1,8], index: 7, kind: output, shape index: {1}]   ;;  %s6359_s8 = inlined_call_operand.vmem [shape: f32[2,1,8], index: 8, kind: output, shape index: {2}]  }
   0x1   :  { %14 = sst [smem:[#allocation4]] %s6354_s3 }
   0x2 LB: > { %s4362_s30 = sadd.s32 4294967295, %s5167_s29   ;;  %p4366_p0 = scmp.ge.s32.totalorder %s5167_s29, 1  ;;  %s5167_s29 = sphi %s5226_s29, %s20_s29  }
   0x3   : > { %p268_p1 = scmp.lt.s32.totalorder %s5167_s29, 3 }
   0x5   : > { %p269_p2 = pnand %p4366_p0, %p268_p1 }
   0x6   : > { %vm328_vm0 = vcmask (!%p269_p2), 57344   ;;  %v5169_v0 = vmov (!%p269_p2), 0   ;;  %vm325_vm1 = vcmask (!%p269_p2), 60416   ;;  %v450_v1 = vld [vmem:[%s6352_s1] sm:$0xff] (!%p269_p2)  ;;  %vm391_vm2 = vsmask.f32 (!%p269_p2), 7938 }
   0x7   : > { %272 = sbr.rel (%p269_p2) target bundleno = 1026 (0x402), region = 44  ;;  %4796 = vset.pattern.permute.xlu0 (!%p269_p2), %v5169_v0  ;;  %329 = vst.msk [vmem:[#allocation2 + $0x8] sm:$0x1] (!%p269_p2), %vm328_vm0, %v5169_v0  ;;  %333 = vst.msk [vmem:[#allocation2 + $0xd4] sm:$0x1] (!%p269_p2), %vm328_vm0, %v5169_v0  ;;  %v458_v2 = vld [vmem:[%s6353_s2] sm:$0xff] (!%p269_p2) }
   0x8   : > { %326 = vst.msk [vmem:[#allocation2] sm:$0xf] (!%p269_p2), %vm325_vm1, %v5169_v0  ;;  %327 = vst.msk [vmem:[#allocation2 + $0x4] sm:$0xf] (!%p269_p2), %vm325_vm1, %v5169_v0  ;;  %453 = vperm.xlu0 (!%p269_p2), %4796, %v450_v1   ;;  %vm335_vm3 = vsmask.f32 (!%p269_p2), 256 }
   0x9   : > { %331 = vst.msk [vmem:[#allocation2 + $0xcc] sm:$0xf] (!%p269_p2), %vm325_vm1, %v5169_v0  ;;  %332 = vst.msk [vmem:[#allocation2 + $0xd0] sm:$0xf] (!%p269_p2), %vm325_vm1, %v5169_v0  ;;  %v340_v13 = vld [vmem:[#allocation2 + $0xc] sm:$0x1] (!%p269_p2) }
   0xa   : > { %vm5248_vm4 = vmand (!%p269_p2), %vm328_vm0, %vm391_vm2  ;;  %v364_v14 = vld [vmem:[#allocation2 + $0x6c] sm:$0x1] (!%p269_p2)  ;;  %vm1199_vm6 = vcmask (!%p269_p2), 64512   ;;  %vm1392_vm7 = vsmask.f32 (!%p269_p2), 7424  ;;  %s5170_s12 = smov (!%p269_p2), 8  }
   0xb   : > { %vm5254_vm5 = vmand (!%p269_p2), %vm328_vm0, %vm335_vm3  ;;  %p308_p3 = scmp.lt.s32.totalorder (!%p269_p2), %s4362_s30, 1  ;;  %s466_s17 = sld [smem:[#allocation4]] (!%p269_p2)  ;;  %vm1633_vm10 = vcmask (!%p269_p2), 130112   ;;  %v396_v43 = vld [vmem:[#allocation2 + $0x14] sm:$0x1] (!%p269_p2)  ;;  %vm1826_vm11 = vcmask (!%p269_p2), 1046528  }
   0xc   : > { %461 = vperm.xlu0 (!%p269_p2), %4796, %v458_v2   ;;  %v341_v15 = vsel (!%p269_p2), %vm5254_vm5, 0, %v340_v13  ;;  %v365_v16 = vsel (!%p269_p2), %vm5254_vm5, 0, %v364_v14  ;;  %v420_v44 = vld [vmem:[#allocation2 + $0x74] sm:$0x1] (!%p269_p2)  ;;  %v397_v45 = vsel (!%p269_p2), %vm5248_vm4, 0, %v396_v43  ;;  %s5171_s18 = smov (!%p269_p2), 16   ;;  %vm5338_vm12 = vmand (!%p269_p2), %vm325_vm1, %vm391_vm2 }
   0xd   : > { %342 = vst [vmem:[#allocation2 + $0xc] sm:$0x1] (!%p269_p2), %v341_v15  ;;  %366 = vst [vmem:[#allocation2 + $0x6c] sm:$0x1] (!%p269_p2), %v365_v16  ;;  %v421_v46 = vsel (!%p269_p2), %vm5248_vm4, 0, %v420_v44  ;;  %s5172_s19 = smov (!%p269_p2), 24  }
   0xe   : > { %v393_v5 = vld [vmem:[#allocation2 + $0x8] sm:$0x1]  ;;  %v444_v6 = vld [vmem:[#allocation2 + $0xd4] sm:$0x1]  ;;  %s6369_s30 = smov (!%p308_p3, %s4362_s30), 1  ;;  %s5173_s20 = smov 48  }
   0xf   : > { %v337_v7 = vld [vmem:[#allocation2] sm:$0x1]  ;;  %v394_v9 = vsel %vm5248_vm4, 0, %v393_v5  ;;  %v445_v10 = vsel %vm5248_vm4, 0, %v444_v6  ;;  %s4668_s13 = sshll.u32 %s6369_s30, 3  ;;  %s5174_s21 = smov 32  }
  0x10   : > { %v388_v8 = vld [vmem:[#allocation2 + $0xcc] sm:$0x1]  ;;  %v338_v11 = vsel %vm5254_vm5, 0, %v337_v7  ;;  %395 = vst [vmem:[#allocation2 + $0x8] sm:$0x1] %v394_v9  ;;  %s312_s16 = scalar_lea.vmem %s6351_s0, %s4668_s13  ;;  %s5175_s22 = smov 40  }
  0x11   : > { %v389_v12 = vsel %vm5254_vm5, 0, %v388_v8  ;;  %446 = vst [vmem:[#allocation2 + $0xd4] sm:$0x1] %v445_v10  ;;  %339 = vst [vmem:[#allocation2] sm:$0x1] %v338_v11  ;;  %v447_v27 = vld [vmem:[%s312_s16] sm:$0xff]  ;;  %v469_v34 = vstv %s466_s17  ;;  %s317_s25 = scalar_lea.vmem %s6357_s6, %s4668_s13 }
  0x12   : > { %390 = vst [vmem:[#allocation2 + $0xcc] sm:$0x1] %v389_v12  ;;  %v448_v28 = vunpack.c.l.bf16 %v447_v27  ;;  %v449_v29 = vunpack.c.h.bf16 %v447_v27  ;;  %398 = vst [vmem:[#allocation2 + $0x14] sm:$0x1] %v397_v45  ;;  %v343_v47 = vld [vmem:[#allocation2 + $0x18] sm:$0x1] }
  0x13   : > { %422 = vst [vmem:[#allocation2 + $0x74] sm:$0x1] %v421_v46  ;;  %v367_v48 = vld [vmem:[#allocation2 + $0x78] sm:$0x1]  ;;  %v4919_v49 = vld [vmem:[#allocation2] sm:$0xfe]  }
  0x14   : > { %v344_v50 = vsel %vm5254_vm5, 0, %v343_v47  ;;  %v368_v51 = vsel %vm5254_vm5, 0, %v367_v48  ;;  %v423_v52 = vld [vmem:[#allocation2 + $0x80] sm:$0x1]  ;;  %v1827_v55 = vrot.slane %v4919_v49, 1  ;;  %s5176_s23 = smov 64  }
  0x15   : > { %345 = vst [vmem:[#allocation2 + $0x18] sm:$0x1] %v344_v50  ;;  %369 = vst [vmem:[#allocation2 + $0x78] sm:$0x1] %v368_v51  ;;  %v424_v53 = vsel %vm5248_vm4, 0, %v423_v52  ;;  %s5177_s24 = smov 56  }
  0x16   : > { %425 = vst [vmem:[#allocation2 + $0x80] sm:$0x1] %v424_v53  ;;  %v399_v58 = vld [vmem:[#allocation2 + $0x20] sm:$0x1]  ;;  %v346_v60 = vld [vmem:[#allocation2 + $0x24] sm:$0x1] }
  0x17   : > { %v4917_v17 = vld [vmem:[#allocation2 + $0x8] ss:$0 sps:$4 sm:$0x11]   ;;  %v400_v59 = vsel %vm5248_vm4, 0, %v399_v58  ;;  %v370_v61 = vld [vmem:[#allocation2 + $0x84] sm:$0x1] }
  0x18   : > { %v4916_v18 = vld [vmem:[#allocation2] sm:$0xff]   ;;  %v1401_v19 = vshll.u32 %v4917_v17, 16  ;;  %v4920_v54 = vld [vmem:[#allocation2 + $0x8] ss:$0 sps:$4 sm:$0x11]   ;;  %v347_v62 = vsel %vm5254_vm5, 0, %v346_v60 }
  0x19   : > { %v4918_v20 = vld [vmem:[#allocation2] sm:$0xff]   ;;  %v1394_v21 = vshrl.u32 %v4916_v18, 16  ;;  %v1396_v22 = vshll.u32 %v4916_v18, 16  ;;  %v1828_v56 = vrot.slane %v4920_v54, 1  ;;  %401 = vst [vmem:[#allocation2 + $0x20] sm:$0x1] %v400_v59 }
  0x1a   : > { %1200 = vst.msk [vmem:[#allocation3] sm:$0xff] %vm1199_vm6, %v4918_v20  ;;  %v1403_v24 = vrot.slane %v1401_v19, 1  ;;  %v371_v63 = vsel %vm5254_vm5, 0, %v370_v61  ;;  %348 = vst [vmem:[#allocation2 + $0x24] sm:$0x1] %v347_v62  ;;  %vm1923_vm15 = vcmask 195712  }
  0x1b   : > { %v1398_v23 = vrot.slane %v1396_v22, 1  ;;  %v1829_v57 = vsel %vm1826_vm11, %v1827_v55, %v1828_v56  ;;  %372 = vst [vmem:[#allocation2 + $0x84] sm:$0x1] %v371_v63  ;;  %v402_v0 = vld [vmem:[#allocation2 + $0x2c] sm:$0x1]  ;;  %vm2100_vm2 = vcmask 261312  }
  0x1c   : > { %1875 = vrot.lane.b32.xlu0 %v1829_v57, %s5171_s18  ;;  %v426_v1 = vld [vmem:[#allocation2 + $0x8c] sm:$0x1]  ;;  %v403_v2 = vsel %vm5248_vm4, 0, %v402_v0  ;;  %v349_v6 = vld [vmem:[#allocation2 + $0x30] sm:$0x1] }
  0x1d   : > { %v1399_v25 = vor.u32 %v1398_v23, %v1394_v21  ;;  %v427_v5 = vsel %vm5248_vm4, 0, %v426_v1  ;;  %404 = vst [vmem:[#allocation2 + $0x2c] sm:$0x1] %v403_v2  ;;  %v373_v7 = vld [vmem:[#allocation2 + $0x90] sm:$0x1]  ;;  %v350_v8 = vsel %vm5254_vm5, 0, %v349_v6 }
  0x1e   : > { %428 = vst [vmem:[#allocation2 + $0x8c] sm:$0x1] %v427_v5  ;;  %v374_v9 = vsel %vm5254_vm5, 0, %v373_v7  ;;  %351 = vst [vmem:[#allocation2 + $0x30] sm:$0x1] %v350_v8 }
  0x1f   : > { %v1404_v26 = vsel %vm1392_vm7, %v1399_v25, %v1403_v24  ;;  %375 = vst [vmem:[#allocation2 + $0x90] sm:$0x1] %v374_v9  ;;  %v405_v10 = vld [vmem:[#allocation2 + $0x38] sm:$0x1]  ;;  %v352_v14 = vld [vmem:[#allocation2 + $0x3c] sm:$0x1] }
  0x20   : > { %1585 = vrot.lane.b32.xlu1 %v1404_v26, %s5170_s12  ;;  %v429_v11 = vld [vmem:[#allocation2 + $0x98] sm:$0x1]  ;;  %v406_v12 = vsel %vm5248_vm4, 0, %v405_v10  ;;  %v376_v15 = vld [vmem:[#allocation2 + $0x9c] sm:$0x1]  ;;  %v353_v16 = vsel %vm5254_vm5, 0, %v352_v14 }
  0x21   : > { %v430_v13 = vsel %vm5248_vm4, 0, %v429_v11  ;;  %407 = vst [vmem:[#allocation2 + $0x38] sm:$0x1] %v406_v12  ;;  %v377_v17 = vsel %vm5254_vm5, 0, %v376_v15  ;;  %354 = vst [vmem:[#allocation2 + $0x3c] sm:$0x1] %v353_v16 }
  0x22   : > { %431 = vst [vmem:[#allocation2 + $0x98] sm:$0x1] %v430_v13  ;;  %378 = vst [vmem:[#allocation2 + $0x9c] sm:$0x1] %v377_v17  ;;  %v408_v18 = vld [vmem:[#allocation2 + $0x44] sm:$0x1] }
  0x23   : > { %v432_v19 = vld [vmem:[#allocation2 + $0xa4] sm:$0x1]  ;;  %v409_v20 = vsel %vm5248_vm4, 0, %v408_v18  ;;  %v355_v22 = vld [vmem:[#allocation2 + $0x48] sm:$0x1] }
  0x24   : > { %v433_v21 = vsel %vm5248_vm4, 0, %v432_v19  ;;  %410 = vst [vmem:[#allocation2 + $0x44] sm:$0x1] %v409_v20  ;;  %v379_v23 = vld [vmem:[#allocation2 + $0xa8] sm:$0x1]  ;;  %v356_v24 = vsel %vm5254_vm5, 0, %v355_v22 }
  0x25   : > { %434 = vst [vmem:[#allocation2 + $0xa4] sm:$0x1] %v433_v21  ;;  %v380_v25 = vsel %vm5254_vm5, 0, %v379_v23  ;;  %357 = vst [vmem:[#allocation2 + $0x48] sm:$0x1] %v356_v24 }
  0x26   : > { %381 = vst [vmem:[#allocation2 + $0xa8] sm:$0x1] %v380_v25  ;;  %v411_v26 = vld [vmem:[#allocation2 + $0x50] sm:$0x1]  ;;  %v959_v49 = vld [vmem:[#allocation2 + $0xc] sm:$0xf] }
  0x27   : > { %v435_v27 = vld [vmem:[#allocation2 + $0xb0] sm:$0x1]  ;;  %v1015_v50 = vld [vmem:[#allocation2 + $0x6c] sm:$0xf]  ;;  %vm634_vm13 = vsmask.f32 4368 }
  0x28   : > { %vm5348_vm14 = vmor %vm335_vm3, %vm634_vm13  ;;  %v963_v8 = vld [vmem:[#allocation2 + $0x14] sm:$0x1]  ;;  %vm2822_vm3 = vcmask 392512  }
  0x29   : > { %v1019_v9 = vld [vmem:[#allocation2 + $0x74] sm:$0x1] }
  0x87   : > { %v454_v30 = vpop.permute.xlu0 %453 }
  0x88   : > { %v456_v31 = vmul.f32 %v454_v30, %v448_v28  ;;  %v457_v32 = vmul.f32 %v454_v30, %v449_v29  ;;  %v412_v28 = vsel %vm5248_vm4, 0, %v411_v26  ;;  %v436_v29 = vsel %vm5248_vm4, 0, %v435_v27 }
  0x89   : > { %413 = vst [vmem:[#allocation2 + $0x50] sm:$0x1] %v412_v28  ;;  %437 = vst [vmem:[#allocation2 + $0xb0] sm:$0x1] %v436_v29  ;;  %v966_v29 = vld [vmem:[#allocation2 + $0x18] sm:$0xf] }
  0x8b   : > { %v462_v33 = vpop.permute.xlu0 %461 }
  0x8c   : > { %v464_v35 = vadd.f32 %v462_v33, %v456_v31  ;;  %v465_v36 = vadd.f32 %v462_v33, %v457_v32 }
  0x8e   : > { %vm467_vm8 = vcmp.ge.f32.partialorder %v464_v35, 0.0  ;;  %vm468_vm9 = vcmp.ge.f32.partialorder %v465_v36, 0.0  ;;  %v470_v37 = vmul.f32 %v469_v34, %v464_v35  ;;  %v471_v38 = vmul.f32 %v469_v34, %v465_v36 }
  0x90   : > { %v472_v39 = vsel %vm467_vm8, %v464_v35, %v470_v37  ;;  %v473_v40 = vsel %vm468_vm9, %v465_v36, %v471_v38  ;;  %v358_v36 = vld [vmem:[#allocation2 + $0x54] sm:$0x1]  ;;  %vm3722_vm8 = vcmask 589312   ;;  %vm3798_vm9 = vcmask 588800  }
  0x91   : > { %v4797_v41 = vpack.i.bf16 %v473_v40, %v472_v39  ;;  %v382_v37 = vld [vmem:[#allocation2 + $0xb4] sm:$0x1]  ;;  %v359_v46 = vsel %vm5254_vm5, 0, %v358_v36 }
  0x92   : > { %v1586_v42 = vpop.permute.xlu1 %1585  ;;  %v383_v47 = vsel %vm5254_vm5, 0, %v382_v37  ;;  %360 = vst [vmem:[#allocation2 + $0x54] sm:$0x1] %v359_v46  ;;  %v1026_v37 = vld [vmem:[#allocation2 + $0x80] sm:$0x1] }
  0x93   : > { %4798 = vxpose.xlu1.b32.start.end [1/1] (short) %v4797_v41, 128  ;;  %1634 = vst.msk [vmem:[#allocation3] sm:$0xff] %vm1633_vm10, %v1586_v42  ;;  %384 = vst [vmem:[#allocation2 + $0xb4] sm:$0x1] %v383_v47 }
 0x113   : > { %v4799_v30 = vpop.trf.xlu1 }
 0x114   : > { %v4803_v31 = vunpack.i.h.bf16 %v4799_v30  ;;  %v4800_v32 = vunpack.i.l.bf16 %v4799_v30  ;;  %v1022_v30 = vld [vmem:[#allocation2 + $0x78] sm:$0xf] }
 0x116   : > { %v4686_v33 = vpack.c.bf16 %v4803_v31, %v4803_v31  ;;  %v4670_v34 = vpack.c.bf16 %v4800_v32, %v4800_v32 }
 0x117   : > { %v4804_v35 = vpop.trf.xlu1 }
 0x118   : > { %v773_v38 = vshrl.u32 %v4686_v33, 16  ;;  %v776_v39 = vshll.u32 %v4686_v33, 16  ;;  %v637_v40 = vshrl.u32 %v4670_v34, 16  ;;  %v640_v41 = vshll.u32 %v4670_v34, 16 }
 0x119   : > { %v4808_v42 = vunpack.i.h.bf16 %v4804_v35  ;;  %v4805_v43 = vunpack.i.l.bf16 %v4804_v35 }
 0x11a   : > { %v775_v44 = vrot.slane %v773_v38, 7  ;;  %v639_v45 = vrot.slane %v637_v40, 7 }
 0x11b   : > { %v4687_v51 = vpack.c.bf16 %v4808_v42, %v4808_v42  ;;  %v4671_v52 = vpack.c.bf16 %v4805_v43, %v4805_v43  ;;  %v4809_v53 = vpop.trf.xlu1 }
 0x11c   : > { %v778_v54 = vor.u32 %v776_v39, %v775_v44  ;;  %v779_v55 = vrot.slane %v775_v44, 4  ;;  %v642_v56 = vor.u32 %v640_v41, %v639_v45  ;;  %v643_v57 = vrot.slane %v639_v45, 4 }
 0x11d   : > { %v781_v58 = vshrl.u32 %v4687_v51, 16  ;;  %v784_v59 = vshll.u32 %v4687_v51, 16  ;;  %v645_v60 = vshrl.u32 %v4671_v52, 16  ;;  %v648_v61 = vshll.u32 %v4671_v52, 16 }
 0x11e   : > { %v1016_v62 = vsel %vm5338_vm12, %v778_v54, %v1015_v50  ;;  %v960_v63 = vsel %vm5338_vm12, %v642_v56, %v959_v49  ;;  %v4813_v0 = vunpack.i.h.bf16 %v4809_v53  ;;  %v4810_v5 = vunpack.i.l.bf16 %v4809_v53  ;;  %v970_v53 = vld [vmem:[#allocation2 + $0x20] sm:$0x1] }
 0x11f   : > { %1017 = vst [vmem:[#allocation2 + $0x6c] sm:$0xf] %v1016_v62  ;;  %961 = vst [vmem:[#allocation2 + $0xc] sm:$0xf] %v960_v63  ;;  %v783_v1 = vrot.slane %v781_v58, 7  ;;  %v647_v2 = vrot.slane %v645_v60, 7  ;;  %v4814_v6 = vpop.trf.xlu1 }
 0x120   : > { %v4688_v10 = vpack.c.bf16 %v4813_v0, %v4813_v0  ;;  %v4818_v11 = vunpack.i.h.bf16 %v4814_v6  ;;  %v4672_v18 = vpack.c.bf16 %v4810_v5, %v4810_v5  ;;  %v4815_v32 = vunpack.i.l.bf16 %v4814_v6  ;;  %v1029_v60 = vld [vmem:[#allocation2 + $0x84] sm:$0xf] }
 0x121   : > { %v786_v12 = vor.u32 %v784_v59, %v783_v1  ;;  %v788_v13 = vrot.slane %v783_v1, 4  ;;  %v650_v14 = vor.u32 %v648_v61, %v647_v2  ;;  %v652_v15 = vrot.slane %v647_v2, 4 }
 0x122   : > { %v790_v16 = vshrl.u32 %v4688_v10, 16  ;;  %v793_v17 = vshll.u32 %v4688_v10, 16  ;;  %v4689_v19 = vpack.c.bf16 %v4818_v11, %v4818_v11  ;;  %v654_v26 = vshrl.u32 %v4672_v18, 16 }
 0x123   : > { %v1020_v20 = vsel %vm5254_vm5, %v788_v13, %v1019_v9  ;;  %v651_v21 = vsel %vm5348_vm14, %v643_v57, %v650_v14  ;;  %v787_v22 = vsel %vm5348_vm14, %v779_v55, %v786_v12  ;;  %v964_v23 = vsel %vm5254_vm5, %v652_v15, %v963_v8  ;;  %v4819_v24 = vpop.trf.xlu1  ;;  %v973_v8 = vld [vmem:[#allocation2 + $0x24] sm:$0xf] }
 0x124   : > { %1021 = vst [vmem:[#allocation2 + $0x74] sm:$0x1] %v1020_v20  ;;  %962 = vst.msk [vmem:[#allocation2 + $0x10] sm:$0xf] %vm325_vm1, %v651_v21  ;;  %v792_v25 = vrot.slane %v790_v16, 7  ;;  %v657_v27 = vshll.u32 %v4672_v18, 16  ;;  %v4823_v33 = vunpack.i.h.bf16 %v4819_v24  ;;  %v4673_v39 = vpack.c.bf16 %v4815_v32, %v4815_v32 }
 0x125   : > { %965 = vst [vmem:[#allocation2 + $0x14] sm:$0x1] %v964_v23  ;;  %1018 = vst.msk [vmem:[#allocation2 + $0x70] sm:$0xf] %vm325_vm1, %v787_v22  ;;  %v798_v28 = vshrl.u32 %v4689_v19, 16  ;;  %v801_v31 = vshll.u32 %v4689_v19, 16  ;;  %v4820_v41 = vunpack.i.l.bf16 %v4819_v24 }
 0x126   : > { %v795_v34 = vor.u32 %v793_v17, %v792_v25  ;;  %v796_v35 = vrot.slane %v792_v25, 4  ;;  %v656_v36 = vrot.slane %v654_v26, 7  ;;  %v4690_v40 = vpack.c.bf16 %v4823_v33, %v4823_v33 }
 0x127   : > { %v800_v38 = vrot.slane %v798_v28, 7  ;;  %v4824_v42 = vpop.trf.xlu1  ;;  %v662_v49 = vshrl.u32 %v4673_v39, 16  ;;  %v665_v50 = vshll.u32 %v4673_v39, 16  ;;  %v4674_v56 = vpack.c.bf16 %v4820_v41, %v4820_v41  ;;  %v977_v39 = vld [vmem:[#allocation2 + $0x2c] sm:$0x1] }
 0x128   : > { %v1023_v43 = vsel %vm5338_vm12, %v795_v34, %v1022_v30  ;;  %v659_v44 = vor.u32 %v657_v27, %v656_v36  ;;  %v660_v45 = vrot.slane %v656_v36, 4  ;;  %v807_v51 = vshrl.u32 %v4690_v40, 16  ;;  %v1033_v34 = vld [vmem:[#allocation2 + $0x8c] sm:$0x1] }
 0x129   : > { %v803_v46 = vor.u32 %v801_v31, %v800_v38  ;;  %1024 = vst [vmem:[#allocation2 + $0x78] sm:$0xf] %v1023_v43  ;;  %v805_v47 = vrot.slane %v800_v38, 4  ;;  %v810_v55 = vshll.u32 %v4690_v40, 16  ;;  %v664_v58 = vrot.slane %v662_v49, 7 }
 0x12a   : > { %v967_v52 = vsel %vm5338_vm12, %v659_v44, %v966_v29  ;;  %v4828_v61 = vunpack.i.h.bf16 %v4824_v42  ;;  %v5373_v0 = vrot.slane %v807_v51, 7  ;;  %v671_v1 = vshrl.u32 %v4674_v56, 16 }
 0x12b   : > { %v804_v54 = vsel %vm5348_vm14, %v796_v35, %v803_v46  ;;  %968 = vst [vmem:[#allocation2 + $0x18] sm:$0xf] %v967_v52  ;;  %v1027_v57 = vsel %vm5254_vm5, %v805_v47, %v1026_v37  ;;  %v5371_v62 = vpop.trf.xlu1  ;;  %v4922_v63 = vld [vmem:[#allocation2 + $0xc] sm:$0xff]   ;;  %v4825_v2 = vunpack.i.l.bf16 %v4824_v42  ;;  %v667_v5 = vor.u32 %v665_v50, %v664_v58  ;;  %v4925_v15 = vld [vmem:[#allocation2 + $0x74] ss:$0 sps:$4 sm:$0x11]  }
 0x12c   : > { %1025 = vst.msk [vmem:[#allocation2 + $0x7c] sm:$0xf] %vm325_vm1, %v804_v54  ;;  %v4921_v59 = vld [vmem:[#allocation2 + $0x6c] sm:$0xff]   ;;  %1028 = vst [vmem:[#allocation2 + $0x80] sm:$0x1] %v1027_v57  ;;  %v669_v6 = vrot.slane %v664_v58, 4  ;;  %v4691_v10 = vpack.c.bf16 %v4828_v61, %v4828_v61  ;;  %2052 = vrot.lane.b32.xlu0 %v4922_v63, %s5172_s19  ;;  %v812_v11 = vor.u32 %v810_v55, %v5373_v0  ;;  %v4833_v20 = vunpack.i.h.bf16 %v5371_v62 }
 0x12d   : > { %2068 = vrot.lane.b32.xlu1 %v4921_v59, %s5172_s19  ;;  %v674_v9 = vshll.u32 %v4674_v56, 16  ;;  %v813_v12 = vrot.slane %v5373_v0, 4  ;;  %v673_v13 = vrot.slane %v671_v1, 7  ;;  %v4924_v14 = vld [vmem:[#allocation2 + $0x6c] sm:$0xff]   ;;  %v4675_v16 = vpack.c.bf16 %v4825_v2, %v4825_v2 }
 0x12e   : > { %v668_v17 = vsel %vm5348_vm14, %v660_v45, %v667_v5  ;;  %v971_v18 = vsel %vm5254_vm5, %v669_v6, %v970_v53  ;;  %v4926_v19 = vld [vmem:[#allocation2 + $0xc] sm:$0xfe]   ;;  %v1030_v22 = vsel %vm5338_vm12, %v812_v11, %v1029_v60  ;;  %v2390_v25 = vshrl.u32 %v4924_v14, 16  ;;  %v4927_v26 = vld [vmem:[#allocation2 + $0x14] ss:$0 sps:$4 sm:$0x11]  }
 0x12f   : > { %969 = vst.msk [vmem:[#allocation2 + $0x1c] sm:$0xf] %vm325_vm1, %v668_v17  ;;  %972 = vst [vmem:[#allocation2 + $0x20] sm:$0x1] %v971_v18  ;;  %v4923_v21 = vld [vmem:[#allocation2 + $0x6c] sm:$0xff]   ;;  %v676_v23 = vor.u32 %v674_v9, %v673_v13  ;;  %v677_v24 = vrot.slane %v673_v13, 4  ;;  %v5387_v31 = vpop.trf.xlu1  ;;  %v4692_v45 = vpack.c.bf16 %v4833_v20, %v4833_v20  ;;  %v4830_v51 = vunpack.i.l.bf16 %v5371_v62 }
 0x130   : > { %1031 = vst [vmem:[#allocation2 + $0x84] sm:$0xf] %v1030_v22  ;;  %v2392_v27 = vshll.u32 %v4924_v14, 16  ;;  %v2397_v28 = vshll.u32 %v4925_v15, 16  ;;  %v1830_v29 = vrot.slane %v4926_v19, 1  ;;  %v815_v30 = vshrl.u32 %v4691_v10, 16  ;;  %2966 = vrot.lane.b32.xlu0 %v4923_v21, %s5173_s20 }
 0x131   : > { %v974_v32 = vsel %vm5338_vm12, %v676_v23, %v973_v8  ;;  %v1831_v33 = vrot.slane %v4927_v26, 1  ;;  %v818_v35 = vshll.u32 %v4691_v10, 16  ;;  %v679_v36 = vshrl.u32 %v4675_v16, 16  ;;  %v4929_v44 = vld [vmem:[#allocation2 + $0xc] sm:$0xfe]  }
 0x132   : > { %975 = vst [vmem:[#allocation2 + $0x24] sm:$0xf] %v974_v32  ;;  %v2394_v37 = vrot.slane %v2392_v27, 1  ;;  %v2399_v38 = vrot.slane %v2397_v28, 1  ;;  %v817_v40 = vrot.slane %v815_v30, 7  ;;  %v682_v41 = vshll.u32 %v4675_v16, 16 }
 0x133   : > { %v1832_v42 = vsel %vm1826_vm11, %v1830_v29, %v1831_v33  ;;  %v681_v43 = vrot.slane %v679_v36, 7  ;;  %v4930_v50 = vld [vmem:[#allocation2 + $0x14] ss:$0 sps:$4 sm:$0x11]   ;;  %v5394_v52 = vpop.trf.xlu1  ;;  %v4928_v55 = vld [vmem:[#allocation2 + $0x78] sm:$0xff]   ;;  %v2726_v56 = vrot.slane %v4929_v44, 1  ;;  %v4676_v2 = vpack.c.bf16 %v4830_v51, %v4830_v51 }
 0x134   : > { %v2395_v46 = vor.u32 %v2394_v37, %v2390_v25  ;;  %v820_v47 = vor.u32 %v818_v35, %v817_v40  ;;  %v822_v49 = vrot.slane %v817_v40, 4  ;;  %1877 = vrot.lane.b32.xlu0 %v1832_v42, %s5171_s18  ;;  %v2727_v60 = vrot.slane %v4930_v50, 1  ;;  %v4931_v61 = vld [vmem:[#allocation2 + $0x78] sm:$0xfe]   ;;  %v4933_v1 = vld [vmem:[#allocation2 + $0x6c] sm:$0xfe]  }
 0x135   : > { %v684_v53 = vor.u32 %v682_v41, %v681_v43  ;;  %v686_v54 = vrot.slane %v681_v43, 4  ;;  %v4932_v63 = vld [vmem:[#allocation2 + $0x80] ss:$0 sps:$4 sm:$0x11]   ;;  %v4838_v5 = vunpack.i.h.bf16 %v5387_v31  ;;  %v3650_v8 = vrot.slane %v4931_v61, 1  ;;  %v4939_v18 = vld [vmem:[#allocation2 + $0x78] sm:$0xff]  }
 0x136   : > { %v2400_v57 = vsel %vm1392_vm7, %v2395_v46, %v2399_v38  ;;  %v1034_v58 = vsel %vm5254_vm5, %v822_v49, %v1033_v34  ;;  %v821_v59 = vsel %vm5348_vm14, %v813_v12, %v820_v47  ;;  %v2728_v6 = vsel %vm1826_vm11, %v2726_v56, %v2727_v60  ;;  %v4934_v10 = vld [vmem:[#allocation2 + $0x74] ss:$0 sps:$4 sm:$0x11]   ;;  %v1036_v13 = vld [vmem:[#allocation2 + $0x90] sm:$0xf] }
 0x137   : > { %2501 = vrot.lane.b32.xlu1 %v2400_v57, %s5174_s21  ;;  %1035 = vst [vmem:[#allocation2 + $0x8c] sm:$0x1] %v1034_v58  ;;  %v685_v62 = vsel %vm5348_vm14, %v677_v24, %v684_v53  ;;  %v978_v0 = vsel %vm5254_vm5, %v686_v54, %v977_v39  ;;  %1032 = vst.msk [vmem:[#allocation2 + $0x88] sm:$0xf] %vm325_vm1, %v821_v59  ;;  %v3651_v9 = vrot.slane %v4932_v63, 1  ;;  %v824_v11 = vshrl.u32 %v4692_v45, 16  ;;  %v5415_v20 = vpop.trf.xlu1 }
 0x138   : > { %976 = vst.msk [vmem:[#allocation2 + $0x28] sm:$0xf] %vm325_vm1, %v685_v62  ;;  %979 = vst [vmem:[#allocation2 + $0x2c] sm:$0x1] %v978_v0  ;;  %2774 = vrot.lane.b32.xlu0 %v2728_v6, %s5175_s22  ;;  %v1854_v12 = vrot.slane %v4933_v1, 1  ;;  %v827_v14 = vshll.u32 %v4692_v45, 16  ;;  %v4835_v19 = vunpack.i.l.bf16 %v5387_v31  ;;  %v4693_v34 = vpack.c.bf16 %v4838_v5, %v4838_v5 }
 0x139   : > { %v1855_v15 = vrot.slane %v4934_v10, 1  ;;  %v4935_v16 = vld [vmem:[#allocation2 + $0x78] sm:$0xfe]   ;;  %v5412_v17 = vrot.slane %v824_v11, 7  ;;  %v3652_v21 = vsel %vm1826_vm11, %v3650_v8, %v3651_v9  ;;  %v688_v23 = vshrl.u32 %v4676_v2, 16  ;;  %v5425_v39 = vld [vmem:[#allocation2 + $0xc] sm:$0xff]  }
 0x13a   : > { %v4936_v22 = vld [vmem:[#allocation2 + $0x80] ss:$0 sps:$4 sm:$0x11]   ;;  %v1857_v25 = vrot.slane %v4935_v16, 1  ;;  %v4937_v26 = vld [vmem:[#allocation2 + $0x6c] sm:$0xfe]   ;;  %v4677_v38 = vpack.c.bf16 %v4835_v19, %v4835_v19 }
 0x13b   : > { %2968 = vrot.lane.b32.xlu1 %v4928_v55, %s5173_s20  ;;  %v1856_v24 = vsel %vm1826_vm11, %v1854_v12, %v1855_v15  ;;  %v980_v27 = vld [vmem:[#allocation2 + $0x30] sm:$0xf]  ;;  %v829_v28 = vor.u32 %v827_v14, %v5412_v17  ;;  %v830_v29 = vrot.slane %v5412_v17, 4  ;;  %v1858_v30 = vrot.slane %v4936_v22, 1  ;;  %v5427_v40 = vpop.trf.xlu1  ;;  %v1040_v56 = vld [vmem:[#allocation2 + $0x98] sm:$0x1] }
 0x13c   : > { %1893 = vrot.lane.b32.xlu0 %v1856_v24, %s5171_s18  ;;  %v4938_v31 = vld [vmem:[#allocation2 + $0x74] ss:$0 sps:$4 sm:$0x11]   ;;  %v690_v32 = vrot.slane %v688_v23, 7  ;;  %v691_v33 = vshll.u32 %v4676_v2, 16  ;;  %v2750_v35 = vrot.slane %v4937_v26, 1 }
 0x13d   : > { %v1037_v36 = vsel %vm5338_vm12, %v829_v28, %v1036_v13  ;;  %v2402_v37 = vshrl.u32 %v4939_v18, 16  ;;  %v2751_v41 = vrot.slane %v4938_v31, 1  ;;  %v1859_v44 = vsel %vm1826_vm11, %v1857_v25, %v1858_v30  ;;  %v4940_v45 = vld [vmem:[#allocation2 + $0x80] ss:$0 sps:$4 sm:$0x11]   ;;  %v4943_v5 = vld [vmem:[#allocation2 + $0x78] sm:$0xff]  }
 0x13e   : > { %1038 = vst [vmem:[#allocation2 + $0x90] sm:$0xf] %v1037_v36  ;;  %v693_v42 = vor.u32 %v691_v33, %v690_v32  ;;  %v694_v43 = vrot.slane %v690_v32, 4  ;;  %v2404_v46 = vshll.u32 %v4939_v18, 16  ;;  %v4941_v50 = vld [vmem:[#allocation2 + $0x6c] sm:$0xfe]  }
 0x13f   : > { %3690 = vrot.lane.b32.xlu1 %v3652_v21, %s5176_s23  ;;  %v2752_v47 = vsel %vm1826_vm11, %v2750_v35, %v2751_v41  ;;  %v4942_v51 = vld [vmem:[#allocation2 + $0x74] ss:$0 sps:$4 sm:$0x11]   ;;  %v832_v53 = vshrl.u32 %v4693_v34, 16  ;;  %v2409_v55 = vshll.u32 %v4940_v45, 16  ;;  %v835_v57 = vshll.u32 %v4693_v34, 16  ;;  %v5437_v8 = vpop.trf.xlu1 }
 0x140   : > { %v981_v49 = vsel %vm5338_vm12, %v693_v42, %v980_v27  ;;  %2790 = vrot.lane.b32.xlu0 %v2752_v47, %s5175_s22  ;;  %v2406_v54 = vrot.slane %v2404_v46, 1  ;;  %v696_v58 = vshrl.u32 %v4677_v38, 16  ;;  %v3647_v59 = vrot.slane %v4941_v50, 1  ;;  %v984_v61 = vld [vmem:[#allocation2 + $0x38] sm:$0x1]  ;;  %v4948_v26 = vld [vmem:[#allocation2 + $0xc] sm:$0xff]  }
 0x141   : > { %982 = vst [vmem:[#allocation2 + $0x30] sm:$0xf] %v981_v49  ;;  %v3648_v60 = vrot.slane %v4942_v51, 1  ;;  %v834_v63 = vrot.slane %v832_v53, 7  ;;  %v699_v62 = vshll.u32 %v4677_v38, 16  ;;  %v2411_v1 = vrot.slane %v2409_v55, 1 }
 0x142   : > { %v2407_v0 = vor.u32 %v2406_v54, %v2402_v37  ;;  %v698_v2 = vrot.slane %v696_v58, 7  ;;  %v1406_v6 = vshrl.u32 %v5425_v39, 16  ;;  %v4944_v12 = vld [vmem:[#allocation2 + $0x80] ss:$0 sps:$4 sm:$0x11]   ;;  %v3290_v16 = vshrl.u32 %v4943_v5, 16 }
 0x143   : > { %1895 = vrot.lane.b32.xlu1 %v1859_v44, %s5171_s18  ;;  %v3649_v9 = vsel %vm1826_vm11, %v3647_v59, %v3648_v60  ;;  %v837_v10 = vor.u32 %v835_v57, %v834_v63  ;;  %v839_v11 = vrot.slane %v834_v63, 4  ;;  %v3292_v19 = vshll.u32 %v4943_v5, 16  ;;  %v4946_v22 = vld [vmem:[#allocation2 + $0x14] ss:$0 sps:$4 sm:$0x11]   ;;  %v5453_v27 = vpop.trf.xlu1  ;;  %v4952_v31 = vld [vmem:[#allocation2 + $0x6c] sm:$0xff]  }
 0x144   : > { %v2412_v13 = vsel %vm1392_vm7, %v2407_v0, %v2411_v1  ;;  %3688 = vrot.lane.b32.xlu0 %v3649_v9, %s5176_s23  ;;  %v701_v14 = vor.u32 %v699_v62, %v698_v2  ;;  %v703_v15 = vrot.slane %v698_v2, 4  ;;  %v3297_v21 = vshll.u32 %v4944_v12, 16  ;;  %v4949_v36 = vld [vmem:[#allocation2 + $0x14] ss:$0 sps:$4 sm:$0x11]   ;;  %v4947_v42 = vld [vmem:[#allocation2 + $0x84] sm:$0xff]  }
 0x145   : > { %v1041_v17 = vsel %vm5254_vm5, %v839_v11, %v1040_v56  ;;  %v838_v18 = vsel %vm5348_vm14, %v830_v29, %v837_v10  ;;  %v1408_v25 = vshll.u32 %v5425_v39, 16  ;;  %v3294_v28 = vrot.slane %v3292_v19, 1  ;;  %v4950_v45 = vld [vmem:[#allocation2 + $0x24] sm:$0xfe]   ;;  %v4956_v58 = vld [vmem:[#allocation2 + $0x6c] sm:$0xff]  }
 0x146   : > { %1042 = vst [vmem:[#allocation2 + $0x98] sm:$0x1] %v1041_v17  ;;  %v702_v23 = vsel %vm5348_vm14, %v694_v43, %v701_v14  ;;  %v985_v24 = vsel %vm5254_vm5, %v703_v15, %v984_v61  ;;  %1039 = vst.msk [vmem:[#allocation2 + $0x94] sm:$0xf] %vm325_vm1, %v838_v18  ;;  %v3299_v29 = vrot.slane %v3297_v21, 1  ;;  %v1413_v30 = vshll.u32 %v4946_v22, 16 }
 0x147   : > { %2503 = vrot.lane.b32.xlu1 %v2412_v13, %s5174_s21  ;;  %983 = vst.msk [vmem:[#allocation2 + $0x34] sm:$0xf] %vm325_vm1, %v702_v23  ;;  %986 = vst [vmem:[#allocation2 + $0x38] sm:$0x1] %v985_v24  ;;  %v1410_v32 = vrot.slane %v1408_v25, 1  ;;  %v2294_v33 = vshrl.u32 %v4948_v26, 16  ;;  %v3295_v34 = vor.u32 %v3294_v28, %v3290_v16  ;;  %v5459_v50 = vpop.trf.xlu1  ;;  %v4843_v60 = vunpack.i.h.bf16 %v5394_v52 }
 0x148   : > { %v1415_v35 = vrot.slane %v1413_v30, 1  ;;  %v2296_v37 = vshll.u32 %v4948_v26, 16  ;;  %v1502_v38 = vshrl.u32 %v4952_v31, 16  ;;  %v2301_v44 = vshll.u32 %v4949_v36, 16  ;;  %v4954_v59 = vld [vmem:[#allocation2 + $0x84] sm:$0xfe]  }
 0x149   : > { %v1411_v41 = vor.u32 %v1410_v32, %v1406_v6  ;;  %v3300_v39 = vsel %vm1392_vm7, %v3295_v34, %v3299_v29  ;;  %v4951_v47 = vld [vmem:[#allocation2 + $0x2c] ss:$0 sps:$4 sm:$0x11]   ;;  %v1504_v49 = vshll.u32 %v4952_v31, 16  ;;  %v2732_v54 = vrot.slane %v4950_v45, 1  ;;  %v4958_v16 = vld [vmem:[#allocation2 + $0x84] sm:$0xff]  }
 0x14a   : > { %v2298_v43 = vrot.slane %v2296_v37, 1  ;;  %v2303_v53 = vrot.slane %v2301_v44, 1  ;;  %v2733_v55 = vrot.slane %v4951_v47, 1  ;;  %v4953_v56 = vld [vmem:[#allocation2 + $0x74] ss:$0 sps:$4 sm:$0x11]   ;;  %v4694_v18 = vpack.c.bf16 %v4843_v60, %v4843_v60 }
 0x14b   : > { %3401 = vrot.lane.b32.xlu1 %v3300_v39, %s5177_s24  ;;  %v1416_v46 = vsel %vm1392_vm7, %v1411_v41, %v1415_v35  ;;  %v1506_v57 = vrot.slane %v1504_v49, 1  ;;  %v1509_v62 = vshll.u32 %v4953_v56, 16  ;;  %v4955_v0 = vld [vmem:[#allocation2 + $0x8c] ss:$0 sps:$4 sm:$0x11]   ;;  %v3653_v2 = vrot.slane %v4954_v59, 1  ;;  %v5467_v12 = vpop.trf.xlu1 }
 0x14c   : > { %1587 = vrot.lane.b32.xlu0 %v1416_v46, %s5170_s12  ;;  %v2299_v51 = vor.u32 %v2298_v43, %v2294_v33  ;;  %v2734_v1 = vsel %vm1826_vm11, %v2732_v54, %v2733_v55  ;;  %v3278_v5 = vshrl.u32 %v4956_v58, 16  ;;  %v3654_v9 = vrot.slane %v4955_v0, 1  ;;  %v4957_v10 = vld [vmem:[#allocation2 + $0x74] ss:$0 sps:$4 sm:$0x11]   ;;  %v4960_v33 = vld [vmem:[#allocation2 + $0x18] sm:$0xff]  }
 0x14d   : > { %v1507_v63 = vor.u32 %v1506_v57, %v1502_v38  ;;  %v1511_v6 = vrot.slane %v1509_v62, 1  ;;  %v3280_v11 = vshll.u32 %v4956_v58, 16  ;;  %v3285_v15 = vshll.u32 %v4957_v10, 16  ;;  %v4959_v17 = vld [vmem:[#allocation2 + $0x8c] ss:$0 sps:$4 sm:$0x11]  }
 0x14e   : > { %v2304_v61 = vsel %vm1392_vm7, %v2299_v51, %v2303_v53  ;;  %v3655_v19 = vsel %vm1826_vm11, %v3653_v2, %v3654_v9  ;;  %v4840_v21 = vunpack.i.l.bf16 %v5394_v52  ;;  %v2414_v24 = vshrl.u32 %v4958_v16, 16  ;;  %v4961_v36 = vld [vmem:[#allocation2 + $0x30] sm:$0xff]   ;;  %v4966_v41 = vld [vmem:[#allocation2 + $0x38] ss:$0 sps:$4 sm:$0x11]  }
 0x14f   : > { %2072 = vrot.lane.b32.xlu1 %v4947_v42, %s5172_s19  ;;  %v1512_v13 = vsel %vm1392_vm7, %v1507_v63, %v1511_v6  ;;  %v3282_v14 = vrot.slane %v3280_v11, 1  ;;  %v3287_v23 = vrot.slane %v3285_v15, 1  ;;  %v2416_v25 = vshll.u32 %v4958_v16, 16  ;;  %v5476_v31 = vpop.trf.xlu1  ;;  %v4965_v37 = vld [vmem:[#allocation2 + $0x30] sm:$0xfe]   ;;  %v4962_v44 = vld [vmem:[#allocation2 + $0x18] sm:$0xff]  }
 0x150   : > { %2485 = vrot.lane.b32.xlu0 %v2304_v61, %s5174_s21  ;;  %v2421_v26 = vshll.u32 %v4959_v17, 16  ;;  %v841_v30 = vshrl.u32 %v4694_v18, 16  ;;  %v4848_v34 = vunpack.i.h.bf16 %v5415_v20  ;;  %v4678_v35 = vpack.c.bf16 %v4840_v21, %v4840_v21  ;;  %v1043_v42 = vld [vmem:[#allocation2 + $0x9c] sm:$0xf]  ;;  %v4963_v56 = vld [vmem:[#allocation2 + $0x90] sm:$0xff]  }
 0x151   : > { %v3283_v22 = vor.u32 %v3282_v14, %v3278_v5  ;;  %v2418_v29 = vrot.slane %v2416_v25, 1  ;;  %v4845_v43 = vunpack.i.l.bf16 %v5415_v20  ;;  %v3632_v45 = vrot.slane %v4965_v37, 1  ;;  %v4967_v46 = vld [vmem:[#allocation2 + $0x18] sm:$0xfe]   ;;  %v4969_v63 = vld [vmem:[#allocation2 + $0x30] sm:$0xfe]  }
 0x152   : > { %v2423_v32 = vrot.slane %v2421_v26, 1  ;;  %v843_v39 = vrot.slane %v841_v30, 7  ;;  %v844_v47 = vshll.u32 %v4694_v18, 16  ;;  %v4695_v49 = vpack.c.bf16 %v4848_v34, %v4848_v34  ;;  %v4968_v53 = vld [vmem:[#allocation2 + $0x20] ss:$0 sps:$4 sm:$0x11]  }
 0x153   : > { %2778 = vrot.lane.b32.xlu1 %v2734_v1, %s5175_s22  ;;  %v3288_v28 = vsel %vm1392_vm7, %v3283_v22, %v3287_v23  ;;  %v2419_v52 = vor.u32 %v2418_v29, %v2414_v24  ;;  %v3633_v51 = vrot.slane %v4966_v41, 1  ;;  %v705_v55 = vshrl.u32 %v4678_v35, 16  ;;  %v987_v58 = vld [vmem:[#allocation2 + $0x3c] sm:$0xf]  ;;  %v1047_v15 = vld [vmem:[#allocation2 + $0xa4] sm:$0x1] }
 0x154   : > { %1603 = vrot.lane.b32.xlu0 %v1512_v13, %s5170_s12  ;;  %v847_v54 = vrot.slane %v843_v39, 4  ;;  %v2729_v57 = vrot.slane %v4967_v46, 1  ;;  %v846_v59 = vor.u32 %v844_v47, %v843_v39  ;;  %v708_v60 = vshll.u32 %v4678_v35, 16  ;;  %v4964_v0 = vld [vmem:[#allocation2 + $0x78] sm:$0xff]   ;;  %v991_v23 = vld [vmem:[#allocation2 + $0x44] sm:$0x1] }
 0x155   : > { %v2424_v38 = vsel %vm1392_vm7, %v2419_v52, %v2423_v32  ;;  %v2730_v61 = vrot.slane %v4968_v53, 1  ;;  %v707_v20 = vrot.slane %v705_v55, 7  ;;  %v4679_v62 = vpack.c.bf16 %v4845_v43, %v4845_v43  ;;  %v4970_v2 = vld [vmem:[#allocation2 + $0x38] ss:$0 sps:$4 sm:$0x11]   ;;  %v4981_v25 = vld [vmem:[#allocation2 + $0x30] sm:$0xff]  }
 0x156   : > { %v1044_v1 = vsel %vm5338_vm12, %v846_v59, %v1043_v42  ;;  %v849_v5 = vshrl.u32 %v4695_v49, 16  ;;  %v1839_v10 = vrot.slane %v4969_v63, 1  ;;  %v1840_v11 = vrot.slane %v4970_v2, 1  ;;  %v4971_v13 = vld [vmem:[#allocation2 + $0x18] sm:$0xfe]  }
 0x157   : > { %3692 = vrot.lane.b32.xlu1 %v3655_v19, %s5176_s23  ;;  %1045 = vst [vmem:[#allocation2 + $0x9c] sm:$0xf] %v1044_v1  ;;  %v710_v6 = vor.u32 %v708_v60, %v707_v20  ;;  %v711_v9 = vrot.slane %v707_v20, 4  ;;  %v4972_v14 = vld [vmem:[#allocation2 + $0x20] ss:$0 sps:$4 sm:$0x11]   ;;  %v3634_v26 = vsel %vm1826_vm11, %v3632_v45, %v3633_v51 }
 0x158   : > { %3399 = vrot.lane.b32.xlu0 %v3288_v28, %s5177_s24  ;;  %v851_v17 = vrot.slane %v849_v5, 7  ;;  %v852_v18 = vshll.u32 %v4695_v49, 16  ;;  %v713_v19 = vshrl.u32 %v4679_v62, 16  ;;  %v3626_v21 = vrot.slane %v4971_v13, 1  ;;  %v4973_v32 = vld [vmem:[#allocation2 + $0x90] sm:$0xfe]  }
 0x159   : > { %v988_v16 = vsel %vm5338_vm12, %v710_v6, %v987_v58  ;;  %v3627_v22 = vrot.slane %v4972_v14, 1  ;;  %v716_v24 = vshll.u32 %v4679_v62, 16  ;;  %v4974_v34 = vld [vmem:[#allocation2 + $0x98] ss:$0 sps:$4 sm:$0x11]   ;;  %v3218_v52 = vshrl.u32 %v4981_v25, 16 }
 0x15a   : > { %989 = vst [vmem:[#allocation2 + $0x3c] sm:$0xf] %v988_v16  ;;  %v854_v28 = vor.u32 %v852_v18, %v851_v17  ;;  %v856_v29 = vrot.slane %v851_v17, 4  ;;  %v715_v30 = vrot.slane %v713_v19, 7  ;;  %v4983_v41 = vld [vmem:[#allocation2 + $0x18] sm:$0xff]   ;;  %v3656_v42 = vrot.slane %v4973_v32, 1 }
 0x15b   : > { %2505 = vrot.lane.b32.xlu1 %v2424_v38, %s5174_s21  ;;  %v3657_v39 = vrot.slane %v4974_v34, 1  ;;  %v4975_v43 = vld [vmem:[#allocation2 + $0x18] sm:$0xfe]   ;;  %v4976_v47 = vld [vmem:[#allocation2 + $0x20] ss:$0 sps:$4 sm:$0x11]   ;;  %v3628_v55 = vsel %vm1826_vm11, %v3626_v21, %v3627_v22  ;;  %v4858_v34 = vunpack.i.h.bf16 %v5437_v8 }
 0x15c   : > { %2054 = vrot.lane.b32.xlu0 %v4960_v33, %s5172_s19  ;;  %v2731_v33 = vsel %vm1826_vm11, %v2729_v57, %v2730_v61  ;;  %v1048_v35 = vsel %vm5254_vm5, %v856_v29, %v1047_v15  ;;  %v720_v37 = vrot.slane %v715_v30, 4  ;;  %v855_v38 = vsel %vm5348_vm14, %v847_v54, %v854_v28  ;;  %v4977_v53 = vld [vmem:[#allocation2 + $0x90] sm:$0xfe]   ;;  %v4978_v57 = vld [vmem:[#allocation2 + $0x98] ss:$0 sps:$4 sm:$0x11]  }
 0x15d   : > { %1049 = vst [vmem:[#allocation2 + $0xa4] sm:$0x1] %v1048_v35  ;;  %1046 = vst.msk [vmem:[#allocation2 + $0xa0] sm:$0xf] %vm325_vm1, %v855_v38  ;;  %v3220_v49 = vshll.u32 %v4981_v25, 16  ;;  %v1833_v51 = vrot.slane %v4975_v43, 1  ;;  %v3658_v60 = vsel %vm1826_vm11, %v3656_v42, %v3657_v39 }
 0x15e   : > { %v992_v46 = vsel %vm5254_vm5, %v720_v37, %v991_v23  ;;  %v2306_v54 = vshrl.u32 %v4983_v41, 16  ;;  %v1863_v58 = vrot.slane %v4977_v53, 1  ;;  %v1864_v61 = vrot.slane %v4978_v57, 1  ;;  %v4979_v20 = vld [vmem:[#allocation2 + $0x78] sm:$0xfe]   ;;  %v4985_v62 = vld [vmem:[#allocation2 + $0x90] sm:$0xff]  }
 0x15f   : > { %2956 = vrot.lane.b32.xlu1 %v4961_v36, %s5173_s20  ;;  %v718_v36 = vor.u32 %v716_v24, %v715_v30  ;;  %993 = vst [vmem:[#allocation2 + $0x44] sm:$0x1] %v992_v46  ;;  %v3222_v59 = vrot.slane %v3220_v49, 1  ;;  %v4980_v63 = vld [vmem:[#allocation2 + $0x80] ss:$0 sps:$4 sm:$0x11]   ;;  %v4853_v23 = vunpack.i.h.bf16 %v5427_v40  ;;  %v4855_v46 = vunpack.i.l.bf16 %v5437_v8 }
 0x160   : > { %2952 = vrot.lane.b32.xlu0 %v4962_v44, %s5173_s20  ;;  %v1841_v44 = vsel %vm1826_vm11, %v1839_v10, %v1840_v11  ;;  %v2753_v1 = vrot.slane %v4979_v20, 1  ;;  %v2754_v2 = vrot.slane %v4980_v63, 1  ;;  %v4982_v5 = vld [vmem:[#allocation2 + $0x38] ss:$0 sps:$4 sm:$0x11]   ;;  %v2308_v6 = vshll.u32 %v4983_v41, 16 }
 0x161   : > { %v719_v45 = vsel %vm5348_vm14, %v711_v9, %v718_v36  ;;  %v3223_v9 = vor.u32 %v3222_v59, %v3218_v52  ;;  %v1865_v10 = vsel %vm1826_vm11, %v1863_v58, %v1864_v61  ;;  %v3225_v11 = vshll.u32 %v4982_v5, 16  ;;  %v4984_v13 = vld [vmem:[#allocation2 + $0x20] ss:$0 sps:$4 sm:$0x11]   ;;  %v4987_v29 = vld [vmem:[#allocation2 + $0x18] sm:$0xff]   ;;  %v4989_v32 = vld [vmem:[#allocation2 + $0x90] sm:$0xff]  }
 0x162   : > { %990 = vst.msk [vmem:[#allocation2 + $0x40] sm:$0xf] %vm325_vm1, %v719_v45  ;;  %v2310_v14 = vrot.slane %v2308_v6, 1  ;;  %v2426_v15 = vshrl.u32 %v4985_v62, 16  ;;  %v2755_v16 = vsel %vm1826_vm11, %v2753_v1, %v2754_v2  ;;  %v2313_v19 = vshll.u32 %v4984_v13, 16  ;;  %v4991_v45 = vld [vmem:[#allocation2 + $0x18] sm:$0xff]  }
 0x163   : > { %2972 = vrot.lane.b32.xlu1 %v4963_v56, %s5173_s20  ;;  %v1834_v56 = vrot.slane %v4976_v47, 1  ;;  %v3227_v17 = vrot.slane %v3225_v11, 1  ;;  %v4986_v21 = vld [vmem:[#allocation2 + $0x98] ss:$0 sps:$4 sm:$0x11]   ;;  %v2428_v22 = vshll.u32 %v4985_v62, 16  ;;  %v4697_v58 = vpack.c.bf16 %v4858_v34, %v4858_v34 }
 0x164   : > { %2070 = vrot.lane.b32.xlu0 %v4964_v0, %s5172_s19  ;;  %v2311_v18 = vor.u32 %v2310_v14, %v2306_v54  ;;  %v2315_v25 = vrot.slane %v2313_v19, 1  ;;  %v2433_v28 = vshll.u32 %v4986_v21, 16  ;;  %v4988_v30 = vld [vmem:[#allocation2 + $0x20] ss:$0 sps:$4 sm:$0x11]   ;;  %v3194_v37 = vshrl.u32 %v4987_v29, 16 }
 0x165   : > { %v1835_v0 = vsel %vm1826_vm11, %v1833_v51, %v1834_v56  ;;  %v3228_v24 = vsel %vm1392_vm7, %v3223_v9, %v3227_v17  ;;  %v3196_v38 = vshll.u32 %v4987_v29, 16  ;;  %v3201_v41 = vshll.u32 %v4988_v30, 16  ;;  %v4990_v42 = vld [vmem:[#allocation2 + $0x98] ss:$0 sps:$4 sm:$0x11]  }
 0x166   : > { %v2316_v52 = vsel %vm1392_vm7, %v2311_v18, %v2315_v25  ;;  %v2435_v36 = vrot.slane %v2433_v28, 1  ;;  %v3314_v39 = vshrl.u32 %v4989_v32, 16  ;;  %v3321_v51 = vshll.u32 %v4990_v42, 16  ;;  %v4992_v53 = vld [vmem:[#allocation2 + $0x20] ss:$0 sps:$4 sm:$0x11]  }
 0x167   : > { %3678 = vrot.lane.b32.xlu1 %v3634_v26, %s5176_s23  ;;  %v2430_v26 = vrot.slane %v2428_v22, 1  ;;  %v3198_v47 = vrot.slane %v3196_v38, 1  ;;  %v3203_v49 = vrot.slane %v3201_v41, 1  ;;  %v1418_v56 = vshrl.u32 %v4991_v45, 16  ;;  %v4996_v41 = vld [vmem:[#allocation2 + $0x9c] sm:$0xff]  }
 0x168   : > { %2776 = vrot.lane.b32.xlu0 %v2731_v33, %s5175_s22  ;;  %v4850_v33 = vunpack.i.l.bf16 %v5427_v40  ;;  %v4696_v40 = vpack.c.bf16 %v4853_v23, %v4853_v23  ;;  %v1420_v57 = vshll.u32 %v4991_v45, 16  ;;  %v1425_v61 = vshll.u32 %v4992_v53, 16  ;;  %v4995_v6 = vld [vmem:[#allocation2 + $0x80] ss:$0 sps:$4 sm:$0x11]  }
 0x169   : > { %v2431_v35 = vor.u32 %v2430_v26, %v2426_v15  ;;  %v3199_v59 = vor.u32 %v3198_v47, %v3194_v37  ;;  %v4863_v20 = vunpack.i.h.bf16 %v5453_v27  ;;  %v4681_v8 = vpack.c.bf16 %v4855_v46, %v4855_v46  ;;  %v4993_v17 = vld [vmem:[#allocation2 + $0x3c] sm:$0xff]   ;;  %v998_v42 = vld [vmem:[#allocation2 + $0x50] sm:$0x1] }
 0x16a   : > { %v4680_v54 = vpack.c.bf16 %v4850_v33, %v4850_v33  ;;  %v1422_v62 = vrot.slane %v1420_v57, 1  ;;  %v4860_v1 = vunpack.i.l.bf16 %v5453_v27  ;;  %v1427_v5 = vrot.slane %v1425_v61, 1  ;;  %v1054_v33 = vld [vmem:[#allocation2 + $0xb0] sm:$0x1]  ;;  %v414_v61 = vld [vmem:[#allocation2 + $0x5c] sm:$0x1] }
 0x16b   : > { %1883 = vrot.lane.b32.xlu1 %v1841_v44, %s5171_s18  ;;  %v2436_v43 = vsel %vm1392_vm7, %v2431_v35, %v2435_v36  ;;  %v3316_v44 = vshll.u32 %v4989_v32, 16  ;;  %v3204_v2 = vsel %vm1392_vm7, %v3199_v59, %v3203_v49  ;;  %v858_v9 = vshrl.u32 %v4696_v40, 16  ;;  %v4999_v49 = vld [vmem:[#allocation2 + $0x44] ss:$0 sps:$4 sm:$0x11]  }
 0x16c   : > { %3674 = vrot.lane.b32.xlu0 %v3628_v55, %s5176_s23  ;;  %v1423_v13 = vor.u32 %v1422_v62, %v1418_v56  ;;  %v1521_v18 = vshll.u32 %v4995_v6, 16  ;;  %v722_v27 = vshrl.u32 %v4680_v54, 16  ;;  %v725_v21 = vshll.u32 %v4680_v54, 16  ;;  %v4997_v56 = vld [vmem:[#allocation2 + $0x24] sm:$0xff]   ;;  %v1057_v62 = vld [vmem:[#allocation2 + $0xb4] sm:$0xf] }
 0x16d   : > { %v3318_v55 = vrot.slane %v3316_v44, 1  ;;  %v860_v19 = vrot.slane %v858_v9, 7  ;;  %v866_v25 = vshrl.u32 %v4697_v58, 16  ;;  %v4698_v26 = vpack.c.bf16 %v4863_v20, %v4863_v20  ;;  %v5002_v9 = vld [vmem:[#allocation2 + $0xa4] ss:$0 sps:$4 sm:$0x11]  }
 0x16e   : > { %v1428_v22 = vsel %vm1392_vm7, %v1423_v13, %v1427_v5  ;;  %v1523_v28 = vrot.slane %v1521_v18, 1  ;;  %v724_v32 = vrot.slane %v722_v27, 7  ;;  %v869_v35 = vshll.u32 %v4697_v58, 16 }
 0x16f   : > { %3694 = vrot.lane.b32.xlu1 %v3658_v60, %s5176_s23  ;;  %v3323_v60 = vrot.slane %v3321_v51, 1  ;;  %v3319_v63 = vor.u32 %v3318_v55, %v3314_v39  ;;  %v864_v30 = vrot.slane %v860_v19, 4  ;;  %v730_v36 = vshrl.u32 %v4681_v8, 16 }
 0x170   : > { %1879 = vrot.lane.b32.xlu0 %v1835_v0, %s5171_s18  ;;  %v4994_v0 = vld [vmem:[#allocation2 + $0x78] sm:$0xff]   ;;  %v727_v38 = vor.u32 %v725_v21, %v724_v32  ;;  %v733_v39 = vshll.u32 %v4681_v8, 16  ;;  %v4682_v44 = vpack.c.bf16 %v4860_v1, %v4860_v1  ;;  %v728_v45 = vrot.slane %v724_v32, 4 }
 0x171   : > { %v3324_v11 = vsel %vm1392_vm7, %v3319_v63, %v3323_v60  ;;  %v1514_v14 = vshrl.u32 %v4994_v0, 16  ;;  %v1516_v15 = vshll.u32 %v4994_v0, 16  ;;  %v732_v47 = vrot.slane %v730_v36, 7  ;;  %v5001_v63 = vld [vmem:[#allocation2 + $0x9c] sm:$0xfe]  }
 0x172   : > { %v875_v55 = vshrl.u32 %v4698_v26, 16  ;;  %v3636_v20 = vrot.slane %v4999_v49, 1  ;;  %v438_v8 = vld [vmem:[#allocation2 + $0xbc] sm:$0x1]  ;;  %v4868_v1 = vunpack.i.h.bf16 %v5459_v50  ;;  %v3659_v13 = vrot.slane %v5001_v63, 1 }
 0x173   : > { %1899 = vrot.lane.b32.xlu1 %v1865_v10, %s5171_s18  ;;  %v861_v10 = vshll.u32 %v4696_v40, 16  ;;  %v1518_v23 = vrot.slane %v1516_v15, 1  ;;  %v735_v58 = vor.u32 %v733_v39, %v732_v47  ;;  %v737_v59 = vrot.slane %v732_v47, 4  ;;  %v5004_v21 = vld [vmem:[#allocation2 + $0x9c] sm:$0xfe]  }
 0x174   : > { %2792 = vrot.lane.b32.xlu0 %v2755_v16, %s5175_s22  ;;  %v1050_v16 = vld [vmem:[#allocation2 + $0xa8] sm:$0xf]  ;;  %v5549_v0 = vrot.slane %v875_v55, 7  ;;  %v739_v15 = vshrl.u32 %v4682_v44, 16 }
 0x175   : > { %v863_v29 = vor.u32 %v861_v10, %v860_v19  ;;  %v1519_v34 = vor.u32 %v1518_v23, %v1514_v14  ;;  %v736_v5 = vsel %vm5348_vm14, %v728_v45, %v735_v58  ;;  %v999_v6 = vsel %vm5254_vm5, %v737_v59, %v998_v42  ;;  %v5006_v36 = vld [vmem:[#allocation2 + $0x24] sm:$0xfe]  }
 0x176   : > { %v878_v10 = vshll.u32 %v4698_v26, 16  ;;  %997 = vst.msk [vmem:[#allocation2 + $0x4c] sm:$0xf] %vm325_vm1, %v736_v5  ;;  %1000 = vst [vmem:[#allocation2 + $0x50] sm:$0x1] %v999_v6  ;;  %v881_v14 = vrot.slane %v5549_v0, 4  ;;  %v4699_v23 = vpack.c.bf16 %v4868_v1, %v4868_v1  ;;  %v4878_v42 = vunpack.i.h.bf16 %v5476_v31 }
 0x177   : > { %3389 = vrot.lane.b32.xlu1 %v3228_v24, %s5177_s24  ;;  %v994_v24 = vld [vmem:[#allocation2 + $0x48] sm:$0xf]  ;;  %v1051_v37 = vsel %vm5338_vm12, %v863_v29, %v1050_v16  ;;  %v1524_v51 = vsel %vm1392_vm7, %v1519_v34, %v1523_v28  ;;  %v3660_v16 = vrot.slane %v5002_v9, 1  ;;  %v742_v19 = vshll.u32 %v4682_v44, 16 }
 0x178   : > { %2487 = vrot.lane.b32.xlu0 %v2316_v52, %s5174_s21  ;;  %v868_v52 = vrot.slane %v866_v25, 7  ;;  %1052 = vst [vmem:[#allocation2 + $0xa8] sm:$0xf] %v1051_v37  ;;  %v995_v53 = vsel %vm5338_vm12, %v727_v38, %v994_v24  ;;  %v880_v18 = vor.u32 %v878_v10, %v5549_v0  ;;  %v741_v27 = vrot.slane %v739_v15, 7  ;;  %v5565_v25 = vld [vmem:[#allocation2 + $0x3c] sm:$0xff]  }
 0x179   : > { %996 = vst [vmem:[#allocation2 + $0x48] sm:$0xf] %v995_v53  ;;  %v3661_v26 = vsel %vm1826_vm11, %v3659_v13, %v3660_v16  ;;  %v5005_v29 = vld [vmem:[#allocation2 + $0xa4] ss:$0 sps:$4 sm:$0x11]   ;;  %v2762_v34 = vrot.slane %v5004_v21, 1  ;;  %v4873_v38 = vunpack.i.h.bf16 %v5467_v12  ;;  %v4875_v10 = vunpack.i.l.bf16 %v5476_v31 }
 0x17a   : > { %v871_v40 = vor.u32 %v869_v35, %v868_v52  ;;  %v873_v46 = vrot.slane %v868_v52, 4  ;;  %v1058_v28 = vsel %vm5338_vm12, %v880_v18, %v1057_v62  ;;  %v744_v32 = vor.u32 %v742_v19, %v741_v27  ;;  %v361_v52 = vld [vmem:[#allocation2 + $0x60] sm:$0x1]  ;;  %v5007_v37 = vld [vmem:[#allocation2 + $0x2c] ss:$0 sps:$4 sm:$0x11]   ;;  %v1876_v19 = vpop.permute.xlu0 %1875 }
 0x17b   : > { %2507 = vrot.lane.b32.xlu1 %v2436_v43, %s5174_s21  ;;  %v4998_v43 = vld [vmem:[#allocation2 + $0x3c] sm:$0xfe]   ;;  %1059 = vst [vmem:[#allocation2 + $0xb4] sm:$0xf] %v1058_v28  ;;  %v2763_v35 = vrot.slane %v5005_v29, 1  ;;  %v886_v44 = vshll.u32 %v4699_v23, 16  ;;  %v4700_v59 = vpack.c.bf16 %v4873_v38, %v4873_v38 }
 0x17c   : > { %3385 = vrot.lane.b32.xlu0 %v3204_v2, %s5177_s24  ;;  %v3635_v54 = vrot.slane %v4998_v43, 1  ;;  %v1055_v57 = vsel %vm5254_vm5, %v873_v46, %v1054_v33  ;;  %v872_v60 = vsel %vm5348_vm14, %v864_v30, %v871_v40  ;;  %v4865_v2 = vunpack.i.l.bf16 %v5459_v50  ;;  %v5000_v50 = vld [vmem:[#allocation2 + $0x24] sm:$0xff]   ;;  %v5012_v18 = vld [vmem:[#allocation2 + $0x9c] sm:$0xff]   ;;  %1924 = vst.msk [vmem:[#allocation3] sm:$0xff] %vm1923_vm15, %v1876_v19 }
 0x17d   : > { %1056 = vst [vmem:[#allocation2 + $0xb0] sm:$0x1] %v1055_v57  ;;  %1053 = vst.msk [vmem:[#allocation2 + $0xac] sm:$0xf] %vm325_vm1, %v872_v60  ;;  %v439_v30 = vsel %vm5248_vm4, 0, %v438_v8  ;;  %v745_v33 = vrot.slane %v741_v27, 4  ;;  %v2764_v46 = vsel %vm1826_vm11, %v2762_v34, %v2763_v35 }
 0x17e   : > { %v4683_v24 = vpack.c.bf16 %v4865_v2, %v4865_v2  ;;  %440 = vst [vmem:[#allocation2 + $0xbc] sm:$0x1] %v439_v30  ;;  %v883_v43 = vshrl.u32 %v4699_v23, 16  ;;  %v5003_v40 = vld [vmem:[#allocation2 + $0x84] sm:$0xff]   ;;  %v3629_v47 = vrot.slane %v5006_v36, 1  ;;  %v3630_v49 = vrot.slane %v5007_v37, 1 }
 0x17f   : > { %3405 = vrot.lane.b32.xlu1 %v3324_v11, %s5177_s24  ;;  %v3637_v11 = vsel %vm1826_vm11, %v3635_v54, %v3636_v20  ;;  %v2344_v55 = vshll.u32 %v5565_v25, 16  ;;  %v5009_v57 = vld [vmem:[#allocation2 + $0x44] ss:$0 sps:$4 sm:$0x11]   ;;  %v362_v58 = vsel %vm5254_vm5, 0, %v361_v52  ;;  %v892_v27 = vshrl.u32 %v4700_v59, 16 }
 0x180   : > { %1589 = vrot.lane.b32.xlu0 %v1428_v22, %s5170_s12  ;;  %v415_v22 = vsel %vm5248_vm4, 0, %v414_v61  ;;  %v747_v45 = vshrl.u32 %v4683_v24, 16  ;;  %v885_v53 = vrot.slane %v883_v43, 7  ;;  %v5585_v61 = vpack.c.bf16 %v4878_v42, %v4878_v42  ;;  %363 = vst [vmem:[#allocation2 + $0x60] sm:$0x1] %v362_v58  ;;  %v5016_v58 = vld [vmem:[#allocation2 + $0x48] sm:$0xff]  }
 0x181   : > { %416 = vst [vmem:[#allocation2 + $0x5c] sm:$0x1] %v415_v22  ;;  %v3631_v2 = vsel %vm1826_vm11, %v3629_v47, %v3630_v49  ;;  %v2346_v6 = vrot.slane %v2344_v55, 1  ;;  %v2349_v9 = vshll.u32 %v5009_v57, 16  ;;  %v5010_v16 = vld [vmem:[#allocation2 + $0x24] sm:$0xfe]  }
 0x182   : > { %v749_v54 = vrot.slane %v747_v45, 7  ;;  %v888_v63 = vor.u32 %v886_v44, %v885_v53  ;;  %v890_v62 = vrot.slane %v885_v53, 4  ;;  %v1836_v21 = vrot.slane %v5010_v16, 1  ;;  %v5014_v44 = vld [vmem:[#allocation2 + $0x84] sm:$0xfe]  }
 0x183   : > { %2060 = vrot.lane.b32.xlu1 %v4993_v17, %s5172_s19  ;;  %v1001_v17 = vld [vmem:[#allocation2 + $0x54] sm:$0xf]  ;;  %v2351_v0 = vrot.slane %v2349_v9, 1  ;;  %v895_v23 = vshll.u32 %v4700_v59, 16  ;;  %v2438_v29 = vshrl.u32 %v5012_v18, 16  ;;  %v2440_v34 = vshll.u32 %v5012_v18, 16 }
 0x184   : > { %1605 = vrot.lane.b32.xlu0 %v1524_v51, %s5170_s12  ;;  %v1002_v39 = vsel %vm5338_vm12, %v744_v32, %v1001_v17  ;;  %v750_v51 = vshll.u32 %v4683_v24, 16  ;;  %v754_v1 = vrot.slane %v749_v54, 4  ;;  %v889_v15 = vsel %vm5348_vm14, %v881_v14, %v888_v63  ;;  %v5011_v17 = vld [vmem:[#allocation2 + $0x2c] ss:$0 sps:$4 sm:$0x11]  }
 0x185   : > { %1003 = vst [vmem:[#allocation2 + $0x54] sm:$0xf] %v1002_v39  ;;  %v1061_v5 = vld [vmem:[#allocation2 + $0xbc] sm:$0x1]  ;;  %1060 = vst.msk [vmem:[#allocation2 + $0xb8] sm:$0xf] %vm325_vm1, %v889_v15 }
 0x186   : > { %v752_v8 = vor.u32 %v750_v51, %v749_v54  ;;  %v1837_v22 = vrot.slane %v5011_v17, 1  ;;  %v900_v37 = vshrl.u32 %v5585_v61, 16  ;;  %v2442_v42 = vrot.slane %v2440_v34, 1  ;;  %v417_v45 = vld [vmem:[#allocation2 + $0x68] sm:$0x1] }
 0x187   : > { %2076 = vrot.lane.b32.xlu1 %v4996_v41, %s5172_s19  ;;  %v4870_v41 = vunpack.i.l.bf16 %v5467_v12  ;;  %v2342_v12 = vshrl.u32 %v5565_v25, 16  ;;  %v1008_v52 = vld [vmem:[#allocation2 + $0x60] sm:$0xf]  ;;  %v5015_v51 = vld [vmem:[#allocation2 + $0x8c] ss:$0 sps:$4 sm:$0x11]  }
 0x188   : > { %2954 = vrot.lane.b32.xlu0 %v4997_v56, %s5173_s20  ;;  %v385_v56 = vld [vmem:[#allocation2 + $0xc0] sm:$0x1]  ;;  %v1005_v20 = vld [vmem:[#allocation2 + $0x5c] sm:$0x1]  ;;  %v753_v13 = vsel %vm5348_vm14, %v745_v33, %v752_v8  ;;  %v1838_v30 = vsel %vm1826_vm11, %v1836_v21, %v1837_v22  ;;  %v2443_v47 = vor.u32 %v2442_v42, %v2438_v29  ;;  %v418_v53 = vsel %vm5248_vm4, 0, %v417_v45  ;;  %v5623_v54 = vld [vmem:[#allocation2 + $0x24] sm:$0xff]  }
 0x189   : > { %v4684_v60 = vpack.c.bf16 %v4870_v41, %v4870_v41  ;;  %1004 = vst.msk [vmem:[#allocation2 + $0x58] sm:$0xf] %vm325_vm1, %v753_v13  ;;  %v2347_v31 = vor.u32 %v2346_v6, %v2342_v12  ;;  %v386_v14 = vsel %vm5254_vm5, 0, %v385_v56  ;;  %v5013_v33 = vld [vmem:[#allocation2 + $0xa4] ss:$0 sps:$4 sm:$0x11]  }
 0x18a   : > { %387 = vst [vmem:[#allocation2 + $0xc0] sm:$0x1] %v386_v14  ;;  %v2445_v39 = vshll.u32 %v5013_v33, 16  ;;  %v1860_v55 = vrot.slane %v5014_v44, 1  ;;  %419 = vst [vmem:[#allocation2 + $0x68] sm:$0x1] %v418_v53 }
 0x18b   : > { %3680 = vrot.lane.b32.xlu1 %v3637_v11, %s5176_s23  ;;  %v1062_v11 = vsel %vm5254_vm5, %v890_v62, %v1061_v5  ;;  %v756_v24 = vshrl.u32 %v4684_v60, 16  ;;  %v2352_v25 = vsel %vm1392_vm7, %v2347_v31, %v2351_v0  ;;  %v759_v28 = vshll.u32 %v4684_v60, 16  ;;  %v441_v56 = vld [vmem:[#allocation2 + $0xc8] sm:$0x1]  ;;  %v5019_v0 = vld [vmem:[#allocation2 + $0x48] sm:$0xfe]  }
 0x18c   : > { %2056 = vrot.lane.b32.xlu0 %v5000_v50, %s5172_s19  ;;  %v1006_v50 = vsel %vm5254_vm5, %v754_v1, %v1005_v20  ;;  %1063 = vst [vmem:[#allocation2 + $0xbc] sm:$0x1] %v1062_v11  ;;  %v2447_v49 = vrot.slane %v2445_v39, 1  ;;  %v902_v57 = vrot.slane %v900_v37, 7  ;;  %v1861_v20 = vrot.slane %v5015_v51, 1  ;;  %v5025_v15 = vld [vmem:[#allocation2 + $0x24] sm:$0xff]  }
 0x18d   : > { %1007 = vst [vmem:[#allocation2 + $0x5c] sm:$0x1] %v1006_v50  ;;  %v5610_v32 = vrot.slane %v756_v24, 7  ;;  %v442_v63 = vsel %vm5248_vm4, 0, %v441_v56  ;;  %v903_v8 = vshll.u32 %v5585_v61, 16  ;;  %v3206_v13 = vshrl.u32 %v5623_v54, 16 }
 0x18e   : > { %v2448_v60 = vsel %vm1392_vm7, %v2443_v47, %v2447_v49  ;;  %443 = vst [vmem:[#allocation2 + $0xc8] sm:$0x1] %v442_v63  ;;  %v907_v1 = vrot.slane %v902_v57, 4  ;;  %v1862_v48 = vsel %vm1826_vm11, %v1860_v55, %v1861_v20  ;;  %v5017_v6 = vld [vmem:[#allocation2 + $0x84] sm:$0xfe]   ;;  %v3208_v61 = vshll.u32 %v5623_v54, 16 }
 0x18f   : > { %3696 = vrot.lane.b32.xlu1 %v3661_v26, %s5176_s23  ;;  %v5606_v26 = vrot.slane %v892_v27, 7  ;;  %v761_v38 = vor.u32 %v759_v28, %v5610_v32  ;;  %v762_v41 = vrot.slane %v5610_v32, 4  ;;  %v905_v3 = vor.u32 %v903_v8, %v902_v57  ;;  %v5018_v11 = vld [vmem:[#allocation2 + $0x8c] ss:$0 sps:$4 sm:$0x11]   ;;  %v5033_v57 = vld [vmem:[#allocation2 + $0x84] sm:$0xff]  }
 0x190   : > { %2970 = vrot.lane.b32.xlu0 %v5003_v40, %s5173_s20  ;;  %v4685_v40 = vpack.c.bf16 %v4875_v10, %v4875_v10  ;;  %v2756_v50 = vrot.slane %v5017_v6, 1  ;;  %v2757_v31 = vrot.slane %v5018_v11, 1  ;;  %v5020_v27 = vld [vmem:[#allocation2 + $0x50] ss:$0 sps:$4 sm:$0x11]   ;;  %v3210_v21 = vrot.slane %v3208_v61, 1 }
 0x191   : > { %v897_v35 = vor.u32 %v895_v23, %v5606_v26  ;;  %v898_v36 = vrot.slane %v5606_v26, 4  ;;  %v1064_v12 = vld [vmem:[#allocation2 + $0xc0] sm:$0xf]  ;;  %v1012_v14 = vld [vmem:[#allocation2 + $0x68] sm:$0x1]  ;;  %v3638_v26 = vrot.slane %v5019_v0, 1 }
 0x192   : > { %v767_v5 = vshll.u32 %v4685_v40, 16  ;;  %v3639_v29 = vrot.slane %v5020_v27, 1  ;;  %v5022_v33 = vld [vmem:[#allocation2 + $0x2c] ss:$0 sps:$4 sm:$0x11]   ;;  %v1432_v34 = vshll.u32 %v5025_v15, 16 }
 0x193   : > { %2798 = vrot.lane.b32.xlu1 %v2764_v46, %s5175_s22  ;;  %v1009_v46 = vsel %vm5338_vm12, %v761_v38, %v1008_v52  ;;  %v1065_v59 = vsel %vm5338_vm12, %v897_v35, %v1064_v12  ;;  %v906_v19 = vsel %vm5348_vm14, %v898_v36, %v905_v3  ;;  %v5029_v52 = vld [vmem:[#allocation2 + $0x24] sm:$0xff]   ;;  %v3211_v38 = vor.u32 %v3210_v21, %v3206_v13  ;;  %v5024_v42 = vld [vmem:[#allocation2 + $0x50] ss:$0 sps:$4 sm:$0x11]  }
 0x194   : > { %3676 = vrot.lane.b32.xlu0 %v3631_v2, %s5176_s23  ;;  %1010 = vst [vmem:[#allocation2 + $0x60] sm:$0xf] %v1009_v46  ;;  %1066 = vst [vmem:[#allocation2 + $0xc0] sm:$0xf] %v1065_v59  ;;  %v764_v2 = vshrl.u32 %v4685_v40, 16  ;;  %v3640_v35 = vsel %vm1826_vm11, %v3638_v26, %v3639_v29  ;;  %v1846_v45 = vrot.slane %v5024_v42, 1 }
 0x195   : > { %1067 = vst.msk [vmem:[#allocation2 + $0xc4] sm:$0xf] %vm325_vm1, %v906_v19  ;;  %v1068_v28 = vld [vmem:[#allocation2 + $0xc8] sm:$0x1]  ;;  %v5023_v36 = vld [vmem:[#allocation2 + $0x48] sm:$0xfe]  }
 0x196   : > { %v766_v10 = vrot.slane %v764_v2, 7  ;;  %v1069_v7 = vsel %vm5254_vm5, %v907_v1, %v1068_v28  ;;  %v1845_v39 = vrot.slane %v5023_v36, 1  ;;  %v5026_v40 = vld [vmem:[#allocation2 + $0x2c] ss:$0 sps:$4 sm:$0x11]   ;;  %v2318_v46 = vshrl.u32 %v5029_v52, 16 }
 0x197   : > { %2493 = vrot.lane.b32.xlu1 %v2352_v25, %s5174_s21  ;;  %v2758_v25 = vsel %vm1826_vm11, %v2756_v50, %v2757_v31  ;;  %1070 = vst [vmem:[#allocation2 + $0xc8] sm:$0x1] %v1069_v7  ;;  %v5031_v47 = vld [vmem:[#allocation2 + $0x48] sm:$0xff]   ;;  %v1437_v12 = vshll.u32 %v5026_v40, 16  ;;  %v2320_v63 = vshll.u32 %v5029_v52, 16  ;;  %vm3000_vm4 = vcmask 458112  }
 0x198   : > { %1881 = vrot.lane.b32.xlu0 %v1838_v30, %s5171_s18  ;;  %v769_v17 = vor.u32 %v767_v5, %v766_v10  ;;  %v771_v18 = vrot.slane %v766_v10, 4  ;;  %v1430_v30 = vshrl.u32 %v5025_v15, 16  ;;  %v1847_v53 = vsel %vm1826_vm11, %v1845_v39, %v1846_v45  ;;  %v5027_v55 = vld [vmem:[#allocation2 + $0xa8] sm:$0xfe]  }
 0x199   : > { %v5028_v56 = vld [vmem:[#allocation2 + $0xb0] ss:$0 sps:$4 sm:$0x11]   ;;  %v2765_v59 = vrot.slane %v5027_v55, 1  ;;  %v2354_v8 = vshrl.u32 %v5031_v47, 16  ;;  %v5035_v10 = vld [vmem:[#allocation2 + $0x48] sm:$0xff]  }
 0x19a   : > { %v770_v23 = vsel %vm5348_vm14, %v762_v41, %v769_v17  ;;  %v1013_v24 = vsel %vm5254_vm5, %v771_v18, %v1012_v14  ;;  %v3213_v41 = vshll.u32 %v5022_v33, 16  ;;  %v5030_v20 = vld [vmem:[#allocation2 + $0x2c] ss:$0 sps:$4 sm:$0x11]   ;;  %v2322_v11 = vrot.slane %v2320_v63, 1  ;;  %v5037_v15 = vld [vmem:[#allocation2 + $0x84] sm:$0xff]  }
 0x19b   : > { %2509 = vrot.lane.b32.xlu1 %v2448_v60, %s5174_s21  ;;  %1011 = vst.msk [vmem:[#allocation2 + $0x64] sm:$0xf] %vm325_vm1, %v770_v23  ;;  %1014 = vst [vmem:[#allocation2 + $0x68] sm:$0x1] %v1013_v24  ;;  %v2766_v60 = vrot.slane %v5028_v56, 1  ;;  %v2325_v6 = vshll.u32 %v5030_v20, 16 }
 0x19c   : > { %1897 = vrot.lane.b32.xlu0 %v1862_v48, %s5171_s18  ;;  %v3215_v4 = vrot.slane %v3213_v41, 1  ;;  %v5032_v3 = vld [vmem:[#allocation2 + $0x50] ss:$0 sps:$4 sm:$0x11]   ;;  %v2356_v13 = vshll.u32 %v5031_v47, 16  ;;  %v3302_v17 = vshrl.u32 %v5033_v57, 16  ;;  %v2323_v19 = vor.u32 %v2322_v11, %v2318_v46 }
 0x19d   : > { %v2767_v48 = vsel %vm1826_vm11, %v2765_v59, %v2766_v60  ;;  %v2327_v50 = vrot.slane %v2325_v6, 1  ;;  %v2361_v61 = vshll.u32 %v5032_v3, 16  ;;  %v3304_v18 = vshll.u32 %v5033_v57, 16  ;;  %v5034_v0 = vld [vmem:[#allocation2 + $0x8c] ss:$0 sps:$4 sm:$0x11]  }
 0x19e   : > { %v2053_v43 = vpop.permute.xlu0 %2052  ;;  %v3216_v51 = vsel %vm1392_vm7, %v3211_v38, %v3215_v4  ;;  %v2358_v31 = vrot.slane %v2356_v13, 1  ;;  %v5036_v26 = vld [vmem:[#allocation2 + $0x50] ss:$0 sps:$4 sm:$0x11]   ;;  %v3242_v28 = vshrl.u32 %v5035_v10, 16  ;;  %v5039_v29 = vld [vmem:[#allocation2 + $0xa8] sm:$0xff]  }
 0x19f   : > { %v5635_v9 = vpop.permute.xlu1 %2068  ;;  %2101 = vst.msk [vmem:[#allocation3] sm:$0xff] %vm2100_vm2, %v2053_v43  ;;  %2960 = vrot.lane.b32.xlu1 %v5016_v58, %s5173_s20  ;;  %v1434_v43 = vrot.slane %v1432_v34, 1  ;;  %v1439_v58 = vrot.slane %v1437_v12, 1  ;;  %v2363_v14 = vrot.slane %v2361_v61, 1  ;;  %v3306_v27 = vrot.slane %v3304_v18, 1  ;;  %v5044_v63 = vld [vmem:[#allocation2 + $0xc] sm:$0xff]  }
 0x1a0   : > { %2794 = vrot.lane.b32.xlu0 %v2758_v25, %s5175_s22  ;;  %v2328_v23 = vsel %vm1392_vm7, %v2323_v19, %v2327_v50  ;;  %v2359_v24 = vor.u32 %v2358_v31, %v2354_v8  ;;  %v3309_v25 = vshll.u32 %v5034_v0, 16  ;;  %v3244_v33 = vshll.u32 %v5035_v10, 16  ;;  %v5038_v42 = vld [vmem:[#allocation2 + $0x8c] ss:$0 sps:$4 sm:$0x11]   ;;  %1201 = vst.msk [vmem:[#allocation3 + $0x8] sm:$0xff] %vm1199_vm6, %v5044_v63 }
 0x1a1   : > { %v1435_v54 = vor.u32 %v1434_v43, %v1430_v30  ;;  %v3307_v7 = vor.u32 %v3306_v27, %v3302_v17  ;;  %v1526_v34 = vshrl.u32 %v5037_v15, 16  ;;  %v3249_v36 = vshll.u32 %v5036_v26, 16  ;;  %v5040_v46 = vld [vmem:[#allocation2 + $0xb0] ss:$0 sps:$4 sm:$0x11]   ;;  %v5045_v18 = vld [vmem:[#allocation2 + $0xb4] sm:$0xff]  }
 0x1a2   : > { %v5630_v62 = vpop.permute.xlu0 %2966  ;;  %v2364_v52 = vsel %vm1392_vm7, %v2359_v24, %v2363_v14  ;;  %v1528_v38 = vshll.u32 %v5037_v15, 16  ;;  %v3246_v41 = vrot.slane %v3244_v33, 1  ;;  %v1533_v40 = vshll.u32 %v5038_v42, 16  ;;  %v5046_v10 = vld [vmem:[#allocation2 + $0x30] sm:$0xfe]  }
 0x1a3   : > { %3682 = vrot.lane.b32.xlu1 %v3640_v35, %s5176_s23  ;;  %v1440_v5 = vsel %vm1392_vm7, %v1435_v54, %v1439_v58  ;;  %v3311_v35 = vrot.slane %v3309_v25, 1  ;;  %v3251_v43 = vrot.slane %v3249_v36, 1  ;;  %v1562_v47 = vshrl.u32 %v5039_v29, 16  ;;  %v5047_v11 = vld [vmem:[#allocation2 + $0x38] ss:$0 sps:$4 sm:$0x11]  }
 0x1a4   : > { %3387 = vrot.lane.b32.xlu0 %v3216_v51, %s5177_s24  ;;  %v1530_v4 = vrot.slane %v1528_v38, 1  ;;  %v3247_v45 = vor.u32 %v3246_v41, %v3242_v28  ;;  %v1564_v51 = vshll.u32 %v5039_v29, 16  ;;  %v1535_v56 = vrot.slane %v1533_v40, 1  ;;  %v5052_v13 = vld [vmem:[#allocation2 + $0x6c] sm:$0xff]   ;;  %v5048_v31 = vld [vmem:[#allocation2 + $0x54] sm:$0xfe]  }
 0x1a5   : > { %v3312_v39 = vsel %vm1392_vm7, %v3307_v7, %v3311_v35  ;;  %v1569_v58 = vshll.u32 %v5040_v46, 16  ;;  %vm2533_vm1 = vcmask 326912   ;;  %v2735_v15 = vrot.slane %v5046_v10, 1  ;;  %v5055_v61 = vld [vmem:[#allocation2 + $0x30] sm:$0xff]   ;;  %1209 = vst.msk [vmem:[#allocation3 + $0x48] sm:$0xff] %vm1199_vm6, %v5052_v13 }
 0x1a6   : > { %v5641_v16 = vpop.permute.xlu0 %1877  ;;  %v1531_v54 = vor.u32 %v1530_v4, %v1526_v34  ;;  %v3252_v55 = vsel %vm1392_vm7, %v3247_v45, %v3251_v43  ;;  %v1566_v57 = vrot.slane %v1564_v51, 1  ;;  %v5043_v17 = vld [vmem:[#allocation2 + $0x90] sm:$0xff]   ;;  %v2736_v19 = vrot.slane %v5047_v11, 1  ;;  %v5049_v0 = vld [vmem:[#allocation2 + $0x5c] ss:$0 sps:$4 sm:$0x11]  }
 0x1a7   : > { %1887 = vrot.lane.b32.xlu1 %v1847_v53, %s5171_s18  ;;  %v1571_v20 = vrot.slane %v1569_v58, 1  ;;  %v3641_v27 = vrot.slane %v5048_v31, 1  ;;  %v5051_v24 = vld [vmem:[#allocation2 + $0x98] ss:$0 sps:$4 sm:$0x11]   ;;  %v2330_v25 = vshrl.u32 %v5055_v61, 16 }
 0x1a8   : > { %1591 = vrot.lane.b32.xlu0 %v1440_v5, %s5170_s12  ;;  %v1536_v59 = vsel %vm1392_vm7, %v1531_v54, %v1535_v56  ;;  %v1567_v60 = vor.u32 %v1566_v57, %v1562_v47  ;;  %v5041_v5 = vld [vmem:[#allocation2 + $0x30] sm:$0xff]   ;;  %v2332_v29 = vshll.u32 %v5055_v61, 16  ;;  %v2760_v33 = vrot.slane %v5051_v24, 1  ;;  %v5054_v35 = vld [vmem:[#allocation2 + $0xbc] ss:$0 sps:$4 sm:$0x11]  }
 0x1a9   : > { %v5647_v22 = vpop.permute.xlu1 %2501  ;;  %v5053_v34 = vld [vmem:[#allocation2 + $0xb4] sm:$0xfe]   ;;  %v2737_v38 = vsel %vm1826_vm11, %v2735_v15, %v2736_v19  ;;  %v5058_v54 = vld [vmem:[#allocation2 + $0x5c] ss:$0 sps:$4 sm:$0x11]   ;;  %vm3433_vm5 = vcmask 523712  }
 0x1aa   : > { %v5656_v32 = vpop.permute.xlu0 %2774  ;;  %v1572_v3 = vsel %vm1392_vm7, %v1567_v60, %v1571_v20  ;;  %v2334_v36 = vrot.slane %v2332_v29, 1  ;;  %v1872_v41 = vrot.slane %v5053_v34, 1  ;;  %v5056_v43 = vld [vmem:[#allocation2 + $0x38] ss:$0 sps:$4 sm:$0x11]   ;;  %v5059_v46 = vld [vmem:[#allocation2 + $0x30] sm:$0xff]  }
 0x1ab   : > { %2800 = vrot.lane.b32.xlu1 %v2767_v48, %s5175_s22  ;;  %v5042_v48 = vld [vmem:[#allocation2 + $0x54] sm:$0xff]   ;;  %v2337_v51 = vshll.u32 %v5056_v43, 16  ;;  %v1442_v57 = vshrl.u32 %v5059_v46, 16  ;;  %v1444_v20 = vshll.u32 %v5059_v46, 16  ;;  %vm3847_vm12 = vcmask 1043456  }
 0x1ac   : > { %2489 = vrot.lane.b32.xlu0 %v2328_v23, %s5174_s21  ;;  %v5050_v23 = vld [vmem:[#allocation2 + $0x90] sm:$0xfe]   ;;  %v5060_v60 = vld [vmem:[#allocation2 + $0x38] ss:$0 sps:$4 sm:$0x11]  }
 0x1ad   : > { %v5661_v37 = vpop.permute.xlu1 %2968  ;;  %v2759_v28 = vrot.slane %v5050_v23, 1  ;;  %v2339_v58 = vrot.slane %v2337_v51, 1  ;;  %v1449_v10 = vshll.u32 %v5060_v60, 16  ;;  %v5061_v11 = vld [vmem:[#allocation2 + $0xb4] sm:$0xff]  }
 0x1ae   : > { %v5664_v44 = vpop.permute.xlu0 %1893  ;;  %v5062_v15 = vld [vmem:[#allocation2 + $0xbc] ss:$0 sps:$4 sm:$0x11]   ;;  %v5063_v61 = vld [vmem:[#allocation2 + $0x90] sm:$0xff]   ;;  %v3350_v31 = vshrl.u32 %v5061_v11, 16 }
 0x1af   : > { %2495 = vrot.lane.b32.xlu1 %v2364_v52, %s5174_s21  ;;  %v5057_v52 = vld [vmem:[#allocation2 + $0x54] sm:$0xff]   ;;  %v2761_v47 = vsel %vm1826_vm11, %v2759_v28, %v2760_v33  ;;  %v1451_v19 = vrot.slane %v1449_v10, 1  ;;  %v1538_v24 = vshrl.u32 %v5063_v61, 16  ;;  %v5071_v60 = vld [vmem:[#allocation2 + $0x68] ss:$0 sps:$4 sm:$0x11]  }
 0x1b0   : > { %3403 = vrot.lane.b32.xlu0 %v3312_v39, %s5177_s24  ;;  %v2366_v42 = vshrl.u32 %v5057_v52, 16  ;;  %v1873_v39 = vrot.slane %v5054_v35, 1  ;;  %v2368_v40 = vshll.u32 %v5057_v52, 16  ;;  %v5064_v23 = vld [vmem:[#allocation2 + $0x98] ss:$0 sps:$4 sm:$0x11]  }
 0x1b1   : > { %v5666_v49 = vpop.permute.xlu1 %3690  ;;  %v5065_v28 = vld [vmem:[#allocation2 + $0xb4] sm:$0xff]   ;;  %v1545_v52 = vshll.u32 %v5064_v23, 16 }
 0x1b2   : > { %v5674_v2 = vpop.permute.xlu0 %2790  ;;  %v2370_v56 = vrot.slane %v2368_v40, 1 }
 0x1b3   : > { %3393 = vrot.lane.b32.xlu1 %v3252_v55, %s5177_s24  ;;  %v2335_v55 = vor.u32 %v2334_v36, %v2330_v25  ;;  %v1540_v25 = vshll.u32 %v5063_v61, 16  ;;  %v5066_v36 = vld [vmem:[#allocation2 + $0xbc] ss:$0 sps:$4 sm:$0x11]  }
 0x1b4   : > { %1607 = vrot.lane.b32.xlu0 %v1536_v59, %s5170_s12  ;;  %v2373_v59 = vshll.u32 %v5058_v54, 16  ;;  %v1581_v40 = vshll.u32 %v5066_v36, 16 }
 0x1b5   : > { %v5672_v1 = vpop.permute.xlu1 %1895  ;;  %v2340_v13 = vsel %vm1392_vm7, %v2335_v55, %v2339_v58  ;;  %v1542_v35 = vrot.slane %v1540_v25, 1  ;;  %v5078_v55 = vld [vmem:[#allocation2 + $0x60] sm:$0xff]  }
 0x1b6   : > { %v5683_v30 = vpop.permute.xlu0 %3688  ;;  %v1583_v51 = vrot.slane %v1581_v40, 1  ;;  %v5081_v40 = vld [vmem:[#allocation2 + $0xa4] ss:$0 sps:$4 sm:$0x11]  }
 0x1b7   : > { %1613 = vrot.lane.b32.xlu1 %v1572_v3, %s5170_s12  ;;  %v1446_v3 = vrot.slane %v1444_v20, 1  ;;  %v1543_v43 = vor.u32 %v1542_v35, %v1538_v24  ;;  %v5072_v20 = vld [vmem:[#allocation2 + $0x3c] sm:$0xfe]  }
 0x1b8   : > { %2058 = vrot.lane.b32.xlu0 %v5041_v5, %s5172_s19  ;;  %v1842_v61 = vrot.slane %v5072_v20, 1 }
 0x1b9   : > { %v5680_v21 = vpop.permute.xlu1 %2503 }
 0x1bb   : > { %2064 = vrot.lane.b32.xlu1 %v5042_v48, %s5172_s19  ;;  %v2371_v48 = vor.u32 %v2370_v56, %v2366_v42  ;;  %v5067_v56 = vld [vmem:[#allocation2 + $0x3c] sm:$0xff]  }
 0x1bc   : > { %2074 = vrot.lane.b32.xlu0 %v5043_v17, %s5172_s19 }
 0x1bd   : > { %v5690_v53 = vpop.permute.xlu1 %3401 }
 0x1be   : > { %v1588_v12 = vpop.permute.xlu0 %1587 }
 0x1bf   : > { %1635 = vst.msk [vmem:[#allocation3 + $0x8] sm:$0xff] %vm1633_vm10, %v1588_v12  ;;  %2978 = vrot.lane.b32.xlu1 %v5045_v18, %s5173_s20  ;;  %v1874_v12 = vsel %vm1826_vm11, %v1872_v41, %v1873_v39  ;;  %v1447_v18 = vor.u32 %v1446_v3, %v1442_v57  ;;  %v1547_v39 = vrot.slane %v1545_v52, 1  ;;  %v5070_v57 = vld [vmem:[#allocation2 + $0x60] sm:$0xfe]  }
 0x1c0   : > { %1925 = vst.msk [vmem:[#allocation3 + $0x8] sm:$0xff] %vm1923_vm15, %v5641_v16  ;;  %v3642_v16 = vrot.slane %v5049_v0, 1  ;;  %2780 = vrot.lane.b32.xlu0 %v2737_v38, %s5175_s22  ;;  %v1574_v38 = vshrl.u32 %v5065_v28, 16  ;;  %v5073_v3 = vld [vmem:[#allocation2 + $0x44] ss:$0 sps:$4 sm:$0x11]  }
 0x1c1   : > { %v5695_v8 = vpop.permute.xlu1 %2072  ;;  %v1452_v29 = vsel %vm1392_vm7, %v1447_v18, %v1451_v19  ;;  %v5075_v18 = vld [vmem:[#allocation2 + $0x68] ss:$0 sps:$4 sm:$0x11]   ;;  %v5083_v52 = vld [vmem:[#allocation2 + $0x3c] sm:$0xff]  }
 0x1c2   : > { %v2486_v6 = vpop.permute.xlu0 %2485  ;;  %v3645_v25 = vrot.slane %v5075_v18, 1 }
 0x1c3   : > { %2534 = vst.msk [vmem:[#allocation3] sm:$0xff] %vm2533_vm1, %v2486_v6  ;;  %v2375_v6 = vrot.slane %v2373_v59, 1  ;;  %v5068_v59 = vld [vmem:[#allocation2 + $0x60] sm:$0xff]  }
 0x1c4   : > { %2796 = vrot.lane.b32.xlu0 %v2761_v47, %s5175_s22  ;;  %2823 = vst.msk [vmem:[#allocation3] sm:$0xff] %vm2822_vm3, %v5656_v32  ;;  %v1548_v32 = vsel %vm1392_vm7, %v1543_v43, %v1547_v39  ;;  %v5087_v39 = vld [vmem:[#allocation2 + $0x3c] sm:$0xff]  }
 0x1c5   : > { %v5705_v50 = vpop.permute.xlu1 %2778  ;;  %v2376_v17 = vsel %vm1392_vm7, %v2371_v48, %v2375_v6  ;;  %v1492_v48 = vshll.u32 %v5078_v55, 16  ;;  %v1851_v6 = vrot.slane %v5070_v57, 1  ;;  %v5084_v57 = vld [vmem:[#allocation2 + $0x44] ss:$0 sps:$4 sm:$0x11]  }
 0x1c6   : > { %v1604_v14 = vpop.permute.xlu0 %1603 }
 0x1c7   : > { %1643 = vst.msk [vmem:[#allocation3 + $0x48] sm:$0xff] %vm1633_vm10, %v1604_v14  ;;  %v1494_v19 = vrot.slane %v1492_v48, 1  ;;  %v5082_v48 = vld [vmem:[#allocation2 + $0xc0] sm:$0xff]  }
 0x1c8   : > { %1933 = vst.msk [vmem:[#allocation3 + $0x48] sm:$0xff] %vm1923_vm15, %v5664_v44  ;;  %v3643_v44 = vsel %vm1826_vm11, %v3641_v27, %v3642_v16  ;;  %2491 = vrot.lane.b32.xlu0 %v2340_v13, %s5174_s21  ;;  %v3352_v27 = vshll.u32 %v5061_v11, 16  ;;  %v3357_v16 = vshll.u32 %v5062_v15, 16  ;;  %v5069_v13 = vld [vmem:[#allocation2 + $0x9c] sm:$0xff]   ;;  %v1852_v15 = vrot.slane %v5071_v60, 1 }
 0x1c9   : > { %v5713_v26 = vpop.permute.xlu1 %3692  ;;  %3684 = vrot.lane.b32.xlu1 %v3643_v44, %s5176_s23  ;;  %v1576_v44 = vshll.u32 %v5065_v28, 16  ;;  %v5077_v28 = vld [vmem:[#allocation2 + $0x44] ss:$0 sps:$4 sm:$0x11]  }
 0x1ca   : > { %v5716_v7 = vpop.permute.xlu0 %3399  ;;  %v3354_v33 = vrot.slane %v3352_v27, 1  ;;  %v3359_v34 = vrot.slane %v3357_v16, 1  ;;  %v5076_v27 = vld [vmem:[#allocation2 + $0x3c] sm:$0xfe]   ;;  %v1853_v24 = vsel %vm1826_vm11, %v1851_v6, %v1852_v15  ;;  %v3237_v6 = vshll.u32 %v5084_v57, 16 }
 0x1cc   : > { %1593 = vrot.lane.b32.xlu0 %v1452_v29, %s5170_s12  ;;  %v2738_v29 = vrot.slane %v5076_v27, 1 }
 0x1cd   : > { %v5722_v4 = vpop.permute.xlu1 %2505  ;;  %1905 = vrot.lane.b32.xlu1 %v1874_v12, %s5171_s18 }
 0x1ce   : > { %v2055_v45 = vpop.permute.xlu0 %2054 }
 0x1cf   : > { %2102 = vst.msk [vmem:[#allocation3 + $0x8] sm:$0xff] %vm2100_vm2, %v2055_v45  ;;  %v1578_v45 = vrot.slane %v1576_v44, 1 }
 0x1d0   : > { %1609 = vrot.lane.b32.xlu0 %v1548_v32, %s5170_s12 }
 0x1d1   : > { %v5729_v63 = vpop.permute.xlu1 %2956  ;;  %2497 = vrot.lane.b32.xlu1 %v2376_v17, %s5174_s21  ;;  %v1579_v47 = vor.u32 %v1578_v45, %v1574_v38  ;;  %v5074_v17 = vld [vmem:[#allocation2 + $0x60] sm:$0xfe]  }
 0x1d2   : > { %v2953_v5 = vpop.permute.xlu0 %2952  ;;  %v5080_v38 = vld [vmem:[#allocation2 + $0x9c] sm:$0xfe]  }
 0x1d3   : > { %3001 = vst.msk [vmem:[#allocation3] sm:$0xff] %vm3000_vm4, %v2953_v5  ;;  %v1584_v58 = vsel %vm1392_vm7, %v1579_v47, %v1583_v51  ;;  %v1490_v5 = vshrl.u32 %v5078_v55, 16  ;;  %v1866_v47 = vrot.slane %v5080_v38, 1  ;;  %v1867_v51 = vrot.slane %v5081_v40, 1  ;;  %v5093_v38 = vld [vmem:[#allocation2 + $0x18] sm:$0xff]  }
 0x1d4   : > { %2958 = vrot.lane.b32.xlu0 %v5067_v56, %s5173_s20  ;;  %v3232_v55 = vshll.u32 %v5083_v52, 16  ;;  %1202 = vst.msk [vmem:[#allocation3 + $0x10] sm:$0xff] %vm1199_vm6, %v5093_v38 }
 0x1d5   : > { %v5735_v0 = vpop.permute.xlu1 %2972  ;;  %v1495_v45 = vor.u32 %v1494_v19, %v1490_v5  ;;  %v1456_v5 = vshll.u32 %v5087_v39, 16 }
 0x1d6   : > { %v2071_v14 = vpop.permute.xlu0 %2070  ;;  %v3234_v20 = vrot.slane %v3232_v55, 1 }
 0x1d7   : > { %2110 = vst.msk [vmem:[#allocation3 + $0x48] sm:$0xff] %vm2100_vm2, %v2071_v14  ;;  %v3644_v14 = vrot.slane %v5074_v17, 1  ;;  %v3239_v17 = vrot.slane %v3237_v6, 1  ;;  %v1458_v27 = vrot.slane %v1456_v5, 1 }
 0x1d8   : > { %2543 = vst.msk [vmem:[#allocation3 + $0x48] sm:$0xff] %vm2533_vm1, %v5680_v21  ;;  %v3355_v21 = vor.u32 %v3354_v33, %v3350_v31  ;;  %v1843_v31 = vrot.slane %v5073_v3, 1  ;;  %2974 = vrot.lane.b32.xlu0 %v5069_v13, %s5173_s20  ;;  %v5079_v33 = vld [vmem:[#allocation2 + $0x68] ss:$0 sps:$4 sm:$0x11]  }
 0x1d9   : > { %v5746_v41 = vpop.permute.xlu1 %3678  ;;  %v1497_v36 = vshll.u32 %v5079_v33, 16  ;;  %v3646_v43 = vsel %vm1826_vm11, %v3644_v14, %v3645_v25  ;;  %v5085_v3 = vld [vmem:[#allocation2 + $0xc0] sm:$0xfe]  }
 0x1da   : > { %v5748_v42 = vpop.permute.xlu0 %2776  ;;  %v3360_v46 = vsel %vm1392_vm7, %v3355_v21, %v3359_v34  ;;  %v2739_v34 = vrot.slane %v5077_v28, 1  ;;  %v1844_v35 = vsel %vm1826_vm11, %v1842_v61, %v1843_v31  ;;  %v1868_v61 = vsel %vm1826_vm11, %v1866_v47, %v1867_v51  ;;  %v5088_v31 = vld [vmem:[#allocation2 + $0x44] ss:$0 sps:$4 sm:$0x11]  }
 0x1db   : > { %3411 = vrot.lane.b32.xlu1 %v3360_v46, %s5177_s24  ;;  %v3230_v46 = vshrl.u32 %v5083_v52, 16  ;;  %v1499_v32 = vrot.slane %v1497_v36, 1  ;;  %v2771_v18 = vrot.slane %v5085_v3, 1  ;;  %v5090_v28 = vld [vmem:[#allocation2 + $0x68] ss:$0 sps:$4 sm:$0x11]  }
 0x1dc   : > { %1885 = vrot.lane.b32.xlu0 %v1844_v35, %s5171_s18  ;;  %v2740_v56 = vsel %vm1826_vm11, %v2738_v29, %v2739_v34  ;;  %v5091_v29 = vld [vmem:[#allocation2 + $0x9c] sm:$0xff]  }
 0x1dd   : > { %v5753_v54 = vpop.permute.xlu1 %1883  ;;  %v1500_v60 = vsel %vm1392_vm7, %v1495_v45, %v1499_v32  ;;  %v3235_v13 = vor.u32 %v3234_v20, %v3230_v46  ;;  %v3328_v45 = vshll.u32 %v5091_v29, 16  ;;  %v5094_v46 = vld [vmem:[#allocation2 + $0x60] sm:$0xff]  }
 0x1de   : > { %v5755_v12 = vpop.permute.xlu0 %3674  ;;  %v3266_v20 = vshrl.u32 %v5094_v46, 16  ;;  %v3268_v5 = vshll.u32 %v5094_v46, 16 }
 0x1df   : > { %1615 = vrot.lane.b32.xlu1 %v1584_v58, %s5170_s12  ;;  %v1454_v58 = vshrl.u32 %v5087_v39, 16  ;;  %v3240_v25 = vsel %vm1392_vm7, %v3235_v13, %v3239_v17  ;;  %v2385_v39 = vshll.u32 %v5090_v28, 16  ;;  %v3330_v51 = vrot.slane %v3328_v45, 1 }
 0x1e0   : > { %2782 = vrot.lane.b32.xlu0 %v2740_v56, %s5175_s22  ;;  %v5096_v56 = vld [vmem:[#allocation2 + $0x9c] sm:$0xff]   ;;  %v3270_v13 = vrot.slane %v3268_v5, 1  ;;  %v5114_v5 = vld [vmem:[%s6355_s4 + $0x10] sm:$0xff]  }
 0x1e1   : > { %v5760_v10 = vpop.permute.xlu1 %3694  ;;  %v1459_v34 = vor.u32 %v1458_v27, %v1454_v58  ;;  %v2387_v47 = vrot.slane %v2385_v39, 1 }
 0x1e2   : > { %v5762_v11 = vpop.permute.xlu0 %1879 }
 0x1e3   : > { %2964 = vrot.lane.b32.xlu1 %v5068_v59, %s5173_s20 }
 0x1e4   : > { %1901 = vrot.lane.b32.xlu0 %v1868_v61, %s5171_s18 }
 0x1e5   : > { %v5766_v16 = vpop.permute.xlu1 %1899 }
 0x1e6   : > { %v2793_v23 = vpop.permute.xlu0 %2792 }
 0x1e7   : > { %2832 = vst.msk [vmem:[#allocation3 + $0x48] sm:$0xff] %vm2822_vm3, %v2793_v23  ;;  %1891 = vrot.lane.b32.xlu1 %v1853_v24, %s5171_s18  ;;  %v1461_v23 = vshll.u32 %v5088_v31, 16  ;;  %v5089_v24 = vld [vmem:[#allocation2 + $0x60] sm:$0xff]   ;;  %v5098_v31 = vld [vmem:[#allocation2 + $0x78] sm:$0xff]  }
 0x1e8   : > { %v2378_v35 = vshrl.u32 %v5089_v24, 16  ;;  %v2380_v36 = vshll.u32 %v5089_v24, 16  ;;  %3391 = vrot.lane.b32.xlu0 %v3240_v25, %s5177_s24  ;;  %1210 = vst.msk [vmem:[#allocation3 + $0x50] sm:$0xff] %vm1199_vm6, %v5098_v31 }
 0x1e9   : > { %v5773_v44 = vpop.permute.xlu1 %3389  ;;  %v1463_v52 = vrot.slane %v1461_v23, 1  ;;  %v3271_v23 = vor.u32 %v3270_v13, %v3266_v20  ;;  %v5104_v20 = vld [vmem:[#allocation2 + $0x48] sm:$0xfe]   ;;  %v5107_v13 = vld [vmem:[#allocation2 + $0xb0] ss:$0 sps:$4 sm:$0x11]  }
 0x1ea   : > { %v2488_v21 = vpop.permute.xlu0 %2487  ;;  %v2382_v40 = vrot.slane %v2380_v36, 1 }
 0x1eb   : > { %2535 = vst.msk [vmem:[#allocation3 + $0x8] sm:$0xff] %vm2533_vm1, %v2488_v21  ;;  %3686 = vrot.lane.b32.xlu1 %v3646_v43, %s5176_s23  ;;  %v5092_v43 = vld [vmem:[#allocation2 + $0xa4] ss:$0 sps:$4 sm:$0x11]   ;;  %v1464_v58 = vsel %vm1392_vm7, %v1459_v34, %v1463_v52 }
 0x1ec   : > { %2824 = vst.msk [vmem:[#allocation3 + $0x8] sm:$0xff] %vm2822_vm3, %v5748_v42  ;;  %v5086_v42 = vld [vmem:[#allocation2 + $0xc8] ss:$0 sps:$4 sm:$0x11]   ;;  %v3333_v55 = vshll.u32 %v5092_v43, 16  ;;  %1595 = vrot.lane.b32.xlu0 %v1464_v58, %s5170_s12 }
 0x1ed   : > { %v5782_v59 = vpop.permute.xlu1 %2507  ;;  %v2772_v19 = vrot.slane %v5086_v42, 1  ;;  %v5095_v42 = vld [vmem:[#allocation2 + $0x68] ss:$0 sps:$4 sm:$0x11]  }
 0x1ee   : > { %v3386_v15 = vpop.permute.xlu0 %3385  ;;  %v3335_v3 = vrot.slane %v3333_v55, 1  ;;  %v3273_v17 = vshll.u32 %v5095_v42, 16  ;;  %v5100_v34 = vld [vmem:[#allocation2 + $0xc8] ss:$0 sps:$4 sm:$0x11]  }
 0x1ef   : > { %1601 = vrot.lane.b32.xlu1 %v1500_v60, %s5170_s12  ;;  %3434 = vst.msk [vmem:[#allocation3] sm:$0xff] %vm3433_vm5, %v3386_v15  ;;  %v2773_v32 = vsel %vm1826_vm11, %v2771_v18, %v2772_v19  ;;  %v2383_v60 = vor.u32 %v2382_v40, %v2378_v35  ;;  %v1550_v15 = vshrl.u32 %v5096_v56, 16  ;;  %v5097_v18 = vld [vmem:[#allocation2 + $0xa4] ss:$0 sps:$4 sm:$0x11]   ;;  %v1552_v19 = vshll.u32 %v5096_v56, 16 }
 0x1f0   : > { %3723 = vst.msk [vmem:[#allocation3] sm:$0xff] %vm3722_vm8, %v5755_v12  ;;  %v3326_v12 = vshrl.u32 %v5091_v29, 16  ;;  %v3275_v25 = vrot.slane %v3273_v17, 1  ;;  %v1557_v29 = vshll.u32 %v5097_v18, 16  ;;  %v5101_v55 = vld [vmem:[#allocation2 + $0x48] sm:$0xff]   ;;  %v2741_v18 = vrot.slane %v5104_v20, 1 }
 0x1f1   : > { %v5789_v14 = vpop.permute.xlu1 %3405  ;;  %v2388_v61 = vsel %vm1392_vm7, %v2383_v60, %v2387_v47  ;;  %v1554_v28 = vrot.slane %v1552_v19, 1  ;;  %v5102_v58 = vld [vmem:[#allocation2 + $0xa8] sm:$0xff]  }
 0x1f2   : > { %v1590_v33 = vpop.permute.xlu0 %1589  ;;  %v3331_v6 = vor.u32 %v3330_v51, %v3326_v12  ;;  %v3276_v52 = vsel %vm1392_vm7, %v3271_v23, %v3275_v25  ;;  %v1559_v36 = vrot.slane %v1557_v29, 1  ;;  %v2481_v12 = vshll.u32 %v5100_v34, 16  ;;  %v5106_v42 = vld [vmem:[#allocation2 + $0xa8] sm:$0xfe]  }
 0x1f3   : > { %2082 = vrot.lane.b32.xlu1 %v5082_v48, %s5172_s19  ;;  %1636 = vst.msk [vmem:[#allocation3 + $0x10] sm:$0xff] %vm1633_vm10, %v1590_v33  ;;  %v5099_v33 = vld [vmem:[#allocation2 + $0xc0] sm:$0xff]   ;;  %v1555_v35 = vor.u32 %v1554_v28, %v1550_v15  ;;  %v5112_v17 = vld [vmem:[#allocation2 + $0x48] sm:$0xff]   ;;  %v3662_v28 = vrot.slane %v5106_v42, 1  ;;  %v3663_v29 = vrot.slane %v5107_v13, 1 }
 0x1f4   : > { %1926 = vst.msk [vmem:[#allocation3 + $0x10] sm:$0xff] %vm1923_vm15, %v5762_v11  ;;  %v3336_v11 = vsel %vm1392_vm7, %v3331_v6, %v3335_v3  ;;  %v2474_v38 = vshrl.u32 %v5099_v33, 16  ;;  %v2476_v43 = vshll.u32 %v5099_v33, 16  ;;  %v5105_v6 = vld [vmem:[#allocation2 + $0x50] ss:$0 sps:$4 sm:$0x11]  }
 0x1f5   : > { %v5796_v21 = vpop.permute.xlu1 %2060  ;;  %3407 = vrot.lane.b32.xlu0 %v3336_v11, %s5177_s24  ;;  %v1560_v46 = vsel %vm1392_vm7, %v1555_v35, %v1559_v36  ;;  %v5103_v3 = vld [vmem:[#allocation2 + $0xa8] sm:$0xff]   ;;  %v2742_v19 = vrot.slane %v5105_v6, 1  ;;  %v5117_v11 = vld [vmem:[%s6355_s4 + $0x18] sm:$0xff]   ;;  %v1468_v23 = vshll.u32 %v5112_v17, 16 }
 0x1f6   : > { %v1606_v57 = vpop.permute.xlu0 %1605  ;;  %v5120_v25 = vld [vmem:[#allocation2 + $0x24] sm:$0xff]   ;;  %v5113_v35 = vld [vmem:[#allocation2 + $0x50] ss:$0 sps:$4 sm:$0x11]  }
 0x1f7   : > { %2804 = vrot.lane.b32.xlu1 %v2773_v32, %s5175_s22  ;;  %1644 = vst.msk [vmem:[#allocation3 + $0x50] sm:$0xff] %vm1633_vm10, %v1606_v57  ;;  %v3739_v45 = vld [vmem:[#allocation3] sm:$0xff]  ;;  %v2483_v32 = vrot.slane %v2481_v12, 1  ;;  %v2743_v34 = vsel %vm1826_vm11, %v2741_v18, %v2742_v19  ;;  %v5115_v36 = vld [vmem:[#allocation2 + $0xa8] sm:$0xff]   ;;  %v5121_v12 = vld [vmem:[%s6355_s4 + $0x20] ss:$0 sps:$4 sm:$0xff]  }
 0x1f8   : > { %1934 = vst.msk [vmem:[#allocation3 + $0x50] sm:$0xff] %vm1923_vm15, %v5672_v1  ;;  %4734 = vmatprep.mubr.msk.bf16.mxu0 %vm3798_vm9, %v3739_v45  ;;  %v2478_v1 = vrot.slane %v2476_v43, 1  ;;  %v5116_v43 = vld [vmem:[#allocation2 + $0xb0] ss:$0 sps:$4 sm:$0x11]  }
 0x1f9   : > { %v5806_v48 = vpop.permute.xlu1 %2076  ;;  %2111 = vst.msk [vmem:[#allocation3 + $0x50] sm:$0xff] %vm2100_vm2, %v5695_v8  ;;  %1611 = vrot.lane.b32.xlu0 %v1560_v46, %s5170_s12  ;;  %v5108_v8 = vld [vmem:[%s6355_s4] sm:$0xff]   ;;  %v1470_v46 = vrot.slane %v1468_v23, 1  ;;  %v2457_v6 = vshll.u32 %v5116_v43, 16  ;;  %v5124_v43 = vld [vmem:[#allocation2 + $0x54] sm:$0xfe]  }
 0x1fa   : > { %v2955_v27 = vpop.permute.xlu0 %2954  ;;  %2544 = vst.msk [vmem:[#allocation3 + $0x50] sm:$0xff] %vm2533_vm1, %v5722_v4  ;;  %v2479_v51 = vor.u32 %v2478_v1, %v2474_v38  ;;  %4724 = vmatprep.subr.bf16.mxu0 %v5108_v8  ;;  %v5111_v4 = vld [vmem:[%s6355_s4 + $0x8] sm:$0xff]   ;;  %4766 = vmatprep.subr.bf16.mxu1 %v5108_v8 }
 0x1fb   : > { %2499 = vrot.lane.b32.xlu1 %v2388_v61, %s5174_s21  ;;  %3002 = vst.msk [vmem:[#allocation3 + $0x8] sm:$0xff] %vm3000_vm4, %v2955_v27  ;;  %4725 = vmatpush3.bf16.msra.mxu0 %v5108_v8  ;;  %v5109_v61 = vld [vmem:[#allocation2 + $0xa8] sm:$0xfe]   ;;  %v5110_v27 = vld [vmem:[#allocation2 + $0xb0] ss:$0 sps:$4 sm:$0x11]  }
 0x1fc   : > { %4771 = vmatpush3.bf16.msra.mxu1 %v5108_v8  ;;  %v2484_v57 = vsel %vm1392_vm7, %v2479_v51, %v2483_v32  ;;  %4726 = vmatprep.subr.bf16.mxu0 %v5111_v4  ;;  %v1869_v33 = vrot.slane %v5109_v61, 1  ;;  %1203 = vst.msk [vmem:[#allocation3 + $0x18] sm:$0xff] %vm1199_vm6, %v5120_v25  ;;  %v1870_v38 = vrot.slane %v5110_v27, 1  ;;  %v5126_v1 = vld [vmem:[#allocation2 + $0x84] sm:$0xff]   ;;  %v3849_v8 = vsel %vm3847_vm12, %v5121_v12, 0 }
 0x1fd   : > { %v5813_v24 = vpop.permute.xlu1 %3680  ;;  %2062 = vrot.lane.b32.xlu0 %v5101_v55, %s5172_s19  ;;  %4767 = vmatprep.subr.bf16.mxu1 %v5111_v4  ;;  %v5118_v32 = vld [vmem:[#allocation2 + $0xa8] sm:$0xff]   ;;  %v1473_v51 = vshll.u32 %v5113_v35, 16  ;;  %1211 = vst.msk [vmem:[#allocation3 + $0x58] sm:$0xff] %vm1199_vm6, %v5126_v1  ;;  %v2450_v61 = vshrl.u32 %v5115_v36, 16  ;;  %v2459_v19 = vrot.slane %v2457_v6, 1  ;;  %v5139_v35 = vld [vmem:[#allocation2 + $0x30] sm:$0xff]  }
 0x1fe   : > { %v2057_v39 = vpop.permute.xlu0 %2056  ;;  %v1871_v20 = vsel %vm1826_vm11, %v1869_v33, %v1870_v38  ;;  %v3338_v27 = vshrl.u32 %v5118_v32, 16  ;;  %1204 = vst.msk [vmem:[#allocation3 + $0x20] sm:$0xff] %vm1199_vm6, %v5139_v35  ;;  %v5145_v1 = vld [vmem:[#allocation2 + $0xb4] sm:$0xff]   ;;  %v5131_v6 = vld [vmem:[#allocation2 + $0xbc] ss:$0 sps:$4 sm:$0x11]  }
 0x1ff   : > { %3397 = vrot.lane.b32.xlu1 %v3276_v52, %s5177_s24  ;;  %2103 = vst.msk [vmem:[#allocation3 + $0x10] sm:$0xff] %vm2100_vm2, %v2057_v39  ;;  %4727 = vmatpush3.bf16.msra.mxu0 %v5111_v4  ;;  %v1466_v39 = vshrl.u32 %v5112_v17, 16  ;;  %v1475_v13 = vrot.slane %v1473_v51, 1  ;;  %v5127_v51 = vld [vmem:[#allocation2 + $0x54] sm:$0xfe]  }
 0x200   : > { %4772 = vmatpush3.bf16.msra.mxu1 %v5111_v4  ;;  %4728 = vmatprep.subr.bf16.mxu0 %v5114_v5  ;;  %v2452_v4 = vshll.u32 %v5115_v36, 16  ;;  %1215 = vst.msk [vmem:[#allocation3 + $0x78] sm:$0xff] %vm1199_vm6, %v5145_v1 }
 0x201   : > { %v5825_v40 = vpop.permute.xlu1 %3696  ;;  %2078 = vrot.lane.b32.xlu0 %v5102_v58, %s5172_s19  ;;  %4768 = vmatprep.subr.bf16.mxu1 %v5114_v5  ;;  %v5129_v58 = vld [vmem:[#allocation2 + $0xa8] sm:$0xff]   ;;  %v1471_v42 = vor.u32 %v1470_v46, %v1466_v39  ;;  %v5122_v39 = vld [vmem:[#allocation2 + $0x54] sm:$0xff]  }
 0x202   : > { %v2971_v47 = vpop.permute.xlu0 %2970  ;;  %1214 = vst.msk [vmem:[#allocation3 + $0x70] sm:$0xff] %vm1199_vm6, %v5129_v58  ;;  %v2454_v17 = vrot.slane %v2452_v4, 1  ;;  %v5142_v46 = vld [vmem:[#allocation2 + $0x90] sm:$0xff]   ;;  %v5128_v58 = vld [vmem:[#allocation2 + $0x5c] ss:$0 sps:$4 sm:$0x11]  }
 0x203   : > { %3010 = vst.msk [vmem:[#allocation3 + $0x48] sm:$0xff] %vm3000_vm4, %v2971_v47  ;;  %2515 = vrot.lane.b32.xlu1 %v2484_v57, %s5174_s21  ;;  %4729 = vmatpush3.bf16.msra.mxu0 %v5114_v5  ;;  %v3664_v47 = vsel %vm1826_vm11, %v3662_v28, %v3663_v29  ;;  %v5119_v57 = vld [vmem:[#allocation2 + $0xb0] ss:$0 sps:$4 sm:$0x11]   ;;  %v1476_v25 = vsel %vm1392_vm7, %v1471_v42, %v1475_v13  ;;  %v5909_v4 = vld [vmem:[#allocation2 + $0x54] sm:$0xff]  }
 0x204   : > { %4773 = vmatpush3.bf16.msra.mxu1 %v5114_v5  ;;  %4730 = vmatprep.subr.bf16.mxu0 %v5117_v11  ;;  %v3345_v23 = vshll.u32 %v5119_v57, 16  ;;  %v2455_v28 = vor.u32 %v2454_v17, %v2450_v61  ;;  %1212 = vst.msk [vmem:[#allocation3 + $0x60] sm:$0xff] %vm1199_vm6, %v5142_v46  ;;  %v3256_v42 = vshll.u32 %v5909_v4, 16  ;;  %v5150_v13 = vld [vmem:[#allocation2 + $0xcc] sm:$0xff]   ;;  %v5156_v61 = vld [vmem:[#allocation2 + $0x60] sm:$0xff]  }
 0x205   : > { %v5839_v56 = vpop.permute.xlu1 %2798  ;;  %2976 = vrot.lane.b32.xlu0 %v5103_v3, %s5173_s20  ;;  %4769 = vmatprep.subr.bf16.mxu1 %v5117_v11  ;;  %v3340_v3 = vshll.u32 %v5118_v32, 16  ;;  %1208 = vst.msk [vmem:[#allocation3 + $0x40] sm:$0xff] %vm1199_vm6, %v5156_v61  ;;  %v5160_v61 = vld [vmem:[#allocation2 + $0x54] sm:$0xff]  }
 0x206   : > { %v5844_v60 = vpop.permute.xlu0 %3676  ;;  %1207 = vst.msk [vmem:[#allocation3 + $0x38] sm:$0xff] %vm1199_vm6, %v5160_v61 }
 0x207   : > { %4731 = vmatpush3.bf16.msra.mxu0 %v5117_v11 }
 0x208   : > { %4774 = vmatpush3.bf16.msra.mxu1 %v5117_v11  ;;  %4776 = vmatprep.subr.msk.bf16.mxu0 %vm3847_vm12, %v5121_v12  ;;  %v3342_v11 = vrot.slane %v3340_v3, 1 }
 0x209   : > { %v5850_v15 = vpop.permute.xlu1 %2493  ;;  %2784 = vrot.lane.b32.xlu0 %v2743_v34, %s5175_s22  ;;  %4777 = vmatprep.subr.msk.bf16.mxu1 %vm3847_vm12, %v5121_v12  ;;  %v3347_v34 = vrot.slane %v3345_v23, 1  ;;  %v5125_v12 = vld [vmem:[#allocation2 + $0x5c] ss:$0 sps:$4 sm:$0x11]   ;;  %v3376_v23 = vshll.u32 %v5150_v13, 16 }
 0x20a   : > { %v5852_v31 = vpop.permute.xlu0 %1881  ;;  %v1849_v57 = vrot.slane %v5125_v12, 1  ;;  %v5158_v12 = vld [vmem:[#allocation2 + $0x9c] sm:$0xff]  }
 0x20b   : > { %4733 = vmatpush3.bf16.msra.mxu0 %v3849_v8  ;;  %1213 = vst.msk [vmem:[#allocation3 + $0x68] sm:$0xff] %vm1199_vm6, %v5158_v12 }
 0x20c   : > { %4775 = vmatpush3.bf16.msra.mxu1 %v3849_v8  ;;  %v5123_v8 = vld [vmem:[#allocation2 + $0xb4] sm:$0xff]  }
 0x20d   : > { %v5859_v52 = vpop.permute.xlu1 %2509  ;;  %3698 = vrot.lane.b32.xlu0 %v3664_v47, %s5176_s23  ;;  %v1848_v47 = vrot.slane %v5124_v43, 1  ;;  %v5154_v43 = vld [vmem:[#allocation2 + $0xcc] sm:$0xfe]  }
 0x20e   : > { %v5866_v45 = vpop.permute.xlu0 %1897 }
 0x211   : > { %v5872_v55 = vpop.permute.xlu1 %2960  ;;  %1903 = vrot.lane.b32.xlu0 %v1871_v20, %s5171_s18  ;;  %v5147_v20 = vld [vmem:[#allocation2 + $0xcc] sm:$0xff]  }
 0x212   : > { %v2795_v5 = vpop.permute.xlu0 %2794  ;;  %2982 = vrot.lane.b32.xlu1 %v5147_v20, %s5173_s20 }
 0x213   : > { %2833 = vst.msk [vmem:[#allocation3 + $0x50] sm:$0xff] %vm2822_vm3, %v2795_v5  ;;  %v5130_v5 = vld [vmem:[#allocation2 + $0xb4] sm:$0xfe]  }
 0x214   : > { %3011 = vst.msk [vmem:[#allocation3 + $0x50] sm:$0xff] %vm3000_vm4, %v5735_v0  ;;  %v2460_v0 = vsel %vm1392_vm7, %v2455_v28, %v2459_v19  ;;  %v2744_v19 = vrot.slane %v5127_v51, 1  ;;  %v3671_v51 = vrot.slane %v5154_v43, 1 }
 0x215   : > { %3444 = vst.msk [vmem:[#allocation3 + $0x50] sm:$0xff] %vm3433_vm5, %v5789_v14  ;;  %v5884_v18 = vpop.permute.xlu1 %3682  ;;  %1597 = vrot.lane.b32.xlu0 %v1476_v25, %s5170_s12  ;;  %v3343_v14 = vor.u32 %v3342_v11, %v3338_v27  ;;  %v5134_v27 = vld [vmem:[#allocation2 + $0x54] sm:$0xff]   ;;  %v3374_v11 = vshrl.u32 %v5150_v13, 16 }
 0x216   : > { %3733 = vst.msk [vmem:[#allocation3 + $0x50] sm:$0xff] %vm3722_vm8, %v5760_v10  ;;  %v3388_v29 = vpop.permute.xlu0 %3387  ;;  %v1480_v1 = vshll.u32 %v5134_v27, 16 }
 0x217   : > { %3435 = vst.msk [vmem:[#allocation3 + $0x8] sm:$0xff] %vm3433_vm5, %v3388_v29  ;;  %v3348_v36 = vsel %vm1392_vm7, %v3343_v14, %v3347_v34  ;;  %v3665_v29 = vrot.slane %v5130_v5, 1  ;;  %v3258_v14 = vrot.slane %v3256_v42, 1  ;;  %v5157_v34 = vld [vmem:[#allocation2 + $0x3c] sm:$0xff]  }
 0x218   : > { %3724 = vst.msk [vmem:[#allocation3 + $0x8] sm:$0xff] %vm3722_vm8, %v5844_v60  ;;  %v1482_v42 = vrot.slane %v1480_v1, 1 }
 0x219   : > { %v5890_v33 = vpop.permute.xlu1 %1887  ;;  %2511 = vrot.lane.b32.xlu0 %v2460_v0, %s5174_s21  ;;  %v3666_v0 = vrot.slane %v5131_v6, 1  ;;  %1205 = vst.msk [vmem:[#allocation3 + $0x28] sm:$0xff] %vm1199_vm6, %v5157_v34  ;;  %v1478_v6 = vshrl.u32 %v5134_v27, 16 }
 0x21a   : > { %v1592_v10 = vpop.permute.xlu0 %1591 }
 0x21b   : > { %1637 = vst.msk [vmem:[#allocation3 + $0x18] sm:$0xff] %vm1633_vm10, %v1592_v10  ;;  %v5135_v10 = vld [vmem:[#allocation2 + $0x5c] ss:$0 sps:$4 sm:$0x11]  }
 0x21c   : > { %1927 = vst.msk [vmem:[#allocation3 + $0x18] sm:$0xff] %vm1923_vm15, %v5852_v31  ;;  %v1485_v13 = vshll.u32 %v5135_v10, 16 }
 0x21d   : > { %v5900_v38 = vpop.permute.xlu1 %2800  ;;  %3409 = vrot.lane.b32.xlu0 %v3348_v36, %s5177_s24  ;;  %v3378_v36 = vrot.slane %v3376_v23, 1  ;;  %v5140_v23 = vld [vmem:[#allocation2 + $0xb4] sm:$0xff]  }
 0x21e   : > { %v2490_v60 = vpop.permute.xlu0 %2489  ;;  %v2462_v43 = vshrl.u32 %v5140_v23, 16 }
 0x21f   : > { %v3740_v32 = vld [vmem:[#allocation3 + $0x8] sm:$0xff]  ;;  %2536 = vst.msk [vmem:[#allocation3 + $0x10] sm:$0xff] %vm2533_vm1, %v2490_v60  ;;  %v5155_v60 = vld [vmem:[#allocation2 + $0xd4] ss:$0 sps:$4 sm:$0x11]  }
 0x220   : > { %4735 = vmatmul.mubr.msk.bf16.vlgmr.msra.gmra.mrb[0].mxu0 %vm3798_vm9, %v3740_v32  ;;  %2825 = vst.msk [vmem:[#allocation3 + $0x10] sm:$0xff] %vm2822_vm3, %v5705_v50  ;;  %v5133_v50 = vld [vmem:[#allocation2 + $0x5c] ss:$0 sps:$4 sm:$0x11]  }
 0x221   : > { %2962 = vrot.lane.b32.xlu0 %v5122_v39, %s5173_s20  ;;  %v5914_v31 = vpop.permute.xlu1 %2495  ;;  %3003 = vst.msk [vmem:[#allocation3 + $0x10] sm:$0xff] %vm3000_vm4, %v5729_v63  ;;  %v5151_v63 = vld [vmem:[#allocation2 + $0xd4] ss:$0 sps:$4 sm:$0x11]   ;;  %v3261_v35 = vshll.u32 %v5133_v50, 16 }
 0x222   : > { %3436 = vst.msk [vmem:[#allocation3 + $0x10] sm:$0xff] %vm3433_vm5, %v5773_v44  ;;  %v3404_v3 = vpop.permute.xlu0 %3403  ;;  %v1850_v44 = vsel %vm1826_vm11, %v1848_v47, %v1849_v57  ;;  %v3381_v25 = vshll.u32 %v5151_v63, 16  ;;  %v3379_v47 = vor.u32 %v3378_v36, %v3374_v11  ;;  %v1487_v11 = vrot.slane %v1485_v13, 1 }
 0x223   : > { %3725 = vst.msk [vmem:[#allocation3 + $0x10] sm:$0xff] %vm3722_vm8, %v5746_v41  ;;  %v2745_v41 = vrot.slane %v5128_v58, 1  ;;  %v3667_v58 = vsel %vm1826_vm11, %v3665_v29, %v3666_v0  ;;  %v3263_v50 = vrot.slane %v3261_v35, 1  ;;  %v5137_v29 = vld [vmem:[#allocation2 + $0x60] sm:$0xfe]  }
 0x224   : > { %3443 = vst.msk [vmem:[#allocation3 + $0x48] sm:$0xff] %vm3433_vm5, %v3404_v3  ;;  %v3383_v39 = vrot.slane %v3381_v25, 1  ;;  %v5159_v3 = vld [vmem:[#allocation2 + $0x48] sm:$0xff]   ;;  %v5136_v35 = vld [vmem:[#allocation2 + $0x60] sm:$0xff]   ;;  %v2747_v36 = vrot.slane %v5137_v29, 1 }
 0x225   : > { %2080 = vrot.lane.b32.xlu0 %v5123_v8, %s5172_s19  ;;  %3732 = vst.msk [vmem:[#allocation3 + $0x48] sm:$0xff] %vm3722_vm8, %v5713_v26  ;;  %v5929_v17 = vpop.permute.xlu1 %3393  ;;  %v3254_v26 = vshrl.u32 %v5909_v4, 16  ;;  %v2746_v32 = vsel %vm1826_vm11, %v2744_v19, %v2745_v41  ;;  %v1483_v41 = vor.u32 %v1482_v42, %v1478_v6  ;;  %v5138_v0 = vld [vmem:[#allocation2 + $0x68] ss:$0 sps:$4 sm:$0x11]  }
 0x226   : > { %v1608_v28 = vpop.permute.xlu0 %1607  ;;  %v3384_v57 = vsel %vm1392_vm7, %v3379_v47, %v3383_v39  ;;  %1206 = vst.msk [vmem:[#allocation3 + $0x30] sm:$0xff] %vm1199_vm6, %v5159_v3  ;;  %v2748_v39 = vrot.slane %v5138_v0, 1  ;;  %v5149_v3 = vld [vmem:[#allocation2 + $0xc8] ss:$0 sps:$4 sm:$0x11]  }
 0x227   : > { %1645 = vst.msk [vmem:[#allocation3 + $0x58] sm:$0xff] %vm1633_vm10, %v1608_v28  ;;  %v3259_v5 = vor.u32 %v3258_v14, %v3254_v26  ;;  %3415 = vrot.lane.b32.xlu1 %v3384_v57, %s5177_s24  ;;  %v1488_v26 = vsel %vm1392_vm7, %v1483_v41, %v1487_v11  ;;  %v5141_v14 = vld [vmem:[#allocation2 + $0xbc] ss:$0 sps:$4 sm:$0x11]   ;;  %v3369_v61 = vshll.u32 %v5149_v3, 16 }
 0x228   : > { %1935 = vst.msk [vmem:[#allocation3 + $0x58] sm:$0xff] %vm1923_vm15, %v5866_v45  ;;  %v3672_v45 = vrot.slane %v5155_v60, 1  ;;  %v5153_v11 = vld [vmem:[#allocation2 + $0xc8] ss:$0 sps:$4 sm:$0x11]  }
 0x229   : > { %1889 = vrot.lane.b32.xlu0 %v1850_v44, %s5171_s18  ;;  %v1614_v46 = vpop.permute.xlu1 %1613  ;;  %v3264_v27 = vsel %vm1392_vm7, %v3259_v5, %v3263_v50  ;;  %v3371_v41 = vrot.slane %v3369_v61, 1 }
 0x22a   : > { %1648 = vst.msk [vmem:[#allocation3 + $0x70] sm:$0xff] %vm1633_vm10, %v1614_v46  ;;  %v3741_v8 = vld [vmem:[#allocation3 + $0x10] sm:$0xff]  ;;  %v2059_v4 = vpop.permute.xlu0 %2058  ;;  %v3673_v63 = vsel %vm1826_vm11, %v3671_v51, %v3672_v45  ;;  %v2469_v46 = vshll.u32 %v5141_v14, 16  ;;  %v5148_v45 = vld [vmem:[#allocation2 + $0xc0] sm:$0xff]  }
 0x22b   : > { %4738 = vmatprep.mubr.msk.bf16.mxu0 %vm3798_vm9, %v3741_v8  ;;  %2104 = vst.msk [vmem:[#allocation3 + $0x18] sm:$0xff] %vm2100_vm2, %v2059_v4  ;;  %3704 = vrot.lane.b32.xlu1 %v3673_v63, %s5176_s23  ;;  %v2749_v8 = vsel %vm1826_vm11, %v2747_v36, %v2748_v39  ;;  %v5144_v4 = vld [vmem:[#allocation2 + $0xbc] ss:$0 sps:$4 sm:$0x11]   ;;  %v3364_v50 = vshll.u32 %v5148_v45, 16  ;;  %v3749_v39 = vld [vmem:[#allocation3 + $0x50] sm:$0xff] }
 0x22c   : > { %v2471_v51 = vrot.slane %v2469_v46, 1  ;;  %v2769_v6 = vrot.slane %v5144_v4, 1 }
 0x22d   : > { %2786 = vrot.lane.b32.xlu0 %v2746_v32, %s5175_s22  ;;  %v5946_v20 = vpop.permute.xlu1 %2064  ;;  %v5143_v32 = vld [vmem:[#allocation2 + $0xb4] sm:$0xfe]   ;;  %v3366_v63 = vrot.slane %v3364_v50, 1 }
 0x22e   : > { %v2075_v44 = vpop.permute.xlu0 %2074  ;;  %v2768_v5 = vrot.slane %v5143_v32, 1 }
 0x22f   : > { %2112 = vst.msk [vmem:[#allocation3 + $0x58] sm:$0xff] %vm2100_vm2, %v2075_v44 }
 0x230   : > { %2545 = vst.msk [vmem:[#allocation3 + $0x58] sm:$0xff] %vm2533_vm1, %v5782_v59  ;;  %v2464_v59 = vshll.u32 %v5140_v23, 16 }
 0x231   : > { %3700 = vrot.lane.b32.xlu0 %v3667_v58, %s5176_s23  ;;  %v5956_v19 = vpop.permute.xlu1 %2978 }
 0x232   : > { %v2781_v25 = vpop.permute.xlu0 %2780  ;;  %v2466_v12 = vrot.slane %v2464_v59, 1 }
 0x234   : > { %v2467_v47 = vor.u32 %v2466_v12, %v2462_v43 }
 0x235   : > { %3395 = vrot.lane.b32.xlu0 %v3264_v27, %s5177_s24 }
 0x236   : > { %v2797_v34 = vpop.permute.xlu0 %2796  ;;  %v2472_v58 = vsel %vm1392_vm7, %v2467_v47, %v2471_v51 }
 0x237   : > { %2834 = vst.msk [vmem:[#allocation3 + $0x58] sm:$0xff] %vm2822_vm3, %v2797_v34 }
 0x239   : > { %1599 = vrot.lane.b32.xlu0 %v1488_v26, %s5170_s12 }
 0x23a   : > { %v2492_v1 = vpop.permute.xlu0 %2491 }
 0x23b   : > { %v5961_v28 = vpop.permute.xlu1 %3684  ;;  %2537 = vst.msk [vmem:[#allocation3 + $0x18] sm:$0xff] %vm2533_vm1, %v2492_v1 }
 0x23c   : > { %2826 = vst.msk [vmem:[#allocation3 + $0x18] sm:$0xff] %vm2822_vm3, %v2781_v25 }
 0x23d   : > { %2066 = vrot.lane.b32.xlu0 %v5136_v35, %s5172_s19  ;;  %s320_s19 = scalar_lea.vmem %s6358_s7, %s6369_s30 }
 0x23e   : > { %v1594_v57 = vpop.permute.xlu0 %1593 }
 0x23f   : > { %v1906_v10 = vpop.permute.xlu1 %1905  ;;  %1638 = vst.msk [vmem:[#allocation3 + $0x20] sm:$0xff] %vm1633_vm10, %v1594_v57 }
 0x240   : > { %1928 = vst.msk [vmem:[#allocation3 + $0x20] sm:$0xff] %vm1923_vm15, %v5753_v54  ;;  %v2770_v54 = vsel %vm1826_vm11, %v2768_v5, %v2769_v6 }
 0x241   : > { %2788 = vrot.lane.b32.xlu0 %v2749_v8, %s5175_s22  ;;  %2105 = vst.msk [vmem:[#allocation3 + $0x20] sm:$0xff] %vm2100_vm2, %v5796_v21  ;;  %v3362_v21 = vshrl.u32 %v5148_v45, 16 }
 0x242   : > { %2538 = vst.msk [vmem:[#allocation3 + $0x20] sm:$0xff] %vm2533_vm1, %v5850_v15  ;;  %v1610_v13 = vpop.permute.xlu0 %1609 }
 0x243   : > { %v5969_v60 = vpop.permute.xlu1 %2497  ;;  %1646 = vst.msk [vmem:[#allocation3 + $0x60] sm:$0xff] %vm1633_vm10, %v1610_v13  ;;  %v3367_v27 = vor.u32 %v3366_v63, %v3362_v21 }
 0x244   : > { %1936 = vst.msk [vmem:[#allocation3 + $0x60] sm:$0xff] %vm1923_vm15, %v5766_v16  ;;  %v5146_v16 = vld [vmem:[#allocation2 + $0xc0] sm:$0xff]  }
 0x245   : > { %2513 = vrot.lane.b32.xlu0 %v2472_v58, %s5174_s21  ;;  %2113 = vst.msk [vmem:[#allocation3 + $0x60] sm:$0xff] %vm2100_vm2, %v5806_v48  ;;  %v5152_v48 = vld [vmem:[#allocation2 + $0xc0] sm:$0xfe]   ;;  %v3372_v25 = vsel %vm1392_vm7, %v3367_v27, %v3371_v41  ;;  %v6115_v27 = vld [vmem:[%s6356_s5] ss:$0 sm:$0xff] }
 0x246   : > { %2546 = vst.msk [vmem:[#allocation3 + $0x60] sm:$0xff] %vm2533_vm1, %v5859_v52  ;;  %v2959_v15 = vpop.permute.xlu0 %2958  ;;  %v3668_v29 = vrot.slane %v5152_v48, 1 }
 0x247   : > { %2835 = vst.msk [vmem:[#allocation3 + $0x60] sm:$0xff] %vm2822_vm3, %v5839_v56  ;;  %v3669_v56 = vrot.slane %v5153_v11, 1 }
 0x248   : > { %3004 = vst.msk [vmem:[#allocation3 + $0x18] sm:$0xff] %vm3000_vm4, %v2959_v15 }
 0x249   : > { %2802 = vrot.lane.b32.xlu0 %v2770_v54, %s5175_s22  ;;  %v3670_v14 = vsel %vm1826_vm11, %v3668_v29, %v3669_v56  ;;  %s323_s22 = scalar_lea.vmem %s6359_s8, %s6369_s30 }
 0x24a   : > { %v2975_v52 = vpop.permute.xlu0 %2974 }
 0x24b   : > { %3012 = vst.msk [vmem:[#allocation3 + $0x58] sm:$0xff] %vm3000_vm4, %v2975_v52 }
 0x24d   : > { %v5982_v42 = vpop.permute.xlu1 %3411  ;;  %2980 = vrot.lane.b32.xlu0 %v5146_v16, %s5173_s20 }
 0x24e   : > { %v1886_v26 = vpop.permute.xlu0 %1885 }
 0x251   : > { %v1616_v44 = vpop.permute.xlu1 %1615  ;;  %3413 = vrot.lane.b32.xlu0 %v3372_v25, %s5177_s24 }
 0x252   : > { %1649 = vst.msk [vmem:[#allocation3 + $0x78] sm:$0xff] %vm1633_vm10, %v1616_v44  ;;  %v2783_v34 = vpop.permute.xlu0 %2782 }
 0x253   : > { %1939 = vst.msk [vmem:[#allocation3 + $0x78] sm:$0xff] %vm1923_vm15, %v1906_v10 }
 0x254   : > { %2827 = vst.msk [vmem:[#allocation3 + $0x20] sm:$0xff] %vm2822_vm3, %v2783_v34 }
 0x255   : > { %v5999_v23 = vpop.permute.xlu1 %2964  ;;  %3702 = vrot.lane.b32.xlu0 %v3670_v14, %s5176_s23  ;;  %3005 = vst.msk [vmem:[#allocation3 + $0x20] sm:$0xff] %vm3000_vm4, %v5872_v55 }
 0x256   : > { %3438 = vst.msk [vmem:[#allocation3 + $0x20] sm:$0xff] %vm3433_vm5, %v5929_v17  ;;  %v1902_v10 = vpop.permute.xlu0 %1901 }
 0x257   : > { %3727 = vst.msk [vmem:[#allocation3 + $0x20] sm:$0xff] %vm3722_vm8, %v5884_v18 }
 0x259   : > { %v1892_v0 = vpop.permute.xlu1 %1891 }
 0x25a   : > { %v3392_v55 = vpop.permute.xlu0 %3391 }
 0x25b   : > { %3437 = vst.msk [vmem:[#allocation3 + $0x18] sm:$0xff] %vm3433_vm5, %v3392_v55 }
 0x25c   : > { %3726 = vst.msk [vmem:[#allocation3 + $0x18] sm:$0xff] %vm3722_vm8, %v5813_v24 }
 0x25d   : > { %v6006_v59 = vpop.permute.xlu1 %3686 }
 0x261   : > { %v1602_v35 = vpop.permute.xlu1 %1601 }
 0x262   : > { %1642 = vst.msk [vmem:[#allocation3 + $0x40] sm:$0xff] %vm1633_vm10, %v1602_v35 }
 0x263   : > { %1932 = vst.msk [vmem:[#allocation3 + $0x40] sm:$0xff] %vm1923_vm15, %v1892_v0  ;;  %v3742_v18 = vld [vmem:[#allocation3 + $0x18] sm:$0xff] }
 0x264   : > { %2109 = vst.msk [vmem:[#allocation3 + $0x40] sm:$0xff] %vm2100_vm2, %v5635_v9  ;;  %4739 = vmatmul.mubr.msk.bf16.gmra.mrb[4].mxu0 %vm3798_vm9, %v3742_v18 }
 0x265   : > { %2542 = vst.msk [vmem:[#allocation3 + $0x40] sm:$0xff] %vm2533_vm1, %v5647_v22  ;;  %v2083_v36 = vpop.permute.xlu1 %2082  ;;  %v1596_v22 = vpop.permute.xlu0 %1595 }
 0x266   : > { %2831 = vst.msk [vmem:[#allocation3 + $0x40] sm:$0xff] %vm2822_vm3, %v5674_v2 }
 0x267   : > { %2116 = vst.msk [vmem:[#allocation3 + $0x78] sm:$0xff] %vm2100_vm2, %v2083_v36 }
 0x268   : > { %3009 = vst.msk [vmem:[#allocation3 + $0x40] sm:$0xff] %vm3000_vm4, %v5661_v37 }
 0x269   : > { %3442 = vst.msk [vmem:[#allocation3 + $0x40] sm:$0xff] %vm3433_vm5, %v5690_v53  ;;  %v2805_v9 = vpop.permute.xlu1 %2804  ;;  %v3408_v37 = vpop.permute.xlu0 %3407  ;;  %v3743_v53 = vld [vmem:[#allocation3 + $0x20] sm:$0xff] }
 0x26a   : > { %3731 = vst.msk [vmem:[#allocation3 + $0x40] sm:$0xff] %vm3722_vm8, %v5666_v49  ;;  %4742 = vmatprep.mubr.msk.bf16.mxu0 %vm3798_vm9, %v3743_v53  ;;  %v3748_v49 = vld [vmem:[#allocation3 + $0x48] sm:$0xff] }
 0x26b   : > { %1639 = vst.msk [vmem:[#allocation3 + $0x28] sm:$0xff] %vm1633_vm10, %v1596_v22 }
 0x26c   : > { %1929 = vst.msk [vmem:[#allocation3 + $0x28] sm:$0xff] %vm1923_vm15, %v1886_v26 }
 0x26d   : > { %v6035_v2 = vpop.permute.xlu1 %2499  ;;  %3445 = vst.msk [vmem:[#allocation3 + $0x58] sm:$0xff] %vm3433_vm5, %v3408_v37  ;;  %v1612_v43 = vpop.permute.xlu0 %1611 }
 0x26e   : > { %3734 = vst.msk [vmem:[#allocation3 + $0x58] sm:$0xff] %vm3722_vm8, %v5825_v40 }
 0x26f   : > { %1647 = vst.msk [vmem:[#allocation3 + $0x68] sm:$0xff] %vm1633_vm10, %v1612_v43 }
 0x270   : > { %1937 = vst.msk [vmem:[#allocation3 + $0x68] sm:$0xff] %vm1923_vm15, %v1902_v10 }
 0x271   : > { %v3747_v24 = vld [vmem:[#allocation3 + $0x40] sm:$0xff]  ;;  %v3398_v17 = vpop.permute.xlu1 %3397  ;;  %v2063_v40 = vpop.permute.xlu0 %2062 }
 0x272   : > { %4750 = vmatprep.mubr.msk.bf16.mxu1 %vm3798_vm9, %v3747_v24  ;;  %2106 = vst.msk [vmem:[#allocation3 + $0x28] sm:$0xff] %vm2100_vm2, %v2063_v40 }
 0x273   : > { %4751 = vmatmul.mubr.msk.bf16.vlgmr.msra.gmra.mrb[0].mxu1 %vm3798_vm9, %v3748_v49  ;;  %2539 = vst.msk [vmem:[#allocation3 + $0x28] sm:$0xff] %vm2533_vm1, %v5914_v31 }
 0x274   : > { %4754 = vmatprep.mubr.msk.bf16.mxu1 %vm3798_vm9, %v3749_v39 }
 0x275   : > { %v2516_v12 = vpop.permute.xlu1 %2515  ;;  %v3750_v46 = vld [vmem:[#allocation3 + $0x58] sm:$0xff]  ;;  %v2079_v1 = vpop.permute.xlu0 %2078 }
 0x276   : > { %2549 = vst.msk [vmem:[#allocation3 + $0x78] sm:$0xff] %vm2533_vm1, %v2516_v12 }
 0x277   : > { %2838 = vst.msk [vmem:[#allocation3 + $0x78] sm:$0xff] %vm2822_vm3, %v2805_v9 }
 0x278   : > { %2114 = vst.msk [vmem:[#allocation3 + $0x68] sm:$0xff] %vm2100_vm2, %v2079_v1 }
 0x279   : > { %v2977_v32 = vpop.permute.xlu0 %2976 }
 0x27a   : > { %3013 = vst.msk [vmem:[#allocation3 + $0x60] sm:$0xff] %vm3000_vm4, %v2977_v32 }
 0x27b   : > { %4755 = vmatmul.mubr.msk.bf16.gmra.mrb[4].mxu1 %vm3798_vm9, %v3750_v46 }
 0x27d   : > { %v2785_v8 = vpop.permute.xlu0 %2784 }
 0x27e   : > { %2828 = vst.msk [vmem:[#allocation3 + $0x28] sm:$0xff] %vm2822_vm3, %v2785_v8 }
 0x281   : > { %v3699_v47 = vpop.permute.xlu0 %3698 }
 0x285   : > { %v1904_v51 = vpop.permute.xlu0 %1903 }
 0x286   : > { %1938 = vst.msk [vmem:[#allocation3 + $0x70] sm:$0xff] %vm1923_vm15, %v1904_v51 }
 0x289   : > { %v1598_v4 = vpop.permute.xlu0 %1597 }
 0x28a   : > { %1640 = vst.msk [vmem:[#allocation3 + $0x30] sm:$0xff] %vm1633_vm10, %v1598_v4 }
 0x28b   : > { %1930 = vst.msk [vmem:[#allocation3 + $0x30] sm:$0xff] %vm1923_vm15, %v5890_v33 }
 0x28c   : > { %2107 = vst.msk [vmem:[#allocation3 + $0x30] sm:$0xff] %vm2100_vm2, %v5946_v20  ;;  %v2983_v20 = vpop.permute.xlu1 %2982 }
 0x28d   : > { %v2512_v31 = vpop.permute.xlu0 %2511  ;;  %2540 = vst.msk [vmem:[#allocation3 + $0x30] sm:$0xff] %vm2533_vm1, %v5969_v60 }
 0x28e   : > { %2547 = vst.msk [vmem:[#allocation3 + $0x68] sm:$0xff] %vm2533_vm1, %v2512_v31 }
 0x28f   : > { %2836 = vst.msk [vmem:[#allocation3 + $0x68] sm:$0xff] %vm2822_vm3, %v5900_v38 }
 0x290   : > { %3014 = vst.msk [vmem:[#allocation3 + $0x68] sm:$0xff] %vm3000_vm4, %v5956_v19  ;;  %3016 = vst.msk [vmem:[#allocation3 + $0x78] sm:$0xff] %vm3000_vm4, %v2983_v20 }
 0x291   : > { %v3410_v45 = vpop.permute.xlu0 %3409  ;;  %3447 = vst.msk [vmem:[#allocation3 + $0x68] sm:$0xff] %vm3433_vm5, %v5982_v42 }
 0x292   : > { %3446 = vst.msk [vmem:[#allocation3 + $0x60] sm:$0xff] %vm3433_vm5, %v3410_v45 }
 0x293   : > { %3735 = vst.msk [vmem:[#allocation3 + $0x60] sm:$0xff] %vm3722_vm8, %v3699_v47 }
 0x295   : > { %v2963_v33 = vpop.permute.xlu0 %2962 }
 0x296   : > { %3006 = vst.msk [vmem:[#allocation3 + $0x28] sm:$0xff] %vm3000_vm4, %v2963_v33 }
 0x299   : > { %v2081_v60 = vpop.permute.xlu0 %2080  ;;  %v3416_v58 = vpop.permute.xlu1 %3415 }
 0x29a   : > { %2115 = vst.msk [vmem:[#allocation3 + $0x70] sm:$0xff] %vm2100_vm2, %v2081_v60  ;;  %v3751_v38 = vld [vmem:[#allocation3 + $0x60] sm:$0xff] }
 0x29b   : > { %4758 = vmatprep.mubr.msk.bf16.mxu1 %vm3798_vm9, %v3751_v38  ;;  %3449 = vst.msk [vmem:[#allocation3 + $0x78] sm:$0xff] %vm3433_vm5, %v3416_v58 }
 0x29d   : > { %v1890_v19 = vpop.permute.xlu0 %1889  ;;  %v3705_v6 = vpop.permute.xlu1 %3704 }
 0x29e   : > { %3738 = vst.msk [vmem:[#allocation3 + $0x78] sm:$0xff] %vm3722_vm8, %v3705_v6 }
 0x2a1   : > { %v2787_v57 = vpop.permute.xlu0 %2786 }
 0x2a2   : > { %2829 = vst.msk [vmem:[#allocation3 + $0x30] sm:$0xff] %vm2822_vm3, %v2787_v57 }
 0x2a3   : > { %3007 = vst.msk [vmem:[#allocation3 + $0x30] sm:$0xff] %vm3000_vm4, %v5999_v23 }
 0x2a4   : > { %3440 = vst.msk [vmem:[#allocation3 + $0x30] sm:$0xff] %vm3433_vm5, %v3398_v17 }
 0x2a5   : > { %3729 = vst.msk [vmem:[#allocation3 + $0x30] sm:$0xff] %vm3722_vm8, %v6006_v59  ;;  %v3701_v5 = vpop.permute.xlu0 %3700 }
 0x2a6   : > { %3736 = vst.msk [vmem:[#allocation3 + $0x68] sm:$0xff] %vm3722_vm8, %v3701_v5 }
 0x2a9   : > { %v3396_v3 = vpop.permute.xlu0 %3395 }
 0x2aa   : > { %3439 = vst.msk [vmem:[#allocation3 + $0x28] sm:$0xff] %vm3433_vm5, %v3396_v3 }
 0x2ab   : > { %3728 = vst.msk [vmem:[#allocation3 + $0x28] sm:$0xff] %vm3722_vm8, %v5961_v28 }
 0x2ac   : > { %v3745_v21 = vld [vmem:[#allocation3 + $0x30] sm:$0xff] }
 0x2ad   : > { %v1600_v50 = vpop.permute.xlu0 %1599  ;;  %v3752_v42 = vld [vmem:[#allocation3 + $0x68] sm:$0xff] }
 0x2ae   : > { %1641 = vst.msk [vmem:[#allocation3 + $0x38] sm:$0xff] %vm1633_vm10, %v1600_v50  ;;  %4759 = vmatmul.mubr.msk.bf16.gmra.mrb[8].mxu1 %vm3798_vm9, %v3752_v42 }
 0x2af   : > { %1931 = vst.msk [vmem:[#allocation3 + $0x38] sm:$0xff] %vm1923_vm15, %v1890_v19 }
 0x2b1   : > { %v2067_v13 = vpop.permute.xlu0 %2066 }
 0x2b2   : > { %2108 = vst.msk [vmem:[#allocation3 + $0x38] sm:$0xff] %vm2100_vm2, %v2067_v13  ;;  %v3744_v54 = vld [vmem:[#allocation3 + $0x28] sm:$0xff] }
 0x2b3   : > { %2541 = vst.msk [vmem:[#allocation3 + $0x38] sm:$0xff] %vm2533_vm1, %v6035_v2  ;;  %4743 = vmatmul.mubr.msk.bf16.gmra.mrb[8].mxu0 %vm3798_vm9, %v3744_v54 }
 0x2b4   : > { %4746 = vmatprep.mubr.msk.bf16.mxu0 %vm3798_vm9, %v3745_v21 }
 0x2b5   : > { %v2789_v28 = vpop.permute.xlu0 %2788 }
 0x2b6   : > { %2830 = vst.msk [vmem:[#allocation3 + $0x38] sm:$0xff] %vm2822_vm3, %v2789_v28 }
 0x2b7   : > { %3008 = vst.msk [vmem:[#allocation3 + $0x38] sm:$0xff] %vm3000_vm4, %v5630_v62 }
 0x2b8   : > { %3441 = vst.msk [vmem:[#allocation3 + $0x38] sm:$0xff] %vm3433_vm5, %v5716_v7  ;;  %v3754_v7 = vld [vmem:[#allocation3 + $0x78] sm:$0xff] }
 0x2b9   : > { %3730 = vst.msk [vmem:[#allocation3 + $0x38] sm:$0xff] %vm3722_vm8, %v5683_v30  ;;  %v2514_v63 = vpop.permute.xlu0 %2513 }
 0x2ba   : > { %2548 = vst.msk [vmem:[#allocation3 + $0x70] sm:$0xff] %vm2533_vm1, %v2514_v63 }
 0x2bd   : > { %v2803_v61 = vpop.permute.xlu0 %2802 }
 0x2be   : > { %2837 = vst.msk [vmem:[#allocation3 + $0x70] sm:$0xff] %vm2822_vm3, %v2803_v61 }
 0x2c0   : > { %v3746_v44 = vld [vmem:[#allocation3 + $0x38] sm:$0xff] }
 0x2c1   : > { %v2981_v15 = vpop.permute.xlu0 %2980  ;;  %4747 = vmatmul.mubr.msk.bf16.gmra.mrb[12].mxu0 %vm3798_vm9, %v3746_v44 }
 0x2c2   : > { %3015 = vst.msk [vmem:[#allocation3 + $0x70] sm:$0xff] %vm3000_vm4, %v2981_v15 }
 0x2c5   : > { %v3414_v16 = vpop.permute.xlu0 %3413 }
 0x2c6   : > { %3448 = vst.msk [vmem:[#allocation3 + $0x70] sm:$0xff] %vm3433_vm5, %v3414_v16 }
 0x2c9   : > { %v3703_v62 = vpop.permute.xlu0 %3702 }
 0x2ca   : > { %3737 = vst.msk [vmem:[#allocation3 + $0x70] sm:$0xff] %vm3722_vm8, %v3703_v62 }
 0x2d1   : > { %v3753_v30 = vld [vmem:[#allocation3 + $0x70] sm:$0xff] }
 0x2d2   : > { %4762 = vmatprep.mubr.msk.bf16.mxu1 %vm3798_vm9, %v3753_v30 }
 0x2d3   : > { %4763 = vmatmul.mubr.msk.bf16.gmra.mrb[12].mxu1 %vm3798_vm9, %v3754_v7 }
 0x2f3   : > { %v4736_v41 = vpop.f32.mrb[0].mxu0 }
 0x2f4   : > { %v3885_v48 = vpop.f32.mrb[1].mxu0  ;;  %v6118_v11 = vadd.f32 %v4736_v41, %v6115_v27 }
 0x2f5   : > { %v3886_v23 = vadd.f32 %v6115_v27, %v3885_v48  ;;  %v4737_v52 = vpop.f32.mrb[2].mxu0 }
 0x2f6   : > { %v3888_v25 = vpop.f32.mrb[3].mxu0  ;;  %v6122_v56 = vadd.f32 %v4737_v52, %v6115_v27  ;;  %v4084_v26 = vmul.f32 %v6118_v11, %v6118_v11  ;;  %v4015_v10 = vsel %vm1199_vm6, %v6118_v11, 0.0 }
 0x2f7   : > { %v4082_v29 = vmul.f32 %v3886_v23, %v3886_v23  ;;  %v6125_v0 = vadd.f32 %v6115_v27, %v3888_v25  ;;  %v4012_v14 = vsel %vm1199_vm6, %v3886_v23, 0.0 }
 0x2f8   : > { %v4085_v55 = vmul.f32 %v6122_v56, %v6122_v56  ;;  %v4117_v37 = vsel %vm1199_vm6, %v4084_v26, 0.0  ;;  %v4017_v18 = vsel %vm1199_vm6, %v6122_v56, 0.0 }
 0x2f9   : > { %v4013_v59 = vsel %vm1199_vm6, %v6125_v0, 0.0  ;;  %v4083_v34 = vmul.f32 %v6125_v0, %v6125_v0  ;;  %v4114_v36 = vsel %vm1199_vm6, %v4082_v29, 0.0 }
 0x2fa   : > { %v4014_v35 = vadd.f32 %v4013_v59, %v4012_v14  ;;  %v4119_v49 = vsel %vm1199_vm6, %v4085_v55, 0.0 }
 0x2fb   : > { %v4115_v9 = vsel %vm1199_vm6, %v4083_v34, 0.0 }
 0x2fc   : > { %v4016_v22 = vadd.f32 %v4015_v10, %v4014_v35  ;;  %v4116_v2 = vadd.f32 %v4115_v9, %v4114_v36 }
 0x2fe   : > { %v4118_v53 = vadd.f32 %v4117_v37, %v4116_v2  ;;  %v4018_v24 = vadd.f32 %v4017_v18, %v4016_v22 }
 0x300   : > { %v4120_v17 = vadd.f32 %v4119_v49, %v4118_v53 }
 0x337   : > { %v4740_v39 = vpop.f32.mrb[4].mxu0 }
 0x338   : > { %v3901_v43 = vpop.f32.mrb[5].mxu0  ;;  %v3910_v40 = vadd.f32 %v4740_v39, %v6115_v27 }
 0x339   : > { %v3902_v12 = vadd.f32 %v6115_v27, %v3901_v43  ;;  %v4741_v46 = vpop.f32.mrb[6].mxu0 }
 0x33a   : > { %v3904_v8 = vpop.f32.mrb[7].mxu0  ;;  %v4088_v38 = vmul.f32 %v3910_v40, %v3910_v40  ;;  %v3913_v5 = vadd.f32 %v4741_v46, %v6115_v27  ;;  %v4023_v50 = vsel %vm1199_vm6, %v3910_v40, 0.0 }
 0x33b   : > { %v4019_v51 = vsel %vm1199_vm6, %v3902_v12, 0.0  ;;  %v4086_v4 = vmul.f32 %v3902_v12, %v3902_v12  ;;  %v3905_v31 = vadd.f32 %v6115_v27, %v3904_v8 }
 0x33c   : > { %v4020_v33 = vadd.f32 %v4019_v51, %v4018_v24  ;;  %v4125_v15 = vsel %vm1199_vm6, %v4088_v38, 0.0  ;;  %v4025_v16 = vsel %vm1199_vm6, %v3913_v5, 0.0  ;;  %v4089_v30 = vmul.f32 %v3913_v5, %v3913_v5 }
 0x33d   : > { %v4121_v19 = vsel %vm1199_vm6, %v4086_v4, 0.0  ;;  %v4021_v6 = vsel %vm1199_vm6, %v3905_v31, 0.0  ;;  %v4087_v3 = vmul.f32 %v3905_v31, %v3905_v31 }
 0x33e   : > { %v4122_v58 = vadd.f32 %v4121_v19, %v4120_v17  ;;  %v4022_v42 = vadd.f32 %v4021_v6, %v4020_v33  ;;  %v4127_v59 = vsel %vm1199_vm6, %v4089_v30, 0.0 }
 0x33f   : > { %v4123_v13 = vsel %vm1199_vm6, %v4087_v3, 0.0 }
 0x340   : > { %v4024_v63 = vadd.f32 %v4023_v50, %v4022_v42  ;;  %v4124_v61 = vadd.f32 %v4123_v13, %v4122_v58 }
 0x342   : > { %v4126_v41 = vadd.f32 %v4125_v15, %v4124_v61  ;;  %v4026_v26 = vadd.f32 %v4025_v16, %v4024_v63 }
 0x344   : > { %v4128_v35 = vadd.f32 %v4127_v59, %v4126_v41 }
 0x346   : > { %v4752_v1 = vpop.f32.mrb[0].mxu1 }
 0x347   : > { %v6147_v32 = vadd.f32 %v4752_v1, %v6115_v27  ;;  %v3949_v47 = vpop.f32.mrb[1].mxu1 }
 0x348   : > { %v4753_v45 = vpop.f32.mrb[2].mxu1  ;;  %v6152_v20 = vadd.f32 %v6115_v27, %v3949_v47 }
 0x349   : > { %v3952_v60 = vpop.f32.mrb[3].mxu1  ;;  %v4883_v57 = vpack.i.bf16 %v6147_v32, %v6118_v11  ;;  %v6163_v21 = vadd.f32 %v4753_v45, %v6115_v27 }
 0x34a   : > { %v4879_v54 = vpack.i.bf16 %v6152_v20, %v3886_v23  ;;  %v6166_v28 = vadd.f32 %v6115_v27, %v3952_v60 }
 0x34b   : > { %v4885_v62 = vpack.i.bf16 %v6163_v21, %v6122_v56 }
 0x34c   : > { %4880 = vxpose.xlu0.b32.start [1/16] (narrow) %v4879_v54, 8  ;;  %v4881_v48 = vpack.i.bf16 %v6166_v28, %v6125_v0 }
 0x34e   : > { %v4756_v44 = vpop.f32.mrb[4].mxu1 }
 0x34f   : > { %v3965_v7 = vpop.f32.mrb[5].mxu1  ;;  %v6175_v11 = vadd.f32 %v4756_v44, %v6115_v27 }
 0x350   : > { %v4757_v23 = vpop.f32.mrb[6].mxu1  ;;  %v6178_v52 = vadd.f32 %v6115_v27, %v3965_v7  ;;  %4882 = vxpose.xlu0.b32.cont [2/16] (narrow) %v4881_v48, 8 }
 0x351   : > { %v6181_v25 = vadd.f32 %v4757_v23, %v6115_v27  ;;  %v3968_v29 = vpop.f32.mrb[7].mxu1  ;;  %v4891_v56 = vpack.i.bf16 %v6175_v11, %v3910_v40 }
 0x352   : > { %v4887_v14 = vpack.i.bf16 %v6178_v52, %v3902_v12  ;;  %v6188_v34 = vadd.f32 %v6115_v27, %v3968_v29 }
 0x353   : > { %v4893_v0 = vpack.i.bf16 %v6181_v25, %v3913_v5 }
 0x354   : > { %v4889_v10 = vpack.i.bf16 %v6188_v34, %v3905_v31  ;;  %4884 = vxpose.xlu0.b32.cont [3/16] (narrow) %v4883_v57, 8 }
 0x358   : > { %4886 = vxpose.xlu0.b32.cont [4/16] (narrow) %v4885_v62, 8 }
 0x35c   : > { %4888 = vxpose.xlu0.b32.cont [5/16] (narrow) %v4887_v14, 8 }
 0x360   : > { %4890 = vxpose.xlu0.b32.cont [6/16] (narrow) %v4889_v10, 8 }
 0x364   : > { %4892 = vxpose.xlu0.b32.cont [7/16] (narrow) %v4891_v56, 8 }
 0x368   : > { %4894 = vxpose.xlu0.b32.cont [8/16] (narrow) %v4893_v0, 8 }
 0x381   : > { %v4760_v36 = vpop.f32.mrb[8].mxu1 }
 0x382   : > { %v3981_v55 = vpop.f32.mrb[9].mxu1  ;;  %v6192_v37 = vadd.f32 %v4760_v36, %v6115_v27 }
 0x383   : > { %v4761_v9 = vpop.f32.mrb[10].mxu1  ;;  %v6196_v24 = vadd.f32 %v6115_v27, %v3981_v55 }
 0x384   : > { %v3984_v22 = vpop.f32.mrb[11].mxu1  ;;  %v6200_v39 = vadd.f32 %v4761_v9, %v6115_v27 }
 0x385   : > { %v6207_v47 = vadd.f32 %v6115_v27, %v3984_v22 }
 0x386   : > { %v4744_v2 = vpop.f32.mrb[8].mxu0 }
 0x387   : > { %v3926_v18 = vadd.f32 %v4744_v2, %v6115_v27  ;;  %v3917_v53 = vpop.f32.mrb[9].mxu0 }
 0x388   : > { %v3918_v49 = vadd.f32 %v6115_v27, %v3917_v53  ;;  %v4745_v17 = vpop.f32.mrb[10].mxu0 }
 0x389   : > { %v4899_v43 = vpack.i.bf16 %v6192_v37, %v3926_v18  ;;  %v3920_v40 = vpop.f32.mrb[11].mxu0  ;;  %v3929_v8 = vadd.f32 %v4745_v17, %v6115_v27  ;;  %v4092_v31 = vmul.f32 %v3926_v18, %v3926_v18  ;;  %v4031_v5 = vsel %vm1199_vm6, %v3926_v18, 0.0 }
 0x38a   : > { %v4895_v12 = vpack.i.bf16 %v6196_v24, %v3918_v49  ;;  %v4027_v46 = vsel %vm1199_vm6, %v3918_v49, 0.0  ;;  %v4090_v1 = vmul.f32 %v3918_v49, %v3918_v49  ;;  %v3921_v4 = vadd.f32 %v6115_v27, %v3920_v40 }
 0x38b   : > { %v4028_v51 = vadd.f32 %v4027_v46, %v4026_v26  ;;  %v4901_v33 = vpack.i.bf16 %v6200_v39, %v3929_v8  ;;  %v4093_v6 = vmul.f32 %v3929_v8, %v3929_v8  ;;  %v4133_v13 = vsel %vm1199_vm6, %v4092_v31, 0.0 }
 0x38c   : > { %v4129_v45 = vsel %vm1199_vm6, %v4090_v1, 0.0  ;;  %4896 = vxpose.xlu0.b32.cont [9/16] (narrow) %v4895_v12, 8  ;;  %v4897_v38 = vpack.i.bf16 %v6207_v47, %v3921_v4  ;;  %v4029_v19 = vsel %vm1199_vm6, %v3921_v4, 0.0  ;;  %v4091_v57 = vmul.f32 %v3921_v4, %v3921_v4 }
 0x38d   : > { %v4130_v60 = vadd.f32 %v4129_v45, %v4128_v35  ;;  %v4030_v58 = vadd.f32 %v4029_v19, %v4028_v51  ;;  %v4033_v54 = vsel %vm1199_vm6, %v3929_v8, 0.0  ;;  %v4135_v44 = vsel %vm1199_vm6, %v4093_v6, 0.0 }
 0x38e   : > { %v4131_v3 = vsel %vm1199_vm6, %v4091_v57, 0.0  ;;  %v4098_v49 = vmul.f32 %v6152_v20, %v6152_v20  ;;  %v4043_v46 = vsel %vm1199_vm6, %v6152_v20, 0.0  ;;  %v4099_v1 = vmul.f32 %v6166_v28, %v6166_v28 }
 0x38f   : > { %v4032_v50 = vadd.f32 %v4031_v5, %v4030_v58  ;;  %v4132_v42 = vadd.f32 %v4131_v3, %v4130_v60  ;;  %v4100_v31 = vmul.f32 %v6147_v32, %v6147_v32  ;;  %v4047_v20 = vsel %vm1199_vm6, %v6147_v32, 0.0 }
 0x390   : > { %4898 = vxpose.xlu0.b32.cont [10/16] (narrow) %v4897_v38, 8  ;;  %v4145_v45 = vsel %vm1199_vm6, %v4098_v49, 0.0  ;;  %v4101_v19 = vmul.f32 %v6163_v21, %v6163_v21  ;;  %v4147_v57 = vsel %vm1199_vm6, %v4099_v1, 0.0  ;;  %v4049_v3 = vsel %vm1199_vm6, %v6163_v21, 0.0 }
 0x391   : > { %v4134_v63 = vadd.f32 %v4133_v13, %v4132_v42  ;;  %v4034_v61 = vadd.f32 %v4033_v54, %v4032_v50  ;;  %v4149_v6 = vsel %vm1199_vm6, %v4100_v31, 0.0 }
 0x393   : > { %v4136_v16 = vadd.f32 %v4135_v44, %v4134_v63  ;;  %v4151_v63 = vsel %vm1199_vm6, %v4101_v19, 0.0  ;;  %v4103_v44 = vmul.f32 %v6188_v34, %v6188_v34 }
 0x394   : > { %v4748_v15 = vpop.f32.mrb[12].mxu0  ;;  %4900 = vxpose.xlu0.b32.cont [11/16] (narrow) %v4899_v43, 8 }
 0x395   : > { %v3933_v62 = vpop.f32.mrb[13].mxu0  ;;  %v6220_v7 = vadd.f32 %v4748_v15, %v6115_v27 }
 0x396   : > { %v6223_v30 = vadd.f32 %v6115_v27, %v3933_v62  ;;  %v4749_v41 = vpop.f32.mrb[14].mxu0 }
 0x397   : > { %v3936_v48 = vpop.f32.mrb[15].mxu0  ;;  %v6230_v26 = vadd.f32 %v4749_v41, %v6115_v27  ;;  %v4096_v59 = vmul.f32 %v6220_v7, %v6220_v7  ;;  %v4039_v9 = vsel %vm1199_vm6, %v6220_v7, 0.0 }
 0x398   : > { %v4035_v23 = vsel %vm1199_vm6, %v6223_v30, 0.0  ;;  %v4094_v29 = vmul.f32 %v6223_v30, %v6223_v30  ;;  %v6233_v56 = vadd.f32 %v6115_v27, %v3936_v48  ;;  %4902 = vxpose.xlu0.b32.cont [12/16] (narrow) %v4901_v33, 8  ;;  %v4045_v33 = vsel %vm1199_vm6, %v6166_v28, 0.0 }
 0x399   : > { %v4036_v14 = vadd.f32 %v4035_v23, %v4034_v61  ;;  %v4097_v22 = vmul.f32 %v6230_v26, %v6230_v26  ;;  %v4141_v17 = vsel %vm1199_vm6, %v4096_v59, 0.0  ;;  %v4041_v43 = vsel %vm1199_vm6, %v6230_v26, 0.0 }
 0x39a   : > { %v4137_v0 = vsel %vm1199_vm6, %v4094_v29, 0.0  ;;  %v4037_v35 = vsel %vm1199_vm6, %v6233_v56, 0.0  ;;  %v4095_v10 = vmul.f32 %v6233_v56, %v6233_v56  ;;  %v4102_v28 = vmul.f32 %v6178_v52, %v6178_v52 }
 0x39b   : > { %v4138_v36 = vadd.f32 %v4137_v0, %v4136_v16  ;;  %v4038_v55 = vadd.f32 %v4037_v35, %v4036_v14  ;;  %v4143_v8 = vsel %vm1199_vm6, %v4097_v22, 0.0  ;;  %v4051_v61 = vsel %vm1199_vm6, %v6178_v52, 0.0 }
 0x39c   : > { %v4139_v2 = vsel %vm1199_vm6, %v4095_v10, 0.0  ;;  %v4104_v16 = vmul.f32 %v6175_v11, %v6175_v11  ;;  %v4153_v23 = vsel %vm1199_vm6, %v4102_v28, 0.0  ;;  %v4053_v29 = vsel %vm1199_vm6, %v6188_v34, 0.0 }
 0x39d   : > { %v4040_v18 = vadd.f32 %v4039_v9, %v4038_v55  ;;  %v4140_v53 = vadd.f32 %v4139_v2, %v4138_v36  ;;  %v4055_v10 = vsel %vm1199_vm6, %v6175_v11, 0.0  ;;  %v4105_v36 = vmul.f32 %v6181_v25, %v6181_v25 }
 0x39e   : > { %v4155_v55 = vsel %vm1199_vm6, %v4103_v44, 0.0  ;;  %v4057_v34 = vsel %vm1199_vm6, %v6181_v25, 0.0  ;;  %v4157_v22 = vsel %vm1199_vm6, %v4104_v16, 0.0  ;;  %v4106_v2 = vmul.f32 %v6196_v24, %v6196_v24 }
 0x39f   : > { %v4042_v40 = vadd.f32 %v4041_v43, %v4040_v18  ;;  %v4142_v12 = vadd.f32 %v4141_v17, %v4140_v53  ;;  %v4159_v17 = vsel %vm1199_vm6, %v4105_v36, 0.0  ;;  %v4107_v25 = vmul.f32 %v6207_v47, %v6207_v47 }
 0x3a1   : > { %v4044_v51 = vadd.f32 %v4043_v46, %v4042_v40  ;;  %v4144_v4 = vadd.f32 %v4143_v8, %v4142_v12  ;;  %v4108_v12 = vmul.f32 %v6192_v37, %v6192_v37  ;;  %v4063_v8 = vsel %vm1199_vm6, %v6192_v37, 0.0 }
 0x3a3   : > { %v4046_v60 = vadd.f32 %v4045_v33, %v4044_v51  ;;  %v4146_v38 = vadd.f32 %v4145_v45, %v4144_v4  ;;  %v4163_v51 = vsel %vm1199_vm6, %v4107_v25, 0.0  ;;  %v4165_v45 = vsel %vm1199_vm6, %v4108_v12, 0.0 }
 0x3a4   : > { %v4065_v33 = vsel %vm1199_vm6, %v6200_v39, 0.0 }
 0x3a5   : > { %v4048_v58 = vadd.f32 %v4047_v20, %v4046_v60  ;;  %v4148_v5 = vadd.f32 %v4147_v57, %v4146_v38 }
 0x3a6   : > { %v4764_v50 = vpop.f32.mrb[12].mxu1 }
 0x3a7   : > { %v4050_v42 = vadd.f32 %v4049_v3, %v4048_v58  ;;  %v4150_v13 = vadd.f32 %v4149_v6, %v4148_v5  ;;  %v6273_v32 = vadd.f32 %v4764_v50, %v6115_v27  ;;  %v3997_v54 = vpop.f32.mrb[13].mxu1 }
 0x3a8   : > { %v3998_v21 = vadd.f32 %v6115_v27, %v3997_v54  ;;  %v4765_v15 = vpop.f32.mrb[14].mxu1 }
 0x3a9   : > { %v4052_v62 = vadd.f32 %v4051_v61, %v4050_v42  ;;  %v4152_v41 = vadd.f32 %v4151_v63, %v4150_v13  ;;  %v4000_v48 = vpop.f32.mrb[15].mxu1  ;;  %v4907_v52 = vpack.i.bf16 %v6273_v32, %v6220_v7  ;;  %v4009_v35 = vadd.f32 %v4765_v15, %v6115_v27 }
 0x3aa   : > { %v4903_v14 = vpack.i.bf16 %v3998_v21, %v6223_v30  ;;  %v4001_v9 = vadd.f32 %v6115_v27, %v4000_v48  ;;  %v4059_v27 = vsel %vm1199_vm6, %v6196_v24, 0.0  ;;  %v4109_v24 = vmul.f32 %v6200_v39, %v6200_v39 }
 0x3ab   : > { %v4154_v59 = vadd.f32 %v4153_v23, %v4152_v41  ;;  %v4054_v0 = vadd.f32 %v4053_v29, %v4052_v62  ;;  %v4909_v11 = vpack.i.bf16 %v4009_v35, %v6230_v26  ;;  %v4161_v26 = vsel %vm1199_vm6, %v4106_v2, 0.0 }
 0x3ac   : > { %4904 = vxpose.xlu0.b32.cont [13/16] (narrow) %v4903_v14, 8  ;;  %v4905_v18 = vpack.i.bf16 %v4001_v9, %v6233_v56  ;;  %v4061_v56 = vsel %vm1199_vm6, %v6207_v47, 0.0  ;;  %v4110_v60 = vmul.f32 %v3998_v21, %v3998_v21  ;;  %v4167_v20 = vsel %vm1199_vm6, %v4109_v24, 0.0 }
 0x3ad   : > { %v4056_v7 = vadd.f32 %v4055_v10, %v4054_v0  ;;  %v4156_v30 = vadd.f32 %v4155_v55, %v4154_v59  ;;  %v4067_v37 = vsel %vm1199_vm6, %v3998_v21, 0.0  ;;  %v4111_v19 = vmul.f32 %v4001_v9, %v4001_v9 }
 0x3ae   : > { %v4112_v5 = vmul.f32 %v6273_v32, %v6273_v32  ;;  %v4169_v6 = vsel %vm1199_vm6, %v4110_v60, 0.0  ;;  %v4069_v3 = vsel %vm1199_vm6, %v4001_v9, 0.0  ;;  %v4071_v50 = vsel %vm1199_vm6, %v6273_v32, 0.0 }
 0x3af   : > { %v4058_v53 = vadd.f32 %v4057_v34, %v4056_v7  ;;  %v4158_v49 = vadd.f32 %v4157_v22, %v4156_v30  ;;  %v4113_v42 = vmul.f32 %v4009_v35, %v4009_v35  ;;  %v4171_v13 = vsel %vm1199_vm6, %v4111_v19, 0.0 }
 0x3b0   : > { %4906 = vxpose.xlu0.b32.cont [14/16] (narrow) %v4905_v18, 8  ;;  %v4173_v61 = vsel %vm1199_vm6, %v4112_v5, 0.0  ;;  %v4073_v44 = vsel %vm1199_vm6, %v4009_v35, 0.0 }
 0x3b1   : > { %v4060_v43 = vadd.f32 %v4059_v27, %v4058_v53  ;;  %v4160_v40 = vadd.f32 %v4159_v17, %v4158_v49  ;;  %v4175_v16 = vsel %vm1199_vm6, %v4113_v42, 0.0 }
 0x3b3   : > { %v4062_v46 = vadd.f32 %v4061_v56, %v4060_v43  ;;  %v4162_v1 = vadd.f32 %v4161_v26, %v4160_v40 }
 0x3b4   : > { %4908 = vxpose.xlu0.b32.cont [15/16] (narrow) %v4907_v52, 8 }
 0x3b5   : > { %v4064_v4 = vadd.f32 %v4063_v8, %v4062_v46  ;;  %v4164_v31 = vadd.f32 %v4163_v51, %v4162_v1 }
 0x3b7   : > { %v4066_v47 = vadd.f32 %v4065_v33, %v4064_v4  ;;  %v4166_v38 = vadd.f32 %v4165_v45, %v4164_v31 }
 0x3b8   : > { %4910 = vxpose.xlu0.b32.end [16/16] (narrow) %v4909_v11, 8 }
 0x3b9   : > { %v4068_v57 = vadd.f32 %v4067_v37, %v4066_v47  ;;  %v4168_v58 = vadd.f32 %v4167_v20, %v4166_v38 }
 0x3bb   : > { %v4170_v28 = vadd.f32 %v4169_v6, %v4168_v58  ;;  %v4070_v39 = vadd.f32 %v4069_v3, %v4068_v57 }
 0x3bd   : > { %v4072_v54 = vadd.f32 %v4071_v50, %v4070_v39  ;;  %v4172_v63 = vadd.f32 %v4171_v13, %v4170_v28 }
 0x3bf   : > { %v4074_v21 = vadd.f32 %v4073_v44, %v4072_v54  ;;  %v4174_v15 = vadd.f32 %v4173_v61, %v4172_v63 }
 0x3c1   : > { %v4075_v62 = vrot.slane %v4074_v21, 4  ;;  %v4176_v41 = vadd.f32 %v4175_v16, %v4174_v15 }
 0x3c3   : > { %v4076_v48 = vadd.f32 %v4075_v62, %v4074_v21  ;;  %v4177_v23 = vrot.slane %v4176_v41, 4 }
 0x3c5   : > { %v4077_v32 = vrot.slane %v4076_v48, 2  ;;  %v4178_v29 = vadd.f32 %v4177_v23, %v4176_v41 }
 0x3c7   : > { %v4078_v52 = vadd.f32 %v4077_v32, %v4076_v48  ;;  %v4179_v14 = vrot.slane %v4178_v29, 2 }
 0x3c9   : > { %v4079_v59 = vrot.slane %v4078_v52, 1  ;;  %v4180_v0 = vadd.f32 %v4179_v14, %v4178_v29 }
 0x3cb   : > { %v4080_v35 = vadd.f32 %v4079_v59, %v4078_v52  ;;  %v4181_v10 = vrot.slane %v4180_v0, 1 }
 0x3cd   : > { %4081 = vst.msk [vmem:[%s320_s19] sm:$0x1] %vm328_vm0, %v4080_v35  ;;  %v4182_v36 = vadd.f32 %v4181_v10, %v4180_v0 }
 0x3cf   : > { %4183 = vst.msk [vmem:[%s323_s22] sm:$0x1] %vm328_vm0, %v4182_v36 }
 0x3fc   : > { %v4911_v55 = vpop.trf.xlu0 }
 0x3fd   : > { %v4915_v9 = vunpack.i.h.bf16 %v4911_v55  ;;  %v4912_v34 = vunpack.i.l.bf16 %v4911_v55 }
 0x3ff   : > { %v4702_v7 = vpack.c.bf16 %v4915_v9, %v4912_v34 }
 0x401   : > { %4256 = vst [vmem:[%s317_s25] sm:$0xff] %v4702_v7 }
 0x402 PF: > { %s20_s29 = sadd.s32 1, %s5167_s29  }
 0x403   : > { %p17_p4 = scmp.ge.s32.totalorder %s20_s29, 4  }
 0x405   :  { %19 = sbr.rel (!%p17_p4) target bundleno = 2 (0x2), region = 101 }

</bundles_post_ra>
